<compile_context>
chip_gen: v5e
topology: v5e:2x2
jax: 0.10.0
libtpu: 0.0.40
codegen_flags: <defaults>
</compile_context>

<pallas_src>
import functools
import math
from typing import NamedTuple, Optional, Tuple

import jax
import jax.numpy as jnp
from jax.experimental import pallas as pl
from jax.experimental.pallas import tpu as pltpu


TM_DEFAULT = 512
TN_DEFAULT = 512
TK_DEFAULT = 512
SEQ_ALIGN = 128          # pad sequence length to a lane-friendly multiple
NEG_INF = -1e9

# VMEM budgeting: keep live blocks comfortably under v7x's 64 MiB physical VMEM while
# raising the scoped limit above the v5e default (16 MiB) so the larger tiles are legal.
VMEM_FUSED_LN_BUDGET = 40 * 1024 * 1024
VMEM_LIMIT_BYTES = 48 * 1024 * 1024


def _round_up(x, m):
    return (x + m - 1) // m * m


def _pick_tile(dim, preferred):
    """Largest 128-granular tile <= preferred that divides dim, else the full dim."""
    if dim <= preferred:
        return dim
    t = (preferred // 128) * 128
    while t >= 128:
        if dim % t == 0:
            return t
        t -= 128
    return dim


def _block_vmem_bytes(tm, tn, tk, x_dtype, w_dtype, out_dtype, res_dtype, use_acc):
    """Rough live-VMEM estimate: double-buffered in/out blocks + f32 accumulator."""
    item = lambda dt: jnp.dtype(dt).itemsize
    total = 2 * tm * tk * item(x_dtype)        # x block (double-buffered)
    total += 2 * tk * tn * item(w_dtype)       # w block
    total += 2 * tm * tn * item(out_dtype)     # out block
    total += 2 * tn * 4 + 4 * tk * 4           # bias + gamma/beta rows
    if res_dtype is not None:
        total += 2 * tm * tn * item(res_dtype)
    if use_acc:
        total += tm * tn * 4
    return total


# ----------------------------------------------------------------------------- kernels

def _fused_linear_kernel(*refs, has_ln, has_res, use_acc, activation, eps):
    """Tiled matmul with optional fused input-LayerNorm, bias, activation, residual."""
    i = 0
    x_ref = refs[i]; i += 1
    w_ref = refs[i]; i += 1
    b_ref = refs[i]; i += 1
    if has_ln:
        g_ref = refs[i]; i += 1
        bt_ref = refs[i]; i += 1
    if has_res:
        r_ref = refs[i]; i += 1
    o_ref = refs[i]; i += 1
    acc_ref = refs[i] if use_acc else None

    x = x_ref[...]
    if has_ln:
        # LN fused into the consuming matmul.  Only used when the full (K, N) weight panel
        # fits VMEM (grid j == k == 1), so this prologue runs exactly once per row block.
        xf = x.astype(jnp.float32)
        mu = jnp.mean(xf, axis=-1, keepdims=True)
        var = jnp.mean(jnp.square(xf - mu), axis=-1, keepdims=True)
        xn = (xf - mu) * jax.lax.rsqrt(var + eps)
        xn = xn * g_ref[...].astype(jnp.float32) + bt_ref[...].astype(jnp.float32)
        x = xn.astype(x_ref.dtype)

    def _epilogue(y):
        y = y + b_ref[...].astype(jnp.float32)
        if activation == "gelu":
            # TODO(synk): PyTorch nn.GELU default is exact erf; tanh approximation used here.
            c = math.sqrt(2.0 / math.pi)
            y = 0.5 * y * (1.0 + jnp.tanh(c * (y + 0.044715 * y * y * y)))
        elif activation == "tanh":
            y = jnp.tanh(y)
        if has_res:
            y = y + r_ref[...].astype(jnp.float32)
        o_ref[...] = y.astype(o_ref.dtype)

    if not use_acc:
        # Single K step: no accumulator scratch, no zero-init / read-modify-write.
        _epilogue(jnp.dot(x, w_ref[...], preferred_element_type=jnp.float32))
    else:
        k = pl.program_id(2)

        @pl.when(k == 0)
        def _():
            acc_ref[...] = jnp.zeros_like(acc_ref)

        acc_ref[...] += jnp.dot(x, w_ref[...], preferred_element_type=jnp.float32)

        @pl.when(k == pl.num_programs(2) - 1)
        def _():
            _epilogue(acc_ref[...])


def _layernorm_kernel(x_ref, g_ref, b_ref, o_ref, *, eps):
    x = x_ref[...].astype(jnp.float32)
    mu = jnp.mean(x, axis=-1, keepdims=True)
    var = jnp.mean(jnp.square(x - mu), axis=-1, keepdims=True)
    y = (x - mu) * jax.lax.rsqrt(var + eps)
    o_ref[...] = (y * g_ref[...].astype(jnp.float32)
                  + b_ref[...].astype(jnp.float32)).astype(o_ref.dtype)


def _attention_kernel(qkv_ref, bias_ref, o_ref, *, heads_per_group):
    """One (batch, head-group) tile per grid step.

    qkv_ref block: (1, 1, 3*hpg, Sp, Dh) — q/k/v for `hpg` heads, each a contiguous
    (Sp, Dh) slab (head selection is done by the BlockSpec index_map, so there is no
    lane-offset slicing here).  Q is pre-scaled by 1/sqrt(Dh) (folded into the QKV
    projection weights).  Per-head outputs are concatenated and written with a single
    lane-dense (Sp, hpg*Dh) store.
    """
    hpg = heads_per_group
    bias = bias_ref[0]                              # (1, Sp) additive key mask (0 / -1e9)
    outs = []
    for h in range(hpg):                            # hpg is small (~ceil(128/Dh))
        q = qkv_ref[0, 0, h]                        # (Sp, Dh)
        k = qkv_ref[0, 0, hpg + h]
        v = qkv_ref[0, 0, 2 * hpg + h]
        # contract last dims directly (no k.T -> no XLU transpose)
        s = jax.lax.dot_general(q, k, (((1,), (1,)), ((), ())),
                                preferred_element_type=jnp.float32)   # (Sp, Sp)
        s = s + bias
        s = s - jnp.max(s, axis=-1, keepdims=True)
        p = jnp.exp(s)
        p = p * pl.reciprocal(jnp.sum(p, axis=-1, keepdims=True), approx=True)
        o = jnp.dot(p.astype(q.dtype), v, preferred_element_type=jnp.float32)
        outs.append(o.astype(o_ref.dtype))
    o_ref[0, 0] = outs[0] if len(outs) == 1 else jnp.concatenate(outs, axis=-1)


# ----------------------------------------------------------------------------- wrappers

def pallas_layernorm(x2d, gamma, beta, *, eps=1e-5, out_dtype=jnp.float32, tm=TM_DEFAULT):
    M, D = x2d.shape
    tm_ = min(tm, _round_up(M, 8))
    Mp = _round_up(M, tm_)
    if Mp != M:
        x2d = jnp.pad(x2d, ((0, Mp - M), (0, 0)))
    out = pl.pallas_call(
        functools.partial(_layernorm_kernel, eps=eps),
        out_shape=jax.ShapeDtypeStruct((Mp, D), out_dtype),
        grid=(Mp // tm_,),
        in_specs=[pl.BlockSpec((tm_, D), lambda i: (i, 0)),
                  pl.BlockSpec((1, D), lambda i: (0, 0)),
                  pl.BlockSpec((1, D), lambda i: (0, 0))],
        out_specs=pl.BlockSpec((tm_, D), lambda i: (i, 0)),
        compiler_params=pltpu.CompilerParams(dimension_semantics=("parallel",)),
    )(x2d, gamma.reshape(1, D).astype(jnp.float32), beta.reshape(1, D).astype(jnp.float32))
    return out[:M] if Mp != M else out


def pallas_linear(x2d, w, b, *, gamma=None, beta=None, residual=None,
                  activation="none", eps=1e-5, out_dtype=None,
                  tm=TM_DEFAULT, tn=TN_DEFAULT, tk=TK_DEFAULT):
    """y = act(LN?(x) @ w + b) + residual?   (tiled, pipelined, bf16 MXU / f32 acc)."""
    M, K = x2d.shape
    Kw, N = w.shape
    assert K == Kw, (K, Kw)
    if x2d.dtype != w.dtype:
        x2d = x2d.astype(w.dtype)
    if out_dtype is None:
        out_dtype = x2d.dtype
    has_res = residual is not None
    res_dtype = residual.dtype if has_res else None

    tm_ = min(tm, _round_up(M, 8))

    has_ln = gamma is not None
    if has_ln:
        # Fuse LN only if the full (K, N) weight panel fits the VMEM budget, so the LN
        # prologue runs exactly once per row block; otherwise hoist it into the standalone
        # LayerNorm kernel and keep regular K/N tiling for the matmul.
        est = _block_vmem_bytes(tm_, N, K, x2d.dtype, w.dtype, out_dtype, res_dtype, False)
        if est > VMEM_FUSED_LN_BUDGET:
            x2d = pallas_layernorm(x2d, gamma, beta, eps=eps, out_dtype=w.dtype, tm=tm)
            gamma = beta = None
            has_ln = False

    if has_ln:
        tn_, tk_ = N, K          # single N/K block -> LN + epilogue computed once
    else:
        tn_ = _pick_tile(N, tn)
        tk_ = _pick_tile(K, tk)
    nk = K // tk_
    use_acc = nk > 1

    Mp = _round_up(M, tm_)
    if Mp != M:
        x2d = jnp.pad(x2d, ((0, Mp - M), (0, 0)))
        if has_res:
            residual = jnp.pad(residual, ((0, Mp - M), (0, 0)))

    operands = [x2d, w, b.reshape(1, N).astype(jnp.float32)]
    in_specs = [
        pl.BlockSpec((tm_, tk_), lambda i, j, k: (i, k)),
        pl.BlockSpec((tk_, tn_), lambda i, j, k: (k, j)),
        pl.BlockSpec((1, tn_), lambda i, j, k: (0, j)),
    ]
    if has_ln:
        operands += [gamma.reshape(1, K).astype(jnp.float32),
                     beta.reshape(1, K).astype(jnp.float32)]
        in_specs += [pl.BlockSpec((1, tk_), lambda i, j, k: (0, k)),
                     pl.BlockSpec((1, tk_), lambda i, j, k: (0, k))]
    if has_res:
        operands.append(residual)
        in_specs.append(pl.BlockSpec((tm_, tn_), lambda i, j, k: (i, j)))

    item = lambda dt: jnp.dtype(dt).itemsize
    flops = 2 * Mp * N * K
    transc = Mp * N if activation in ("gelu", "tanh") else 0
    bytes_accessed = (Mp * K * item(x2d.dtype) + K * N * item(w.dtype)
                      + Mp * N * item(out_dtype)
                      + (Mp * N * item(res_dtype) if has_res else 0))

    out = pl.pallas_call(
        functools.partial(_fused_linear_kernel, has_ln=has_ln, has_res=has_res,
                          use_acc=use_acc, activation=activation, eps=eps),
        out_shape=jax.ShapeDtypeStruct((Mp, N), out_dtype),
        grid=(Mp // tm_, N // tn_, nk),
        in_specs=in_specs,
        out_specs=pl.BlockSpec((tm_, tn_), lambda i, j, k: (i, j)),
        scratch_shapes=([pltpu.VMEM((tm_, tn_), jnp.float32)] if use_acc else []),
        compiler_params=pltpu.CompilerParams(
            dimension_semantics=("parallel", "parallel", "arbitrary"),
            vmem_limit_bytes=VMEM_LIMIT_BYTES),
        cost_estimate=pl.CostEstimate(flops=int(flops), transcendentals=int(transc),
                                      bytes_accessed=int(bytes_accessed)),
    )(*operands)
    return out[:M] if Mp != M else out


def pallas_attention(qkv, key_bias, *, num_heads):
    """qkv: (B, Sp, 3*D) with columns ordered (qkv, head, dh); key_bias: (B, 1, Sp) f32.

    Returns the attention output as (B*Sp, D) with head-major columns.  Heads are
    processed in groups sized so the per-step output slab is >= 128 lanes wide.
    """
    B, Sp, threeD = qkv.shape
    D = threeD // 3
    H = num_heads
    Dh = D // H
    hpg = min(H, max(1, 128 // max(Dh, 1)))
    while H % hpg != 0:
        hpg -= 1
    HG = H // hpg

    # Layout plumbing (wrapper-side XLA transpose): head axis ahead of Sp so each q/k/v
    # block is a contiguous (Sp, Dh) slab selectable by the index_map.
    qkv6 = qkv.reshape(B, Sp, 3, HG, hpg, Dh)
    qkv_t = jnp.transpose(qkv6, (0, 3, 2, 4, 1, 5)).reshape(B, HG, 3 * hpg, Sp, Dh)

    out = pl.pallas_call(
        functools.partial(_attention_kernel, heads_per_group=hpg),
        out_shape=jax.ShapeDtypeStruct((B, HG, Sp, hpg * Dh), qkv.dtype),
        grid=(B, HG),
        in_specs=[pl.BlockSpec((1, 1, 3 * hpg, Sp, Dh), lambda b, g: (b, g, 0, 0, 0)),
                  pl.BlockSpec((1, 1, Sp), lambda b, g: (b, 0, 0))],
        out_specs=pl.BlockSpec((1, 1, Sp, hpg * Dh), lambda b, g: (b, g, 0, 0)),
        compiler_params=pltpu.CompilerParams(
            dimension_semantics=("parallel", "parallel")),
    )(qkv_t, key_bias)

    # (B, HG, Sp, hpg*Dh) -> (B*Sp, D); head order is preserved.
    return jnp.transpose(out, (0, 2, 1, 3)).reshape(B * Sp, D)


# ----------------------------------------------------------------------------- model

class TransformerOutput(NamedTuple):
    last_hidden_state: Optional[jnp.ndarray]
    pooler_output: Optional[jnp.ndarray]
    hidden_states: Optional[Tuple[jnp.ndarray, ...]]
    attentions: Optional[Tuple[jnp.ndarray, ...]]


def init_params(key, *, channels, patch_size, hidden, mlp_dim, num_layers, num_patches):
    patch_dim = channels * patch_size * patch_size

    def nrm(k, shape, scale=0.02):
        return scale * jax.random.normal(k, shape, jnp.float32)

    keys = jax.random.split(key, 8 + num_layers)
    params = {
        # conv(kernel=patch, stride=patch) expressed as a matmul:
        # weight laid out as (C*ph*pw, D), patches flattened in (c, kh, kw) order.
        "patch_w": nrm(keys[0], (patch_dim, hidden)),
        "patch_b": jnp.zeros((hidden,), jnp.float32),
        "cls_token": nrm(keys[1], (1, 1, hidden)),
        "mask_token": nrm(keys[2], (1, 1, hidden)),
        "pos_emb": nrm(keys[3], (1, num_patches + 1, hidden)),
        "final_ln_g": jnp.ones((hidden,), jnp.float32),
        "final_ln_b": jnp.zeros((hidden,), jnp.float32),
        "pooler_w": nrm(keys[4], (hidden, hidden)),
        "pooler_b": jnp.zeros((hidden,), jnp.float32),
        "layers": [],
    }
    for li in range(num_layers):
        lk = jax.random.split(keys[8 + li], 4)
        params["layers"].append({
            "ln1_g": jnp.ones((hidden,), jnp.float32),
            "ln1_b": jnp.zeros((hidden,), jnp.float32),
            # qkv output columns ordered (qkv_idx, head, head_dim)
            "qkv_w": nrm(lk[0], (hidden, 3 * hidden)),
            "qkv_b": jnp.zeros((3 * hidden,), jnp.float32),
            "proj_w": nrm(lk[1], (hidden, hidden)),
            "proj_b": jnp.zeros((hidden,), jnp.float32),
            "ln2_g": jnp.ones((hidden,), jnp.float32),
            "ln2_b": jnp.zeros((hidden,), jnp.float32),
            "fc1_w": nrm(lk[2], (hidden, mlp_dim)),
            "fc1_b": jnp.zeros((mlp_dim,), jnp.float32),
            "fc2_w": nrm(lk[3], (mlp_dim, hidden)),
            "fc2_b": jnp.zeros((hidden,), jnp.float32),
        })
    return params


def prepare_params(params, *, num_heads, compute_dtype=jnp.bfloat16):
    """One-time prep: cast matmul weights to the MXU dtype and fold the 1/sqrt(Dh)
    attention scale into the Q section of the QKV projection."""
    D = params["patch_w"].shape[1]
    scale = 1.0 / math.sqrt(D // num_heads)
    prepared = dict(params)
    prepared["patch_w"] = params["patch_w"].astype(compute_dtype)
    prepared["pooler_w"] = params["pooler_w"].astype(compute_dtype)
    layers = []
    for lp in params["layers"]:
        lp = dict(lp)
        lp["qkv_w"] = lp["qkv_w"].at[:, :D].multiply(scale).astype(compute_dtype)
        lp["qkv_b"] = lp["qkv_b"].at[:D].multiply(scale)
        lp["proj_w"] = lp["proj_w"].astype(compute_dtype)
        lp["fc1_w"] = lp["fc1_w"].astype(compute_dtype)
        lp["fc2_w"] = lp["fc2_w"].astype(compute_dtype)
        layers.append(lp)
    prepared["layers"] = layers
    return prepared


def _encoder_layer(lp, x2d, key_bias, B, Sp, num_heads):
    D = x2d.shape[1]
    # pre-LN MHA block: LN fused into the QKV matmul, residual fused into the out-proj.
    qkv = pallas_linear(x2d, lp["qkv_w"], lp["qkv_b"],
                        gamma=lp["ln1_g"], beta=lp["ln1_b"])            # (B*Sp, 3D)
    attn = pallas_attention(qkv.reshape(B, Sp, 3 * D), key_bias,
                            num_heads=num_heads)                         # (B*Sp, D)
    x2d = pallas_linear(attn, lp["proj_w"], lp["proj_b"], residual=x2d)
    # pre-LN MLP block: LN+GELU fused into FC1, residual fused into FC2.
    h = pallas_linear(x2d, lp["fc1_w"], lp["fc1_b"],
                      gamma=lp["ln2_g"], beta=lp["ln2_b"], activation="gelu")
    x2d = pallas_linear(h, lp["fc2_w"], lp["fc2_b"], residual=x2d)
    # TODO(synk): residual stream is carried in bf16; use f32 if strict parity with an
    # f32 PyTorch forward is required.
    return x2d


def vision_transformer_forward(params, images, image_patches_mask=None, attention_mask=None,
                               *, patch_size, num_heads, compute_dtype=jnp.bfloat16,
                               return_hidden_states=True):
    B, C, H, W = images.shape
    p = patch_size
    hp, wp = H // p, W // p
    n_patches = hp * wp
    D = params["patch_w"].shape[1]

    # ---- PatchEmbeddings: conv(kernel=p, stride=p) == matmul over flattened patches
    patches = images.reshape(B, C, hp, p, wp, p)
    patches = patches.transpose(0, 2, 4, 1, 3, 5).reshape(B * n_patches, C * p * p)
    patch_emb = pallas_linear(patches.astype(compute_dtype), params["patch_w"],
                              params["patch_b"], out_dtype=jnp.float32)
    patch_emb = patch_emb.reshape(B, n_patches, D)

    if image_patches_mask is not None:
        m = image_patches_mask.astype(jnp.float32)[..., None]            # (B, n_patches, 1)
        patch_emb = patch_emb * (1.0 - m) + params["mask_token"] * m

    cls = jnp.broadcast_to(params["cls_token"], (B, 1, D))
    x = jnp.concatenate([cls, patch_emb], axis=1) + params["pos_emb"]    # (B, S, D) f32
    S = n_patches + 1

    # Pad sequence to a lane-friendly length; padded key positions get -1e9 bias so they
    # never influence real tokens, and are sliced off before the outputs.
    Sp = _round_up(S, SEQ_ALIGN)
    x = jnp.pad(x, ((0, 0), (0, Sp - S), (0, 0))).astype(compute_dtype)

    if attention_mask is not None:
        valid = jnp.pad(attention_mask.astype(bool), ((0, 0), (0, Sp - S)))
    else:
        valid = jnp.broadcast_to(jnp.arange(Sp) < S, (B, Sp))
    key_bias = jnp.where(valid, 0.0, NEG_INF).astype(jnp.float32).reshape(B, 1, Sp)

    # ---- TransformerEncoder (return_hidden_states=True semantics)
    x2d = x.reshape(B * Sp, D)
    hidden = [x2d] if return_hidden_states else None
    for lp in params["layers"]:
        x2d = _encoder_layer(lp, x2d, key_bias, B, Sp, num_heads)
        if return_hidden_states:
            hidden.append(x2d)

    last_hidden_state = pallas_layernorm(x2d, params["final_ln_g"], params["final_ln_b"],
                                         out_dtype=jnp.float32)
    last_hidden_state = last_hidden_state.reshape(B, Sp, D)[:, :S, :]

    # ---- Pooler: CLS token -> Linear -> tanh
    pooled = pallas_linear(last_hidden_state[:, 0, :].astype(compute_dtype),
                           params["pooler_w"], params["pooler_b"],
                           activation="tanh", out_dtype=jnp.float32)

    hidden_states = None
    if return_hidden_states:
        # kept in the bf16 compute dtype (no extra per-layer f32 HBM copies)
        hidden_states = tuple(h.reshape(B, Sp, D)[:, :S, :] for h in hidden)

    return TransformerOutput(
        last_hidden_state=last_hidden_state,
        pooler_output=pooled,
        hidden_states=hidden_states,
        attentions=None,   # TODO(synk): per-layer attention probabilities not materialized.
    )


# ----------------------------------------------------------------------------- main

if __name__ == "__main__":
    B, C, IMG, PATCH = 2, 3, 16, 4
    HIDDEN, HEADS, LAYERS, MLP = 32, 4, 2, 64
    N_PATCHES = (IMG // PATCH) ** 2          # 16
    SEQ = N_PATCHES + 1                      # 17

    key = jax.random.PRNGKey(0)
    k_img, k_params = jax.random.split(key)
    images = jax.random.normal(k_img, (B, C, IMG, IMG), jnp.float32)
    # deterministic patch mask: mask every 5th patch
    image_patches_mask = (jnp.arange(N_PATCHES) % 5 == 0)
    image_patches_mask = jnp.broadcast_to(image_patches_mask, (B, N_PATCHES))
    attention_mask = jnp.ones((B, SEQ), jnp.float32)

    raw_params = init_params(k_params, channels=C, patch_size=PATCH, hidden=HIDDEN,
                             mlp_dim=MLP, num_layers=LAYERS, num_patches=N_PATCHES)
    params = prepare_params(raw_params, num_heads=HEADS)

    fwd = jax.jit(functools.partial(vision_transformer_forward,
                                    patch_size=PATCH, num_heads=HEADS))
    out = fwd(params, images, image_patches_mask, attention_mask)

    jax.block_until_ready(out.last_hidden_state)
    jax.block_until_ready(out.pooler_output)

    assert out.last_hidden_state.shape == (B, SEQ, HIDDEN)
    assert out.pooler_output.shape == (B, HIDDEN)
    assert len(out.hidden_states) == LAYERS + 1
    assert bool(jnp.all(jnp.isfinite(out.last_hidden_state)))
    assert bool(jnp.all(jnp.isfinite(out.pooler_output)))
    print("KERNEL_OK")
</pallas_src>

<mosaic_0001>
module attributes {stable_mosaic.version = 11 : i64} {
  func.func @_fused_linear_kernel(%arg0: i32, %arg1: i32, %arg2: i32, %arg3: memref<32x48xbf16, #tpu.memory_space<vmem>>, %arg4: memref<48x32xbf16, #tpu.memory_space<vmem>>, %arg5: memref<1x32xf32, #tpu.memory_space<vmem>>, %arg6: memref<32x32xf32, #tpu.memory_space<vmem>>) attributes {dimension_semantics = [#tpu.dimension_semantics<parallel>, #tpu.dimension_semantics<parallel>, #tpu.dimension_semantics<arbitrary>], iteration_bounds = array<i64: 1, 1, 1>, scalar_prefetch = 0 : i64, scratch_operands = 0 : i64, tpu.core_type = #tpu.core_type<tc>, window_params = [{transform_indices = @transform_0, window_bounds = array<i64: 32, 48>}, {transform_indices = @transform_1, window_bounds = array<i64: 48, 32>}, {transform_indices = @transform_2, window_bounds = array<i64: 1, 32>}, {transform_indices = @transform_3, window_bounds = array<i64: 32, 32>}]} {
    %c0 = arith.constant 0 : index
    %c0_0 = arith.constant 0 : index
    %0 = vector.load %arg3[%c0, %c0_0] : memref<32x48xbf16, #tpu.memory_space<vmem>>, vector<32x48xbf16>
    %c0_1 = arith.constant 0 : index
    %c0_2 = arith.constant 0 : index
    %1 = vector.load %arg4[%c0_1, %c0_2] : memref<48x32xbf16, #tpu.memory_space<vmem>>, vector<48x32xbf16>
    %cst = arith.constant dense<0.000000e+00> : vector<32x32xf32>
    %2 = tpu.matmul %0, %1, %cst {dimension_numbers = #tpu.dot_dimension_numbers<[1], [0], [0], [1], [0, 0, 1, 1], [], []>} : vector<32x48xbf16>, vector<48x32xbf16>, vector<32x32xf32> -> vector<32x32xf32>
    %c0_3 = arith.constant 0 : index
    %c0_4 = arith.constant 0 : index
    %3 = vector.load %arg5[%c0_3, %c0_4] : memref<1x32xf32, #tpu.memory_space<vmem>>, vector<1x32xf32>
    %4 = vector.broadcast %3 : vector<1x32xf32> to vector<32x32xf32>
    %5 = arith.addf %2, %4 : vector<32x32xf32>
    %c0_5 = arith.constant 0 : index
    %c0_6 = arith.constant 0 : index
    %6 = vector.load %arg6[%c0_5, %c0_6] : memref<32x32xf32, #tpu.memory_space<vmem>>, vector<32x32xf32>
    tpu.vector_store %arg6[%c0_5, %c0_6], %5 {strides = array<i32>} : memref<32x32xf32, #tpu.memory_space<vmem>>, vector<32x32xf32>,
    return
  }
  func.func @transform_0(%arg0: i32, %arg1: i32, %arg2: i32) -> (i32, i32) {
    %c0_i32 = arith.constant 0 : i32
    return %arg0, %arg2 : i32, i32
  }
  func.func @transform_1(%arg0: i32, %arg1: i32, %arg2: i32) -> (i32, i32) {
    %c0_i32 = arith.constant 0 : i32
    return %arg2, %arg1 : i32, i32
  }
  func.func @transform_2(%arg0: i32, %arg1: i32, %arg2: i32) -> (i32, i32) {
    %c0_i32 = arith.constant 0 : i32
    %c0_i32_0 = arith.constant 0 : i32
    return %c0_i32, %arg1 : i32, i32
  }
  func.func @transform_3(%arg0: i32, %arg1: i32, %arg2: i32) -> (i32, i32) {
    %c0_i32 = arith.constant 0 : i32
    return %arg0, %arg1 : i32, i32
  }
}

module attributes {stable_mosaic.version = 11 : i64} {
  func.func @_fused_linear_kernel(%arg0: i32, %arg1: i32, %arg2: i32, %arg3: memref<256x32xbf16, #tpu.memory_space<vmem>>, %arg4: memref<32x96xbf16, #tpu.memory_space<vmem>>, %arg5: memref<1x96xf32, #tpu.memory_space<vmem>>, %arg6: memref<1x32xf32, #tpu.memory_space<vmem>>, %arg7: memref<1x32xf32, #tpu.memory_space<vmem>>, %arg8: memref<256x96xbf16, #tpu.memory_space<vmem>>) attributes {dimension_semantics = [#tpu.dimension_semantics<parallel>, #tpu.dimension_semantics<parallel>, #tpu.dimension_semantics<arbitrary>], iteration_bounds = array<i64: 1, 1, 1>, scalar_prefetch = 0 : i64, scratch_operands = 0 : i64, tpu.core_type = #tpu.core_type<tc>, window_params = [{transform_indices = @transform_0, window_bounds = array<i64: 256, 32>}, {transform_indices = @transform_1, window_bounds = array<i64: 32, 96>}, {transform_indices = @transform_2, window_bounds = array<i64: 1, 96>}, {transform_indices = @transform_3, window_bounds = array<i64: 1, 32>}, {transform_indices = @transform_4, window_bounds = array<i64: 1, 32>}, {transform_indices = @transform_5, window_bounds = array<i64: 256, 96>}]} {
    %c0 = arith.constant 0 : index
    %c0_0 = arith.constant 0 : index
    %0 = vector.load %arg3[%c0, %c0_0] : memref<256x32xbf16, #tpu.memory_space<vmem>>, vector<256x32xbf16>
    %1 = arith.extf %0 : vector<256x32xbf16> to vector<256x32xf32>
    %cst = arith.constant dense<0.000000e+00> : vector<256xf32>
    %2 = vector.multi_reduction <add>, %1, %cst [1] : vector<256x32xf32> to vector<256xf32>
    %3 = vector.shape_cast %2 : vector<256xf32> to vector<256x1xf32>
    %cst_1 = arith.constant 3.200000e+01 : f32
    %4 = vector.broadcast %cst_1 : f32 to vector<256x1xf32>
    %5 = arith.divf %3, %4 : vector<256x1xf32>
    %6 = vector.broadcast %5 : vector<256x1xf32> to vector<256x32xf32>
    %7 = arith.subf %1, %6 : vector<256x32xf32>
    %8 = arith.mulf %7, %7 : vector<256x32xf32>
    %cst_2 = arith.constant dense<0.000000e+00> : vector<256xf32>
    %9 = vector.multi_reduction <add>, %8, %cst_2 [1] : vector<256x32xf32> to vector<256xf32>
    %10 = vector.shape_cast %9 : vector<256xf32> to vector<256x1xf32>
    %cst_3 = arith.constant 3.200000e+01 : f32
    %11 = vector.broadcast %cst_3 : f32 to vector<256x1xf32>
    %12 = arith.divf %10, %11 : vector<256x1xf32>
    %13 = vector.broadcast %5 : vector<256x1xf32> to vector<256x32xf32>
    %14 = arith.subf %1, %13 : vector<256x32xf32>
    %cst_4 = arith.constant 9.99999974E-6 : f32
    %15 = vector.broadcast %cst_4 : f32 to vector<256x1xf32>
    %16 = arith.addf %12, %15 : vector<256x1xf32>
    %17 = math.rsqrt %16 : vector<256x1xf32>
    %18 = vector.broadcast %17 : vector<256x1xf32> to vector<256x32xf32>
    %19 = arith.mulf %14, %18 : vector<256x32xf32>
    %c0_5 = arith.constant 0 : index
    %c0_6 = arith.constant 0 : index
    %20 = vector.load %arg6[%c0_5, %c0_6] : memref<1x32xf32, #tpu.memory_space<vmem>>, vector<1x32xf32>
    %21 = vector.broadcast %20 : vector<1x32xf32> to vector<256x32xf32>
    %22 = arith.mulf %19, %21 : vector<256x32xf32>
    %c0_7 = arith.constant 0 : index
    %c0_8 = arith.constant 0 : index
    %23 = vector.load %arg7[%c0_7, %c0_8] : memref<1x32xf32, #tpu.memory_space<vmem>>, vector<1x32xf32>
    %24 = vector.broadcast %23 : vector<1x32xf32> to vector<256x32xf32>
    %25 = arith.addf %22, %24 : vector<256x32xf32>
    %26 = arith.truncf %25 : vector<256x32xf32> to vector<256x32xbf16>
    %c0_9 = arith.constant 0 : index
    %c0_10 = arith.constant 0 : index
    %27 = vector.load %arg4[%c0_9, %c0_10] : memref<32x96xbf16, #tpu.memory_space<vmem>>, vector<32x96xbf16>
    %cst_11 = arith.constant dense<0.000000e+00> : vector<256x96xf32>
    %28 = tpu.matmul %26, %27, %cst_11 {dimension_numbers = #tpu.dot_dimension_numbers<[1], [0], [0], [1], [0, 0, 1, 1], [], []>} : vector<256x32xbf16>, vector<32x96xbf16>, vector<256x96xf32> -> vector<256x96xf32>
    %c0_12 = arith.constant 0 : index
    %c0_13 = arith.constant 0 : index
    %29 = vector.load %arg5[%c0_12, %c0_13] : memref<1x96xf32, #tpu.memory_space<vmem>>, vector<1x96xf32>
    %30 = vector.broadcast %29 : vector<1x96xf32> to vector<256x96xf32>
    %31 = arith.addf %28, %30 : vector<256x96xf32>
    %32 = arith.truncf %31 : vector<256x96xf32> to vector<256x96xbf16>
    %c0_14 = arith.constant 0 : index
    %c0_15 = arith.constant 0 : index
    %33 = vector.load %arg8[%c0_14, %c0_15] : memref<256x96xbf16, #tpu.memory_space<vmem>>, vector<256x96xbf16>
    tpu.vector_store %arg8[%c0_14, %c0_15], %32 {strides = array<i32>} : memref<256x96xbf16, #tpu.memory_space<vmem>>, vector<256x96xbf16>,
    return
  }
  func.func @transform_0(%arg0: i32, %arg1: i32, %arg2: i32) -> (i32, i32) {
    %c0_i32 = arith.constant 0 : i32
    return %arg0, %arg2 : i32, i32
  }
  func.func @transform_1(%arg0: i32, %arg1: i32, %arg2: i32) -> (i32, i32) {
    %c0_i32 = arith.constant 0 : i32
    return %arg2, %arg1 : i32, i32
  }
  func.func @transform_2(%arg0: i32, %arg1: i32, %arg2: i32) -> (i32, i32) {
    %c0_i32 = arith.constant 0 : i32
    %c0_i32_0 = arith.constant 0 : i32
    return %c0_i32, %arg1 : i32, i32
  }
  func.func @transform_3(%arg0: i32, %arg1: i32, %arg2: i32) -> (i32, i32) {
    %c0_i32 = arith.constant 0 : i32
    %c0_i32_0 = arith.constant 0 : i32
    return %c0_i32, %arg2 : i32, i32
  }
  func.func @transform_4(%arg0: i32, %arg1: i32, %arg2: i32) -> (i32, i32) {
    %c0_i32 = arith.constant 0 : i32
    %c0_i32_0 = arith.constant 0 : i32
    return %c0_i32, %arg2 : i32, i32
  }
  func.func @transform_5(%arg0: i32, %arg1: i32, %arg2: i32) -> (i32, i32) {
    %c0_i32 = arith.constant 0 : i32
    return %arg0, %arg1 : i32, i32
  }
}

module attributes {stable_mosaic.version = 11 : i64} {
  func.func @_fused_linear_kernel(%arg0: i32, %arg1: i32, %arg2: i32, %arg3: memref<256x32xbf16, #tpu.memory_space<vmem>>, %arg4: memref<32x32xbf16, #tpu.memory_space<vmem>>, %arg5: memref<1x32xf32, #tpu.memory_space<vmem>>, %arg6: memref<256x32xbf16, #tpu.memory_space<vmem>>, %arg7: memref<256x32xbf16, #tpu.memory_space<vmem>>) attributes {dimension_semantics = [#tpu.dimension_semantics<parallel>, #tpu.dimension_semantics<parallel>, #tpu.dimension_semantics<arbitrary>], iteration_bounds = array<i64: 1, 1, 1>, scalar_prefetch = 0 : i64, scratch_operands = 0 : i64, tpu.core_type = #tpu.core_type<tc>, window_params = [{transform_indices = @transform_0, window_bounds = array<i64: 256, 32>}, {transform_indices = @transform_1, window_bounds = array<i64: 32, 32>}, {transform_indices = @transform_2, window_bounds = array<i64: 1, 32>}, {transform_indices = @transform_3, window_bounds = array<i64: 256, 32>}, {transform_indices = @transform_4, window_bounds = array<i64: 256, 32>}]} {
    %c0 = arith.constant 0 : index
    %c0_0 = arith.constant 0 : index
    %0 = vector.load %arg3[%c0, %c0_0] : memref<256x32xbf16, #tpu.memory_space<vmem>>, vector<256x32xbf16>
    %c0_1 = arith.constant 0 : index
    %c0_2 = arith.constant 0 : index
    %1 = vector.load %arg4[%c0_1, %c0_2] : memref<32x32xbf16, #tpu.memory_space<vmem>>, vector<32x32xbf16>
    %cst = arith.constant dense<0.000000e+00> : vector<256x32xf32>
    %2 = tpu.matmul %0, %1, %cst {dimension_numbers = #tpu.dot_dimension_numbers<[1], [0], [0], [1], [0, 0, 1, 1], [], []>} : vector<256x32xbf16>, vector<32x32xbf16>, vector<256x32xf32> -> vector<256x32xf32>
    %c0_3 = arith.constant 0 : index
    %c0_4 = arith.constant 0 : index
    %3 = vector.load %arg5[%c0_3, %c0_4] : memref<1x32xf32, #tpu.memory_space<vmem>>, vector<1x32xf32>
    %4 = vector.broadcast %3 : vector<1x32xf32> to vector<256x32xf32>
    %5 = arith.addf %2, %4 : vector<256x32xf32>
    %c0_5 = arith.constant 0 : index
    %c0_6 = arith.constant 0 : index
    %6 = vector.load %arg6[%c0_5, %c0_6] : memref<256x32xbf16, #tpu.memory_space<vmem>>, vector<256x32xbf16>
    %7 = arith.extf %6 : vector<256x32xbf16> to vector<256x32xf32>
    %8 = arith.addf %5, %7 : vector<256x32xf32>
    %9 = arith.truncf %8 : vector<256x32xf32> to vector<256x32xbf16>
    %c0_7 = arith.constant 0 : index
    %c0_8 = arith.constant 0 : index
    %10 = vector.load %arg7[%c0_7, %c0_8] : memref<256x32xbf16, #tpu.memory_space<vmem>>, vector<256x32xbf16>
    tpu.vector_store %arg7[%c0_7, %c0_8], %9 {strides = array<i32>} : memref<256x32xbf16, #tpu.memory_space<vmem>>, vector<256x32xbf16>,
    return
  }
  func.func @transform_0(%arg0: i32, %arg1: i32, %arg2: i32) -> (i32, i32) {
    %c0_i32 = arith.constant 0 : i32
    return %arg0, %arg2 : i32, i32
  }
  func.func @transform_1(%arg0: i32, %arg1: i32, %arg2: i32) -> (i32, i32) {
    %c0_i32 = arith.constant 0 : i32
    return %arg2, %arg1 : i32, i32
  }
  func.func @transform_2(%arg0: i32, %arg1: i32, %arg2: i32) -> (i32, i32) {
    %c0_i32 = arith.constant 0 : i32
    %c0_i32_0 = arith.constant 0 : i32
    return %c0_i32, %arg1 : i32, i32
  }
  func.func @transform_3(%arg0: i32, %arg1: i32, %arg2: i32) -> (i32, i32) {
    %c0_i32 = arith.constant 0 : i32
    return %arg0, %arg1 : i32, i32
  }
  func.func @transform_4(%arg0: i32, %arg1: i32, %arg2: i32) -> (i32, i32) {
    %c0_i32 = arith.constant 0 : i32
    return %arg0, %arg1 : i32, i32
  }
}

module attributes {stable_mosaic.version = 11 : i64} {
  func.func @_attention_kernel(%arg0: i32, %arg1: i32, %arg2: memref<1x1x12x128x8xbf16, #tpu.memory_space<vmem>>, %arg3: memref<1x1x128xf32, #tpu.memory_space<vmem>>, %arg4: memref<1x1x128x32xbf16, #tpu.memory_space<vmem>>) attributes {dimension_semantics = [#tpu.dimension_semantics<parallel>, #tpu.dimension_semantics<parallel>], iteration_bounds = array<i64: 2, 1>, scalar_prefetch = 0 : i64, scratch_operands = 0 : i64, tpu.core_type = #tpu.core_type<tc>, window_params = [{transform_indices = @transform_0, window_bounds = array<i64: 1, 1, 12, 128, 8>}, {transform_indices = @transform_1, window_bounds = array<i64: 1, 1, 128>}, {transform_indices = @transform_2, window_bounds = array<i64: 1, 1, 128, 32>}]} {
    %c0 = arith.constant 0 : index
    %c0_0 = arith.constant 0 : index
    %c0_1 = arith.constant 0 : index
    %0 = vector.load %arg3[%c0, %c0_0, %c0_1] : memref<1x1x128xf32, #tpu.memory_space<vmem>>, vector<1x1x128xf32>
    %1 = vector.shape_cast %0 : vector<1x1x128xf32> to vector<1x128xf32>
    %c0_2 = arith.constant 0 : index
    %c0_3 = arith.constant 0 : index
    %c0_4 = arith.constant 0 : index
    %c0_5 = arith.constant 0 : index
    %c0_6 = arith.constant 0 : index
    %2 = vector.load %arg2[%c0_2, %c0_3, %c0_4, %c0_5, %c0_6] : memref<1x1x12x128x8xbf16, #tpu.memory_space<vmem>>, vector<1x1x1x128x8xbf16>
    %3 = vector.shape_cast %2 : vector<1x1x1x128x8xbf16> to vector<128x8xbf16>
    %c0_7 = arith.constant 0 : index
    %c0_8 = arith.constant 0 : index
    %c4 = arith.constant 4 : index
    %c0_9 = arith.constant 0 : index
    %c0_10 = arith.constant 0 : index
    %4 = vector.load %arg2[%c0_7, %c0_8, %c4, %c0_9, %c0_10] : memref<1x1x12x128x8xbf16, #tpu.memory_space<vmem>>, vector<1x1x1x128x8xbf16>
    %5 = vector.shape_cast %4 : vector<1x1x1x128x8xbf16> to vector<128x8xbf16>
    %c0_11 = arith.constant 0 : index
    %c0_12 = arith.constant 0 : index
    %c8 = arith.constant 8 : index
    %c0_13 = arith.constant 0 : index
    %c0_14 = arith.constant 0 : index
    %6 = vector.load %arg2[%c0_11, %c0_12, %c8, %c0_13, %c0_14] : memref<1x1x12x128x8xbf16, #tpu.memory_space<vmem>>, vector<1x1x1x128x8xbf16>
    %7 = vector.shape_cast %6 : vector<1x1x1x128x8xbf16> to vector<128x8xbf16>
    %cst = arith.constant dense<0.000000e+00> : vector<128x128xf32>
    %8 = tpu.matmul %3, %5, %cst {dimension_numbers = #tpu.dot_dimension_numbers<[1], [1], [0], [0], [0, 0, 1, 0], [], []>} : vector<128x8xbf16>, vector<128x8xbf16>, vector<128x128xf32> -> vector<128x128xf32>
    %9 = vector.broadcast %1 : vector<1x128xf32> to vector<128x128xf32>
    %10 = arith.addf %8, %9 : vector<128x128xf32>
    %cst_15 = arith.constant dense<0xFF800000> : vector<128xf32>
    %11 = vector.multi_reduction <maximumf>, %10, %cst_15 [1] : vector<128x128xf32> to vector<128xf32>
    %12 = vector.shape_cast %11 : vector<128xf32> to vector<128x1xf32>
    %13 = vector.broadcast %12 : vector<128x1xf32> to vector<128x128xf32>
    %14 = arith.subf %10, %13 : vector<128x128xf32>
    %15 = math.exp %14 : vector<128x128xf32>
    %cst_16 = arith.constant dense<0.000000e+00> : vector<128xf32>
    %16 = vector.multi_reduction <add>, %15, %cst_16 [1] : vector<128x128xf32> to vector<128xf32>
    %17 = vector.shape_cast %16 : vector<128xf32> to vector<128x1xf32>
    %18 = tpu.reciprocal %17 {approx = true} : vector<128x1xf32> -> vector<128x1xf32>
    %19 = vector.broadcast %18 : vector<128x1xf32> to vector<128x128xf32>
    %20 = arith.mulf %15, %19 : vector<128x128xf32>
    %21 = arith.truncf %20 : vector<128x128xf32> to vector<128x128xbf16>
    %cst_17 = arith.constant dense<0.000000e+00> : vector<128x8xf32>
    %22 = tpu.matmul %21, %7, %cst_17 {dimension_numbers = #tpu.dot_dimension_numbers<[1], [0], [0], [1], [0, 0, 1, 1], [], []>} : vector<128x128xbf16>, vector<128x8xbf16>, vector<128x8xf32> -> vector<128x8xf32>
    %23 = arith.truncf %22 : vector<128x8xf32> to vector<128x8xbf16>
    %c0_18 = arith.constant 0 : index
    %c0_19 = arith.constant 0 : index
    %c1 = arith.constant 1 : index
    %c0_20 = arith.constant 0 : index
    %c0_21 = arith.constant 0 : index
    %24 = vector.load %arg2[%c0_18, %c0_19, %c1, %c0_20, %c0_21] : memref<1x1x12x128x8xbf16, #tpu.memory_space<vmem>>, vector<1x1x1x128x8xbf16>
    %25 = vector.shape_cast %24 : vector<1x1x1x128x8xbf16> to vector<128x8xbf16>
    %c0_22 = arith.constant 0 : index
    %c0_23 = arith.constant 0 : index
    %c5 = arith.constant 5 : index
    %c0_24 = arith.constant 0 : index
    %c0_25 = arith.constant 0 : index
    %26 = vector.load %arg2[%c0_22, %c0_23, %c5, %c0_24, %c0_25] : memref<1x1x12x128x8xbf16, #tpu.memory_space<vmem>>, vector<1x1x1x128x8xbf16>
    %27 = vector.shape_cast %26 : vector<1x1x1x128x8xbf16> to vector<128x8xbf16>
    %c0_26 = arith.constant 0 : index
    %c0_27 = arith.constant 0 : index
    %c9 = arith.constant 9 : index
    %c0_28 = arith.constant 0 : index
    %c0_29 = arith.constant 0 : index
    %28 = vector.load %arg2[%c0_26, %c0_27, %c9, %c0_28, %c0_29] : memref<1x1x12x128x8xbf16, #tpu.memory_space<vmem>>, vector<1x1x1x128x8xbf16>
    %29 = vector.shape_cast %28 : vector<1x1x1x128x8xbf16> to vector<128x8xbf16>
    %cst_30 = arith.constant dense<0.000000e+00> : vector<128x128xf32>
    %30 = tpu.matmul %25, %27, %cst_30 {dimension_numbers = #tpu.dot_dimension_numbers<[1], [1], [0], [0], [0, 0, 1, 0], [], []>} : vector<128x8xbf16>, vector<128x8xbf16>, vector<128x128xf32> -> vector<128x128xf32>
    %31 = vector.broadcast %1 : vector<1x128xf32> to vector<128x128xf32>
    %32 = arith.addf %30, %31 : vector<128x128xf32>
    %cst_31 = arith.constant dense<0xFF800000> : vector<128xf32>
    %33 = vector.multi_reduction <maximumf>, %32, %cst_31 [1] : vector<128x128xf32> to vector<128xf32>
    %34 = vector.shape_cast %33 : vector<128xf32> to vector<128x1xf32>
    %35 = vector.broadcast %34 : vector<128x1xf32> to vector<128x128xf32>
    %36 = arith.subf %32, %35 : vector<128x128xf32>
    %37 = math.exp %36 : vector<128x128xf32>
    %cst_32 = arith.constant dense<0.000000e+00> : vector<128xf32>
    %38 = vector.multi_reduction <add>, %37, %cst_32 [1] : vector<128x128xf32> to vector<128xf32>
    %39 = vector.shape_cast %38 : vector<128xf32> to vector<128x1xf32>
    %40 = tpu.reciprocal %39 {approx = true} : vector<128x1xf32> -> vector<128x1xf32>
    %41 = vector.broadcast %40 : vector<128x1xf32> to vector<128x128xf32>
    %42 = arith.mulf %37, %41 : vector<128x128xf32>
    %43 = arith.truncf %42 : vector<128x128xf32> to vector<128x128xbf16>
    %cst_33 = arith.constant dense<0.000000e+00> : vector<128x8xf32>
    %44 = tpu.matmul %43, %29, %cst_33 {dimension_numbers = #tpu.dot_dimension_numbers<[1], [0], [0], [1], [0, 0, 1, 1], [], []>} : vector<128x128xbf16>, vector<128x8xbf16>, vector<128x8xf32> -> vector<128x8xf32>
    %45 = arith.truncf %44 : vector<128x8xf32> to vector<128x8xbf16>
    %c0_34 = arith.constant 0 : index
    %c0_35 = arith.constant 0 : index
    %c2 = arith.constant 2 : index
    %c0_36 = arith.constant 0 : index
    %c0_37 = arith.constant 0 : index
    %46 = vector.load %arg2[%c0_34, %c0_35, %c2, %c0_36, %c0_37] : memref<1x1x12x128x8xbf16, #tpu.memory_space<vmem>>, vector<1x1x1x128x8xbf16>
    %47 = vector.shape_cast %46 : vector<1x1x1x128x8xbf16> to vector<128x8xbf16>
    %c0_38 = arith.constant 0 : index
    %c0_39 = arith.constant 0 : index
    %c6 = arith.constant 6 : index
    %c0_40 = arith.constant 0 : index
    %c0_41 = arith.constant 0 : index
    %48 = vector.load %arg2[%c0_38, %c0_39, %c6, %c0_40, %c0_41] : memref<1x1x12x128x8xbf16, #tpu.memory_space<vmem>>, vector<1x1x1x128x8xbf16>
    %49 = vector.shape_cast %48 : vector<1x1x1x128x8xbf16> to vector<128x8xbf16>
    %c0_42 = arith.constant 0 : index
    %c0_43 = arith.constant 0 : index
    %c10 = arith.constant 10 : index
    %c0_44 = arith.constant 0 : index
    %c0_45 = arith.constant 0 : index
    %50 = vector.load %arg2[%c0_42, %c0_43, %c10, %c0_44, %c0_45] : memref<1x1x12x128x8xbf16, #tpu.memory_space<vmem>>, vector<1x1x1x128x8xbf16>
    %51 = vector.shape_cast %50 : vector<1x1x1x128x8xbf16> to vector<128x8xbf16>
    %cst_46 = arith.constant dense<0.000000e+00> : vector<128x128xf32>
    %52 = tpu.matmul %47, %49, %cst_46 {dimension_numbers = #tpu.dot_dimension_numbers<[1], [1], [0], [0], [0, 0, 1, 0], [], []>} : vector<128x8xbf16>, vector<128x8xbf16>, vector<128x128xf32> -> vector<128x128xf32>
    %53 = vector.broadcast %1 : vector<1x128xf32> to vector<128x128xf32>
    %54 = arith.addf %52, %53 : vector<128x128xf32>
    %cst_47 = arith.constant dense<0xFF800000> : vector<128xf32>
    %55 = vector.multi_reduction <maximumf>, %54, %cst_47 [1] : vector<128x128xf32> to vector<128xf32>
    %56 = vector.shape_cast %55 : vector<128xf32> to vector<128x1xf32>
    %57 = vector.broadcast %56 : vector<128x1xf32> to vector<128x128xf32>
    %58 = arith.subf %54, %57 : vector<128x128xf32>
    %59 = math.exp %58 : vector<128x128xf32>
    %cst_48 = arith.constant dense<0.000000e+00> : vector<128xf32>
    %60 = vector.multi_reduction <add>, %59, %cst_48 [1] : vector<128x128xf32> to vector<128xf32>
    %61 = vector.shape_cast %60 : vector<128xf32> to vector<128x1xf32>
    %62 = tpu.reciprocal %61 {approx = true} : vector<128x1xf32> -> vector<128x1xf32>
    %63 = vector.broadcast %62 : vector<128x1xf32> to vector<128x128xf32>
    %64 = arith.mulf %59, %63 : vector<128x128xf32>
    %65 = arith.truncf %64 : vector<128x128xf32> to vector<128x128xbf16>
    %cst_49 = arith.constant dense<0.000000e+00> : vector<128x8xf32>
    %66 = tpu.matmul %65, %51, %cst_49 {dimension_numbers = #tpu.dot_dimension_numbers<[1], [0], [0], [1], [0, 0, 1, 1], [], []>} : vector<128x128xbf16>, vector<128x8xbf16>, vector<128x8xf32> -> vector<128x8xf32>
    %67 = arith.truncf %66 : vector<128x8xf32> to vector<128x8xbf16>
    %c0_50 = arith.constant 0 : index
    %c0_51 = arith.constant 0 : index
    %c3 = arith.constant 3 : index
    %c0_52 = arith.constant 0 : index
    %c0_53 = arith.constant 0 : index
    %68 = vector.load %arg2[%c0_50, %c0_51, %c3, %c0_52, %c0_53] : memref<1x1x12x128x8xbf16, #tpu.memory_space<vmem>>, vector<1x1x1x128x8xbf16>
    %69 = vector.shape_cast %68 : vector<1x1x1x128x8xbf16> to vector<128x8xbf16>
    %c0_54 = arith.constant 0 : index
    %c0_55 = arith.constant 0 : index
    %c7 = arith.constant 7 : index
    %c0_56 = arith.constant 0 : index
    %c0_57 = arith.constant 0 : index
    %70 = vector.load %arg2[%c0_54, %c0_55, %c7, %c0_56, %c0_57] : memref<1x1x12x128x8xbf16, #tpu.memory_space<vmem>>, vector<1x1x1x128x8xbf16>
    %71 = vector.shape_cast %70 : vector<1x1x1x128x8xbf16> to vector<128x8xbf16>
    %c0_58 = arith.constant 0 : index
    %c0_59 = arith.constant 0 : index
    %c11 = arith.constant 11 : index
    %c0_60 = arith.constant 0 : index
    %c0_61 = arith.constant 0 : index
    %72 = vector.load %arg2[%c0_58, %c0_59, %c11, %c0_60, %c0_61] : memref<1x1x12x128x8xbf16, #tpu.memory_space<vmem>>, vector<1x1x1x128x8xbf16>
    %73 = vector.shape_cast %72 : vector<1x1x1x128x8xbf16> to vector<128x8xbf16>
    %cst_62 = arith.constant dense<0.000000e+00> : vector<128x128xf32>
    %74 = tpu.matmul %69, %71, %cst_62 {dimension_numbers = #tpu.dot_dimension_numbers<[1], [1], [0], [0], [0, 0, 1, 0], [], []>} : vector<128x8xbf16>, vector<128x8xbf16>, vector<128x128xf32> -> vector<128x128xf32>
    %75 = vector.broadcast %1 : vector<1x128xf32> to vector<128x128xf32>
    %76 = arith.addf %74, %75 : vector<128x128xf32>
    %cst_63 = arith.constant dense<0xFF800000> : vector<128xf32>
    %77 = vector.multi_reduction <maximumf>, %76, %cst_63 [1] : vector<128x128xf32> to vector<128xf32>
    %78 = vector.shape_cast %77 : vector<128xf32> to vector<128x1xf32>
    %79 = vector.broadcast %78 : vector<128x1xf32> to vector<128x128xf32>
    %80 = arith.subf %76, %79 : vector<128x128xf32>
    %81 = math.exp %80 : vector<128x128xf32>
    %cst_64 = arith.constant dense<0.000000e+00> : vector<128xf32>
    %82 = vector.multi_reduction <add>, %81, %cst_64 [1] : vector<128x128xf32> to vector<128xf32>
    %83 = vector.shape_cast %82 : vector<128xf32> to vector<128x1xf32>
    %84 = tpu.reciprocal %83 {approx = true} : vector<128x1xf32> -> vector<128x1xf32>
    %85 = vector.broadcast %84 : vector<128x1xf32> to vector<128x128xf32>
    %86 = arith.mulf %81, %85 : vector<128x128xf32>
    %87 = arith.truncf %86 : vector<128x128xf32> to vector<128x128xbf16>
    %cst_65 = arith.constant dense<0.000000e+00> : vector<128x8xf32>
    %88 = tpu.matmul %87, %73, %cst_65 {dimension_numbers = #tpu.dot_dimension_numbers<[1], [0], [0], [1], [0, 0, 1, 1], [], []>} : vector<128x128xbf16>, vector<128x8xbf16>, vector<128x8xf32> -> vector<128x8xf32>
    %89 = arith.truncf %88 : vector<128x8xf32> to vector<128x8xbf16>
    %90 = tpu.concatenate %23, %45, %67, %89 in 1 : vector<128x8xbf16>, vector<128x8xbf16>, vector<128x8xbf16>, vector<128x8xbf16> -> vector<128x32xbf16>
    %c0_66 = arith.constant 0 : index
    %c0_67 = arith.constant 0 : index
    %c0_68 = arith.constant 0 : index
    %c0_69 = arith.constant 0 : index
    %91 = vector.load %arg4[%c0_66, %c0_67, %c0_68, %c0_69] : memref<1x1x128x32xbf16, #tpu.memory_space<vmem>>, vector<1x1x128x32xbf16>
    %92 = vector.shape_cast %91 : vector<1x1x128x32xbf16> to vector<128x32xbf16>
    %93 = vector.shape_cast %90 : vector<128x32xbf16> to vector<1x1x128x32xbf16>
    tpu.vector_store %arg4[%c0_66, %c0_67, %c0_68, %c0_69], %93 {strides = array<i32>} : memref<1x1x128x32xbf16, #tpu.memory_space<vmem>>, vector<1x1x128x32xbf16>,
    return
  }
  func.func @transform_0(%arg0: i32, %arg1: i32) -> (i32, i32, i32, i32, i32) {
    %c0_i32 = arith.constant 0 : i32
    %c0_i32_0 = arith.constant 0 : i32
    %c0_i32_1 = arith.constant 0 : i32
    %c0_i32_2 = arith.constant 0 : i32
    return %arg0, %arg1, %c0_i32, %c0_i32_0, %c0_i32_1 : i32, i32, i32, i32, i32
  }
  func.func @transform_1(%arg0: i32, %arg1: i32) -> (i32, i32, i32) {
    %c0_i32 = arith.constant 0 : i32
    %c0_i32_0 = arith.constant 0 : i32
    %c0_i32_1 = arith.constant 0 : i32
    return %arg0, %c0_i32, %c0_i32_0 : i32, i32, i32
  }
  func.func @transform_2(%arg0: i32, %arg1: i32) -> (i32, i32, i32, i32) {
    %c0_i32 = arith.constant 0 : i32
    %c0_i32_0 = arith.constant 0 : i32
    %c0_i32_1 = arith.constant 0 : i32
    return %arg0, %arg1, %c0_i32, %c0_i32_0 : i32, i32, i32, i32
  }
}

module attributes {stable_mosaic.version = 11 : i64} {
  func.func @_fused_linear_kernel(%arg0: i32, %arg1: i32, %arg2: i32, %arg3: memref<256x32xbf16, #tpu.memory_space<vmem>>, %arg4: memref<32x64xbf16, #tpu.memory_space<vmem>>, %arg5: memref<1x64xf32, #tpu.memory_space<vmem>>, %arg6: memref<1x32xf32, #tpu.memory_space<vmem>>, %arg7: memref<1x32xf32, #tpu.memory_space<vmem>>, %arg8: memref<256x64xbf16, #tpu.memory_space<vmem>>) attributes {dimension_semantics = [#tpu.dimension_semantics<parallel>, #tpu.dimension_semantics<parallel>, #tpu.dimension_semantics<arbitrary>], iteration_bounds = array<i64: 1, 1, 1>, scalar_prefetch = 0 : i64, scratch_operands = 0 : i64, tpu.core_type = #tpu.core_type<tc>, window_params = [{transform_indices = @transform_0, window_bounds = array<i64: 256, 32>}, {transform_indices = @transform_1, window_bounds = array<i64: 32, 64>}, {transform_indices = @transform_2, window_bounds = array<i64: 1, 64>}, {transform_indices = @transform_3, window_bounds = array<i64: 1, 32>}, {transform_indices = @transform_4, window_bounds = array<i64: 1, 32>}, {transform_indices = @transform_5, window_bounds = array<i64: 256, 64>}]} {
    %c0 = arith.constant 0 : index
    %c0_0 = arith.constant 0 : index
    %0 = vector.load %arg3[%c0, %c0_0] : memref<256x32xbf16, #tpu.memory_space<vmem>>, vector<256x32xbf16>
    %1 = arith.extf %0 : vector<256x32xbf16> to vector<256x32xf32>
    %cst = arith.constant dense<0.000000e+00> : vector<256xf32>
    %2 = vector.multi_reduction <add>, %1, %cst [1] : vector<256x32xf32> to vector<256xf32>
    %3 = vector.shape_cast %2 : vector<256xf32> to vector<256x1xf32>
    %cst_1 = arith.constant 3.200000e+01 : f32
    %4 = vector.broadcast %cst_1 : f32 to vector<256x1xf32>
    %5 = arith.divf %3, %4 : vector<256x1xf32>
    %6 = vector.broadcast %5 : vector<256x1xf32> to vector<256x32xf32>
    %7 = arith.subf %1, %6 : vector<256x32xf32>
    %8 = arith.mulf %7, %7 : vector<256x32xf32>
    %cst_2 = arith.constant dense<0.000000e+00> : vector<256xf32>
    %9 = vector.multi_reduction <add>, %8, %cst_2 [1] : vector<256x32xf32> to vector<256xf32>
    %10 = vector.shape_cast %9 : vector<256xf32> to vector<256x1xf32>
    %cst_3 = arith.constant 3.200000e+01 : f32
    %11 = vector.broadcast %cst_3 : f32 to vector<256x1xf32>
    %12 = arith.divf %10, %11 : vector<256x1xf32>
    %13 = vector.broadcast %5 : vector<256x1xf32> to vector<256x32xf32>
    %14 = arith.subf %1, %13 : vector<256x32xf32>
    %cst_4 = arith.constant 9.99999974E-6 : f32
    %15 = vector.broadcast %cst_4 : f32 to vector<256x1xf32>
    %16 = arith.addf %12, %15 : vector<256x1xf32>
    %17 = math.rsqrt %16 : vector<256x1xf32>
    %18 = vector.broadcast %17 : vector<256x1xf32> to vector<256x32xf32>
    %19 = arith.mulf %14, %18 : vector<256x32xf32>
    %c0_5 = arith.constant 0 : index
    %c0_6 = arith.constant 0 : index
    %20 = vector.load %arg6[%c0_5, %c0_6] : memref<1x32xf32, #tpu.memory_space<vmem>>, vector<1x32xf32>
    %21 = vector.broadcast %20 : vector<1x32xf32> to vector<256x32xf32>
    %22 = arith.mulf %19, %21 : vector<256x32xf32>
    %c0_7 = arith.constant 0 : index
    %c0_8 = arith.constant 0 : index
    %23 = vector.load %arg7[%c0_7, %c0_8] : memref<1x32xf32, #tpu.memory_space<vmem>>, vector<1x32xf32>
    %24 = vector.broadcast %23 : vector<1x32xf32> to vector<256x32xf32>
    %25 = arith.addf %22, %24 : vector<256x32xf32>
    %26 = arith.truncf %25 : vector<256x32xf32> to vector<256x32xbf16>
    %c0_9 = arith.constant 0 : index
    %c0_10 = arith.constant 0 : index
    %27 = vector.load %arg4[%c0_9, %c0_10] : memref<32x64xbf16, #tpu.memory_space<vmem>>, vector<32x64xbf16>
    %cst_11 = arith.constant dense<0.000000e+00> : vector<256x64xf32>
    %28 = tpu.matmul %26, %27, %cst_11 {dimension_numbers = #tpu.dot_dimension_numbers<[1], [0], [0], [1], [0, 0, 1, 1], [], []>} : vector<256x32xbf16>, vector<32x64xbf16>, vector<256x64xf32> -> vector<256x64xf32>
    %c0_12 = arith.constant 0 : index
    %c0_13 = arith.constant 0 : index
    %29 = vector.load %arg5[%c0_12, %c0_13] : memref<1x64xf32, #tpu.memory_space<vmem>>, vector<1x64xf32>
    %30 = vector.broadcast %29 : vector<1x64xf32> to vector<256x64xf32>
    %31 = arith.addf %28, %30 : vector<256x64xf32>
    %cst_14 = arith.constant 5.000000e-01 : f32
    %32 = vector.broadcast %cst_14 : f32 to vector<256x64xf32>
    %33 = arith.mulf %32, %31 : vector<256x64xf32>
    %cst_15 = arith.constant 4.471500e-02 : f32
    %34 = vector.broadcast %cst_15 : f32 to vector<256x64xf32>
    %35 = arith.mulf %34, %31 : vector<256x64xf32>
    %36 = arith.mulf %35, %31 : vector<256x64xf32>
    %37 = arith.mulf %36, %31 : vector<256x64xf32>
    %38 = arith.addf %31, %37 : vector<256x64xf32>
    %cst_16 = arith.constant 0.797884583 : f32
    %39 = vector.broadcast %cst_16 : f32 to vector<256x64xf32>
    %40 = arith.mulf %39, %38 : vector<256x64xf32>
    %41 = math.tanh %40 : vector<256x64xf32>
    %cst_17 = arith.constant 1.000000e+00 : f32
    %42 = vector.broadcast %cst_17 : f32 to vector<256x64xf32>
    %43 = arith.addf %42, %41 : vector<256x64xf32>
    %44 = arith.mulf %33, %43 : vector<256x64xf32>
    %45 = arith.truncf %44 : vector<256x64xf32> to vector<256x64xbf16>
    %c0_18 = arith.constant 0 : index
    %c0_19 = arith.constant 0 : index
    %46 = vector.load %arg8[%c0_18, %c0_19] : memref<256x64xbf16, #tpu.memory_space<vmem>>, vector<256x64xbf16>
    tpu.vector_store %arg8[%c0_18, %c0_19], %45 {strides = array<i32>} : memref<256x64xbf16, #tpu.memory_space<vmem>>, vector<256x64xbf16>,
    return
  }
  func.func @transform_0(%arg0: i32, %arg1: i32, %arg2: i32) -> (i32, i32) {
    %c0_i32 = arith.constant 0 : i32
    return %arg0, %arg2 : i32, i32
  }
  func.func @transform_1(%arg0: i32, %arg1: i32, %arg2: i32) -> (i32, i32) {
    %c0_i32 = arith.constant 0 : i32
    return %arg2, %arg1 : i32, i32
  }
  func.func @transform_2(%arg0: i32, %arg1: i32, %arg2: i32) -> (i32, i32) {
    %c0_i32 = arith.constant 0 : i32
    %c0_i32_0 = arith.constant 0 : i32
    return %c0_i32, %arg1 : i32, i32
  }
  func.func @transform_3(%arg0: i32, %arg1: i32, %arg2: i32) -> (i32, i32) {
    %c0_i32 = arith.constant 0 : i32
    %c0_i32_0 = arith.constant 0 : i32
    return %c0_i32, %arg2 : i32, i32
  }
  func.func @transform_4(%arg0: i32, %arg1: i32, %arg2: i32) -> (i32, i32) {
    %c0_i32 = arith.constant 0 : i32
    %c0_i32_0 = arith.constant 0 : i32
    return %c0_i32, %arg2 : i32, i32
  }
  func.func @transform_5(%arg0: i32, %arg1: i32, %arg2: i32) -> (i32, i32) {
    %c0_i32 = arith.constant 0 : i32
    return %arg0, %arg1 : i32, i32
  }
}

module attributes {stable_mosaic.version = 11 : i64} {
  func.func @_fused_linear_kernel(%arg0: i32, %arg1: i32, %arg2: i32, %arg3: memref<256x64xbf16, #tpu.memory_space<vmem>>, %arg4: memref<64x32xbf16, #tpu.memory_space<vmem>>, %arg5: memref<1x32xf32, #tpu.memory_space<vmem>>, %arg6: memref<256x32xbf16, #tpu.memory_space<vmem>>, %arg7: memref<256x32xbf16, #tpu.memory_space<vmem>>) attributes {dimension_semantics = [#tpu.dimension_semantics<parallel>, #tpu.dimension_semantics<parallel>, #tpu.dimension_semantics<arbitrary>], iteration_bounds = array<i64: 1, 1, 1>, scalar_prefetch = 0 : i64, scratch_operands = 0 : i64, tpu.core_type = #tpu.core_type<tc>, window_params = [{transform_indices = @transform_0, window_bounds = array<i64: 256, 64>}, {transform_indices = @transform_1, window_bounds = array<i64: 64, 32>}, {transform_indices = @transform_2, window_bounds = array<i64: 1, 32>}, {transform_indices = @transform_3, window_bounds = array<i64: 256, 32>}, {transform_indices = @transform_4, window_bounds = array<i64: 256, 32>}]} {
    %c0 = arith.constant 0 : index
    %c0_0 = arith.constant 0 : index
    %0 = vector.load %arg3[%c0, %c0_0] : memref<256x64xbf16, #tpu.memory_space<vmem>>, vector<256x64xbf16>
    %c0_1 = arith.constant 0 : index
    %c0_2 = arith.constant 0 : index
    %1 = vector.load %arg4[%c0_1, %c0_2] : memref<64x32xbf16, #tpu.memory_space<vmem>>, vector<64x32xbf16>
    %cst = arith.constant dense<0.000000e+00> : vector<256x32xf32>
    %2 = tpu.matmul %0, %1, %cst {dimension_numbers = #tpu.dot_dimension_numbers<[1], [0], [0], [1], [0, 0, 1, 1], [], []>} : vector<256x64xbf16>, vector<64x32xbf16>, vector<256x32xf32> -> vector<256x32xf32>
    %c0_3 = arith.constant 0 : index
    %c0_4 = arith.constant 0 : index
    %3 = vector.load %arg5[%c0_3, %c0_4] : memref<1x32xf32, #tpu.memory_space<vmem>>, vector<1x32xf32>
    %4 = vector.broadcast %3 : vector<1x32xf32> to vector<256x32xf32>
    %5 = arith.addf %2, %4 : vector<256x32xf32>
    %c0_5 = arith.constant 0 : index
    %c0_6 = arith.constant 0 : index
    %6 = vector.load %arg6[%c0_5, %c0_6] : memref<256x32xbf16, #tpu.memory_space<vmem>>, vector<256x32xbf16>
    %7 = arith.extf %6 : vector<256x32xbf16> to vector<256x32xf32>
    %8 = arith.addf %5, %7 : vector<256x32xf32>
    %9 = arith.truncf %8 : vector<256x32xf32> to vector<256x32xbf16>
    %c0_7 = arith.constant 0 : index
    %c0_8 = arith.constant 0 : index
    %10 = vector.load %arg7[%c0_7, %c0_8] : memref<256x32xbf16, #tpu.memory_space<vmem>>, vector<256x32xbf16>
    tpu.vector_store %arg7[%c0_7, %c0_8], %9 {strides = array<i32>} : memref<256x32xbf16, #tpu.memory_space<vmem>>, vector<256x32xbf16>,
    return
  }
  func.func @transform_0(%arg0: i32, %arg1: i32, %arg2: i32) -> (i32, i32) {
    %c0_i32 = arith.constant 0 : i32
    return %arg0, %arg2 : i32, i32
  }
  func.func @transform_1(%arg0: i32, %arg1: i32, %arg2: i32) -> (i32, i32) {
    %c0_i32 = arith.constant 0 : i32
    return %arg2, %arg1 : i32, i32
  }
  func.func @transform_2(%arg0: i32, %arg1: i32, %arg2: i32) -> (i32, i32) {
    %c0_i32 = arith.constant 0 : i32
    %c0_i32_0 = arith.constant 0 : i32
    return %c0_i32, %arg1 : i32, i32
  }
  func.func @transform_3(%arg0: i32, %arg1: i32, %arg2: i32) -> (i32, i32) {
    %c0_i32 = arith.constant 0 : i32
    return %arg0, %arg1 : i32, i32
  }
  func.func @transform_4(%arg0: i32, %arg1: i32, %arg2: i32) -> (i32, i32) {
    %c0_i32 = arith.constant 0 : i32
    return %arg0, %arg1 : i32, i32
  }
}

module attributes {stable_mosaic.version = 11 : i64} {
  func.func @_layernorm_kernel(%arg0: i32, %arg1: memref<256x32xbf16, #tpu.memory_space<vmem>>, %arg2: memref<1x32xf32, #tpu.memory_space<vmem>>, %arg3: memref<1x32xf32, #tpu.memory_space<vmem>>, %arg4: memref<256x32xf32, #tpu.memory_space<vmem>>) attributes {dimension_semantics = [#tpu.dimension_semantics<parallel>], iteration_bounds = array<i64: 1>, scalar_prefetch = 0 : i64, scratch_operands = 0 : i64, tpu.core_type = #tpu.core_type<tc>, window_params = [{transform_indices = @transform_0, window_bounds = array<i64: 256, 32>}, {pipeline_mode = #tpu.pipeline_mode<synchronous>, transform_indices = @transform_1, window_bounds = array<i64: 1, 32>}, {pipeline_mode = #tpu.pipeline_mode<synchronous>, transform_indices = @transform_2, window_bounds = array<i64: 1, 32>}, {transform_indices = @transform_3, window_bounds = array<i64: 256, 32>}]} {
    %c0 = arith.constant 0 : index
    %c0_0 = arith.constant 0 : index
    %0 = vector.load %arg1[%c0, %c0_0] : memref<256x32xbf16, #tpu.memory_space<vmem>>, vector<256x32xbf16>
    %1 = arith.extf %0 : vector<256x32xbf16> to vector<256x32xf32>
    %cst = arith.constant dense<0.000000e+00> : vector<256xf32>
    %2 = vector.multi_reduction <add>, %1, %cst [1] : vector<256x32xf32> to vector<256xf32>
    %3 = vector.shape_cast %2 : vector<256xf32> to vector<256x1xf32>
    %cst_1 = arith.constant 3.200000e+01 : f32
    %4 = vector.broadcast %cst_1 : f32 to vector<256x1xf32>
    %5 = arith.divf %3, %4 : vector<256x1xf32>
    %6 = vector.broadcast %5 : vector<256x1xf32> to vector<256x32xf32>
    %7 = arith.subf %1, %6 : vector<256x32xf32>
    %8 = arith.mulf %7, %7 : vector<256x32xf32>
    %cst_2 = arith.constant dense<0.000000e+00> : vector<256xf32>
    %9 = vector.multi_reduction <add>, %8, %cst_2 [1] : vector<256x32xf32> to vector<256xf32>
    %10 = vector.shape_cast %9 : vector<256xf32> to vector<256x1xf32>
    %cst_3 = arith.constant 3.200000e+01 : f32
    %11 = vector.broadcast %cst_3 : f32 to vector<256x1xf32>
    %12 = arith.divf %10, %11 : vector<256x1xf32>
    %13 = vector.broadcast %5 : vector<256x1xf32> to vector<256x32xf32>
    %14 = arith.subf %1, %13 : vector<256x32xf32>
    %cst_4 = arith.constant 9.99999974E-6 : f32
    %15 = vector.broadcast %cst_4 : f32 to vector<256x1xf32>
    %16 = arith.addf %12, %15 : vector<256x1xf32>
    %17 = math.rsqrt %16 : vector<256x1xf32>
    %18 = vector.broadcast %17 : vector<256x1xf32> to vector<256x32xf32>
    %19 = arith.mulf %14, %18 : vector<256x32xf32>
    %c0_5 = arith.constant 0 : index
    %c0_6 = arith.constant 0 : index
    %20 = vector.load %arg2[%c0_5, %c0_6] : memref<1x32xf32, #tpu.memory_space<vmem>>, vector<1x32xf32>
    %21 = vector.broadcast %20 : vector<1x32xf32> to vector<256x32xf32>
    %22 = arith.mulf %19, %21 : vector<256x32xf32>
    %c0_7 = arith.constant 0 : index
    %c0_8 = arith.constant 0 : index
    %23 = vector.load %arg3[%c0_7, %c0_8] : memref<1x32xf32, #tpu.memory_space<vmem>>, vector<1x32xf32>
    %24 = vector.broadcast %23 : vector<1x32xf32> to vector<256x32xf32>
    %25 = arith.addf %22, %24 : vector<256x32xf32>
    %c0_9 = arith.constant 0 : index
    %c0_10 = arith.constant 0 : index
    %26 = vector.load %arg4[%c0_9, %c0_10] : memref<256x32xf32, #tpu.memory_space<vmem>>, vector<256x32xf32>
    tpu.vector_store %arg4[%c0_9, %c0_10], %25 {strides = array<i32>} : memref<256x32xf32, #tpu.memory_space<vmem>>, vector<256x32xf32>,
    return
  }
  func.func @transform_0(%arg0: i32) -> (i32, i32) {
    %c0_i32 = arith.constant 0 : i32
    %c0_i32_0 = arith.constant 0 : i32
    return %arg0, %c0_i32 : i32, i32
  }
  func.func @transform_1(%arg0: i32) -> (i32, i32) {
    %c0_i32 = arith.constant 0 : i32
    %c0_i32_0 = arith.constant 0 : i32
    %c0_i32_1 = arith.constant 0 : i32
    return %c0_i32, %c0_i32_0 : i32, i32
  }
  func.func @transform_2(%arg0: i32) -> (i32, i32) {
    %c0_i32 = arith.constant 0 : i32
    %c0_i32_0 = arith.constant 0 : i32
    %c0_i32_1 = arith.constant 0 : i32
    return %c0_i32, %c0_i32_0 : i32, i32
  }
  func.func @transform_3(%arg0: i32) -> (i32, i32) {
    %c0_i32 = arith.constant 0 : i32
    %c0_i32_0 = arith.constant 0 : i32
    return %arg0, %c0_i32 : i32, i32
  }
}

module attributes {stable_mosaic.version = 11 : i64} {
  func.func @_fused_linear_kernel(%arg0: i32, %arg1: i32, %arg2: i32, %arg3: memref<8x32xbf16, #tpu.memory_space<vmem>>, %arg4: memref<32x32xbf16, #tpu.memory_space<vmem>>, %arg5: memref<1x32xf32, #tpu.memory_space<vmem>>, %arg6: memref<8x32xf32, #tpu.memory_space<vmem>>) attributes {dimension_semantics = [#tpu.dimension_semantics<parallel>, #tpu.dimension_semantics<parallel>, #tpu.dimension_semantics<arbitrary>], iteration_bounds = array<i64: 1, 1, 1>, scalar_prefetch = 0 : i64, scratch_operands = 0 : i64, tpu.core_type = #tpu.core_type<tc>, window_params = [{transform_indices = @transform_0, window_bounds = array<i64: 8, 32>}, {transform_indices = @transform_1, window_bounds = array<i64: 32, 32>}, {transform_indices = @transform_2, window_bounds = array<i64: 1, 32>}, {transform_indices = @transform_3, window_bounds = array<i64: 8, 32>}]} {
    %c0 = arith.constant 0 : index
    %c0_0 = arith.constant 0 : index
    %0 = vector.load %arg3[%c0, %c0_0] : memref<8x32xbf16, #tpu.memory_space<vmem>>, vector<8x32xbf16>
    %c0_1 = arith.constant 0 : index
    %c0_2 = arith.constant 0 : index
    %1 = vector.load %arg4[%c0_1, %c0_2] : memref<32x32xbf16, #tpu.memory_space<vmem>>, vector<32x32xbf16>
    %cst = arith.constant dense<0.000000e+00> : vector<8x32xf32>
    %2 = tpu.matmul %0, %1, %cst {dimension_numbers = #tpu.dot_dimension_numbers<[1], [0], [0], [1], [0, 0, 1, 1], [], []>} : vector<8x32xbf16>, vector<32x32xbf16>, vector<8x32xf32> -> vector<8x32xf32>
    %c0_3 = arith.constant 0 : index
    %c0_4 = arith.constant 0 : index
    %3 = vector.load %arg5[%c0_3, %c0_4] : memref<1x32xf32, #tpu.memory_space<vmem>>, vector<1x32xf32>
    %4 = vector.broadcast %3 : vector<1x32xf32> to vector<8x32xf32>
    %5 = arith.addf %2, %4 : vector<8x32xf32>
    %6 = math.tanh %5 : vector<8x32xf32>
    %c0_5 = arith.constant 0 : index
    %c0_6 = arith.constant 0 : index
    %7 = vector.load %arg6[%c0_5, %c0_6] : memref<8x32xf32, #tpu.memory_space<vmem>>, vector<8x32xf32>
    tpu.vector_store %arg6[%c0_5, %c0_6], %6 {strides = array<i32>} : memref<8x32xf32, #tpu.memory_space<vmem>>, vector<8x32xf32>,
    return
  }
  func.func @transform_0(%arg0: i32, %arg1: i32, %arg2: i32) -> (i32, i32) {
    %c0_i32 = arith.constant 0 : i32
    return %arg0, %arg2 : i32, i32
  }
  func.func @transform_1(%arg0: i32, %arg1: i32, %arg2: i32) -> (i32, i32) {
    %c0_i32 = arith.constant 0 : i32
    return %arg2, %arg1 : i32, i32
  }
  func.func @transform_2(%arg0: i32, %arg1: i32, %arg2: i32) -> (i32, i32) {
    %c0_i32 = arith.constant 0 : i32
    %c0_i32_0 = arith.constant 0 : i32
    return %c0_i32, %arg1 : i32, i32
  }
  func.func @transform_3(%arg0: i32, %arg1: i32, %arg2: i32) -> (i32, i32) {
    %c0_i32 = arith.constant 0 : i32
    return %arg0, %arg1 : i32, i32
  }
}

</mosaic_0001>

<bundles_post_ra>
// kernel: vision_transformer_forward.13
= control target key start
LH: loop header
LB: loop body
LE: loop exit
PB: predicated region body
PF: predicated region fallthrough
CT: control target
= control target key end

     0   :  { %vm57_vm0 = vcmask 392192   ;;  %vm83_vm1 = vcmask 261120   ;;  %s173_s1 = inlined_call_operand.vmem [shape: bf16[48,32], index: 1, kind: input, shape index: {}]   ;;  %s174_s2 = inlined_call_operand.vmem [shape: f32[1,32], index: 2, kind: input, shape index: {}]   ;;  %s175_s0 = inlined_call_operand.vmem [shape: bf16[32,48], index: 0, kind: input, shape index: {}]   ;;  %s176_s3 = inlined_call_operand.vmem [shape: f32[32,32], index: 3, kind: output, shape index: {}]  }
   0x1   :  { %v118_v0 = vld [vmem:[%s173_s1 + $0x10] sm:$0xff]  ;;  %v117_v1 = vld [vmem:[%s173_s1 + $0x8] sm:$0xff]  ;;  %v116_v2 = vld [vmem:[%s173_s1] sm:$0xff] }
   0x2   :  { %69 = vmatpush.bf16.msra.mxu0 %v118_v0  ;;  %119 = vmatpush.bf16.msra.mxu1 %v118_v0  ;;  %v114_v3 = vld [vmem:[%s175_s0] sm:$0xff]  ;;  %v115_v4 = vld [vmem:[%s175_s0 + $0x8] sm:$0xff] }
   0x3   :  { %v122_v5 = vld [vmem:[%s174_s2] ss:$0 sm:$0xff] }
   0x6   :  { %70 = vmatpush.bf16.msra.mxu0 %v117_v1  ;;  %120 = vmatpush.bf16.msra.mxu1 %v117_v1 }
   0xa   :  { %71 = vmatpush.bf16.msra.mxu0 %v116_v2  ;;  %121 = vmatpush.bf16.msra.mxu1 %v116_v2 }
   0xd   :  { %112 = vmatmul.msk.bf16.vlgmr.msra.gmra.mxu0 %vm57_vm0, %v114_v3  ;;  %113 = vmatmul.msk.bf16.vlgmr.msra.gmra.mxu1 %vm57_vm0, %v115_v4 }
  0x8a   :  { %v73_v6 = vpop.f32.mrf.mxu0  ;;  %v78_v7 = vpop.f32.mrf.mxu1 }
  0x8b   :  { %v74_v8 = vadd.f32 %v122_v5, %v73_v6  ;;  %v79_v9 = vadd.f32 %v122_v5, %v78_v7 }
  0x8d   :  { %84 = vst.msk [vmem:[%s176_s3] sm:$0xff] %vm83_vm1, %v74_v8 }
  0x8e   :  { %86 = vst.msk [vmem:[%s176_s3 + $0x10] sm:$0xff] %vm83_vm1, %v79_v9 }
  0x92   :  { %v75_v10 = vpop.f32.mrf.mxu0  ;;  %v80_v11 = vpop.f32.mrf.mxu1 }
  0x93   :  { %v76_v12 = vadd.f32 %v122_v5, %v75_v10  ;;  %v81_v13 = vadd.f32 %v122_v5, %v80_v11 }
  0x95   :  { %85 = vst.msk [vmem:[%s176_s3 + $0x8] sm:$0xff] %vm83_vm1, %v76_v12 }
  0x96   :  { %87 = vst.msk [vmem:[%s176_s3 + $0x18] sm:$0xff] %vm83_vm1, %v81_v13 }

// kernel: vision_transformer_forward.14
= control target key start
LH: loop header
LB: loop body
LE: loop exit
PB: predicated region body
PF: predicated region fallthrough
CT: control target
= control target key end

     0   :  { %vm85_vm0 = vcmask 261120   ;;  %s2734_s0 = inlined_call_operand.vmem [shape: bf16[256,32], index: 0, kind: input, shape index: {}]   ;;  %s2735_s3 = inlined_call_operand.vmem [shape: f32[1,32], index: 3, kind: input, shape index: {}]   ;;  %s2736_s4 = inlined_call_operand.vmem [shape: f32[1,32], index: 4, kind: input, shape index: {}]   ;;  %s2737_s1 = inlined_call_operand.vmem [shape: bf16[32,96], index: 1, kind: input, shape index: {}]   ;;  %s2738_s2 = inlined_call_operand.vmem [shape: f32[1,96], index: 2, kind: input, shape index: {}]   ;;  %s2739_s5 = inlined_call_operand.vmem [shape: bf16[256,96], index: 5, kind: output, shape index: {}]  }
   0x1   :  { %v1326_v0 = vld [vmem:[%s2734_s0 + $0x60] sm:$0xff]   ;;  %v1370_v16 = vld [vmem:[%s2734_s0 + $0x48] sm:$0xff]   ;;  %v1426_v38 = vld [vmem:[%s2734_s0 + $0x50] sm:$0xff]  }
   0x2   :  { %v1331_v1 = vld [vmem:[%s2734_s0 + $0x40] sm:$0xff]   ;;  %v1187_v3 = vunpack.c.l.bf16 %v1326_v0  ;;  %v1188_v9 = vunpack.c.h.bf16 %v1326_v0  ;;  %v1175_v19 = vunpack.c.l.bf16 %v1370_v16  ;;  %v1387_v23 = vld [vmem:[%s2734_s0 + $0x68] sm:$0xff]   ;;  %v1176_v25 = vunpack.c.h.bf16 %v1370_v16  ;;  %v1443_v45 = vld [vmem:[%s2734_s0 + $0x70] sm:$0xff]  }
   0x3   :  { %v1336_v2 = vld [vmem:[%s2734_s0] sm:$0xff]   ;;  %v1171_v4 = vunpack.c.l.bf16 %v1331_v1  ;;  %v1172_v10 = vunpack.c.h.bf16 %v1331_v1  ;;  %v1191_v24 = vunpack.c.l.bf16 %v1387_v23  ;;  %v1192_v26 = vunpack.c.h.bf16 %v1387_v23  ;;  %v1404_v30 = vld [vmem:[%s2734_s0 + $0x8] sm:$0xff]   ;;  %v1448_v46 = vld [vmem:[%s2734_s0 + $0x10] sm:$0xff]  }
   0x4   :  { %v1139_v5 = vunpack.c.l.bf16 %v1336_v2  ;;  %v158_v6 = vsel %vm85_vm0, %v1187_v3, 0.0  ;;  %v1140_v11 = vunpack.c.h.bf16 %v1336_v2  ;;  %v161_v12 = vsel %vm85_vm0, %v1188_v9, 0.0  ;;  %v1365_v15 = vld [vmem:[%s2734_s0 + $0x20] sm:$0xff]   ;;  %v1409_v31 = vld [vmem:[%s2734_s0 + $0x28] sm:$0xff]   ;;  %v1465_v53 = vld [vmem:[%s2734_s0 + $0x30] sm:$0xff]  }
   0x5   :  { %v134_v7 = vsel %vm85_vm0, %v1171_v4, 0.0  ;;  %159 = vadd.xlane.f32.xlu1 %v158_v6  ;;  %v137_v13 = vsel %vm85_vm0, %v1172_v10, 0.0  ;;  %v1156_v17 = vunpack.c.h.bf16 %v1365_v15  ;;  %v1155_v18 = vunpack.c.l.bf16 %v1365_v15  ;;  %v1482_v60 = vld [vmem:[%s2734_s0 + $0x58] sm:$0xff]  }
   0x6   :  { %v86_v8 = vsel %vm85_vm0, %v1139_v5, 0.0  ;;  %135 = vadd.xlane.f32.xlu0 %v134_v7  ;;  %v89_v14 = vsel %vm85_vm0, %v1140_v11, 0.0  ;;  %v140_v22 = vsel %vm85_vm0, %v1175_v19, 0.0  ;;  %v164_v27 = vsel %vm85_vm0, %v1191_v24, 0.0  ;;  %v1487_v61 = vld [vmem:[%s2734_s0 + $0x78] sm:$0xff]  }
   0x7   :  { %87 = vadd.xlane.f32.xlu2 %v86_v8  ;;  %v113_v20 = vsel %vm85_vm0, %v1156_v17, 0.0  ;;  %v110_v21 = vsel %vm85_vm0, %v1155_v18, 0.0  ;;  %v143_v28 = vsel %vm85_vm0, %v1176_v25, 0.0  ;;  %v167_v29 = vsel %vm85_vm0, %v1192_v26, 0.0 }
   0x8   :  { %v1144_v32 = vunpack.c.h.bf16 %v1404_v30  ;;  %v1143_v33 = vunpack.c.l.bf16 %v1404_v30  ;;  %v1159_v34 = vunpack.c.l.bf16 %v1409_v31  ;;  %v1179_v39 = vunpack.c.l.bf16 %v1426_v38 }
   0x9   :  { %v1160_v40 = vunpack.c.h.bf16 %v1409_v31  ;;  %v1180_v41 = vunpack.c.h.bf16 %v1426_v38  ;;  %v1196_v47 = vunpack.c.h.bf16 %v1443_v45  ;;  %v1195_v48 = vunpack.c.l.bf16 %v1443_v45 }
   0xa   :  { %v95_v35 = vsel %vm85_vm0, %v1144_v32, 0.0  ;;  %v92_v36 = vsel %vm85_vm0, %v1143_v33, 0.0  ;;  %v116_v37 = vsel %vm85_vm0, %v1159_v34, 0.0  ;;  %v146_v42 = vsel %vm85_vm0, %v1179_v39, 0.0 }
   0xb   :  { %v119_v43 = vsel %vm85_vm0, %v1160_v40, 0.0  ;;  %v149_v44 = vsel %vm85_vm0, %v1180_v41, 0.0  ;;  %v1147_v49 = vunpack.c.l.bf16 %v1448_v46  ;;  %v173_v50 = vsel %vm85_vm0, %v1196_v47, 0.0 }
   0xc   :  { %v170_v51 = vsel %vm85_vm0, %v1195_v48, 0.0  ;;  %v1163_v54 = vunpack.c.l.bf16 %v1465_v53  ;;  %v1148_v55 = vunpack.c.h.bf16 %v1448_v46  ;;  %v1164_v56 = vunpack.c.h.bf16 %v1465_v53 }
   0xd   :  { %162 = vadd.xlane.f32.xlu1 %v161_v12  ;;  %v98_v52 = vsel %vm85_vm0, %v1147_v49, 0.0  ;;  %v1183_v62 = vunpack.c.l.bf16 %v1482_v60  ;;  %v1199_v63 = vunpack.c.l.bf16 %v1487_v61  ;;  %v1184_v6 = vunpack.c.h.bf16 %v1482_v60 }
   0xe   :  { %138 = vadd.xlane.f32.xlu0 %v137_v13  ;;  %v122_v57 = vsel %vm85_vm0, %v1163_v54, 0.0  ;;  %v101_v58 = vsel %vm85_vm0, %v1148_v55, 0.0  ;;  %v125_v59 = vsel %vm85_vm0, %v1164_v56, 0.0  ;;  %v1504_v13 = vld [vmem:[%s2734_s0 + $0x18] sm:$0xff]  }
   0xf   :  { %90 = vadd.xlane.f32.xlu2 %v89_v14  ;;  %v152_v7 = vsel %vm85_vm0, %v1183_v62, 0.0  ;;  %v176_v8 = vsel %vm85_vm0, %v1199_v63, 0.0  ;;  %v155_v12 = vsel %vm85_vm0, %v1184_v6, 0.0  ;;  %v1509_v14 = vld [vmem:[%s2734_s0 + $0x38] sm:$0xff]  }
  0x15   :  { %114 = vadd.xlane.f32.xlu1 %v113_v20  ;;  %v1200_v20 = vunpack.c.h.bf16 %v1487_v61 }
  0x16   :  { %111 = vadd.xlane.f32.xlu0 %v110_v21  ;;  %v1151_v21 = vunpack.c.l.bf16 %v1504_v13 }
  0x17   :  { %141 = vadd.xlane.f32.xlu2 %v140_v22  ;;  %v1167_v22 = vunpack.c.l.bf16 %v1509_v14 }
  0x1d   :  { %165 = vadd.xlane.f32.xlu1 %v164_v27  ;;  %v179_v27 = vsel %vm85_vm0, %v1200_v20, 0.0 }
  0x1e   :  { %144 = vadd.xlane.f32.xlu0 %v143_v28  ;;  %v104_v28 = vsel %vm85_vm0, %v1151_v21, 0.0 }
  0x1f   :  { %168 = vadd.xlane.f32.xlu2 %v167_v29  ;;  %v128_v29 = vsel %vm85_vm0, %v1167_v22, 0.0 }
  0x25   :  { %96 = vadd.xlane.f32.xlu1 %v95_v35  ;;  %v1152_v35 = vunpack.c.h.bf16 %v1504_v13 }
  0x26   :  { %93 = vadd.xlane.f32.xlu0 %v92_v36  ;;  %v1168_v36 = vunpack.c.h.bf16 %v1509_v14 }
  0x27   :  { %117 = vadd.xlane.f32.xlu2 %v116_v37  ;;  %v107_v37 = vsel %vm85_vm0, %v1152_v35, 0.0 }
  0x2d   :  { %147 = vadd.xlane.f32.xlu1 %v146_v42  ;;  %v131_v42 = vsel %vm85_vm0, %v1168_v36, 0.0 }
  0x2e   :  { %120 = vadd.xlane.f32.xlu0 %v119_v43  ;;  %v1292_v43 = vmov 32.0  }
  0x2f   :  { %150 = vadd.xlane.f32.xlu2 %v149_v44  ;;  %1226 = vrcp.f32 %v1292_v43 }
  0x35   :  { %174 = vadd.xlane.f32.xlu1 %v173_v50  ;;  %v1227_v44 = vpop.eup %1226 }
  0x36   :  { %171 = vadd.xlane.f32.xlu0 %v170_v51  ;;  %v183_v50 = vmul.f32 32.0, %v1227_v44  ;;  %vm187_vm1 = vweird.f32 %v1227_v44 }
  0x37   :  { %99 = vadd.xlane.f32.xlu2 %v98_v52 }
  0x38   :  { %v184_v51 = vsub.f32 1.0, %v183_v50 }
  0x3a   :  { %v185_v52 = vmul.f32 %v1227_v44, %v184_v51 }
  0x3d   :  { %123 = vadd.xlane.f32.xlu1 %v122_v57  ;;  %v186_v57 = vadd.f32 %v1227_v44, %v185_v52 }
  0x3e   :  { %102 = vadd.xlane.f32.xlu0 %v101_v58 }
  0x3f   :  { %126 = vadd.xlane.f32.xlu2 %v125_v59  ;;  %v1531_v58 = vsel %vm187_vm1, %v1227_v44, %v186_v57 }
  0x45   :  { %153 = vadd.xlane.f32.xlu1 %v152_v7 }
  0x46   :  { %177 = vadd.xlane.f32.xlu0 %v176_v8 }
  0x47   :  { %156 = vadd.xlane.f32.xlu2 %v155_v12 }
  0x4d   :  { %180 = vadd.xlane.f32.xlu1 %v179_v27 }
  0x4e   :  { %105 = vadd.xlane.f32.xlu0 %v104_v28 }
  0x4f   :  { %129 = vadd.xlane.f32.xlu2 %v128_v29 }
  0x55   :  { %108 = vadd.xlane.f32.xlu1 %v107_v37 }
  0x56   :  { %132 = vadd.xlane.f32.xlu0 %v131_v42 }
  0x78   :  { %v160_v59 = vpop.xlane.xlu1 %159 }
  0x79   :  { %v136_v7 = vpop.xlane.xlu0 %135  ;;  %v213_v8 = vmul.f32 %v1531_v58, %v160_v59 }
  0x7a   :  { %v205_v12 = vmul.f32 %v1531_v58, %v136_v7  ;;  %v88_v27 = vpop.xlane.xlu2 %87 }
  0x7b   :  { %v1537_v28 = vsub.f32 %v1187_v3, %v213_v8  ;;  %v189_v37 = vmul.f32 %v1531_v58, %v88_v27 }
  0x7c   :  { %v1541_v29 = vsub.f32 %v1171_v4, %v205_v12 }
  0x7d   :  { %v277_v43 = vmul.f32 %v1537_v28, %v1537_v28  ;;  %v1552_v3 = vsub.f32 %v1139_v5, %v189_v37 }
  0x7e   :  { %v269_v42 = vmul.f32 %v1541_v29, %v1541_v29 }
  0x7f   :  { %v357_v50 = vsel %vm85_vm0, %v277_v43, 0.0  ;;  %v253_v12 = vmul.f32 %v1552_v3, %v1552_v3 }
  0x80   :  { %v333_v44 = vsel %vm85_vm0, %v269_v42, 0.0  ;;  %v163_v51 = vpop.xlane.xlu1 %162  ;;  %358 = vadd.xlane.f32.xlu2 %v357_v50 }
  0x81   :  { %v139_v52 = vpop.xlane.xlu0 %138  ;;  %334 = vadd.xlane.f32.xlu0 %v333_v44  ;;  %v214_v4 = vmul.f32 %v1531_v58, %v163_v51  ;;  %v285_v43 = vsel %vm85_vm0, %v253_v12, 0.0 }
  0x82   :  { %v206_v57 = vmul.f32 %v1531_v58, %v139_v52  ;;  %v91_v59 = vpop.xlane.xlu2 %90 }
  0x83   :  { %v1558_v7 = vsub.f32 %v1188_v9, %v214_v4  ;;  %v190_v5 = vmul.f32 %v1531_v58, %v91_v59 }
  0x84   :  { %v1562_v8 = vsub.f32 %v1172_v10, %v206_v57 }
  0x85   :  { %v278_v37 = vmul.f32 %v1558_v7, %v1558_v7  ;;  %v1573_v0 = vsub.f32 %v1140_v11, %v190_v5 }
  0x86   :  { %v270_v27 = vmul.f32 %v1562_v8, %v1562_v8 }
  0x87   :  { %v360_v1 = vsel %vm85_vm0, %v278_v37, 0.0  ;;  %v254_v4 = vmul.f32 %v1573_v0, %v1573_v0 }
  0x88   :  { %v336_v9 = vsel %vm85_vm0, %v270_v27, 0.0  ;;  %v115_v10 = vpop.xlane.xlu1 %114  ;;  %286 = vadd.xlane.f32.xlu2 %v285_v43 }
  0x89   :  { %v112_v42 = vpop.xlane.xlu0 %111  ;;  %337 = vadd.xlane.f32.xlu1 %v336_v9  ;;  %361 = vadd.xlane.f32.xlu0 %v360_v1  ;;  %v198_v44 = vmul.f32 %v1531_v58, %v115_v10 }
  0x8a   :  { %v197_v50 = vmul.f32 %v1531_v58, %v112_v42  ;;  %v142_v51 = vpop.xlane.xlu2 %141 }
  0x8b   :  { %v1582_v2 = vsub.f32 %v1156_v17, %v198_v44  ;;  %v207_v52 = vmul.f32 %v1531_v58, %v142_v51 }
  0x8c   :  { %v1586_v11 = vsub.f32 %v1155_v18, %v197_v50  ;;  %v288_v18 = vsel %vm85_vm0, %v254_v4, 0.0 }
  0x8d   :  { %v262_v59 = vmul.f32 %v1582_v2, %v1582_v2  ;;  %v1597_v5 = vsub.f32 %v1175_v19, %v207_v52 }
  0x8e   :  { %v261_v57 = vmul.f32 %v1586_v11, %v1586_v11 }
  0x8f   :  { %v312_v15 = vsel %vm85_vm0, %v262_v59, 0.0  ;;  %v271_v43 = vmul.f32 %v1597_v5, %v1597_v5 }
  0x90   :  { %v309_v17 = vsel %vm85_vm0, %v261_v57, 0.0  ;;  %v166_v12 = vpop.xlane.xlu1 %165  ;;  %313 = vadd.xlane.f32.xlu2 %v312_v15 }
  0x91   :  { %v145_v27 = vpop.xlane.xlu0 %144  ;;  %310 = vadd.xlane.f32.xlu1 %v309_v17  ;;  %289 = vadd.xlane.f32.xlu0 %v288_v18  ;;  %v215_v37 = vmul.f32 %v1531_v58, %v166_v12 }
  0x92   :  { %v208_v9 = vmul.f32 %v1531_v58, %v145_v27  ;;  %v169_v1 = vpop.xlane.xlu2 %168 }
  0x93   :  { %v1606_v19 = vsub.f32 %v1191_v24, %v215_v37  ;;  %v216_v42 = vmul.f32 %v1531_v58, %v169_v1 }
  0x94   :  { %v1610_v10 = vsub.f32 %v1176_v25, %v208_v9  ;;  %v339_v25 = vsel %vm85_vm0, %v271_v43, 0.0 }
  0x95   :  { %v279_v50 = vmul.f32 %v1606_v19, %v1606_v19  ;;  %v1621_v51 = vsub.f32 %v1192_v26, %v216_v42 }
  0x96   :  { %v272_v44 = vmul.f32 %v1610_v10, %v1610_v10 }
  0x97   :  { %v363_v16 = vsel %vm85_vm0, %v279_v50, 0.0  ;;  %v280_v18 = vmul.f32 %v1621_v51, %v1621_v51 }
  0x98   :  { %v342_v24 = vsel %vm85_vm0, %v272_v44, 0.0  ;;  %v97_v52 = vpop.xlane.xlu1 %96 }
  0x99   :  { %v94_v4 = vpop.xlane.xlu0 %93  ;;  %364 = vadd.xlane.f32.xlu0 %v363_v16  ;;  %340 = vadd.xlane.f32.xlu1 %v339_v25  ;;  %v192_v57 = vmul.f32 %v1531_v58, %v97_v52 }
  0x9a   :  { %v191_v59 = vmul.f32 %v1531_v58, %v94_v4  ;;  %343 = vadd.xlane.f32.xlu2 %v342_v24  ;;  %v118_v17 = vpop.xlane.xlu2 %117 }
  0x9b   :  { %v1630_v23 = vsub.f32 %v1144_v32, %v192_v57  ;;  %v199_v15 = vmul.f32 %v1531_v58, %v118_v17 }
  0x9c   :  { %v1634_v26 = vsub.f32 %v1143_v33, %v191_v59  ;;  %v366_v33 = vsel %vm85_vm0, %v280_v18, 0.0 }
  0x9d   :  { %v256_v27 = vmul.f32 %v1630_v23, %v1630_v23  ;;  %v1645_v37 = vsub.f32 %v1159_v34, %v199_v15 }
  0x9e   :  { %v255_v12 = vmul.f32 %v1634_v26, %v1634_v26 }
  0x9f   :  { %v294_v30 = vsel %vm85_vm0, %v256_v27, 0.0  ;;  %v263_v16 = vmul.f32 %v1645_v37, %v1645_v37 }
  0xa0   :  { %v291_v32 = vsel %vm85_vm0, %v255_v12, 0.0  ;;  %v148_v9 = vpop.xlane.xlu1 %147 }
  0xa1   :  { %v121_v1 = vpop.xlane.xlu0 %120  ;;  %295 = vadd.xlane.f32.xlu0 %v294_v30  ;;  %367 = vadd.xlane.f32.xlu1 %v366_v33  ;;  %v209_v42 = vmul.f32 %v1531_v58, %v148_v9 }
  0xa2   :  { %v200_v43 = vmul.f32 %v1531_v58, %v121_v1  ;;  %292 = vadd.xlane.f32.xlu2 %v291_v32  ;;  %v151_v44 = vpop.xlane.xlu2 %150 }
  0xa3   :  { %v1654_v34 = vsub.f32 %v1179_v39, %v209_v42  ;;  %v210_v24 = vmul.f32 %v1531_v58, %v151_v44 }
  0xa4   :  { %v1658_v50 = vsub.f32 %v1160_v40, %v200_v43  ;;  %v315_v40 = vsel %vm85_vm0, %v263_v16, 0.0 }
  0xa5   :  { %v273_v52 = vmul.f32 %v1654_v34, %v1654_v34  ;;  %v1669_v4 = vsub.f32 %v1180_v41, %v210_v24 }
  0xa6   :  { %v264_v25 = vmul.f32 %v1658_v50, %v1658_v50 }
  0xa7   :  { %v345_v31 = vsel %vm85_vm0, %v273_v52, 0.0  ;;  %v274_v27 = vmul.f32 %v1669_v4, %v1669_v4 }
  0xa8   :  { %v318_v39 = vsel %vm85_vm0, %v264_v25, 0.0  ;;  %v175_v57 = vpop.xlane.xlu1 %174 }
  0xa9   :  { %v172_v59 = vpop.xlane.xlu0 %171  ;;  %346 = vadd.xlane.f32.xlu0 %v345_v31  ;;  %316 = vadd.xlane.f32.xlu1 %v315_v40  ;;  %v218_v17 = vmul.f32 %v1531_v58, %v175_v57 }
  0xaa   :  { %v217_v15 = vmul.f32 %v1531_v58, %v172_v59  ;;  %319 = vadd.xlane.f32.xlu2 %v318_v39  ;;  %v100_v18 = vpop.xlane.xlu2 %99 }
  0xab   :  { %v1678_v38 = vsub.f32 %v1196_v47, %v218_v17  ;;  %v193_v12 = vmul.f32 %v1531_v58, %v100_v18 }
  0xac   :  { %v1682_v41 = vsub.f32 %v1195_v48, %v217_v15  ;;  %v348_v48 = vsel %vm85_vm0, %v274_v27, 0.0 }
  0xad   :  { %v282_v30 = vmul.f32 %v1678_v38, %v1678_v38  ;;  %v1693_v33 = vsub.f32 %v1147_v49, %v193_v12 }
  0xae   :  { %v281_v32 = vmul.f32 %v1682_v41, %v1682_v41 }
  0xaf   :  { %v372_v45 = vsel %vm85_vm0, %v282_v30, 0.0  ;;  %v257_v25 = vmul.f32 %v1693_v33, %v1693_v33 }
  0xb0   :  { %v369_v47 = vsel %vm85_vm0, %v281_v32, 0.0  ;;  %v124_v9 = vpop.xlane.xlu1 %123 }
  0xb1   :  { %v103_v1 = vpop.xlane.xlu0 %102  ;;  %373 = vadd.xlane.f32.xlu0 %v372_v45  ;;  %349 = vadd.xlane.f32.xlu1 %v348_v48  ;;  %v201_v42 = vmul.f32 %v1531_v58, %v124_v9 }
  0xb2   :  { %v194_v43 = vmul.f32 %v1531_v58, %v103_v1  ;;  %370 = vadd.xlane.f32.xlu2 %v369_v47  ;;  %v127_v44 = vpop.xlane.xlu2 %126 }
  0xb3   :  { %v1702_v49 = vsub.f32 %v1163_v54, %v201_v42  ;;  %v202_v16 = vmul.f32 %v1531_v58, %v127_v44 }
  0xb4   :  { %v1706_v24 = vsub.f32 %v1148_v55, %v194_v43  ;;  %v297_v55 = vsel %vm85_vm0, %v257_v25, 0.0 }
  0xb5   :  { %v265_v39 = vmul.f32 %v1702_v49, %v1702_v49  ;;  %v1717_v31 = vsub.f32 %v1164_v56, %v202_v16 }
  0xb6   :  { %v258_v52 = vmul.f32 %v1706_v24, %v1706_v24 }
  0xb7   :  { %v321_v46 = vsel %vm85_vm0, %v265_v39, 0.0  ;;  %v266_v18 = vmul.f32 %v1717_v31, %v1717_v31 }
  0xb8   :  { %v300_v54 = vsel %vm85_vm0, %v258_v52, 0.0  ;;  %v154_v40 = vpop.xlane.xlu1 %153 }
  0xb9   :  { %v178_v57 = vpop.xlane.xlu0 %177  ;;  %322 = vadd.xlane.f32.xlu0 %v321_v46  ;;  %298 = vadd.xlane.f32.xlu1 %v297_v55  ;;  %v211_v59 = vmul.f32 %v1531_v58, %v154_v40  ;;  %v324_v47 = vsel %vm85_vm0, %v266_v18, 0.0 }
  0xba   :  { %301 = vadd.xlane.f32.xlu2 %v300_v54  ;;  %v157_v17 = vpop.xlane.xlu2 %156  ;;  %v219_v56 = vmul.f32 %v1531_v58, %v178_v57 }
  0xbb   :  { %v212_v15 = vmul.f32 %v1531_v58, %v157_v17  ;;  %v1726_v53 = vsub.f32 %v1183_v62, %v211_v59 }
  0xbc   :  { %v1741_v30 = vsub.f32 %v1199_v63, %v219_v56 }
  0xbd   :  { %v1733_v12 = vsub.f32 %v1184_v6, %v212_v15  ;;  %v275_v27 = vmul.f32 %v1726_v53, %v1726_v53 }
  0xbe   :  { %v283_v44 = vmul.f32 %v1741_v30, %v1741_v30 }
  0xbf   :  { %v276_v32 = vmul.f32 %v1733_v12, %v1733_v12  ;;  %v351_v62 = vsel %vm85_vm0, %v275_v27, 0.0 }
  0xc0   :  { %v181_v45 = vpop.xlane.xlu1 %180 }
  0xc1   :  { %v106_v48 = vpop.xlane.xlu0 %105  ;;  %325 = vadd.xlane.f32.xlu1 %v324_v47  ;;  %v354_v60 = vsel %vm85_vm0, %v276_v32, 0.0  ;;  %v220_v6 = vmul.f32 %v1531_v58, %v181_v45 }
  0xc2   :  { %v195_v9 = vmul.f32 %v1531_v58, %v106_v48  ;;  %352 = vadd.xlane.f32.xlu2 %v351_v62  ;;  %355 = vadd.xlane.f32.xlu0 %v354_v60  ;;  %v130_v1 = vpop.xlane.xlu2 %129  ;;  %v1136_v62 = vld [vmem:[%s2737_s1 + $0x8] sm:$0xff] }
  0xc3   :  { %v203_v42 = vmul.f32 %v1531_v58, %v130_v1  ;;  %v1751_v63 = vsub.f32 %v1200_v20, %v220_v6  ;;  %v375_v20 = vsel %vm85_vm0, %v283_v44, 0.0  ;;  %1217 = vmatpush.bf16.msra.mxu2 %v1136_v62  ;;  %1218 = vmatpush.bf16.msra.mxu3 %v1136_v62  ;;  %v1135_v1 = vld [vmem:[%s2737_s1] sm:$0xff] }
  0xc4   :  { %v1755_v43 = vsub.f32 %v1151_v21, %v195_v9  ;;  %959 = vmatpush.bf16.msra.mxu0 %v1136_v62  ;;  %1216 = vmatpush.bf16.msra.mxu1 %v1136_v62 }
  0xc5   :  { %v284_v16 = vmul.f32 %v1751_v63, %v1751_v63  ;;  %v1765_v52 = vsub.f32 %v1167_v22, %v203_v42 }
  0xc6   :  { %2744 = vst [vmem:[#allocation2_spill] sm:$0xff] %v1755_v43  ;;  %v259_v25 = vmul.f32 %v1755_v43, %v1755_v43 }
  0xc7   :  { %2745 = vst [vmem:[#allocation3_spill] sm:$0xff] %v1765_v52  ;;  %v378_v61 = vsel %vm85_vm0, %v284_v16, 0.0  ;;  %v267_v40 = vmul.f32 %v1765_v52, %v1765_v52  ;;  %1220 = vmatpush.bf16.msra.mxu2 %v1135_v1  ;;  %1221 = vmatpush.bf16.msra.mxu3 %v1135_v1 }
  0xc8   :  { %v303_v21 = vsel %vm85_vm0, %v259_v25, 0.0  ;;  %v109_v39 = vpop.xlane.xlu1 %108  ;;  %960 = vmatpush.bf16.msra.mxu0 %v1135_v1  ;;  %1219 = vmatpush.bf16.msra.mxu1 %v1135_v1 }
  0xc9   :  { %v133_v54 = vpop.xlane.xlu0 %132  ;;  %376 = vadd.xlane.f32.xlu1 %v375_v20  ;;  %v196_v46 = vmul.f32 %v1531_v58, %v109_v39  ;;  %v327_v15 = vsel %vm85_vm0, %v267_v40, 0.0 }
  0xca   :  { %v204_v55 = vmul.f32 %v1531_v58, %v133_v54  ;;  %379 = vadd.xlane.f32.xlu2 %v378_v61  ;;  %304 = vadd.xlane.f32.xlu0 %v303_v21 }
  0xcb   :  { %v1776_v22 = vsub.f32 %v1152_v35, %v196_v46 }
  0xcc   :  { %v1780_v57 = vsub.f32 %v1168_v36, %v204_v55 }
  0xcd   :  { %2746 = vst [vmem:[#allocation4_spill] sm:$0xff] %v1776_v22  ;;  %v260_v59 = vmul.f32 %v1776_v22, %v1776_v22 }
  0xce   :  { %2747 = vst [vmem:[#allocation5_spill] sm:$0xff] %v1780_v57  ;;  %v268_v17 = vmul.f32 %v1780_v57, %v1780_v57 }
  0xcf   :  { %v306_v56 = vsel %vm85_vm0, %v260_v59, 0.0 }
  0xd0   :  { %v330_v18 = vsel %vm85_vm0, %v268_v17, 0.0 }
  0xd1   :  { %307 = vadd.xlane.f32.xlu1 %v306_v56 }
  0xd2   :  { %331 = vadd.xlane.f32.xlu0 %v330_v18  ;;  %328 = vadd.xlane.f32.xlu2 %v327_v15 }
  0xf3   :  { %v359_v35 = vpop.xlane.xlu2 %358 }
  0xf4   :  { %v335_v13 = vpop.xlane.xlu0 %334  ;;  %v405_v36 = vmul.f32 %v359_v35, %v1531_v58 }
  0xf5   :  { %v397_v14 = vmul.f32 %v335_v13, %v1531_v58 }
  0xf6   :  { %v1793_v32 = vadd.f32 1e-05, %v405_v36 }
  0xf7   :  { %v1791_v27 = vadd.f32 1e-05, %v397_v14 }
  0xf8   :  { %vm691_vm7 = vweird.f32 %v1793_v32 }
  0xf9   :  { %1228 = vrsqrt.f32 %v1791_v27  ;;  %vm611_vm2 = vweird.f32 %v1791_v27 }
  0xfa   :  { %1230 = vrsqrt.f32 %v1793_v32 }
  0xfb   :  { %v287_v6 = vpop.xlane.xlu2 %286 }
  0xfc   :  { %v338_v47 = vpop.xlane.xlu1 %337  ;;  %v362_v45 = vpop.xlane.xlu0 %361  ;;  %v381_v9 = vmul.f32 %v287_v6, %v1531_v58 }
  0xfd   :  { %v398_v48 = vmul.f32 %v338_v47, %v1531_v58  ;;  %v406_v60 = vmul.f32 %v362_v45, %v1531_v58 }
  0xfe   :  { %v1816_v20 = vadd.f32 1e-05, %v381_v9 }
  0xff   :  { %v1806_v42 = vpop.eup %1228  ;;  %v1808_v44 = vadd.f32 1e-05, %v398_v48  ;;  %v1810_v16 = vadd.f32 1e-05, %v406_v60 }
 0x100   :  { %v1812_v25 = vpop.eup %1230  ;;  %v606_v61 = vmul.f32 %v1806_v42, %v1791_v27  ;;  %vm612_vm3 = vweird.f32 %v1806_v42  ;;  %vm451_vm13 = vweird.f32 %v1816_v20 }
 0x101   :  { %v686_v21 = vmul.f32 %v1812_v25, %v1793_v32  ;;  %1232 = vrsqrt.f32 %v1808_v44  ;;  %vm692_vm4 = vweird.f32 %v1812_v25  ;;  %vm1861_vm6 = vmor %vm611_vm2, %vm612_vm3  ;;  %vm621_vm9 = vweird.f32 %v1808_v44 }
 0x102   :  { %v607_v39 = vmul.f32 %v1806_v42, %v606_v61  ;;  %1234 = vrsqrt.f32 %v1810_v16  ;;  %vm1869_vm8 = vmor %vm691_vm7, %vm692_vm4  ;;  %vm701_vm12 = vweird.f32 %v1810_v16 }
 0x103   :  { %v687_v54 = vmul.f32 %v1812_v25, %v686_v21  ;;  %1236 = vrsqrt.f32 %v1816_v20  ;;  %v314_v15 = vpop.xlane.xlu2 %313 }
 0x104   :  { %v311_v46 = vpop.xlane.xlu1 %310  ;;  %v290_v55 = vpop.xlane.xlu0 %289  ;;  %v608_v40 = vmul.f32 0.5, %v607_v39  ;;  %v390_v18 = vmul.f32 %v314_v15, %v1531_v58 }
 0x105   :  { %v389_v59 = vmul.f32 %v311_v46, %v1531_v58  ;;  %v382_v17 = vmul.f32 %v290_v55, %v1531_v58  ;;  %v688_v56 = vmul.f32 0.5, %v687_v54 }
 0x106   :  { %v609_v45 = vsub.f32 1.5, %v608_v40  ;;  %v1840_v60 = vadd.f32 1e-05, %v390_v18 }
 0x107   :  { %v1233_v13 = vpop.eup %1232  ;;  %v1828_v35 = vadd.f32 1e-05, %v389_v59  ;;  %v1833_v62 = vadd.f32 1e-05, %v382_v17  ;;  %v689_v6 = vsub.f32 1.5, %v688_v56 }
 0x108   :  { %v1830_v14 = vpop.eup %1234  ;;  %v616_v36 = vmul.f32 %v1233_v13, %v1808_v44  ;;  %v610_v55 = vmul.f32 %v1806_v42, %v609_v45  ;;  %vm622_vm5 = vweird.f32 %v1233_v13 }
 0x109   :  { %v1835_v47 = vpop.eup %1236  ;;  %v696_v48 = vmul.f32 %v1830_v14, %v1810_v16  ;;  %1238 = vrsqrt.f32 %v1828_v35  ;;  %v690_v17 = vmul.f32 %v1812_v25, %v689_v6  ;;  %vm1880_vm10 = vmor %vm621_vm9, %vm622_vm5  ;;  %vm702_vm11 = vweird.f32 %v1830_v14  ;;  %v1915_v16 = vld [vmem:[%s2735_s3] ss:$0 sm:$0xff] }
 0x10a   :  { %v617_v9 = vmul.f32 %v1233_v13, %v616_v36  ;;  %v446_v1 = vmul.f32 %v1835_v47, %v1816_v20  ;;  %1240 = vrsqrt.f32 %v1833_v62  ;;  %v614_v32 = vsel %vm1861_vm6, %v1806_v42, %v610_v55  ;;  %vm1920_vm14 = vmor %vm701_vm12, %vm702_vm11 }
 0x10b   :  { %v697_v61 = vmul.f32 %v1830_v14, %v696_v48  ;;  %1242 = vrsqrt.f32 %v1840_v60  ;;  %v694_v44 = vsel %vm1869_vm8, %v1812_v25, %v690_v17  ;;  %v781_v17 = vmul.f32 %v614_v32, %v1541_v29 }
 0x10c   :  { %v618_v21 = vmul.f32 0.5, %v617_v9  ;;  %v447_v39 = vmul.f32 %v1835_v47, %v446_v1  ;;  %v365_v54 = vpop.xlane.xlu0 %364  ;;  %v341_v46 = vpop.xlane.xlu1 %340  ;;  %vm452_vm15 = vweird.f32 %v1835_v47  ;;  %vm531_vm1 = vweird.f32 %v1828_v35 }
 0x10d   :  { %v698_v40 = vmul.f32 0.5, %v697_v61  ;;  %v344_v59 = vpop.xlane.xlu2 %343  ;;  %v407_v56 = vmul.f32 %v365_v54, %v1531_v58  ;;  %v399_v18 = vmul.f32 %v341_v46, %v1531_v58  ;;  %vm1948_vm2 = vmor %vm451_vm13, %vm452_vm15  ;;  %vm461_vm3 = vweird.f32 %v1833_v62 }
 0x10e   :  { %v619_v15 = vsub.f32 1.5, %v618_v21  ;;  %v448_v9 = vmul.f32 0.5, %v447_v39  ;;  %v400_v6 = vmul.f32 %v344_v59, %v1531_v58  ;;  %vm541_vm5 = vweird.f32 %v1840_v60 }
 0x10f   :  { %v1855_v36 = vpop.eup %1238  ;;  %v699_v48 = vsub.f32 1.5, %v698_v40  ;;  %v1885_v39 = vadd.f32 1e-05, %v407_v56  ;;  %v1895_v55 = vadd.f32 1e-05, %v399_v18 }
 0x110   :  { %v620_v61 = vmul.f32 %v1233_v13, %v619_v15  ;;  %v526_v27 = vmul.f32 %v1855_v36, %v1828_v35  ;;  %v1887_v54 = vpop.eup %1240  ;;  %v449_v15 = vsub.f32 1.5, %v448_v9  ;;  %v1902_v45 = vadd.f32 1e-05, %v400_v6 }
 0x111   :  { %v1897_v40 = vpop.eup %1242  ;;  %v700_v59 = vmul.f32 %v1830_v14, %v699_v48  ;;  %v456_v56 = vmul.f32 %v1887_v54, %v1833_v62  ;;  %1244 = vrsqrt.f32 %v1885_v39  ;;  %v789_v6 = vmul.f32 %v694_v44, %v1537_v28 }
 0x112   :  { %v624_v46 = vsel %vm1880_vm10, %v1233_v13, %v620_v61  ;;  %v527_v42 = vmul.f32 %v1855_v36, %v526_v27  ;;  %v536_v13 = vmul.f32 %v1897_v40, %v1840_v60  ;;  %1246 = vrsqrt.f32 %v1895_v55 }
 0x113   :  { %v782_v18 = vmul.f32 %v624_v46, %v1562_v8  ;;  %v457_v48 = vmul.f32 %v1887_v54, %v456_v56  ;;  %v704_v27 = vsel %vm1920_vm14, %v1830_v14, %v700_v59  ;;  %v450_v32 = vmul.f32 %v1835_v47, %v449_v15  ;;  %v1941_v14 = vld [vmem:[%s2736_s4] ss:$0 sm:$0xff] }
 0x114   :  { %v528_v25 = vmul.f32 0.5, %v527_v42  ;;  %v296_v9 = vpop.xlane.xlu0 %295  ;;  %v368_v1 = vpop.xlane.xlu1 %367  ;;  %v537_v29 = vmul.f32 %v1897_v40, %v536_v13  ;;  %1248 = vrsqrt.f32 %v1902_v45  ;;  %v817_v13 = vmul.f32 %v1915_v16, %v781_v17 }
 0x115   :  { %v293_v8 = vpop.xlane.xlu2 %292  ;;  %v458_v21 = vmul.f32 0.5, %v457_v48  ;;  %v384_v44 = vmul.f32 %v296_v9, %v1531_v58  ;;  %v408_v46 = vmul.f32 %v368_v1, %v1531_v58  ;;  %v818_v61 = vmul.f32 %v1915_v16, %v782_v18 }
 0x116   :  { %v529_v28 = vsub.f32 1.5, %v528_v25  ;;  %v538_v42 = vmul.f32 0.5, %v537_v29  ;;  %v383_v56 = vmul.f32 %v293_v8, %v1531_v58  ;;  %v790_v59 = vmul.f32 %v704_v27, %v1558_v7 }
 0x117   :  { %v1953_v25 = vadd.f32 1e-05, %v384_v44  ;;  %v825_v17 = vmul.f32 %v1915_v16, %v789_v6  ;;  %v1956_v18 = vpop.eup %1244  ;;  %v454_v7 = vsel %vm1948_vm2, %v1835_v47, %v450_v32  ;;  %vm532_vm4 = vweird.f32 %v1855_v36 }
 0x118   :  { %v530_v48 = vmul.f32 %v1855_v36, %v529_v28  ;;  %v1964_v20 = vadd.f32 1e-05, %v408_v46  ;;  %v1966_v9 = vpop.eup %1246  ;;  %v459_v1 = vsub.f32 1.5, %v458_v21  ;;  %v706_v6 = vmul.f32 %v1956_v18, %v1885_v39  ;;  %vm1991_vm7 = vmor %vm531_vm1, %vm532_vm4 }
 0x119   :  { %1250 = vrsqrt.f32 %v1953_v25  ;;  %v1971_v29 = vadd.f32 1e-05, %v383_v56  ;;  %v539_v47 = vsub.f32 1.5, %v538_v42  ;;  %v626_v27 = vmul.f32 %v1966_v9, %v1895_v55 }
 0x11a   :  { %v1973_v8 = vpop.eup %1248  ;;  %v853_v32 = vadd.f32 %v1941_v14, %v817_v13  ;;  %v854_v28 = vadd.f32 %v1941_v14, %v818_v61  ;;  %vm462_vm6 = vweird.f32 %v1887_v54  ;;  %v707_v21 = vmul.f32 %v1956_v18, %v706_v6 }
 0x11b   :  { %v636_v44 = vmul.f32 %v1973_v8, %v1902_v45  ;;  %v826_v46 = vmul.f32 %v1915_v16, %v790_v59  ;;  %v1985_v56 = vmul.f32 %v454_v7, %v1552_v3  ;;  %vm542_vm8 = vweird.f32 %v1897_v40  ;;  %vm2014_vm9 = vmor %vm461_vm3, %vm462_vm6 }
 0x11c   :  { %v627_v13 = vmul.f32 %v1966_v9, %v626_v27  ;;  %1252 = vrsqrt.f32 %v1964_v20  ;;  %v347_v61 = vpop.xlane.xlu0 %346  ;;  %v534_v3 = vsel %vm1991_vm7, %v1855_v36, %v530_v48  ;;  %v460_v59 = vmul.f32 %v1887_v54, %v459_v1  ;;  %v317_v35 = vpop.xlane.xlu1 %316  ;;  %vm2032_vm12 = vmor %vm541_vm5, %vm542_vm8 }
 0x11d   :  { %v637_v15 = vmul.f32 %v1973_v8, %v636_v44  ;;  %1254 = vrsqrt.f32 %v1971_v29  ;;  %v540_v7 = vmul.f32 %v1897_v40, %v539_v47  ;;  %v708_v6 = vmul.f32 0.5, %v707_v21  ;;  %v320_v48 = vpop.xlane.xlu2 %319 }
 0x11e   :  { %v628_v52 = vmul.f32 0.5, %v627_v13  ;;  %v877_v57 = vpack.c.bf16 %v854_v28, %v853_v32  ;;  %v861_v43 = vadd.f32 %v1941_v14, %v825_v17  ;;  %v862_v42 = vadd.f32 %v1941_v14, %v826_v46 }
 0x11f   :  { %v2005_v27 = vpop.eup %1250  ;;  %v638_v22 = vmul.f32 0.5, %v637_v15  ;;  %v401_v36 = vmul.f32 %v347_v61, %v1531_v58  ;;  %vm711_vm10 = vweird.f32 %v1885_v39  ;;  %vm631_vm11 = vweird.f32 %v1895_v55 }
 0x120   :  { %v476_v17 = vmul.f32 %v2005_v27, %v1953_v25  ;;  %1127 = vmatmul.msk.bf16.vlgmr.msra.gmra.mxu2 %vm85_vm0, %v877_v57  ;;  %v391_v47 = vmul.f32 %v317_v35, %v1531_v58  ;;  %v773_v32 = vmul.f32 %v534_v3, %v1586_v11  ;;  %v464_v62 = vsel %vm2014_vm9, %v1887_v54, %v460_v59 }
 0x121   :  { %v629_v21 = vsub.f32 1.5, %v628_v52  ;;  %vm641_vm13 = vweird.f32 %v1902_v45  ;;  %v881_v57 = vpack.c.bf16 %v862_v42, %v861_v43  ;;  %v544_v11 = vsel %vm2032_vm12, %v1897_v40, %v540_v7 }
 0x122   :  { %v2037_v44 = vpop.eup %1252  ;;  %v709_v46 = vsub.f32 1.5, %v708_v6  ;;  %v477_v54 = vmul.f32 %v2005_v27, %v476_v17  ;;  %v2043_v13 = vadd.f32 1e-05, %v401_v36  ;;  %vm712_vm14 = vweird.f32 %v1956_v18 }
 0x123   :  { %v2045_v60 = vpop.eup %1254  ;;  %v639_v61 = vsub.f32 1.5, %v638_v22  ;;  %v716_v52 = vmul.f32 %v2037_v44, %v1964_v20  ;;  %1131 = vmatmul.msk.bf16.vlgmr.msra.gmra.mxu3 %vm85_vm0, %v881_v57  ;;  %v2051_v43 = vadd.f32 1e-05, %v391_v47  ;;  %v766_v3 = vmul.f32 %v464_v62, %v1573_v0  ;;  %vm2087_vm5 = vmor %vm711_vm10, %vm712_vm14 }
 0x124   :  { %vm632_vm15 = vweird.f32 %v1966_v9  ;;  %v466_v40 = vmul.f32 %v2045_v60, %v1971_v29  ;;  %v392_v59 = vmul.f32 %v320_v48, %v1531_v58  ;;  %v774_v15 = vmul.f32 %v544_v11, %v1582_v2  ;;  %v374_v47 = vpop.xlane.xlu0 %373  ;;  %v350_v57 = vpop.xlane.xlu1 %349 }
 0x125   :  { %v630_v22 = vmul.f32 %v1966_v9, %v629_v21  ;;  %vm642_vm1 = vweird.f32 %v1973_v8  ;;  %v717_v35 = vmul.f32 %v2037_v44, %v716_v52  ;;  %v2063_v7 = vmul.f32 %v1956_v18, %v709_v46  ;;  %vm2074_vm3 = vmor %vm631_vm11, %vm632_vm15  ;;  %v371_v11 = vpop.xlane.xlu2 %370 }
 0x126   :  { %v478_v6 = vmul.f32 0.5, %v477_v54  ;;  %v467_v0 = vmul.f32 %v2045_v60, %v466_v40  ;;  %1256 = vrsqrt.f32 %v2043_v13  ;;  %v640_v42 = vmul.f32 %v1973_v8, %v639_v61  ;;  %vm2106_vm7 = vmor %vm641_vm13, %vm642_vm1 }
 0x127   :  { %v718_v36 = vmul.f32 0.5, %v717_v35  ;;  %vm471_vm2 = vweird.f32 %v1971_v29  ;;  %1258 = vrsqrt.f32 %v2051_v43  ;;  %vm482_vm4 = vweird.f32 %v2005_v27 }
 0x128   :  { %v468_v48 = vmul.f32 0.5, %v467_v0  ;;  %v2079_v1 = vadd.f32 1e-05, %v392_v59  ;;  %v801_v17 = vmul.f32 %v1915_v16, %v1985_v56  ;;  %v634_v55 = vsel %vm2074_vm3, %v1966_v9, %v630_v22 }
 0x129   :  { %vm481_vm6 = vweird.f32 %v1953_v25  ;;  %v802_v28 = vmul.f32 %v1915_v16, %v766_v3  ;;  %v809_v21 = vmul.f32 %v1915_v16, %v773_v32  ;;  %v810_v56 = vmul.f32 %v1915_v16, %v774_v15 }
 0x12a   :  { %v714_v39 = vsel %vm2087_vm5, %v1956_v18, %v2063_v7  ;;  %v479_v46 = vsub.f32 1.5, %v478_v6  ;;  %vm721_vm8 = vweird.f32 %v1964_v20  ;;  %v469_v32 = vsub.f32 1.5, %v468_v48  ;;  %vm2165_vm12 = vmor %vm481_vm6, %vm482_vm4 }
 0x12b   :  { %1260 = vrsqrt.f32 %v2079_v1  ;;  %v644_v54 = vsel %vm2106_vm7, %v1973_v8, %v640_v42  ;;  %v719_v61 = vsub.f32 1.5, %v718_v36  ;;  %v837_v18 = vadd.f32 %v1941_v14, %v801_v17 }
 0x12c   :  { %v838_v52 = vadd.f32 %v1941_v14, %v802_v28  ;;  %v2117_v45 = vpop.eup %1256  ;;  %v783_v3 = vmul.f32 %v634_v55, %v1597_v5  ;;  %v845_v40 = vadd.f32 %v1941_v14, %v809_v21  ;;  %v846_v59 = vadd.f32 %v1941_v14, %v810_v56 }
 0x12d   :  { %v410_v15 = vmul.f32 %v374_v47, %v1531_v58  ;;  %v2123_v22 = vpop.eup %1258  ;;  %v470_v35 = vmul.f32 %v2045_v60, %v469_v32  ;;  %vm472_vm9 = vweird.f32 %v2045_v60  ;;  %v646_v8 = vmul.f32 %v2117_v45, %v2043_v13  ;;  %v323_v32 = vpop.xlane.xlu0 %322 }
 0x12e   :  { %v869_v7 = vpack.c.bf16 %v838_v52, %v837_v18  ;;  %v784_v6 = vmul.f32 %v644_v54, %v1610_v10  ;;  %v480_v5 = vmul.f32 %v2005_v27, %v479_v46  ;;  %vm722_vm10 = vweird.f32 %v2037_v44  ;;  %vm2143_vm11 = vmor %vm471_vm2, %vm472_vm9  ;;  %v302_v18 = vpop.xlane.xlu2 %301 }
 0x12f   :  { %v546_v0 = vmul.f32 %v2123_v22, %v2051_v43  ;;  %v720_v42 = vmul.f32 %v2037_v44, %v719_v61  ;;  %v647_v36 = vmul.f32 %v2117_v45, %v646_v8  ;;  %v873_v2 = vpack.c.bf16 %v846_v59, %v845_v40  ;;  %vm2177_vm13 = vmor %vm721_vm8, %vm722_vm10  ;;  %v299_v61 = vpop.xlane.xlu1 %298 }
 0x130   :  { %1119 = vmatmul.msk.bf16.vlgmr.msra.gmra.mxu0 %vm85_vm0, %v869_v7  ;;  %v2137_v48 = vadd.f32 1e-05, %v410_v15  ;;  %v402_v62 = vmul.f32 %v350_v57, %v1531_v58  ;;  %v409_v55 = vmul.f32 %v371_v11, %v1531_v58  ;;  %v819_v28 = vmul.f32 %v1915_v16, %v783_v3 }
 0x131   :  { %v2139_v17 = vpop.eup %1260  ;;  %v547_v47 = vmul.f32 %v2123_v22, %v546_v0  ;;  %v474_v21 = vsel %vm2143_vm11, %v2045_v60, %v470_v35  ;;  %v648_v56 = vmul.f32 0.5, %v647_v36  ;;  %1123 = vmatmul.msk.bf16.vlgmr.msra.gmra.mxu1 %vm85_vm0, %v873_v2  ;;  %v2159_v9 = vmul.f32 %v714_v39, %v1606_v19 }
 0x132   :  { %v556_v29 = vmul.f32 %v2139_v17, %v2079_v1  ;;  %1262 = vrsqrt.f32 %v2137_v48  ;;  %v2169_v11 = vadd.f32 1e-05, %v402_v62  ;;  %v2171_v46 = vadd.f32 1e-05, %v409_v55 }
 0x133   :  { %v548_v60 = vmul.f32 0.5, %v547_v47  ;;  %vm651_vm14 = vweird.f32 %v2043_v13  ;;  %v820_v39 = vmul.f32 %v1915_v16, %v784_v6  ;;  %v855_v54 = vadd.f32 %v1941_v14, %v819_v28 }
 0x134   :  { %v557_v25 = vmul.f32 %v2139_v17, %v556_v29  ;;  %v484_v52 = vsel %vm2165_vm12, %v2005_v27, %v480_v5  ;;  %v724_v20 = vsel %vm2177_vm13, %v2037_v44, %v720_v42  ;;  %v767_v3 = vmul.f32 %v474_v21, %v1634_v26 }
 0x135   :  { %1264 = vrsqrt.f32 %v2169_v11  ;;  %v649_v40 = vsub.f32 1.5, %v648_v56  ;;  %v856_v15 = vadd.f32 %v1941_v14, %v820_v39  ;;  %v549_v35 = vsub.f32 1.5, %v548_v60 }
 0x136   :  { %v558_v59 = vmul.f32 0.5, %v557_v25  ;;  %1266 = vrsqrt.f32 %v2171_v46  ;;  %v393_v8 = vmul.f32 %v323_v32, %v1531_v58  ;;  %v385_v7 = vmul.f32 %v299_v61, %v1531_v58 }
 0x137   :  { %v386_v27 = vmul.f32 %v302_v18, %v1531_v58  ;;  %v768_v44 = vmul.f32 %v484_v52, %v1630_v23  ;;  %vm551_vm15 = vweird.f32 %v2051_v43  ;;  %vm561_vm1 = vweird.f32 %v2079_v1  ;;  %v356_v43 = vpop.xlane.xlu0 %355 }
 0x138   :  { %v2198_v6 = vpop.eup %1262  ;;  %v878_v26 = vpack.c.bf16 %v856_v15, %v855_v54  ;;  %v792_v5 = vmul.f32 %v724_v20, %v1621_v51  ;;  %vm652_vm2 = vweird.f32 %v2117_v45  ;;  %v559_v0 = vsub.f32 1.5, %v558_v59  ;;  %v326_v54 = vpop.xlane.xlu1 %325 }
 0x139   :  { %v736_v42 = vmul.f32 %v2198_v6, %v2137_v48  ;;  %v650_v36 = vmul.f32 %v2117_v45, %v649_v40  ;;  %v2209_v2 = vadd.f32 1e-05, %v393_v8  ;;  %v2211_v23 = vadd.f32 1e-05, %v385_v7  ;;  %vm2232_vm5 = vmor %vm651_vm14, %vm652_vm2 }
 0x13a   :  { %1128 = vmatmul.msk.bf16.gmra.mxu2 %vm85_vm0, %v878_v26  ;;  %v803_v10 = vmul.f32 %v1915_v16, %v767_v3  ;;  %v550_v51 = vmul.f32 %v2123_v22, %v549_v35  ;;  %vm552_vm3 = vweird.f32 %v2123_v22  ;;  %v2219_v55 = vadd.f32 1e-05, %v386_v27 }
 0x13b   :  { %v2214_v47 = vpop.eup %1264  ;;  %v737_v62 = vmul.f32 %v2198_v6, %v736_v42  ;;  %vm562_vm4 = vweird.f32 %v2139_v17  ;;  %1268 = vrsqrt.f32 %v2209_v2  ;;  %v804_v56 = vmul.f32 %v1915_v16, %v768_v44  ;;  %vm2245_vm7 = vmor %vm551_vm15, %vm552_vm3 }
 0x13c   :  { %v2221_v28 = vpop.eup %1266  ;;  %v656_v21 = vmul.f32 %v2214_v47, %v2169_v11  ;;  %v560_v57 = vmul.f32 %v2139_v17, %v559_v0  ;;  %vm741_vm6 = vweird.f32 %v2137_v48  ;;  %v654_v19 = vsel %vm2232_vm5, %v2117_v45, %v650_v36  ;;  %vm2261_vm8 = vmor %vm561_vm1, %vm562_vm4 }
 0x13d   :  { %v738_v60 = vmul.f32 0.5, %v737_v62  ;;  %v726_v32 = vmul.f32 %v2221_v28, %v2171_v46  ;;  %1270 = vrsqrt.f32 %v2211_v23  ;;  %v839_v39 = vadd.f32 %v1941_v14, %v803_v10 }
 0x13e   :  { %v657_v25 = vmul.f32 %v2214_v47, %v656_v21  ;;  %v554_v61 = vsel %vm2245_vm7, %v2123_v22, %v550_v51  ;;  %1272 = vrsqrt.f32 %v2219_v55  ;;  %vm661_vm9 = vweird.f32 %v2169_v11 }
 0x13f   :  { %v739_v18 = vsub.f32 1.5, %v738_v60  ;;  %v727_v45 = vmul.f32 %v2221_v28, %v726_v32  ;;  %v840_v3 = vadd.f32 %v1941_v14, %v804_v56  ;;  %v827_v22 = vmul.f32 %v1915_v16, %v2159_v9 }
 0x140   :  { %v658_v20 = vmul.f32 0.5, %v657_v25  ;;  %v828_v40 = vmul.f32 %v1915_v16, %v792_v5  ;;  %v2271_v59 = vmul.f32 %v654_v19, %v1654_v34  ;;  %v564_v1 = vsel %vm2261_vm8, %v2139_v17, %v560_v57  ;;  %v353_v5 = vpop.xlane.xlu2 %352 }
 0x141   :  { %v728_v15 = vmul.f32 0.5, %v727_v45  ;;  %v394_v35 = vmul.f32 %v326_v54, %v1531_v58  ;;  %v2277_v8 = vpop.eup %1268  ;;  %v870_v27 = vpack.c.bf16 %v840_v3, %v839_v39  ;;  %v863_v44 = vadd.f32 %v1941_v14, %v827_v22  ;;  %v377_v45 = vpop.xlane.xlu1 %376 }
 0x142   :  { %v659_v7 = vsub.f32 1.5, %v658_v20  ;;  %v864_v9 = vadd.f32 %v1941_v14, %v828_v40  ;;  %v775_v26 = vmul.f32 %v554_v61, %v1645_v37  ;;  %v740_v34 = vmul.f32 %v2198_v6, %v739_v18 }
 0x143   :  { %vm742_vm10 = vweird.f32 %v2198_v6  ;;  %vm731_vm11 = vweird.f32 %v2171_v46  ;;  %v566_v17 = vmul.f32 %v2277_v8, %v2209_v2  ;;  %v2287_v0 = vpop.eup %1270  ;;  %v729_v42 = vsub.f32 1.5, %v728_v15  ;;  %1120 = vmatmul.msk.bf16.gmra.mxu0 %vm85_vm0, %v870_v27 }
 0x144   :  { %v882_v36 = vpack.c.bf16 %v864_v9, %v863_v44  ;;  %v2290_v10 = vadd.f32 1e-05, %v394_v35  ;;  %v404_v37 = vmul.f32 %v356_v43, %v1531_v58  ;;  %v2293_v51 = vpop.eup %1272  ;;  %v776_v62 = vmul.f32 %v564_v1, %v1658_v50  ;;  %vm2304_vm13 = vmor %vm741_vm6, %vm742_vm10  ;;  %v305_v43 = vpop.xlane.xlu0 %304 }
 0x145   :  { %vm662_vm12 = vweird.f32 %v2214_v47  ;;  %v567_v21 = vmul.f32 %v2277_v8, %v566_v17  ;;  %v486_v56 = vmul.f32 %v2287_v0, %v2211_v23  ;;  %v660_v57 = vmul.f32 %v2214_v47, %v659_v7 }
 0x146   :  { %vm732_vm14 = vweird.f32 %v2221_v28  ;;  %v496_v50 = vmul.f32 %v2293_v51, %v2219_v55  ;;  %1132 = vmatmul.msk.bf16.gmra.mxu3 %vm85_vm0, %v882_v36  ;;  %1274 = vrsqrt.f32 %v2290_v10  ;;  %v744_v60 = vsel %vm2304_vm13, %v2198_v6, %v740_v34  ;;  %vm2329_vm3 = vmor %vm661_vm9, %vm662_vm12 }
 0x147   :  { %v568_v48 = vmul.f32 0.5, %v567_v21  ;;  %vm571_vm15 = vweird.f32 %v2209_v2  ;;  %v487_v32 = vmul.f32 %v2287_v0, %v486_v56  ;;  %v730_v19 = vmul.f32 %v2221_v28, %v729_v42  ;;  %vm2351_vm5 = vmor %vm731_vm11, %vm732_vm14 }
 0x148   :  { %vm572_vm1 = vweird.f32 %v2277_v8  ;;  %vm491_vm2 = vweird.f32 %v2211_v23  ;;  %v497_v13 = vmul.f32 %v2293_v51, %v496_v50  ;;  %v2323_v25 = vadd.f32 1e-05, %v404_v37  ;;  %v380_v34 = vpop.xlane.xlu2 %379 }
 0x149   :  { %v569_v39 = vsub.f32 1.5, %v568_v48  ;;  %v488_v54 = vmul.f32 0.5, %v487_v32  ;;  %v403_v61 = vmul.f32 %v353_v5, %v1531_v58  ;;  %v811_v18 = vmul.f32 %v1915_v16, %v775_v26  ;;  %vm2370_vm7 = vmor %vm571_vm15, %vm572_vm1  ;;  %v308_v6 = vpop.xlane.xlu1 %307 }
 0x14a   :  { %v664_v52 = vsel %vm2329_vm3, %v2214_v47, %v660_v57  ;;  %v498_v20 = vmul.f32 0.5, %v497_v13  ;;  %vm501_vm4 = vweird.f32 %v2219_v55  ;;  %1276 = vrsqrt.f32 %v2323_v25 }
 0x14b   :  { %v812_v11 = vmul.f32 %v1915_v16, %v776_v62  ;;  %v570_v3 = vmul.f32 %v2277_v8, %v569_v39  ;;  %v489_v22 = vsub.f32 1.5, %v488_v54  ;;  %v2342_v40 = vadd.f32 1e-05, %v403_v61 }
 0x14c   :  { %v847_v1 = vadd.f32 %v1941_v14, %v811_v18  ;;  %v2345_v15 = vpop.eup %1274  ;;  %v499_v35 = vsub.f32 1.5, %v498_v20  ;;  %v411_v27 = vmul.f32 %v377_v45, %v1531_v58  ;;  %v387_v44 = vmul.f32 %v305_v43, %v1531_v58 }
 0x14d   :  { %v848_v7 = vadd.f32 %v1941_v14, %v812_v11  ;;  %v794_v9 = vmul.f32 %v744_v60, %v1678_v38  ;;  %v734_v26 = vsel %vm2351_vm5, %v2221_v28, %v730_v19  ;;  %vm492_vm6 = vweird.f32 %v2287_v0 }
 0x14e   :  { %v576_v46 = vmul.f32 %v2345_v15, %v2290_v10  ;;  %v786_v17 = vmul.f32 %v664_v52, %v1669_v4  ;;  %v490_v38 = vmul.f32 %v2287_v0, %v489_v22  ;;  %vm502_vm8 = vweird.f32 %v2293_v51  ;;  %vm2394_vm9 = vmor %vm491_vm2, %vm492_vm6  ;;  %v332_v22 = vpop.xlane.xlu0 %331 }
 0x14f   :  { %1278 = vrsqrt.f32 %v2342_v40  ;;  %v574_v28 = vsel %vm2370_vm7, %v2277_v8, %v570_v3  ;;  %v874_v42 = vpack.c.bf16 %v848_v7, %v847_v1  ;;  %v2381_v36 = vadd.f32 1e-05, %v411_v27  ;;  %vm2416_vm12 = vmor %vm501_vm4, %vm502_vm8 }
 0x150   :  { %v577_v4 = vmul.f32 %v2345_v15, %v576_v46  ;;  %v2383_v2 = vpop.eup %1276  ;;  %v793_v37 = vmul.f32 %v734_v26, %v1682_v41  ;;  %v500_v62 = vmul.f32 %v2293_v51, %v499_v35  ;;  %v2387_v21 = vadd.f32 1e-05, %v387_v44 }
 0x151   :  { %v412_v56 = vmul.f32 %v380_v34, %v1531_v58  ;;  %vm581_vm10 = vweird.f32 %v2290_v10  ;;  %vm582_vm11 = vweird.f32 %v2345_v15  ;;  %v676_v41 = vmul.f32 %v2383_v2, %v2323_v25  ;;  %1124 = vmatmul.msk.bf16.gmra.mxu1 %vm85_vm0, %v874_v42 }
 0x152   :  { %v578_v29 = vmul.f32 0.5, %v577_v4  ;;  %v2404_v57 = vmul.f32 %v574_v28, %v1702_v49  ;;  %v494_v23 = vsel %vm2394_vm9, %v2287_v0, %v490_v38  ;;  %1280 = vrsqrt.f32 %v2381_v36  ;;  %vm2447_vm15 = vmor %vm581_vm10, %vm582_vm11  ;;  %v329_v4 = vpop.xlane.xlu2 %328 }
 0x153   :  { %v2410_v50 = vadd.f32 1e-05, %v412_v56  ;;  %v677_v49 = vmul.f32 %v2383_v2, %v676_v41  ;;  %vm681_vm13 = vweird.f32 %v2323_v25  ;;  %1282 = vrsqrt.f32 %v2387_v21 }
 0x154   :  { %v579_v48 = vsub.f32 1.5, %v578_v29  ;;  %v821_v0 = vmul.f32 %v1915_v16, %v2271_v59  ;;  %v504_v55 = vsel %vm2416_vm12, %v2293_v51, %v500_v62  ;;  %v822_v19 = vmul.f32 %v1915_v16, %v786_v17 }
 0x155   :  { %v2425_v32 = vpop.eup %1278  ;;  %1284 = vrsqrt.f32 %v2410_v50  ;;  %v829_v13 = vmul.f32 %v1915_v16, %v793_v37  ;;  %v769_v39 = vmul.f32 %v494_v23, %v1693_v33  ;;  %v678_v61 = vmul.f32 0.5, %v677_v49 }
 0x156   :  { %v580_v54 = vmul.f32 %v2345_v15, %v579_v48  ;;  %v666_v59 = vmul.f32 %v2425_v32, %v2342_v40  ;;  %vm671_vm14 = vweird.f32 %v2342_v40  ;;  %v857_v18 = vadd.f32 %v1941_v14, %v821_v0 }
 0x157   :  { %v858_v51 = vadd.f32 %v1941_v14, %v822_v19  ;;  %v830_v45 = vmul.f32 %v1915_v16, %v794_v9  ;;  %v865_v43 = vadd.f32 %v1941_v14, %v829_v13  ;;  %v770_v52 = vmul.f32 %v504_v55, %v1706_v24 }
 0x158   :  { %v679_v20 = vsub.f32 1.5, %v678_v61  ;;  %v667_v11 = vmul.f32 %v2425_v32, %v666_v59  ;;  %v388_v3 = vmul.f32 %v308_v6, %v1531_v58  ;;  %v1281_v1 = vpop.eup %1280  ;;  %v584_v47 = vsel %vm2447_vm15, %v2345_v15, %v580_v54 }
 0x159   :  { %vm682_vm1 = vweird.f32 %v2383_v2  ;;  %v879_v24 = vpack.c.bf16 %v858_v51, %v857_v18  ;;  %v866_v10 = vadd.f32 %v1941_v14, %v830_v45  ;;  %v2458_v35 = vpop.eup %1282  ;;  %vm672_vm2 = vweird.f32 %v2425_v32 }
 0x15a   :  { %v680_v7 = vmul.f32 %v2383_v2, %v679_v20  ;;  %v668_v27 = vmul.f32 0.5, %v667_v11  ;;  %v746_v44 = vmul.f32 %v1281_v1, %v2381_v36  ;;  %vm751_vm3 = vweird.f32 %v2381_v36  ;;  %vm2477_vm5 = vmor %vm681_vm13, %vm682_vm1 }
 0x15b   :  { %v1285_v9 = vpop.eup %1284  ;;  %v506_v15 = vmul.f32 %v2458_v35, %v2387_v21  ;;  %1129 = vmatmul.msk.bf16.gmra.mxu2 %vm85_vm0, %v879_v24  ;;  %v883_v26 = vpack.c.bf16 %v866_v10, %v865_v43  ;;  %v2467_v46 = vadd.f32 1e-05, %v388_v3  ;;  %v396_v34 = vmul.f32 %v332_v22, %v1531_v58  ;;  %vm2493_vm8 = vmor %vm671_vm14, %vm672_vm2 }
 0x15c   :  { %v778_v17 = vmul.f32 %v584_v47, %v1717_v31  ;;  %v669_v5 = vsub.f32 1.5, %v668_v27  ;;  %v747_v38 = vmul.f32 %v1281_v1, %v746_v44  ;;  %v756_v28 = vmul.f32 %v1285_v9, %v2410_v50 }
 0x15d   :  { %vm761_vm4 = vweird.f32 %v2410_v50  ;;  %vm752_vm6 = vweird.f32 %v1281_v1  ;;  %v507_v37 = vmul.f32 %v2458_v35, %v506_v15  ;;  %vm512_vm7 = vweird.f32 %v2458_v35  ;;  %1133 = vmatmul.msk.bf16.gmra.mxu3 %vm85_vm0, %v883_v26 }
 0x15e   :  { %1286 = vrsqrt.f32 %v2467_v46  ;;  %v684_v31 = vsel %vm2477_vm5, %v2383_v2, %v680_v7  ;;  %v670_v62 = vmul.f32 %v2425_v32, %v669_v5  ;;  %v748_v25 = vmul.f32 0.5, %v747_v38  ;;  %vm753_vm10 = vmor %vm751_vm3, %vm752_vm6 }
 0x15f   :  { %v757_v56 = vmul.f32 %v1285_v9, %v756_v28  ;;  %v508_v29 = vmul.f32 0.5, %v507_v37  ;;  %v2497_v41 = vadd.f32 1e-05, %v396_v34  ;;  %v395_v23 = vmul.f32 %v329_v4, %v1531_v58 }
 0x160   :  { %v805_v60 = vmul.f32 %v1915_v16, %v769_v39  ;;  %v674_v2 = vsel %vm2493_vm8, %v2425_v32, %v670_v62  ;;  %v749_v48 = vsub.f32 1.5, %v748_v25  ;;  %v806_v0 = vmul.f32 %v1915_v16, %v770_v52  ;;  %v2803_v62 = vld [vmem:[#allocation4_spill] sm:$0xff] }
 0x161   :  { %v758_v49 = vmul.f32 0.5, %v757_v56  ;;  %v788_v40 = vmul.f32 %v684_v31, %v1733_v12  ;;  %v509_v55 = vsub.f32 1.5, %v508_v29  ;;  %vm762_vm9 = vweird.f32 %v1285_v9 }
 0x162   :  { %1288 = vrsqrt.f32 %v2497_v41  ;;  %v750_v19 = vmul.f32 %v1281_v1, %v749_v48  ;;  %v2507_v6 = vadd.f32 1e-05, %v395_v23  ;;  %v841_v58 = vadd.f32 %v1941_v14, %v805_v60  ;;  %vm763_vm11 = vmor %vm761_vm4, %vm762_vm9 }
 0x163   :  { %v759_v13 = vsub.f32 1.5, %v758_v49  ;;  %v787_v54 = vmul.f32 %v674_v2, %v1726_v53  ;;  %v842_v32 = vadd.f32 %v1941_v14, %v806_v0  ;;  %v813_v12 = vmul.f32 %v1915_v16, %v2404_v57  ;;  %v2804_v2 = vld [vmem:[#allocation5_spill] sm:$0xff] }
 0x164   :  { %v1287_v39 = vpop.eup %1286  ;;  %v814_v61 = vmul.f32 %v1915_v16, %v778_v17  ;;  %v754_v59 = vsel %vm753_vm10, %v1281_v1, %v750_v19  ;;  %v510_v18 = vmul.f32 %v2458_v35, %v509_v55  ;;  %1290 = vrsqrt.f32 %v2507_v6 }
 0x165   :  { %v760_v51 = vmul.f32 %v1285_v9, %v759_v13  ;;  %v516_v45 = vmul.f32 %v1287_v39, %v2467_v46  ;;  %v795_v43 = vmul.f32 %v754_v59, %v1741_v30  ;;  %vm511_vm12 = vweird.f32 %v2387_v21  ;;  %v2805_v13 = vld [vmem:[#allocation3_spill] sm:$0xff] }
 0x166   :  { %v871_v57 = vpack.c.bf16 %v842_v32, %v841_v58  ;;  %vm2528_vm13 = vmor %vm511_vm12, %vm512_vm7  ;;  %v849_v20 = vadd.f32 %v1941_v14, %v813_v12  ;;  %v850_v50 = vadd.f32 %v1941_v14, %v814_v61  ;;  %v823_v11 = vmul.f32 %v1915_v16, %v787_v54 }
 0x167   :  { %v764_v53 = vsel %vm763_vm11, %v1285_v9, %v760_v51  ;;  %v517_v36 = vmul.f32 %v1287_v39, %v516_v45  ;;  %v514_v21 = vsel %vm2528_vm13, %v2458_v35, %v510_v18  ;;  %v824_v1 = vmul.f32 %v1915_v16, %v788_v40  ;;  %v2802_v9 = vld [vmem:[#allocation2_spill] sm:$0xff] }
 0x168   :  { %v1289_v52 = vpop.eup %1288  ;;  %v796_v30 = vmul.f32 %v764_v53, %v1751_v63  ;;  %1121 = vmatmul.msk.bf16.gmra.mxu0 %vm85_vm0, %v871_v57  ;;  %v875_v47 = vpack.c.bf16 %v850_v50, %v849_v20  ;;  %v859_v63 = vadd.f32 %v1941_v14, %v823_v11  ;;  %v831_v24 = vmul.f32 %v1915_v16, %v795_v43 }
 0x169   :  { %v518_v3 = vmul.f32 0.5, %v517_v36  ;;  %v596_v22 = vmul.f32 %v1289_v52, %v2497_v41  ;;  %vm522_vm14 = vweird.f32 %v1287_v39  ;;  %v860_v44 = vadd.f32 %v1941_v14, %v824_v1 }
 0x16a   :  { %v832_v10 = vmul.f32 %v1915_v16, %v796_v30  ;;  %v1291_v35 = vpop.eup %1290  ;;  %v771_v15 = vmul.f32 %v514_v21, %v2802_v9  ;;  %1125 = vmatmul.msk.bf16.gmra.mxu1 %vm85_vm0, %v875_v47  ;;  %v867_v26 = vadd.f32 %v1941_v14, %v831_v24  ;;  %vm521_vm15 = vweird.f32 %v2467_v46 }
 0x16b   :  { %v519_v7 = vsub.f32 1.5, %v518_v3  ;;  %v597_v27 = vmul.f32 %v1289_v52, %v596_v22  ;;  %v586_v38 = vmul.f32 %v1291_v35, %v2507_v6  ;;  %vm523_vm1 = vmor %vm521_vm15, %vm522_vm14  ;;  %v880_v28 = vpack.c.bf16 %v860_v44, %v859_v63 }
 0x16c   :  { %v868_v34 = vadd.f32 %v1941_v14, %v832_v10  ;;  %vm602_vm2 = vweird.f32 %v1289_v52  ;;  %v807_v56 = vmul.f32 %v1915_v16, %v771_v15  ;;  %vm601_vm3 = vweird.f32 %v2497_v41 }
 0x16d   :  { %v520_v17 = vmul.f32 %v1287_v39, %v519_v7  ;;  %v598_v5 = vmul.f32 0.5, %v597_v27  ;;  %v587_v31 = vmul.f32 %v1291_v35, %v586_v38  ;;  %1130 = vmatmul.msk.bf16.gmra.mxu2 %vm85_vm0, %v880_v28  ;;  %vm603_vm4 = vmor %vm601_vm3, %vm602_vm2  ;;  %vm592_vm5 = vweird.f32 %v1291_v35 }
 0x16e   :  { %v884_v4 = vpack.c.bf16 %v868_v34, %v867_v26  ;;  %v843_v49 = vadd.f32 %v1941_v14, %v807_v56  ;;  %vm591_vm6 = vweird.f32 %v2507_v6  ;;  %v2572_v6 = vld [vmem:[%s2738_s2] ss:$0 sm:$0xff]  ;;  %vm1074_vm8 = vcmask 781312  }
 0x16f   :  { %v524_v42 = vsel %vm523_vm1, %v1287_v39, %v520_v17  ;;  %v599_v37 = vsub.f32 1.5, %v598_v5  ;;  %v588_v46 = vmul.f32 0.5, %v587_v31  ;;  %vm593_vm7 = vmor %vm591_vm6, %vm592_vm5 }
 0x170   :  { %v772_v25 = vmul.f32 %v524_v42, %v2803_v62  ;;  %1134 = vmatmul.msk.bf16.gmra.mxu3 %vm85_vm0, %v884_v4 }
 0x171   :  { %v600_v8 = vmul.f32 %v1289_v52, %v599_v37  ;;  %v589_v60 = vsub.f32 1.5, %v588_v46 }
 0x172   :  { %v808_v29 = vmul.f32 %v1915_v16, %v772_v25 }
 0x173   :  { %v604_v23 = vsel %vm603_vm4, %v1289_v52, %v600_v8  ;;  %v590_v40 = vmul.f32 %v1291_v35, %v589_v60 }
 0x174   :  { %v780_v48 = vmul.f32 %v604_v23, %v2804_v2  ;;  %v844_v0 = vadd.f32 %v1941_v14, %v808_v29 }
 0x175   :  { %v594_v19 = vsel %vm593_vm7, %v1291_v35, %v590_v40 }
 0x176   :  { %v872_v55 = vpack.c.bf16 %v844_v0, %v843_v49  ;;  %v816_v41 = vmul.f32 %v1915_v16, %v780_v48  ;;  %v779_v58 = vmul.f32 %v594_v19, %v2805_v13 }
 0x178   :  { %1122 = vmatmul.msk.bf16.gmra.mxu0 %vm85_vm0, %v872_v55  ;;  %v815_v39 = vmul.f32 %v1915_v16, %v779_v58  ;;  %v852_v54 = vadd.f32 %v1941_v14, %v816_v41 }
 0x17a   :  { %v851_v32 = vadd.f32 %v1941_v14, %v815_v39 }
 0x17c   :  { %v876_v12 = vpack.c.bf16 %v852_v54, %v851_v32 }
 0x17e   :  { %1126 = vmatmul.msk.bf16.gmra.mxu1 %vm85_vm0, %v876_v12 }
 0x1a3   :  { %v1002_v61 = vpop.f32.mrf.mxu2 }
 0x1a4   :  { %v1003_v59 = vadd.f32 %v2572_v6, %v1002_v61 }
 0x1a6   :  { %v1058_v18 = vpack.c.bf16 %v1003_v59, %v1003_v59  ;;  %v1022_v51 = vpop.f32.mrf.mxu3 }
 0x1a7   :  { %v1023_v16 = vadd.f32 %v2572_v6, %v1022_v51 }
 0x1a8   :  { %1091 = vst.msk [vmem:[%s2739_s5 + $0x40] sm:$0xf] %vm1074_vm8, %v1058_v18 }
 0x1a9   :  { %v1066_v14 = vpack.c.bf16 %v1023_v16, %v1023_v16 }
 0x1ab   :  { %1099 = vst.msk [vmem:[%s2739_s5 + $0x60] sm:$0xf] %vm1074_vm8, %v1066_v14  ;;  %v1004_v45 = vpop.f32.mrf.mxu2 }
 0x1ac   :  { %v1005_v53 = vadd.f32 %v2572_v6, %v1004_v45 }
 0x1ad   :  { %v962_v43 = vpop.f32.mrf.mxu0 }
 0x1ae   :  { %v963_v36 = vadd.f32 %v2572_v6, %v962_v43  ;;  %v982_v57 = vpop.f32.mrf.mxu1  ;;  %v1059_v52 = vpack.c.bf16 %v1005_v53, %v1005_v53  ;;  %v1024_v33 = vpop.f32.mrf.mxu3 }
 0x1af   :  { %v983_v20 = vadd.f32 %v2572_v6, %v982_v57  ;;  %v1025_v50 = vadd.f32 %v2572_v6, %v1024_v33 }
 0x1b0   :  { %v1042_v30 = vpack.c.bf16 %v963_v36, %v963_v36  ;;  %1092 = vst.msk [vmem:[%s2739_s5 + $0x44] sm:$0xf] %vm1074_vm8, %v1059_v52 }
 0x1b1   :  { %v1050_v11 = vpack.c.bf16 %v983_v20, %v983_v20  ;;  %v1067_v21 = vpack.c.bf16 %v1025_v50, %v1025_v50 }
 0x1b2   :  { %1075 = vst.msk [vmem:[%s2739_s5] sm:$0xf] %vm1074_vm8, %v1042_v30 }
 0x1b3   :  { %1083 = vst.msk [vmem:[%s2739_s5 + $0x20] sm:$0xf] %vm1074_vm8, %v1050_v11 }
 0x1b4   :  { %1100 = vst.msk [vmem:[%s2739_s5 + $0x64] sm:$0xf] %vm1074_vm8, %v1067_v21 }
 0x1b5   :  { %v964_v3 = vpop.f32.mrf.mxu0 }
 0x1b6   :  { %v965_v22 = vadd.f32 %v2572_v6, %v964_v3  ;;  %v984_v1 = vpop.f32.mrf.mxu1 }
 0x1b7   :  { %v985_v63 = vadd.f32 %v2572_v6, %v984_v1 }
 0x1b8   :  { %v1043_v47 = vpack.c.bf16 %v965_v22, %v965_v22 }
 0x1b9   :  { %v1051_v24 = vpack.c.bf16 %v985_v63, %v985_v63 }
 0x1ba   :  { %1076 = vst.msk [vmem:[%s2739_s5 + $0x4] sm:$0xf] %vm1074_vm8, %v1043_v47 }
 0x1bb   :  { %1084 = vst.msk [vmem:[%s2739_s5 + $0x24] sm:$0xf] %vm1074_vm8, %v1051_v24 }
 0x1bd   :  { %v1007_v10 = vpop.f32.mrf.mxu2 }
 0x1be   :  { %v1008_v7 = vadd.f32 %v2572_v6, %v1007_v10 }
 0x1c0   :  { %v1060_v27 = vpack.c.bf16 %v1008_v7, %v1008_v7  ;;  %v967_v44 = vpop.f32.mrf.mxu0 }
 0x1c1   :  { %v968_v35 = vadd.f32 %v2572_v6, %v967_v44 }
 0x1c2   :  { %1093 = vst.msk [vmem:[%s2739_s5 + $0x48] sm:$0xf] %vm1074_vm8, %v1060_v27 }
 0x1c3   :  { %v1044_v9 = vpack.c.bf16 %v968_v35, %v968_v35 }
 0x1c5   :  { %v1009_v15 = vpop.f32.mrf.mxu2  ;;  %1077 = vst.msk [vmem:[%s2739_s5 + $0x8] sm:$0xf] %vm1074_vm8, %v1044_v9 }
 0x1c6   :  { %v1010_v26 = vadd.f32 %v2572_v6, %v1009_v15 }
 0x1c8   :  { %v1061_v34 = vpack.c.bf16 %v1010_v26, %v1010_v26  ;;  %v969_v5 = vpop.f32.mrf.mxu0 }
 0x1c9   :  { %v1027_v17 = vpop.f32.mrf.mxu3  ;;  %v970_v28 = vadd.f32 %v2572_v6, %v969_v5 }
 0x1ca   :  { %1094 = vst.msk [vmem:[%s2739_s5 + $0x4c] sm:$0xf] %vm1074_vm8, %v1061_v34  ;;  %v1028_v38 = vadd.f32 %v2572_v6, %v1027_v17 }
 0x1cb   :  { %v1045_v42 = vpack.c.bf16 %v970_v28, %v970_v28 }
 0x1cc   :  { %v1068_v4 = vpack.c.bf16 %v1028_v38, %v1028_v38 }
 0x1cd   :  { %1078 = vst.msk [vmem:[%s2739_s5 + $0xc] sm:$0xf] %vm1074_vm8, %v1045_v42 }
 0x1ce   :  { %1101 = vst.msk [vmem:[%s2739_s5 + $0x68] sm:$0xf] %vm1074_vm8, %v1068_v4  ;;  %v987_v37 = vpop.f32.mrf.mxu1 }
 0x1cf   :  { %v988_v31 = vadd.f32 %v2572_v6, %v987_v37 }
 0x1d1   :  { %v1052_v62 = vpack.c.bf16 %v988_v31, %v988_v31  ;;  %v1029_v25 = vpop.f32.mrf.mxu3 }
 0x1d2   :  { %v1030_v56 = vadd.f32 %v2572_v6, %v1029_v25 }
 0x1d3   :  { %1085 = vst.msk [vmem:[%s2739_s5 + $0x28] sm:$0xf] %vm1074_vm8, %v1052_v62 }
 0x1d4   :  { %v1069_v8 = vpack.c.bf16 %v1030_v56, %v1030_v56 }
 0x1d6   :  { %1102 = vst.msk [vmem:[%s2739_s5 + $0x6c] sm:$0xf] %vm1074_vm8, %v1069_v8  ;;  %v989_v46 = vpop.f32.mrf.mxu1 }
 0x1d7   :  { %v990_v29 = vadd.f32 %v2572_v6, %v989_v46 }
 0x1d9   :  { %v1053_v23 = vpack.c.bf16 %v990_v29, %v990_v29 }
 0x1db   :  { %1086 = vst.msk [vmem:[%s2739_s5 + $0x2c] sm:$0xf] %vm1074_vm8, %v1053_v23 }
 0x1de   :  { %v1012_v60 = vpop.f32.mrf.mxu2 }
 0x1df   :  { %v1013_v2 = vadd.f32 %v2572_v6, %v1012_v60 }
 0x1e0   :  { %v1032_v48 = vpop.f32.mrf.mxu3 }
 0x1e1   :  { %v1062_v49 = vpack.c.bf16 %v1013_v2, %v1013_v2  ;;  %v1033_v0 = vadd.f32 %v2572_v6, %v1032_v48 }
 0x1e3   :  { %1095 = vst.msk [vmem:[%s2739_s5 + $0x50] sm:$0xf] %vm1074_vm8, %v1062_v49  ;;  %v1070_v40 = vpack.c.bf16 %v1033_v0, %v1033_v0 }
 0x1e5   :  { %1103 = vst.msk [vmem:[%s2739_s5 + $0x70] sm:$0xf] %vm1074_vm8, %v1070_v40  ;;  %v972_v55 = vpop.f32.mrf.mxu0 }
 0x1e6   :  { %v973_v41 = vadd.f32 %v2572_v6, %v972_v55  ;;  %v1014_v19 = vpop.f32.mrf.mxu2 }
 0x1e7   :  { %v1015_v13 = vadd.f32 %v2572_v6, %v1014_v19  ;;  %v992_v54 = vpop.f32.mrf.mxu1 }
 0x1e8   :  { %v1046_v58 = vpack.c.bf16 %v973_v41, %v973_v41  ;;  %v1034_v39 = vpop.f32.mrf.mxu3  ;;  %v993_v61 = vadd.f32 %v2572_v6, %v992_v54 }
 0x1e9   :  { %v1063_v32 = vpack.c.bf16 %v1015_v13, %v1015_v13  ;;  %v1035_v12 = vadd.f32 %v2572_v6, %v1034_v39 }
 0x1ea   :  { %1079 = vst.msk [vmem:[%s2739_s5 + $0x10] sm:$0xf] %vm1074_vm8, %v1046_v58  ;;  %v1054_v18 = vpack.c.bf16 %v993_v61, %v993_v61 }
 0x1eb   :  { %1096 = vst.msk [vmem:[%s2739_s5 + $0x54] sm:$0xf] %vm1074_vm8, %v1063_v32  ;;  %v1071_v59 = vpack.c.bf16 %v1035_v12, %v1035_v12 }
 0x1ec   :  { %1087 = vst.msk [vmem:[%s2739_s5 + $0x30] sm:$0xf] %vm1074_vm8, %v1054_v18 }
 0x1ed   :  { %1104 = vst.msk [vmem:[%s2739_s5 + $0x74] sm:$0xf] %vm1074_vm8, %v1071_v59  ;;  %v974_v51 = vpop.f32.mrf.mxu0 }
 0x1ee   :  { %v975_v16 = vadd.f32 %v2572_v6, %v974_v51 }
 0x1ef   :  { %v994_v45 = vpop.f32.mrf.mxu1 }
 0x1f0   :  { %v1047_v14 = vpack.c.bf16 %v975_v16, %v975_v16  ;;  %v995_v43 = vadd.f32 %v2572_v6, %v994_v45  ;;  %v1017_v53 = vpop.f32.mrf.mxu2 }
 0x1f1   :  { %v1018_v57 = vadd.f32 %v2572_v6, %v1017_v53 }
 0x1f2   :  { %1080 = vst.msk [vmem:[%s2739_s5 + $0x14] sm:$0xf] %vm1074_vm8, %v1047_v14  ;;  %v1055_v52 = vpack.c.bf16 %v995_v43, %v995_v43 }
 0x1f3   :  { %v1037_v36 = vpop.f32.mrf.mxu3  ;;  %v1064_v30 = vpack.c.bf16 %v1018_v57, %v1018_v57 }
 0x1f4   :  { %v1038_v33 = vadd.f32 %v2572_v6, %v1037_v36  ;;  %1088 = vst.msk [vmem:[%s2739_s5 + $0x34] sm:$0xf] %vm1074_vm8, %v1055_v52 }
 0x1f5   :  { %v977_v50 = vpop.f32.mrf.mxu0  ;;  %1097 = vst.msk [vmem:[%s2739_s5 + $0x58] sm:$0xf] %vm1074_vm8, %v1064_v30 }
 0x1f6   :  { %v1072_v20 = vpack.c.bf16 %v1038_v33, %v1038_v33  ;;  %v978_v11 = vadd.f32 %v2572_v6, %v977_v50 }
 0x1f8   :  { %1105 = vst.msk [vmem:[%s2739_s5 + $0x78] sm:$0xf] %vm1074_vm8, %v1072_v20  ;;  %v1048_v21 = vpack.c.bf16 %v978_v11, %v978_v11  ;;  %v1019_v3 = vpop.f32.mrf.mxu2 }
 0x1f9   :  { %v1020_v1 = vadd.f32 %v2572_v6, %v1019_v3 }
 0x1fa   :  { %1081 = vst.msk [vmem:[%s2739_s5 + $0x18] sm:$0xf] %vm1074_vm8, %v1048_v21 }
 0x1fb   :  { %v1039_v22 = vpop.f32.mrf.mxu3  ;;  %v997_v63 = vpop.f32.mrf.mxu1  ;;  %v1065_v24 = vpack.c.bf16 %v1020_v1, %v1020_v1 }
 0x1fc   :  { %v1040_v47 = vadd.f32 %v2572_v6, %v1039_v22  ;;  %v998_v10 = vadd.f32 %v2572_v6, %v997_v63 }
 0x1fd   :  { %v979_v27 = vpop.f32.mrf.mxu0  ;;  %1098 = vst.msk [vmem:[%s2739_s5 + $0x5c] sm:$0xf] %vm1074_vm8, %v1065_v24 }
 0x1fe   :  { %v1073_v7 = vpack.c.bf16 %v1040_v47, %v1040_v47  ;;  %v980_v44 = vadd.f32 %v2572_v6, %v979_v27  ;;  %v1056_v35 = vpack.c.bf16 %v998_v10, %v998_v10 }
 0x200   :  { %1106 = vst.msk [vmem:[%s2739_s5 + $0x7c] sm:$0xf] %vm1074_vm8, %v1073_v7  ;;  %v1049_v9 = vpack.c.bf16 %v980_v44, %v980_v44 }
 0x201   :  { %1089 = vst.msk [vmem:[%s2739_s5 + $0x38] sm:$0xf] %vm1074_vm8, %v1056_v35 }
 0x202   :  { %1082 = vst.msk [vmem:[%s2739_s5 + $0x1c] sm:$0xf] %vm1074_vm8, %v1049_v9 }
 0x203   :  { %v999_v15 = vpop.f32.mrf.mxu1 }
 0x204   :  { %v1000_v26 = vadd.f32 %v2572_v6, %v999_v15 }
 0x206   :  { %v1057_v34 = vpack.c.bf16 %v1000_v26, %v1000_v26 }
 0x208   :  { %1090 = vst.msk [vmem:[%s2739_s5 + $0x3c] sm:$0xf] %vm1074_vm8, %v1057_v34 }

// kernel: vision_transformer_forward.16
= control target key start
LH: loop header
LB: loop body
LE: loop exit
PB: predicated region body
PF: predicated region fallthrough
CT: control target
= control target key end

     0   :  { %vm150_vm0 = vcmask 261120   ;;  %vm416_vm1 = vcmask 257024   ;;  %s953_s1 = inlined_call_operand.vmem [shape: bf16[32,32], index: 1, kind: input, shape index: {}]   ;;  %s954_s0 = inlined_call_operand.vmem [shape: bf16[256,32], index: 0, kind: input, shape index: {}]   ;;  %s955_s2 = inlined_call_operand.vmem [shape: f32[1,32], index: 2, kind: input, shape index: {}]   ;;  %s956_s3 = inlined_call_operand.vmem [shape: bf16[256,32], index: 3, kind: input, shape index: {}]   ;;  %s957_s4 = inlined_call_operand.vmem [shape: bf16[256,32], index: 4, kind: output, shape index: {}]  }
   0x1   :  { %v558_v0 = vld [vmem:[%s953_s1 + $0x8] sm:$0xff]  ;;  %v557_v1 = vld [vmem:[%s953_s1] sm:$0xff]  ;;  %v543_v10 = vld [vmem:[%s954_s0 + $0x10] sm:$0xff] }
   0x2   :  { %205 = vmatpush.bf16.msra.mxu0 %v558_v0  ;;  %638 = vmatpush.bf16.msra.mxu1 %v558_v0  ;;  %v541_v2 = vld [vmem:[%s954_s0] sm:$0xff]  ;;  %v542_v6 = vld [vmem:[%s954_s0 + $0x8] sm:$0xff]  ;;  %v547_v11 = vld [vmem:[%s954_s0 + $0x30] sm:$0xff] }
   0x3   :  { %639 = vmatpush.bf16.msra.mxu2 %v558_v0  ;;  %640 = vmatpush.bf16.msra.mxu3 %v558_v0  ;;  %v545_v3 = vld [vmem:[%s954_s0 + $0x20] sm:$0xff]  ;;  %v546_v7 = vld [vmem:[%s954_s0 + $0x28] sm:$0xff]  ;;  %v551_v12 = vld [vmem:[%s954_s0 + $0x50] sm:$0xff] }
   0x4   :  { %v549_v4 = vld [vmem:[%s954_s0 + $0x40] sm:$0xff]  ;;  %v550_v8 = vld [vmem:[%s954_s0 + $0x48] sm:$0xff]  ;;  %v555_v13 = vld [vmem:[%s954_s0 + $0x70] sm:$0xff] }
   0x5   :  { %v553_v5 = vld [vmem:[%s954_s0 + $0x60] sm:$0xff]  ;;  %v554_v9 = vld [vmem:[%s954_s0 + $0x68] sm:$0xff]  ;;  %v544_v14 = vld [vmem:[%s954_s0 + $0x18] sm:$0xff] }
   0x6   :  { %206 = vmatpush.bf16.msra.mxu0 %v557_v1  ;;  %641 = vmatpush.bf16.msra.mxu1 %v557_v1  ;;  %v548_v15 = vld [vmem:[%s954_s0 + $0x38] sm:$0xff]  ;;  %v560_v18 = vld [vmem:[%s956_s3] sm:$0xff]   ;;  %v623_v51 = vld [vmem:[%s956_s3 + $0x8] sm:$0xff]  }
   0x7   :  { %642 = vmatpush.bf16.msra.mxu2 %v557_v1  ;;  %643 = vmatpush.bf16.msra.mxu3 %v557_v1  ;;  %v552_v16 = vld [vmem:[%s954_s0 + $0x58] sm:$0xff]  ;;  %v626_v19 = vld [vmem:[%s956_s3 + $0x20] sm:$0xff]   ;;  %v561_v21 = vunpack.c.l.bf16 %v560_v18  ;;  %v562_v37 = vunpack.c.h.bf16 %v560_v18  ;;  %v627_v52 = vld [vmem:[%s956_s3 + $0x28] sm:$0xff]   ;;  %v565_v59 = vunpack.c.l.bf16 %v623_v51 }
   0x8   :  { %v556_v17 = vld [vmem:[%s954_s0 + $0x78] sm:$0xff]  ;;  %v749_v20 = vld [vmem:[%s955_s2] ss:$0 sm:$0xff]  ;;  %v577_v22 = vunpack.c.l.bf16 %v626_v19  ;;  %v578_v38 = vunpack.c.h.bf16 %v626_v19  ;;  %v581_v60 = vunpack.c.l.bf16 %v627_v52  ;;  %v582_v18 = vunpack.c.h.bf16 %v627_v52  ;;  %v632_v52 = vld [vmem:[%s956_s3 + $0x50] sm:$0xff]  }
   0x9   :  { %525 = vmatmul.msk.bf16.vlgmr.msra.gmra.mxu0 %vm150_vm0, %v541_v2  ;;  %529 = vmatmul.msk.bf16.vlgmr.msra.gmra.mxu1 %vm150_vm0, %v545_v3  ;;  %v630_v29 = vld [vmem:[%s956_s3 + $0x40] sm:$0xff]  }
   0xa   :  { %533 = vmatmul.msk.bf16.vlgmr.msra.gmra.mxu2 %vm150_vm0, %v549_v4  ;;  %537 = vmatmul.msk.bf16.vlgmr.msra.gmra.mxu3 %vm150_vm0, %v553_v5  ;;  %v634_v30 = vld [vmem:[%s956_s3 + $0x60] sm:$0xff]   ;;  %v593_v33 = vunpack.c.l.bf16 %v630_v29  ;;  %v594_v55 = vunpack.c.h.bf16 %v630_v29 }
   0xb   :  { %v609_v34 = vunpack.c.l.bf16 %v634_v30  ;;  %v610_v56 = vunpack.c.h.bf16 %v634_v30 }
  0x19   :  { %526 = vmatmul.msk.bf16.gmra.mxu0 %vm150_vm0, %v542_v6  ;;  %530 = vmatmul.msk.bf16.gmra.mxu1 %vm150_vm0, %v546_v7  ;;  %v631_v7 = vld [vmem:[%s956_s3 + $0x48] sm:$0xff]  }
  0x1a   :  { %534 = vmatmul.msk.bf16.gmra.mxu2 %vm150_vm0, %v550_v8  ;;  %538 = vmatmul.msk.bf16.gmra.mxu3 %vm150_vm0, %v554_v9  ;;  %v635_v8 = vld [vmem:[%s956_s3 + $0x68] sm:$0xff]  }
  0x29   :  { %527 = vmatmul.msk.bf16.gmra.mxu0 %vm150_vm0, %v543_v10  ;;  %531 = vmatmul.msk.bf16.gmra.mxu1 %vm150_vm0, %v547_v11 }
  0x2a   :  { %535 = vmatmul.msk.bf16.gmra.mxu2 %vm150_vm0, %v551_v12  ;;  %539 = vmatmul.msk.bf16.gmra.mxu3 %vm150_vm0, %v555_v13  ;;  %v597_v13 = vunpack.c.l.bf16 %v631_v7 }
  0x39   :  { %528 = vmatmul.msk.bf16.gmra.mxu0 %vm150_vm0, %v544_v14  ;;  %532 = vmatmul.msk.bf16.gmra.mxu1 %vm150_vm0, %v548_v15  ;;  %v613_v14 = vunpack.c.l.bf16 %v635_v8 }
  0x3a   :  { %536 = vmatmul.msk.bf16.gmra.mxu2 %vm150_vm0, %v552_v16  ;;  %540 = vmatmul.msk.bf16.gmra.mxu3 %vm150_vm0, %v556_v17  ;;  %v566_v17 = vunpack.c.h.bf16 %v623_v51 }
  0x86   :  { %v208_v23 = vpop.f32.mrf.mxu0  ;;  %v228_v24 = vpop.f32.mrf.mxu1 }
  0x87   :  { %v209_v25 = vadd.f32 %v749_v20, %v208_v23  ;;  %v229_v26 = vadd.f32 %v749_v20, %v228_v24 }
  0x89   :  { %v352_v27 = vadd.f32 %v561_v21, %v209_v25  ;;  %v360_v28 = vadd.f32 %v577_v22, %v229_v26 }
  0x8b   :  { %v384_v31 = vpack.c.bf16 %v352_v27, %v352_v27  ;;  %v392_v32 = vpack.c.bf16 %v360_v28, %v360_v28 }
  0x8d   :  { %417 = vst.msk [vmem:[%s957_s4] sm:$0xf] %vm416_vm1, %v384_v31  ;;  %v248_v35 = vpop.f32.mrf.mxu2  ;;  %v268_v36 = vpop.f32.mrf.mxu3 }
  0x8e   :  { %425 = vst.msk [vmem:[%s957_s4 + $0x20] sm:$0xf] %vm416_vm1, %v392_v32  ;;  %v249_v39 = vadd.f32 %v749_v20, %v248_v35  ;;  %v269_v40 = vadd.f32 %v749_v20, %v268_v36  ;;  %v210_v41 = vpop.f32.mrf.mxu0  ;;  %v230_v42 = vpop.f32.mrf.mxu1  ;;  %v624_v32 = vld [vmem:[%s956_s3 + $0x10] sm:$0xff]   ;;  %v598_v36 = vunpack.c.h.bf16 %v631_v7 }
  0x8f   :  { %v211_v43 = vadd.f32 %v749_v20, %v210_v41  ;;  %v231_v44 = vadd.f32 %v749_v20, %v230_v42 }
  0x90   :  { %v368_v45 = vadd.f32 %v593_v33, %v249_v39  ;;  %v376_v46 = vadd.f32 %v609_v34, %v269_v40  ;;  %v628_v33 = vld [vmem:[%s956_s3 + $0x30] sm:$0xff]   ;;  %v569_v40 = vunpack.c.l.bf16 %v624_v32 }
  0x91   :  { %v353_v47 = vadd.f32 %v562_v37, %v211_v43  ;;  %v361_v48 = vadd.f32 %v578_v38, %v231_v44  ;;  %v614_v37 = vunpack.c.h.bf16 %v635_v8  ;;  %v585_v41 = vunpack.c.l.bf16 %v628_v33 }
  0x92   :  { %v400_v49 = vpack.c.bf16 %v368_v45, %v368_v45  ;;  %v408_v50 = vpack.c.bf16 %v376_v46, %v376_v46 }
  0x93   :  { %v385_v53 = vpack.c.bf16 %v353_v47, %v353_v47  ;;  %v393_v54 = vpack.c.bf16 %v361_v48, %v361_v48 }
  0x94   :  { %433 = vst.msk [vmem:[%s957_s4 + $0x40] sm:$0xf] %vm416_vm1, %v400_v49 }
  0x95   :  { %441 = vst.msk [vmem:[%s957_s4 + $0x60] sm:$0xf] %vm416_vm1, %v408_v50  ;;  %v250_v57 = vpop.f32.mrf.mxu2  ;;  %v270_v58 = vpop.f32.mrf.mxu3 }
  0x96   :  { %418 = vst.msk [vmem:[%s957_s4 + $0x4] sm:$0xf] %vm416_vm1, %v385_v53  ;;  %v251_v61 = vadd.f32 %v749_v20, %v250_v57  ;;  %v271_v62 = vadd.f32 %v749_v20, %v270_v58  ;;  %v213_v63 = vpop.f32.mrf.mxu0  ;;  %v233_v0 = vpop.f32.mrf.mxu1  ;;  %v636_v53 = vld [vmem:[%s956_s3 + $0x70] sm:$0xff]   ;;  %v601_v58 = vunpack.c.l.bf16 %v632_v52 }
  0x97   :  { %426 = vst.msk [vmem:[%s957_s4 + $0x24] sm:$0xf] %vm416_vm1, %v393_v54  ;;  %v214_v1 = vadd.f32 %v749_v20, %v213_v63  ;;  %v234_v2 = vadd.f32 %v749_v20, %v233_v0  ;;  %v586_v63 = vunpack.c.h.bf16 %v628_v33  ;;  %v633_v33 = vld [vmem:[%s956_s3 + $0x58] sm:$0xff]  }
  0x98   :  { %v369_v3 = vadd.f32 %v594_v55, %v251_v61  ;;  %v377_v4 = vadd.f32 %v610_v56, %v271_v62  ;;  %v570_v62 = vunpack.c.h.bf16 %v624_v32 }
  0x99   :  { %v354_v5 = vadd.f32 %v565_v59, %v214_v1  ;;  %v362_v6 = vadd.f32 %v581_v60, %v234_v2  ;;  %v617_v59 = vunpack.c.l.bf16 %v636_v53 }
  0x9a   :  { %v401_v9 = vpack.c.bf16 %v369_v3, %v369_v3  ;;  %v409_v10 = vpack.c.bf16 %v377_v4, %v377_v4 }
  0x9b   :  { %v386_v11 = vpack.c.bf16 %v354_v5, %v354_v5  ;;  %v394_v12 = vpack.c.bf16 %v362_v6, %v362_v6 }
  0x9c   :  { %434 = vst.msk [vmem:[%s957_s4 + $0x44] sm:$0xf] %vm416_vm1, %v401_v9 }
  0x9d   :  { %442 = vst.msk [vmem:[%s957_s4 + $0x64] sm:$0xf] %vm416_vm1, %v409_v10  ;;  %v253_v15 = vpop.f32.mrf.mxu2  ;;  %v273_v16 = vpop.f32.mrf.mxu3 }
  0x9e   :  { %419 = vst.msk [vmem:[%s957_s4 + $0x8] sm:$0xf] %vm416_vm1, %v386_v11  ;;  %v254_v19 = vadd.f32 %v749_v20, %v253_v15  ;;  %v274_v21 = vadd.f32 %v749_v20, %v273_v16  ;;  %v215_v22 = vpop.f32.mrf.mxu0  ;;  %v235_v23 = vpop.f32.mrf.mxu1  ;;  %v602_v16 = vunpack.c.h.bf16 %v632_v52 }
  0x9f   :  { %427 = vst.msk [vmem:[%s957_s4 + $0x28] sm:$0xf] %vm416_vm1, %v394_v12  ;;  %v216_v24 = vadd.f32 %v749_v20, %v215_v22  ;;  %v236_v25 = vadd.f32 %v749_v20, %v235_v23  ;;  %v625_v12 = vld [vmem:[%s956_s3 + $0x18] sm:$0xff]  }
  0xa0   :  { %v370_v26 = vadd.f32 %v597_v13, %v254_v19  ;;  %v378_v27 = vadd.f32 %v613_v14, %v274_v21  ;;  %v629_v13 = vld [vmem:[%s956_s3 + $0x38] sm:$0xff]   ;;  %v573_v21 = vunpack.c.l.bf16 %v625_v12 }
  0xa1   :  { %v355_v28 = vadd.f32 %v566_v17, %v216_v24  ;;  %v363_v29 = vadd.f32 %v582_v18, %v236_v25  ;;  %v618_v17 = vunpack.c.h.bf16 %v636_v53  ;;  %v589_v22 = vunpack.c.l.bf16 %v629_v13 }
  0xa2   :  { %v402_v30 = vpack.c.bf16 %v370_v26, %v370_v26  ;;  %v410_v31 = vpack.c.bf16 %v378_v27, %v378_v27 }
  0xa3   :  { %v387_v34 = vpack.c.bf16 %v355_v28, %v355_v28  ;;  %v395_v35 = vpack.c.bf16 %v363_v29, %v363_v29 }
  0xa4   :  { %435 = vst.msk [vmem:[%s957_s4 + $0x48] sm:$0xf] %vm416_vm1, %v402_v30 }
  0xa5   :  { %443 = vst.msk [vmem:[%s957_s4 + $0x68] sm:$0xf] %vm416_vm1, %v410_v31  ;;  %v255_v38 = vpop.f32.mrf.mxu2  ;;  %v275_v39 = vpop.f32.mrf.mxu3 }
  0xa6   :  { %420 = vst.msk [vmem:[%s957_s4 + $0xc] sm:$0xf] %vm416_vm1, %v387_v34  ;;  %v256_v42 = vadd.f32 %v749_v20, %v255_v38  ;;  %v276_v43 = vadd.f32 %v749_v20, %v275_v39  ;;  %v218_v44 = vpop.f32.mrf.mxu0  ;;  %v238_v45 = vpop.f32.mrf.mxu1  ;;  %v637_v34 = vld [vmem:[%s956_s3 + $0x78] sm:$0xff]   ;;  %v605_v39 = vunpack.c.l.bf16 %v633_v33 }
  0xa7   :  { %428 = vst.msk [vmem:[%s957_s4 + $0x2c] sm:$0xf] %vm416_vm1, %v395_v35  ;;  %v219_v46 = vadd.f32 %v749_v20, %v218_v44  ;;  %v239_v47 = vadd.f32 %v749_v20, %v238_v45  ;;  %v590_v44 = vunpack.c.h.bf16 %v629_v13 }
  0xa8   :  { %v371_v48 = vadd.f32 %v598_v36, %v256_v42  ;;  %v379_v49 = vadd.f32 %v614_v37, %v276_v43  ;;  %v574_v43 = vunpack.c.h.bf16 %v625_v12 }
  0xa9   :  { %v356_v50 = vadd.f32 %v569_v40, %v219_v46  ;;  %v364_v51 = vadd.f32 %v585_v41, %v239_v47  ;;  %v621_v40 = vunpack.c.l.bf16 %v637_v34 }
  0xaa   :  { %v403_v54 = vpack.c.bf16 %v371_v48, %v371_v48  ;;  %v411_v55 = vpack.c.bf16 %v379_v49, %v379_v49 }
  0xab   :  { %v388_v56 = vpack.c.bf16 %v356_v50, %v356_v50  ;;  %v396_v57 = vpack.c.bf16 %v364_v51, %v364_v51 }
  0xac   :  { %436 = vst.msk [vmem:[%s957_s4 + $0x4c] sm:$0xf] %vm416_vm1, %v403_v54 }
  0xad   :  { %444 = vst.msk [vmem:[%s957_s4 + $0x6c] sm:$0xf] %vm416_vm1, %v411_v55  ;;  %v258_v60 = vpop.f32.mrf.mxu2  ;;  %v278_v61 = vpop.f32.mrf.mxu3 }
  0xae   :  { %421 = vst.msk [vmem:[%s957_s4 + $0x10] sm:$0xf] %vm416_vm1, %v388_v56  ;;  %v259_v0 = vadd.f32 %v749_v20, %v258_v60  ;;  %v279_v1 = vadd.f32 %v749_v20, %v278_v61  ;;  %v220_v2 = vpop.f32.mrf.mxu0  ;;  %v240_v3 = vpop.f32.mrf.mxu1  ;;  %v622_v60 = vunpack.c.h.bf16 %v637_v34 }
  0xaf   :  { %429 = vst.msk [vmem:[%s957_s4 + $0x30] sm:$0xf] %vm416_vm1, %v396_v57  ;;  %v221_v4 = vadd.f32 %v749_v20, %v220_v2  ;;  %v241_v5 = vadd.f32 %v749_v20, %v240_v3 }
  0xb0   :  { %v372_v6 = vadd.f32 %v601_v58, %v259_v0  ;;  %v380_v7 = vadd.f32 %v617_v59, %v279_v1  ;;  %v606_v59 = vunpack.c.h.bf16 %v633_v33 }
  0xb1   :  { %v357_v8 = vadd.f32 %v570_v62, %v221_v4  ;;  %v365_v9 = vadd.f32 %v586_v63, %v241_v5 }
  0xb2   :  { %v404_v10 = vpack.c.bf16 %v372_v6, %v372_v6  ;;  %v412_v11 = vpack.c.bf16 %v380_v7, %v380_v7 }
  0xb3   :  { %v389_v14 = vpack.c.bf16 %v357_v8, %v357_v8  ;;  %v397_v15 = vpack.c.bf16 %v365_v9, %v365_v9 }
  0xb4   :  { %437 = vst.msk [vmem:[%s957_s4 + $0x50] sm:$0xf] %vm416_vm1, %v404_v10 }
  0xb5   :  { %445 = vst.msk [vmem:[%s957_s4 + $0x70] sm:$0xf] %vm416_vm1, %v412_v11  ;;  %v260_v18 = vpop.f32.mrf.mxu2  ;;  %v280_v19 = vpop.f32.mrf.mxu3 }
  0xb6   :  { %422 = vst.msk [vmem:[%s957_s4 + $0x14] sm:$0xf] %vm416_vm1, %v389_v14  ;;  %v261_v23 = vadd.f32 %v749_v20, %v260_v18  ;;  %v281_v24 = vadd.f32 %v749_v20, %v280_v19  ;;  %v223_v25 = vpop.f32.mrf.mxu0  ;;  %v243_v26 = vpop.f32.mrf.mxu1 }
  0xb7   :  { %430 = vst.msk [vmem:[%s957_s4 + $0x34] sm:$0xf] %vm416_vm1, %v397_v15  ;;  %v224_v27 = vadd.f32 %v749_v20, %v223_v25  ;;  %v244_v28 = vadd.f32 %v749_v20, %v243_v26 }
  0xb8   :  { %v373_v29 = vadd.f32 %v602_v16, %v261_v23  ;;  %v381_v30 = vadd.f32 %v618_v17, %v281_v24 }
  0xb9   :  { %v358_v31 = vadd.f32 %v573_v21, %v224_v27  ;;  %v366_v32 = vadd.f32 %v589_v22, %v244_v28 }
  0xba   :  { %v405_v35 = vpack.c.bf16 %v373_v29, %v373_v29  ;;  %v413_v36 = vpack.c.bf16 %v381_v30, %v381_v30 }
  0xbb   :  { %v390_v37 = vpack.c.bf16 %v358_v31, %v358_v31  ;;  %v398_v38 = vpack.c.bf16 %v366_v32, %v366_v32 }
  0xbc   :  { %438 = vst.msk [vmem:[%s957_s4 + $0x54] sm:$0xf] %vm416_vm1, %v405_v35 }
  0xbd   :  { %446 = vst.msk [vmem:[%s957_s4 + $0x74] sm:$0xf] %vm416_vm1, %v413_v36  ;;  %v263_v41 = vpop.f32.mrf.mxu2  ;;  %v283_v42 = vpop.f32.mrf.mxu3 }
  0xbe   :  { %423 = vst.msk [vmem:[%s957_s4 + $0x18] sm:$0xf] %vm416_vm1, %v390_v37  ;;  %v264_v45 = vadd.f32 %v749_v20, %v263_v41  ;;  %v284_v46 = vadd.f32 %v749_v20, %v283_v42  ;;  %v225_v47 = vpop.f32.mrf.mxu0  ;;  %v245_v48 = vpop.f32.mrf.mxu1 }
  0xbf   :  { %431 = vst.msk [vmem:[%s957_s4 + $0x38] sm:$0xf] %vm416_vm1, %v398_v38  ;;  %v226_v49 = vadd.f32 %v749_v20, %v225_v47  ;;  %v246_v50 = vadd.f32 %v749_v20, %v245_v48 }
  0xc0   :  { %v374_v51 = vadd.f32 %v605_v39, %v264_v45  ;;  %v382_v52 = vadd.f32 %v621_v40, %v284_v46 }
  0xc1   :  { %v359_v53 = vadd.f32 %v574_v43, %v226_v49  ;;  %v367_v54 = vadd.f32 %v590_v44, %v246_v50 }
  0xc2   :  { %v406_v55 = vpack.c.bf16 %v374_v51, %v374_v51  ;;  %v414_v56 = vpack.c.bf16 %v382_v52, %v382_v52 }
  0xc3   :  { %v391_v57 = vpack.c.bf16 %v359_v53, %v359_v53  ;;  %v399_v58 = vpack.c.bf16 %v367_v54, %v367_v54 }
  0xc4   :  { %439 = vst.msk [vmem:[%s957_s4 + $0x58] sm:$0xf] %vm416_vm1, %v406_v55 }
  0xc5   :  { %447 = vst.msk [vmem:[%s957_s4 + $0x78] sm:$0xf] %vm416_vm1, %v414_v56  ;;  %v265_v61 = vpop.f32.mrf.mxu2  ;;  %v285_v62 = vpop.f32.mrf.mxu3 }
  0xc6   :  { %424 = vst.msk [vmem:[%s957_s4 + $0x1c] sm:$0xf] %vm416_vm1, %v391_v57  ;;  %v266_v63 = vadd.f32 %v749_v20, %v265_v61  ;;  %v286_v0 = vadd.f32 %v749_v20, %v285_v62 }
  0xc7   :  { %432 = vst.msk [vmem:[%s957_s4 + $0x3c] sm:$0xf] %vm416_vm1, %v399_v58 }
  0xc8   :  { %v375_v1 = vadd.f32 %v606_v59, %v266_v63  ;;  %v383_v2 = vadd.f32 %v622_v60, %v286_v0 }
  0xca   :  { %v407_v3 = vpack.c.bf16 %v375_v1, %v375_v1  ;;  %v415_v4 = vpack.c.bf16 %v383_v2, %v383_v2 }
  0xcc   :  { %440 = vst.msk [vmem:[%s957_s4 + $0x5c] sm:$0xf] %vm416_vm1, %v407_v3 }
  0xcd   :  { %448 = vst.msk [vmem:[%s957_s4 + $0x7c] sm:$0xf] %vm416_vm1, %v415_v4 }

// kernel: vision_transformer_forward.18
= control target key start
LH: loop header
LB: loop body
LE: loop exit
PB: predicated region body
PF: predicated region fallthrough
CT: control target
= control target key end

     0   :  { %vm166_vm0 = vcmask 523264   ;;  %vm432_vm1 = vcmask 257024   ;;  %s991_s1 = inlined_call_operand.vmem [shape: bf16[64,32], index: 1, kind: input, shape index: {}]   ;;  %s992_s2 = inlined_call_operand.vmem [shape: f32[1,32], index: 2, kind: input, shape index: {}]   ;;  %s993_s0 = inlined_call_operand.vmem [shape: bf16[256,64], index: 0, kind: input, shape index: {}]   ;;  %s994_s3 = inlined_call_operand.vmem [shape: bf16[256,32], index: 3, kind: input, shape index: {}]   ;;  %s995_s4 = inlined_call_operand.vmem [shape: bf16[256,32], index: 4, kind: output, shape index: {}]  }
   0x1   :  { %v584_v0 = vld [vmem:[%s991_s1 + $0x18] sm:$0xff]  ;;  %v583_v1 = vld [vmem:[%s991_s1 + $0x10] sm:$0xff]  ;;  %v582_v2 = vld [vmem:[%s991_s1 + $0x8] sm:$0xff] }
   0x2   :  { %219 = vmatpush.bf16.msra.mxu0 %v584_v0  ;;  %664 = vmatpush.bf16.msra.mxu1 %v584_v0  ;;  %v581_v3 = vld [vmem:[%s991_s1] sm:$0xff]  ;;  %v566_v8 = vld [vmem:[%s993_s0 + $0x8] sm:$0xff]  ;;  %v567_v12 = vld [vmem:[%s993_s0 + $0x10] sm:$0xff] }
   0x3   :  { %665 = vmatpush.bf16.msra.mxu2 %v584_v0  ;;  %666 = vmatpush.bf16.msra.mxu3 %v584_v0  ;;  %v565_v4 = vld [vmem:[%s993_s0] sm:$0xff]  ;;  %v570_v9 = vld [vmem:[%s993_s0 + $0x28] sm:$0xff]  ;;  %v571_v13 = vld [vmem:[%s993_s0 + $0x30] sm:$0xff] }
   0x4   :  { %v569_v5 = vld [vmem:[%s993_s0 + $0x20] sm:$0xff]  ;;  %v574_v10 = vld [vmem:[%s993_s0 + $0x48] sm:$0xff]  ;;  %v575_v14 = vld [vmem:[%s993_s0 + $0x50] sm:$0xff] }
   0x5   :  { %v573_v6 = vld [vmem:[%s993_s0 + $0x40] sm:$0xff]  ;;  %v578_v11 = vld [vmem:[%s993_s0 + $0x68] sm:$0xff]  ;;  %v579_v15 = vld [vmem:[%s993_s0 + $0x70] sm:$0xff] }
   0x6   :  { %220 = vmatpush.bf16.msra.mxu0 %v583_v1  ;;  %667 = vmatpush.bf16.msra.mxu1 %v583_v1  ;;  %v577_v7 = vld [vmem:[%s993_s0 + $0x60] sm:$0xff]  ;;  %v568_v16 = vld [vmem:[%s993_s0 + $0x18] sm:$0xff]  ;;  %v649_v53 = vld [vmem:[%s994_s3 + $0x8] sm:$0xff]  }
   0x7   :  { %668 = vmatpush.bf16.msra.mxu2 %v583_v1  ;;  %669 = vmatpush.bf16.msra.mxu3 %v583_v1  ;;  %v572_v17 = vld [vmem:[%s993_s0 + $0x38] sm:$0xff]  ;;  %v586_v20 = vld [vmem:[%s994_s3] sm:$0xff]   ;;  %v653_v54 = vld [vmem:[%s994_s3 + $0x28] sm:$0xff]   ;;  %v591_v61 = vunpack.c.l.bf16 %v649_v53 }
   0x8   :  { %v576_v18 = vld [vmem:[%s993_s0 + $0x58] sm:$0xff]  ;;  %v652_v21 = vld [vmem:[%s994_s3 + $0x20] sm:$0xff]   ;;  %v587_v23 = vunpack.c.l.bf16 %v586_v20  ;;  %v588_v39 = vunpack.c.h.bf16 %v586_v20  ;;  %v607_v62 = vunpack.c.l.bf16 %v653_v54  ;;  %v608_v20 = vunpack.c.h.bf16 %v653_v54  ;;  %v658_v54 = vld [vmem:[%s994_s3 + $0x50] sm:$0xff]  }
   0x9   :  { %v580_v19 = vld [vmem:[%s993_s0 + $0x78] sm:$0xff]  ;;  %v787_v22 = vld [vmem:[%s992_s2] ss:$0 sm:$0xff]  ;;  %v603_v24 = vunpack.c.l.bf16 %v652_v21  ;;  %v604_v40 = vunpack.c.h.bf16 %v652_v21 }
   0xa   :  { %221 = vmatpush.bf16.msra.mxu0 %v582_v2  ;;  %670 = vmatpush.bf16.msra.mxu1 %v582_v2  ;;  %v656_v31 = vld [vmem:[%s994_s3 + $0x40] sm:$0xff]  }
   0xb   :  { %671 = vmatpush.bf16.msra.mxu2 %v582_v2  ;;  %672 = vmatpush.bf16.msra.mxu3 %v582_v2  ;;  %v660_v32 = vld [vmem:[%s994_s3 + $0x60] sm:$0xff]   ;;  %v619_v35 = vunpack.c.l.bf16 %v656_v31  ;;  %v620_v57 = vunpack.c.h.bf16 %v656_v31 }
   0xc   :  { %v635_v36 = vunpack.c.l.bf16 %v660_v32  ;;  %v636_v58 = vunpack.c.h.bf16 %v660_v32 }
   0xe   :  { %222 = vmatpush.bf16.msra.mxu0 %v581_v3  ;;  %673 = vmatpush.bf16.msra.mxu1 %v581_v3 }
   0xf   :  { %674 = vmatpush.bf16.msra.mxu2 %v581_v3  ;;  %675 = vmatpush.bf16.msra.mxu3 %v581_v3 }
  0x11   :  { %549 = vmatmul.msk.bf16.vlgmr.msra.gmra.mxu0 %vm166_vm0, %v565_v4  ;;  %553 = vmatmul.msk.bf16.vlgmr.msra.gmra.mxu1 %vm166_vm0, %v569_v5 }
  0x12   :  { %557 = vmatmul.msk.bf16.vlgmr.msra.gmra.mxu2 %vm166_vm0, %v573_v6  ;;  %561 = vmatmul.msk.bf16.vlgmr.msra.gmra.mxu3 %vm166_vm0, %v577_v7 }
  0x21   :  { %550 = vmatmul.msk.bf16.gmra.mxu0 %vm166_vm0, %v566_v8  ;;  %554 = vmatmul.msk.bf16.gmra.mxu1 %vm166_vm0, %v570_v9  ;;  %v657_v9 = vld [vmem:[%s994_s3 + $0x48] sm:$0xff]  }
  0x22   :  { %558 = vmatmul.msk.bf16.gmra.mxu2 %vm166_vm0, %v574_v10  ;;  %562 = vmatmul.msk.bf16.gmra.mxu3 %vm166_vm0, %v578_v11  ;;  %v661_v10 = vld [vmem:[%s994_s3 + $0x68] sm:$0xff]  }
  0x31   :  { %551 = vmatmul.msk.bf16.gmra.mxu0 %vm166_vm0, %v567_v12  ;;  %555 = vmatmul.msk.bf16.gmra.mxu1 %vm166_vm0, %v571_v13 }
  0x32   :  { %559 = vmatmul.msk.bf16.gmra.mxu2 %vm166_vm0, %v575_v14  ;;  %563 = vmatmul.msk.bf16.gmra.mxu3 %vm166_vm0, %v579_v15  ;;  %v623_v15 = vunpack.c.l.bf16 %v657_v9 }
  0x41   :  { %552 = vmatmul.msk.bf16.gmra.mxu0 %vm166_vm0, %v568_v16  ;;  %556 = vmatmul.msk.bf16.gmra.mxu1 %vm166_vm0, %v572_v17  ;;  %v639_v16 = vunpack.c.l.bf16 %v661_v10 }
  0x42   :  { %560 = vmatmul.msk.bf16.gmra.mxu2 %vm166_vm0, %v576_v18  ;;  %564 = vmatmul.msk.bf16.gmra.mxu3 %vm166_vm0, %v580_v19  ;;  %v592_v19 = vunpack.c.h.bf16 %v649_v53 }
  0x8e   :  { %v224_v25 = vpop.f32.mrf.mxu0  ;;  %v244_v26 = vpop.f32.mrf.mxu1 }
  0x8f   :  { %v225_v27 = vadd.f32 %v787_v22, %v224_v25  ;;  %v245_v28 = vadd.f32 %v787_v22, %v244_v26 }
  0x91   :  { %v368_v29 = vadd.f32 %v587_v23, %v225_v27  ;;  %v376_v30 = vadd.f32 %v603_v24, %v245_v28 }
  0x93   :  { %v400_v33 = vpack.c.bf16 %v368_v29, %v368_v29  ;;  %v408_v34 = vpack.c.bf16 %v376_v30, %v376_v30 }
  0x95   :  { %433 = vst.msk [vmem:[%s995_s4] sm:$0xf] %vm432_vm1, %v400_v33  ;;  %v264_v37 = vpop.f32.mrf.mxu2  ;;  %v284_v38 = vpop.f32.mrf.mxu3 }
  0x96   :  { %441 = vst.msk [vmem:[%s995_s4 + $0x20] sm:$0xf] %vm432_vm1, %v408_v34  ;;  %v265_v41 = vadd.f32 %v787_v22, %v264_v37  ;;  %v285_v42 = vadd.f32 %v787_v22, %v284_v38  ;;  %v226_v43 = vpop.f32.mrf.mxu0  ;;  %v246_v44 = vpop.f32.mrf.mxu1  ;;  %v650_v34 = vld [vmem:[%s994_s3 + $0x10] sm:$0xff]   ;;  %v624_v38 = vunpack.c.h.bf16 %v657_v9 }
  0x97   :  { %v227_v45 = vadd.f32 %v787_v22, %v226_v43  ;;  %v247_v46 = vadd.f32 %v787_v22, %v246_v44 }
  0x98   :  { %v384_v47 = vadd.f32 %v619_v35, %v265_v41  ;;  %v392_v48 = vadd.f32 %v635_v36, %v285_v42  ;;  %v654_v35 = vld [vmem:[%s994_s3 + $0x30] sm:$0xff]   ;;  %v595_v42 = vunpack.c.l.bf16 %v650_v34 }
  0x99   :  { %v369_v49 = vadd.f32 %v588_v39, %v227_v45  ;;  %v377_v50 = vadd.f32 %v604_v40, %v247_v46  ;;  %v640_v39 = vunpack.c.h.bf16 %v661_v10  ;;  %v611_v43 = vunpack.c.l.bf16 %v654_v35 }
  0x9a   :  { %v416_v51 = vpack.c.bf16 %v384_v47, %v384_v47  ;;  %v424_v52 = vpack.c.bf16 %v392_v48, %v392_v48 }
  0x9b   :  { %v401_v55 = vpack.c.bf16 %v369_v49, %v369_v49  ;;  %v409_v56 = vpack.c.bf16 %v377_v50, %v377_v50 }
  0x9c   :  { %449 = vst.msk [vmem:[%s995_s4 + $0x40] sm:$0xf] %vm432_vm1, %v416_v51 }
  0x9d   :  { %457 = vst.msk [vmem:[%s995_s4 + $0x60] sm:$0xf] %vm432_vm1, %v424_v52  ;;  %v266_v59 = vpop.f32.mrf.mxu2  ;;  %v286_v60 = vpop.f32.mrf.mxu3 }
  0x9e   :  { %434 = vst.msk [vmem:[%s995_s4 + $0x4] sm:$0xf] %vm432_vm1, %v401_v55  ;;  %v267_v63 = vadd.f32 %v787_v22, %v266_v59  ;;  %v287_v0 = vadd.f32 %v787_v22, %v286_v60  ;;  %v229_v1 = vpop.f32.mrf.mxu0  ;;  %v249_v2 = vpop.f32.mrf.mxu1  ;;  %v662_v55 = vld [vmem:[%s994_s3 + $0x70] sm:$0xff]   ;;  %v627_v60 = vunpack.c.l.bf16 %v658_v54 }
  0x9f   :  { %442 = vst.msk [vmem:[%s995_s4 + $0x24] sm:$0xf] %vm432_vm1, %v409_v56  ;;  %v230_v3 = vadd.f32 %v787_v22, %v229_v1  ;;  %v250_v4 = vadd.f32 %v787_v22, %v249_v2  ;;  %v612_v1 = vunpack.c.h.bf16 %v654_v35  ;;  %v659_v35 = vld [vmem:[%s994_s3 + $0x58] sm:$0xff]  }
  0xa0   :  { %v385_v5 = vadd.f32 %v620_v57, %v267_v63  ;;  %v393_v6 = vadd.f32 %v636_v58, %v287_v0  ;;  %v596_v0 = vunpack.c.h.bf16 %v650_v34 }
  0xa1   :  { %v370_v7 = vadd.f32 %v591_v61, %v230_v3  ;;  %v378_v8 = vadd.f32 %v607_v62, %v250_v4  ;;  %v643_v61 = vunpack.c.l.bf16 %v662_v55 }
  0xa2   :  { %v417_v11 = vpack.c.bf16 %v385_v5, %v385_v5  ;;  %v425_v12 = vpack.c.bf16 %v393_v6, %v393_v6 }
  0xa3   :  { %v402_v13 = vpack.c.bf16 %v370_v7, %v370_v7  ;;  %v410_v14 = vpack.c.bf16 %v378_v8, %v378_v8 }
  0xa4   :  { %450 = vst.msk [vmem:[%s995_s4 + $0x44] sm:$0xf] %vm432_vm1, %v417_v11 }
  0xa5   :  { %458 = vst.msk [vmem:[%s995_s4 + $0x64] sm:$0xf] %vm432_vm1, %v425_v12  ;;  %v269_v17 = vpop.f32.mrf.mxu2  ;;  %v289_v18 = vpop.f32.mrf.mxu3 }
  0xa6   :  { %435 = vst.msk [vmem:[%s995_s4 + $0x8] sm:$0xf] %vm432_vm1, %v402_v13  ;;  %v270_v21 = vadd.f32 %v787_v22, %v269_v17  ;;  %v290_v23 = vadd.f32 %v787_v22, %v289_v18  ;;  %v231_v24 = vpop.f32.mrf.mxu0  ;;  %v251_v25 = vpop.f32.mrf.mxu1  ;;  %v628_v18 = vunpack.c.h.bf16 %v658_v54 }
  0xa7   :  { %443 = vst.msk [vmem:[%s995_s4 + $0x28] sm:$0xf] %vm432_vm1, %v410_v14  ;;  %v232_v26 = vadd.f32 %v787_v22, %v231_v24  ;;  %v252_v27 = vadd.f32 %v787_v22, %v251_v25  ;;  %v651_v14 = vld [vmem:[%s994_s3 + $0x18] sm:$0xff]  }
  0xa8   :  { %v386_v28 = vadd.f32 %v623_v15, %v270_v21  ;;  %v394_v29 = vadd.f32 %v639_v16, %v290_v23  ;;  %v655_v15 = vld [vmem:[%s994_s3 + $0x38] sm:$0xff]   ;;  %v599_v23 = vunpack.c.l.bf16 %v651_v14 }
  0xa9   :  { %v371_v30 = vadd.f32 %v592_v19, %v232_v26  ;;  %v379_v31 = vadd.f32 %v608_v20, %v252_v27  ;;  %v644_v19 = vunpack.c.h.bf16 %v662_v55  ;;  %v615_v24 = vunpack.c.l.bf16 %v655_v15 }
  0xaa   :  { %v418_v32 = vpack.c.bf16 %v386_v28, %v386_v28  ;;  %v426_v33 = vpack.c.bf16 %v394_v29, %v394_v29 }
  0xab   :  { %v403_v36 = vpack.c.bf16 %v371_v30, %v371_v30  ;;  %v411_v37 = vpack.c.bf16 %v379_v31, %v379_v31 }
  0xac   :  { %451 = vst.msk [vmem:[%s995_s4 + $0x48] sm:$0xf] %vm432_vm1, %v418_v32 }
  0xad   :  { %459 = vst.msk [vmem:[%s995_s4 + $0x68] sm:$0xf] %vm432_vm1, %v426_v33  ;;  %v271_v40 = vpop.f32.mrf.mxu2  ;;  %v291_v41 = vpop.f32.mrf.mxu3 }
  0xae   :  { %436 = vst.msk [vmem:[%s995_s4 + $0xc] sm:$0xf] %vm432_vm1, %v403_v36  ;;  %v272_v44 = vadd.f32 %v787_v22, %v271_v40  ;;  %v292_v45 = vadd.f32 %v787_v22, %v291_v41  ;;  %v234_v46 = vpop.f32.mrf.mxu0  ;;  %v254_v47 = vpop.f32.mrf.mxu1  ;;  %v663_v36 = vld [vmem:[%s994_s3 + $0x78] sm:$0xff]   ;;  %v631_v41 = vunpack.c.l.bf16 %v659_v35 }
  0xaf   :  { %444 = vst.msk [vmem:[%s995_s4 + $0x2c] sm:$0xf] %vm432_vm1, %v411_v37  ;;  %v235_v48 = vadd.f32 %v787_v22, %v234_v46  ;;  %v255_v49 = vadd.f32 %v787_v22, %v254_v47  ;;  %v616_v46 = vunpack.c.h.bf16 %v655_v15 }
  0xb0   :  { %v387_v50 = vadd.f32 %v624_v38, %v272_v44  ;;  %v395_v51 = vadd.f32 %v640_v39, %v292_v45  ;;  %v600_v45 = vunpack.c.h.bf16 %v651_v14 }
  0xb1   :  { %v372_v52 = vadd.f32 %v595_v42, %v235_v48  ;;  %v380_v53 = vadd.f32 %v611_v43, %v255_v49  ;;  %v647_v42 = vunpack.c.l.bf16 %v663_v36 }
  0xb2   :  { %v419_v56 = vpack.c.bf16 %v387_v50, %v387_v50  ;;  %v427_v57 = vpack.c.bf16 %v395_v51, %v395_v51 }
  0xb3   :  { %v404_v58 = vpack.c.bf16 %v372_v52, %v372_v52  ;;  %v412_v59 = vpack.c.bf16 %v380_v53, %v380_v53 }
  0xb4   :  { %452 = vst.msk [vmem:[%s995_s4 + $0x4c] sm:$0xf] %vm432_vm1, %v419_v56 }
  0xb5   :  { %460 = vst.msk [vmem:[%s995_s4 + $0x6c] sm:$0xf] %vm432_vm1, %v427_v57  ;;  %v274_v62 = vpop.f32.mrf.mxu2  ;;  %v294_v63 = vpop.f32.mrf.mxu3 }
  0xb6   :  { %437 = vst.msk [vmem:[%s995_s4 + $0x10] sm:$0xf] %vm432_vm1, %v404_v58  ;;  %v275_v2 = vadd.f32 %v787_v22, %v274_v62  ;;  %v295_v3 = vadd.f32 %v787_v22, %v294_v63  ;;  %v236_v4 = vpop.f32.mrf.mxu0  ;;  %v256_v5 = vpop.f32.mrf.mxu1  ;;  %v648_v62 = vunpack.c.h.bf16 %v663_v36 }
  0xb7   :  { %445 = vst.msk [vmem:[%s995_s4 + $0x30] sm:$0xf] %vm432_vm1, %v412_v59  ;;  %v237_v6 = vadd.f32 %v787_v22, %v236_v4  ;;  %v257_v7 = vadd.f32 %v787_v22, %v256_v5 }
  0xb8   :  { %v388_v8 = vadd.f32 %v627_v60, %v275_v2  ;;  %v396_v9 = vadd.f32 %v643_v61, %v295_v3  ;;  %v632_v61 = vunpack.c.h.bf16 %v659_v35 }
  0xb9   :  { %v373_v10 = vadd.f32 %v596_v0, %v237_v6  ;;  %v381_v11 = vadd.f32 %v612_v1, %v257_v7 }
  0xba   :  { %v420_v12 = vpack.c.bf16 %v388_v8, %v388_v8  ;;  %v428_v13 = vpack.c.bf16 %v396_v9, %v396_v9 }
  0xbb   :  { %v405_v16 = vpack.c.bf16 %v373_v10, %v373_v10  ;;  %v413_v17 = vpack.c.bf16 %v381_v11, %v381_v11 }
  0xbc   :  { %453 = vst.msk [vmem:[%s995_s4 + $0x50] sm:$0xf] %vm432_vm1, %v420_v12 }
  0xbd   :  { %461 = vst.msk [vmem:[%s995_s4 + $0x70] sm:$0xf] %vm432_vm1, %v428_v13  ;;  %v276_v20 = vpop.f32.mrf.mxu2  ;;  %v296_v21 = vpop.f32.mrf.mxu3 }
  0xbe   :  { %438 = vst.msk [vmem:[%s995_s4 + $0x14] sm:$0xf] %vm432_vm1, %v405_v16  ;;  %v277_v25 = vadd.f32 %v787_v22, %v276_v20  ;;  %v297_v26 = vadd.f32 %v787_v22, %v296_v21  ;;  %v239_v27 = vpop.f32.mrf.mxu0  ;;  %v259_v28 = vpop.f32.mrf.mxu1 }
  0xbf   :  { %446 = vst.msk [vmem:[%s995_s4 + $0x34] sm:$0xf] %vm432_vm1, %v413_v17  ;;  %v240_v29 = vadd.f32 %v787_v22, %v239_v27  ;;  %v260_v30 = vadd.f32 %v787_v22, %v259_v28 }
  0xc0   :  { %v389_v31 = vadd.f32 %v628_v18, %v277_v25  ;;  %v397_v32 = vadd.f32 %v644_v19, %v297_v26 }
  0xc1   :  { %v374_v33 = vadd.f32 %v599_v23, %v240_v29  ;;  %v382_v34 = vadd.f32 %v615_v24, %v260_v30 }
  0xc2   :  { %v421_v37 = vpack.c.bf16 %v389_v31, %v389_v31  ;;  %v429_v38 = vpack.c.bf16 %v397_v32, %v397_v32 }
  0xc3   :  { %v406_v39 = vpack.c.bf16 %v374_v33, %v374_v33  ;;  %v414_v40 = vpack.c.bf16 %v382_v34, %v382_v34 }
  0xc4   :  { %454 = vst.msk [vmem:[%s995_s4 + $0x54] sm:$0xf] %vm432_vm1, %v421_v37 }
  0xc5   :  { %462 = vst.msk [vmem:[%s995_s4 + $0x74] sm:$0xf] %vm432_vm1, %v429_v38  ;;  %v279_v43 = vpop.f32.mrf.mxu2  ;;  %v299_v44 = vpop.f32.mrf.mxu3 }
  0xc6   :  { %439 = vst.msk [vmem:[%s995_s4 + $0x18] sm:$0xf] %vm432_vm1, %v406_v39  ;;  %v280_v47 = vadd.f32 %v787_v22, %v279_v43  ;;  %v300_v48 = vadd.f32 %v787_v22, %v299_v44  ;;  %v241_v49 = vpop.f32.mrf.mxu0  ;;  %v261_v50 = vpop.f32.mrf.mxu1 }
  0xc7   :  { %447 = vst.msk [vmem:[%s995_s4 + $0x38] sm:$0xf] %vm432_vm1, %v414_v40  ;;  %v242_v51 = vadd.f32 %v787_v22, %v241_v49  ;;  %v262_v52 = vadd.f32 %v787_v22, %v261_v50 }
  0xc8   :  { %v390_v53 = vadd.f32 %v631_v41, %v280_v47  ;;  %v398_v54 = vadd.f32 %v647_v42, %v300_v48 }
  0xc9   :  { %v375_v55 = vadd.f32 %v600_v45, %v242_v51  ;;  %v383_v56 = vadd.f32 %v616_v46, %v262_v52 }
  0xca   :  { %v422_v57 = vpack.c.bf16 %v390_v53, %v390_v53  ;;  %v430_v58 = vpack.c.bf16 %v398_v54, %v398_v54 }
  0xcb   :  { %v407_v59 = vpack.c.bf16 %v375_v55, %v375_v55  ;;  %v415_v60 = vpack.c.bf16 %v383_v56, %v383_v56 }
  0xcc   :  { %455 = vst.msk [vmem:[%s995_s4 + $0x58] sm:$0xf] %vm432_vm1, %v422_v57 }
  0xcd   :  { %463 = vst.msk [vmem:[%s995_s4 + $0x78] sm:$0xf] %vm432_vm1, %v430_v58  ;;  %v281_v63 = vpop.f32.mrf.mxu2  ;;  %v301_v0 = vpop.f32.mrf.mxu3 }
  0xce   :  { %440 = vst.msk [vmem:[%s995_s4 + $0x1c] sm:$0xf] %vm432_vm1, %v407_v59  ;;  %v282_v1 = vadd.f32 %v787_v22, %v281_v63  ;;  %v302_v2 = vadd.f32 %v787_v22, %v301_v0 }
  0xcf   :  { %448 = vst.msk [vmem:[%s995_s4 + $0x3c] sm:$0xf] %vm432_vm1, %v415_v60 }
  0xd0   :  { %v391_v3 = vadd.f32 %v632_v61, %v282_v1  ;;  %v399_v4 = vadd.f32 %v648_v62, %v302_v2 }
  0xd2   :  { %v423_v5 = vpack.c.bf16 %v391_v3, %v391_v3  ;;  %v431_v6 = vpack.c.bf16 %v399_v4, %v399_v4 }
  0xd4   :  { %456 = vst.msk [vmem:[%s995_s4 + $0x5c] sm:$0xf] %vm432_vm1, %v423_v5 }
  0xd5   :  { %464 = vst.msk [vmem:[%s995_s4 + $0x7c] sm:$0xf] %vm432_vm1, %v431_v6 }

// kernel: vision_transformer_forward.17
= control target key start
LH: loop header
LB: loop body
LE: loop exit
PB: predicated region body
PF: predicated region fallthrough
CT: control target
= control target key end

     0   :  { %vm85_vm0 = vcmask 261120   ;;  %s3268_s0 = inlined_call_operand.vmem [shape: bf16[256,32], index: 0, kind: input, shape index: {}]   ;;  %s3269_s3 = inlined_call_operand.vmem [shape: f32[1,32], index: 3, kind: input, shape index: {}]   ;;  %s3270_s4 = inlined_call_operand.vmem [shape: f32[1,32], index: 4, kind: input, shape index: {}]   ;;  %s3271_s1 = inlined_call_operand.vmem [shape: bf16[32,64], index: 1, kind: input, shape index: {}]   ;;  %s3272_s2 = inlined_call_operand.vmem [shape: f32[1,64], index: 2, kind: input, shape index: {}]   ;;  %s3273_s5 = inlined_call_operand.vmem [shape: bf16[256,64], index: 5, kind: output, shape index: {}]  }
   0x1   :  { %v1678_v0 = vld [vmem:[%s3268_s0 + $0x60] sm:$0xff]   ;;  %v1722_v16 = vld [vmem:[%s3268_s0 + $0x48] sm:$0xff]   ;;  %v1778_v38 = vld [vmem:[%s3268_s0 + $0x50] sm:$0xff]  }
   0x2   :  { %v1683_v1 = vld [vmem:[%s3268_s0 + $0x40] sm:$0xff]   ;;  %v1475_v3 = vunpack.c.l.bf16 %v1678_v0  ;;  %v1476_v9 = vunpack.c.h.bf16 %v1678_v0  ;;  %v1463_v19 = vunpack.c.l.bf16 %v1722_v16  ;;  %v1739_v23 = vld [vmem:[%s3268_s0 + $0x68] sm:$0xff]   ;;  %v1464_v25 = vunpack.c.h.bf16 %v1722_v16  ;;  %v1795_v45 = vld [vmem:[%s3268_s0 + $0x70] sm:$0xff]  }
   0x3   :  { %v1688_v2 = vld [vmem:[%s3268_s0] sm:$0xff]   ;;  %v1459_v4 = vunpack.c.l.bf16 %v1683_v1  ;;  %v1460_v10 = vunpack.c.h.bf16 %v1683_v1  ;;  %v1479_v24 = vunpack.c.l.bf16 %v1739_v23  ;;  %v1480_v26 = vunpack.c.h.bf16 %v1739_v23  ;;  %v1756_v30 = vld [vmem:[%s3268_s0 + $0x8] sm:$0xff]   ;;  %v1800_v46 = vld [vmem:[%s3268_s0 + $0x10] sm:$0xff]  }
   0x4   :  { %v1427_v5 = vunpack.c.l.bf16 %v1688_v2  ;;  %v158_v6 = vsel %vm85_vm0, %v1475_v3, 0.0  ;;  %v1428_v11 = vunpack.c.h.bf16 %v1688_v2  ;;  %v161_v12 = vsel %vm85_vm0, %v1476_v9, 0.0  ;;  %v1717_v15 = vld [vmem:[%s3268_s0 + $0x20] sm:$0xff]   ;;  %v1761_v31 = vld [vmem:[%s3268_s0 + $0x28] sm:$0xff]   ;;  %v1817_v53 = vld [vmem:[%s3268_s0 + $0x30] sm:$0xff]  }
   0x5   :  { %v134_v7 = vsel %vm85_vm0, %v1459_v4, 0.0  ;;  %159 = vadd.xlane.f32.xlu1 %v158_v6  ;;  %v137_v13 = vsel %vm85_vm0, %v1460_v10, 0.0  ;;  %v1444_v17 = vunpack.c.h.bf16 %v1717_v15  ;;  %v1443_v18 = vunpack.c.l.bf16 %v1717_v15  ;;  %v1834_v60 = vld [vmem:[%s3268_s0 + $0x58] sm:$0xff]  }
   0x6   :  { %v86_v8 = vsel %vm85_vm0, %v1427_v5, 0.0  ;;  %135 = vadd.xlane.f32.xlu0 %v134_v7  ;;  %v89_v14 = vsel %vm85_vm0, %v1428_v11, 0.0  ;;  %v140_v22 = vsel %vm85_vm0, %v1463_v19, 0.0  ;;  %v164_v27 = vsel %vm85_vm0, %v1479_v24, 0.0  ;;  %v1839_v61 = vld [vmem:[%s3268_s0 + $0x78] sm:$0xff]  }
   0x7   :  { %87 = vadd.xlane.f32.xlu2 %v86_v8  ;;  %v113_v20 = vsel %vm85_vm0, %v1444_v17, 0.0  ;;  %v110_v21 = vsel %vm85_vm0, %v1443_v18, 0.0  ;;  %v143_v28 = vsel %vm85_vm0, %v1464_v25, 0.0  ;;  %v167_v29 = vsel %vm85_vm0, %v1480_v26, 0.0 }
   0x8   :  { %v1432_v32 = vunpack.c.h.bf16 %v1756_v30  ;;  %v1431_v33 = vunpack.c.l.bf16 %v1756_v30  ;;  %v1447_v34 = vunpack.c.l.bf16 %v1761_v31  ;;  %v1467_v39 = vunpack.c.l.bf16 %v1778_v38 }
   0x9   :  { %v1448_v40 = vunpack.c.h.bf16 %v1761_v31  ;;  %v1468_v41 = vunpack.c.h.bf16 %v1778_v38  ;;  %v1484_v47 = vunpack.c.h.bf16 %v1795_v45  ;;  %v1483_v48 = vunpack.c.l.bf16 %v1795_v45 }
   0xa   :  { %v95_v35 = vsel %vm85_vm0, %v1432_v32, 0.0  ;;  %v92_v36 = vsel %vm85_vm0, %v1431_v33, 0.0  ;;  %v116_v37 = vsel %vm85_vm0, %v1447_v34, 0.0  ;;  %v146_v42 = vsel %vm85_vm0, %v1467_v39, 0.0 }
   0xb   :  { %v119_v43 = vsel %vm85_vm0, %v1448_v40, 0.0  ;;  %v149_v44 = vsel %vm85_vm0, %v1468_v41, 0.0  ;;  %v1435_v49 = vunpack.c.l.bf16 %v1800_v46  ;;  %v173_v50 = vsel %vm85_vm0, %v1484_v47, 0.0 }
   0xc   :  { %v170_v51 = vsel %vm85_vm0, %v1483_v48, 0.0  ;;  %v1451_v54 = vunpack.c.l.bf16 %v1817_v53  ;;  %v1436_v55 = vunpack.c.h.bf16 %v1800_v46  ;;  %v1452_v56 = vunpack.c.h.bf16 %v1817_v53 }
   0xd   :  { %162 = vadd.xlane.f32.xlu1 %v161_v12  ;;  %v98_v52 = vsel %vm85_vm0, %v1435_v49, 0.0  ;;  %v1471_v62 = vunpack.c.l.bf16 %v1834_v60  ;;  %v1487_v63 = vunpack.c.l.bf16 %v1839_v61  ;;  %v1472_v6 = vunpack.c.h.bf16 %v1834_v60 }
   0xe   :  { %138 = vadd.xlane.f32.xlu0 %v137_v13  ;;  %v122_v57 = vsel %vm85_vm0, %v1451_v54, 0.0  ;;  %v101_v58 = vsel %vm85_vm0, %v1436_v55, 0.0  ;;  %v125_v59 = vsel %vm85_vm0, %v1452_v56, 0.0  ;;  %v1856_v13 = vld [vmem:[%s3268_s0 + $0x18] sm:$0xff]  }
   0xf   :  { %90 = vadd.xlane.f32.xlu2 %v89_v14  ;;  %v152_v7 = vsel %vm85_vm0, %v1471_v62, 0.0  ;;  %v176_v8 = vsel %vm85_vm0, %v1487_v63, 0.0  ;;  %v155_v12 = vsel %vm85_vm0, %v1472_v6, 0.0  ;;  %v1861_v14 = vld [vmem:[%s3268_s0 + $0x38] sm:$0xff]  }
  0x15   :  { %114 = vadd.xlane.f32.xlu1 %v113_v20  ;;  %v1488_v20 = vunpack.c.h.bf16 %v1839_v61 }
  0x16   :  { %111 = vadd.xlane.f32.xlu0 %v110_v21  ;;  %v1439_v21 = vunpack.c.l.bf16 %v1856_v13 }
  0x17   :  { %141 = vadd.xlane.f32.xlu2 %v140_v22  ;;  %v1455_v22 = vunpack.c.l.bf16 %v1861_v14 }
  0x1d   :  { %165 = vadd.xlane.f32.xlu1 %v164_v27  ;;  %v179_v27 = vsel %vm85_vm0, %v1488_v20, 0.0 }
  0x1e   :  { %144 = vadd.xlane.f32.xlu0 %v143_v28  ;;  %v104_v28 = vsel %vm85_vm0, %v1439_v21, 0.0 }
  0x1f   :  { %168 = vadd.xlane.f32.xlu2 %v167_v29  ;;  %v128_v29 = vsel %vm85_vm0, %v1455_v22, 0.0 }
  0x25   :  { %96 = vadd.xlane.f32.xlu1 %v95_v35  ;;  %v1440_v35 = vunpack.c.h.bf16 %v1856_v13 }
  0x26   :  { %93 = vadd.xlane.f32.xlu0 %v92_v36  ;;  %v1456_v36 = vunpack.c.h.bf16 %v1861_v14 }
  0x27   :  { %117 = vadd.xlane.f32.xlu2 %v116_v37  ;;  %v107_v37 = vsel %vm85_vm0, %v1440_v35, 0.0 }
  0x2d   :  { %147 = vadd.xlane.f32.xlu1 %v146_v42  ;;  %v131_v42 = vsel %vm85_vm0, %v1456_v36, 0.0 }
  0x2e   :  { %120 = vadd.xlane.f32.xlu0 %v119_v43  ;;  %v1644_v43 = vmov 32.0  }
  0x2f   :  { %150 = vadd.xlane.f32.xlu2 %v149_v44  ;;  %1514 = vrcp.f32 %v1644_v43 }
  0x35   :  { %174 = vadd.xlane.f32.xlu1 %v173_v50  ;;  %v1515_v44 = vpop.eup %1514 }
  0x36   :  { %171 = vadd.xlane.f32.xlu0 %v170_v51  ;;  %v183_v50 = vmul.f32 32.0, %v1515_v44  ;;  %vm187_vm1 = vweird.f32 %v1515_v44 }
  0x37   :  { %99 = vadd.xlane.f32.xlu2 %v98_v52 }
  0x38   :  { %v184_v51 = vsub.f32 1.0, %v183_v50 }
  0x3a   :  { %v185_v52 = vmul.f32 %v1515_v44, %v184_v51 }
  0x3d   :  { %123 = vadd.xlane.f32.xlu1 %v122_v57  ;;  %v186_v57 = vadd.f32 %v1515_v44, %v185_v52 }
  0x3e   :  { %102 = vadd.xlane.f32.xlu0 %v101_v58 }
  0x3f   :  { %126 = vadd.xlane.f32.xlu2 %v125_v59  ;;  %v1883_v58 = vsel %vm187_vm1, %v1515_v44, %v186_v57 }
  0x45   :  { %153 = vadd.xlane.f32.xlu1 %v152_v7 }
  0x46   :  { %177 = vadd.xlane.f32.xlu0 %v176_v8 }
  0x47   :  { %156 = vadd.xlane.f32.xlu2 %v155_v12 }
  0x4d   :  { %180 = vadd.xlane.f32.xlu1 %v179_v27 }
  0x4e   :  { %105 = vadd.xlane.f32.xlu0 %v104_v28 }
  0x4f   :  { %129 = vadd.xlane.f32.xlu2 %v128_v29 }
  0x55   :  { %108 = vadd.xlane.f32.xlu1 %v107_v37 }
  0x56   :  { %132 = vadd.xlane.f32.xlu0 %v131_v42 }
  0x78   :  { %v160_v59 = vpop.xlane.xlu1 %159 }
  0x79   :  { %v136_v7 = vpop.xlane.xlu0 %135  ;;  %v213_v8 = vmul.f32 %v1883_v58, %v160_v59 }
  0x7a   :  { %v205_v12 = vmul.f32 %v1883_v58, %v136_v7  ;;  %v88_v27 = vpop.xlane.xlu2 %87 }
  0x7b   :  { %v1889_v28 = vsub.f32 %v1475_v3, %v213_v8  ;;  %v189_v37 = vmul.f32 %v1883_v58, %v88_v27 }
  0x7c   :  { %v1893_v29 = vsub.f32 %v1459_v4, %v205_v12 }
  0x7d   :  { %v277_v43 = vmul.f32 %v1889_v28, %v1889_v28  ;;  %v1904_v3 = vsub.f32 %v1427_v5, %v189_v37 }
  0x7e   :  { %v269_v42 = vmul.f32 %v1893_v29, %v1893_v29 }
  0x7f   :  { %v357_v50 = vsel %vm85_vm0, %v277_v43, 0.0  ;;  %v253_v12 = vmul.f32 %v1904_v3, %v1904_v3 }
  0x80   :  { %v333_v44 = vsel %vm85_vm0, %v269_v42, 0.0  ;;  %v163_v51 = vpop.xlane.xlu1 %162  ;;  %358 = vadd.xlane.f32.xlu2 %v357_v50 }
  0x81   :  { %v139_v52 = vpop.xlane.xlu0 %138  ;;  %334 = vadd.xlane.f32.xlu0 %v333_v44  ;;  %v214_v4 = vmul.f32 %v1883_v58, %v163_v51  ;;  %v285_v43 = vsel %vm85_vm0, %v253_v12, 0.0 }
  0x82   :  { %v206_v57 = vmul.f32 %v1883_v58, %v139_v52  ;;  %v91_v59 = vpop.xlane.xlu2 %90 }
  0x83   :  { %v1910_v7 = vsub.f32 %v1476_v9, %v214_v4  ;;  %v190_v5 = vmul.f32 %v1883_v58, %v91_v59 }
  0x84   :  { %v1914_v8 = vsub.f32 %v1460_v10, %v206_v57 }
  0x85   :  { %v278_v37 = vmul.f32 %v1910_v7, %v1910_v7  ;;  %v1925_v0 = vsub.f32 %v1428_v11, %v190_v5 }
  0x86   :  { %v270_v27 = vmul.f32 %v1914_v8, %v1914_v8 }
  0x87   :  { %v360_v1 = vsel %vm85_vm0, %v278_v37, 0.0  ;;  %v254_v4 = vmul.f32 %v1925_v0, %v1925_v0 }
  0x88   :  { %v336_v9 = vsel %vm85_vm0, %v270_v27, 0.0  ;;  %v115_v10 = vpop.xlane.xlu1 %114  ;;  %286 = vadd.xlane.f32.xlu2 %v285_v43 }
  0x89   :  { %v112_v42 = vpop.xlane.xlu0 %111  ;;  %337 = vadd.xlane.f32.xlu1 %v336_v9  ;;  %361 = vadd.xlane.f32.xlu0 %v360_v1  ;;  %v198_v44 = vmul.f32 %v1883_v58, %v115_v10 }
  0x8a   :  { %v197_v50 = vmul.f32 %v1883_v58, %v112_v42  ;;  %v142_v51 = vpop.xlane.xlu2 %141 }
  0x8b   :  { %v1934_v2 = vsub.f32 %v1444_v17, %v198_v44  ;;  %v207_v52 = vmul.f32 %v1883_v58, %v142_v51 }
  0x8c   :  { %v1938_v11 = vsub.f32 %v1443_v18, %v197_v50  ;;  %v288_v18 = vsel %vm85_vm0, %v254_v4, 0.0 }
  0x8d   :  { %v262_v59 = vmul.f32 %v1934_v2, %v1934_v2  ;;  %v1949_v5 = vsub.f32 %v1463_v19, %v207_v52 }
  0x8e   :  { %v261_v57 = vmul.f32 %v1938_v11, %v1938_v11 }
  0x8f   :  { %v312_v15 = vsel %vm85_vm0, %v262_v59, 0.0  ;;  %v271_v43 = vmul.f32 %v1949_v5, %v1949_v5 }
  0x90   :  { %v309_v17 = vsel %vm85_vm0, %v261_v57, 0.0  ;;  %v166_v12 = vpop.xlane.xlu1 %165  ;;  %313 = vadd.xlane.f32.xlu2 %v312_v15 }
  0x91   :  { %v145_v27 = vpop.xlane.xlu0 %144  ;;  %310 = vadd.xlane.f32.xlu1 %v309_v17  ;;  %289 = vadd.xlane.f32.xlu0 %v288_v18  ;;  %v215_v37 = vmul.f32 %v1883_v58, %v166_v12 }
  0x92   :  { %v208_v9 = vmul.f32 %v1883_v58, %v145_v27  ;;  %v169_v1 = vpop.xlane.xlu2 %168 }
  0x93   :  { %v1958_v19 = vsub.f32 %v1479_v24, %v215_v37  ;;  %v216_v42 = vmul.f32 %v1883_v58, %v169_v1 }
  0x94   :  { %v1962_v10 = vsub.f32 %v1464_v25, %v208_v9  ;;  %v339_v25 = vsel %vm85_vm0, %v271_v43, 0.0 }
  0x95   :  { %v279_v50 = vmul.f32 %v1958_v19, %v1958_v19  ;;  %v1973_v51 = vsub.f32 %v1480_v26, %v216_v42 }
  0x96   :  { %v272_v44 = vmul.f32 %v1962_v10, %v1962_v10 }
  0x97   :  { %v363_v16 = vsel %vm85_vm0, %v279_v50, 0.0  ;;  %v280_v18 = vmul.f32 %v1973_v51, %v1973_v51 }
  0x98   :  { %v342_v24 = vsel %vm85_vm0, %v272_v44, 0.0  ;;  %v97_v52 = vpop.xlane.xlu1 %96 }
  0x99   :  { %v94_v4 = vpop.xlane.xlu0 %93  ;;  %364 = vadd.xlane.f32.xlu0 %v363_v16  ;;  %340 = vadd.xlane.f32.xlu1 %v339_v25  ;;  %v192_v57 = vmul.f32 %v1883_v58, %v97_v52 }
  0x9a   :  { %v191_v59 = vmul.f32 %v1883_v58, %v94_v4  ;;  %343 = vadd.xlane.f32.xlu2 %v342_v24  ;;  %v118_v17 = vpop.xlane.xlu2 %117 }
  0x9b   :  { %v1982_v23 = vsub.f32 %v1432_v32, %v192_v57  ;;  %v199_v15 = vmul.f32 %v1883_v58, %v118_v17 }
  0x9c   :  { %v1986_v26 = vsub.f32 %v1431_v33, %v191_v59  ;;  %v366_v33 = vsel %vm85_vm0, %v280_v18, 0.0 }
  0x9d   :  { %v256_v27 = vmul.f32 %v1982_v23, %v1982_v23  ;;  %v1997_v37 = vsub.f32 %v1447_v34, %v199_v15 }
  0x9e   :  { %v255_v12 = vmul.f32 %v1986_v26, %v1986_v26 }
  0x9f   :  { %v294_v30 = vsel %vm85_vm0, %v256_v27, 0.0  ;;  %v263_v16 = vmul.f32 %v1997_v37, %v1997_v37 }
  0xa0   :  { %v291_v32 = vsel %vm85_vm0, %v255_v12, 0.0  ;;  %v148_v9 = vpop.xlane.xlu1 %147 }
  0xa1   :  { %v121_v1 = vpop.xlane.xlu0 %120  ;;  %295 = vadd.xlane.f32.xlu0 %v294_v30  ;;  %367 = vadd.xlane.f32.xlu1 %v366_v33  ;;  %v209_v42 = vmul.f32 %v1883_v58, %v148_v9 }
  0xa2   :  { %v200_v43 = vmul.f32 %v1883_v58, %v121_v1  ;;  %292 = vadd.xlane.f32.xlu2 %v291_v32  ;;  %v151_v44 = vpop.xlane.xlu2 %150 }
  0xa3   :  { %v2006_v34 = vsub.f32 %v1467_v39, %v209_v42  ;;  %v210_v24 = vmul.f32 %v1883_v58, %v151_v44 }
  0xa4   :  { %v2010_v50 = vsub.f32 %v1448_v40, %v200_v43  ;;  %v315_v40 = vsel %vm85_vm0, %v263_v16, 0.0 }
  0xa5   :  { %v273_v52 = vmul.f32 %v2006_v34, %v2006_v34  ;;  %v2021_v4 = vsub.f32 %v1468_v41, %v210_v24 }
  0xa6   :  { %v264_v25 = vmul.f32 %v2010_v50, %v2010_v50 }
  0xa7   :  { %v345_v31 = vsel %vm85_vm0, %v273_v52, 0.0  ;;  %v274_v27 = vmul.f32 %v2021_v4, %v2021_v4 }
  0xa8   :  { %v318_v39 = vsel %vm85_vm0, %v264_v25, 0.0  ;;  %v175_v57 = vpop.xlane.xlu1 %174 }
  0xa9   :  { %v172_v59 = vpop.xlane.xlu0 %171  ;;  %346 = vadd.xlane.f32.xlu0 %v345_v31  ;;  %316 = vadd.xlane.f32.xlu1 %v315_v40  ;;  %v218_v17 = vmul.f32 %v1883_v58, %v175_v57 }
  0xaa   :  { %v217_v15 = vmul.f32 %v1883_v58, %v172_v59  ;;  %319 = vadd.xlane.f32.xlu2 %v318_v39  ;;  %v100_v18 = vpop.xlane.xlu2 %99 }
  0xab   :  { %v2030_v38 = vsub.f32 %v1484_v47, %v218_v17  ;;  %v193_v12 = vmul.f32 %v1883_v58, %v100_v18 }
  0xac   :  { %v2034_v41 = vsub.f32 %v1483_v48, %v217_v15  ;;  %v348_v48 = vsel %vm85_vm0, %v274_v27, 0.0 }
  0xad   :  { %v282_v30 = vmul.f32 %v2030_v38, %v2030_v38  ;;  %v2045_v33 = vsub.f32 %v1435_v49, %v193_v12 }
  0xae   :  { %v281_v32 = vmul.f32 %v2034_v41, %v2034_v41 }
  0xaf   :  { %v372_v45 = vsel %vm85_vm0, %v282_v30, 0.0  ;;  %v257_v25 = vmul.f32 %v2045_v33, %v2045_v33 }
  0xb0   :  { %v369_v47 = vsel %vm85_vm0, %v281_v32, 0.0  ;;  %v124_v9 = vpop.xlane.xlu1 %123 }
  0xb1   :  { %v103_v1 = vpop.xlane.xlu0 %102  ;;  %373 = vadd.xlane.f32.xlu0 %v372_v45  ;;  %349 = vadd.xlane.f32.xlu1 %v348_v48  ;;  %v201_v42 = vmul.f32 %v1883_v58, %v124_v9 }
  0xb2   :  { %v194_v43 = vmul.f32 %v1883_v58, %v103_v1  ;;  %370 = vadd.xlane.f32.xlu2 %v369_v47  ;;  %v127_v44 = vpop.xlane.xlu2 %126 }
  0xb3   :  { %v2054_v49 = vsub.f32 %v1451_v54, %v201_v42  ;;  %v202_v16 = vmul.f32 %v1883_v58, %v127_v44 }
  0xb4   :  { %v2058_v24 = vsub.f32 %v1436_v55, %v194_v43  ;;  %v297_v55 = vsel %vm85_vm0, %v257_v25, 0.0 }
  0xb5   :  { %v265_v39 = vmul.f32 %v2054_v49, %v2054_v49  ;;  %v2069_v31 = vsub.f32 %v1452_v56, %v202_v16 }
  0xb6   :  { %v258_v52 = vmul.f32 %v2058_v24, %v2058_v24 }
  0xb7   :  { %v321_v46 = vsel %vm85_vm0, %v265_v39, 0.0  ;;  %v266_v18 = vmul.f32 %v2069_v31, %v2069_v31 }
  0xb8   :  { %v300_v54 = vsel %vm85_vm0, %v258_v52, 0.0  ;;  %v154_v40 = vpop.xlane.xlu1 %153 }
  0xb9   :  { %v178_v57 = vpop.xlane.xlu0 %177  ;;  %322 = vadd.xlane.f32.xlu0 %v321_v46  ;;  %298 = vadd.xlane.f32.xlu1 %v297_v55  ;;  %v211_v59 = vmul.f32 %v1883_v58, %v154_v40  ;;  %v324_v47 = vsel %vm85_vm0, %v266_v18, 0.0 }
  0xba   :  { %301 = vadd.xlane.f32.xlu2 %v300_v54  ;;  %v157_v17 = vpop.xlane.xlu2 %156  ;;  %v219_v56 = vmul.f32 %v1883_v58, %v178_v57 }
  0xbb   :  { %v212_v15 = vmul.f32 %v1883_v58, %v157_v17  ;;  %v2078_v53 = vsub.f32 %v1471_v62, %v211_v59 }
  0xbc   :  { %v2093_v30 = vsub.f32 %v1487_v63, %v219_v56 }
  0xbd   :  { %v2085_v12 = vsub.f32 %v1472_v6, %v212_v15  ;;  %v275_v27 = vmul.f32 %v2078_v53, %v2078_v53 }
  0xbe   :  { %v283_v44 = vmul.f32 %v2093_v30, %v2093_v30 }
  0xbf   :  { %v276_v32 = vmul.f32 %v2085_v12, %v2085_v12  ;;  %v351_v62 = vsel %vm85_vm0, %v275_v27, 0.0 }
  0xc0   :  { %v181_v45 = vpop.xlane.xlu1 %180 }
  0xc1   :  { %v106_v48 = vpop.xlane.xlu0 %105  ;;  %325 = vadd.xlane.f32.xlu1 %v324_v47  ;;  %v354_v60 = vsel %vm85_vm0, %v276_v32, 0.0  ;;  %v220_v6 = vmul.f32 %v1883_v58, %v181_v45 }
  0xc2   :  { %v195_v9 = vmul.f32 %v1883_v58, %v106_v48  ;;  %352 = vadd.xlane.f32.xlu2 %v351_v62  ;;  %355 = vadd.xlane.f32.xlu0 %v354_v60  ;;  %v130_v1 = vpop.xlane.xlu2 %129  ;;  %v1424_v62 = vld [vmem:[%s3271_s1 + $0x8] sm:$0xff] }
  0xc3   :  { %v203_v42 = vmul.f32 %v1883_v58, %v130_v1  ;;  %v2103_v63 = vsub.f32 %v1488_v20, %v220_v6  ;;  %v375_v20 = vsel %vm85_vm0, %v283_v44, 0.0  ;;  %1505 = vmatpush.bf16.msra.mxu2 %v1424_v62  ;;  %1506 = vmatpush.bf16.msra.mxu3 %v1424_v62  ;;  %v1423_v1 = vld [vmem:[%s3271_s1] sm:$0xff] }
  0xc4   :  { %v2107_v43 = vsub.f32 %v1439_v21, %v195_v9  ;;  %959 = vmatpush.bf16.msra.mxu0 %v1424_v62  ;;  %1504 = vmatpush.bf16.msra.mxu1 %v1424_v62 }
  0xc5   :  { %v284_v16 = vmul.f32 %v2103_v63, %v2103_v63  ;;  %v2117_v52 = vsub.f32 %v1455_v22, %v203_v42 }
  0xc6   :  { %3278 = vst [vmem:[#allocation2_spill] sm:$0xff] %v2107_v43  ;;  %v259_v25 = vmul.f32 %v2107_v43, %v2107_v43 }
  0xc7   :  { %3279 = vst [vmem:[#allocation3_spill] sm:$0xff] %v2117_v52  ;;  %v378_v61 = vsel %vm85_vm0, %v284_v16, 0.0  ;;  %v267_v40 = vmul.f32 %v2117_v52, %v2117_v52  ;;  %1508 = vmatpush.bf16.msra.mxu2 %v1423_v1  ;;  %1509 = vmatpush.bf16.msra.mxu3 %v1423_v1 }
  0xc8   :  { %v303_v21 = vsel %vm85_vm0, %v259_v25, 0.0  ;;  %v109_v39 = vpop.xlane.xlu1 %108  ;;  %960 = vmatpush.bf16.msra.mxu0 %v1423_v1  ;;  %1507 = vmatpush.bf16.msra.mxu1 %v1423_v1 }
  0xc9   :  { %v133_v54 = vpop.xlane.xlu0 %132  ;;  %376 = vadd.xlane.f32.xlu1 %v375_v20  ;;  %v196_v46 = vmul.f32 %v1883_v58, %v109_v39  ;;  %v327_v15 = vsel %vm85_vm0, %v267_v40, 0.0 }
  0xca   :  { %v204_v55 = vmul.f32 %v1883_v58, %v133_v54  ;;  %379 = vadd.xlane.f32.xlu2 %v378_v61  ;;  %304 = vadd.xlane.f32.xlu0 %v303_v21 }
  0xcb   :  { %v2128_v22 = vsub.f32 %v1440_v35, %v196_v46 }
  0xcc   :  { %v2132_v57 = vsub.f32 %v1456_v36, %v204_v55 }
  0xcd   :  { %3280 = vst [vmem:[#allocation4_spill] sm:$0xff] %v2128_v22  ;;  %v260_v59 = vmul.f32 %v2128_v22, %v2128_v22 }
  0xce   :  { %3281 = vst [vmem:[#allocation5_spill] sm:$0xff] %v2132_v57  ;;  %v268_v17 = vmul.f32 %v2132_v57, %v2132_v57 }
  0xcf   :  { %v306_v56 = vsel %vm85_vm0, %v260_v59, 0.0 }
  0xd0   :  { %v330_v18 = vsel %vm85_vm0, %v268_v17, 0.0 }
  0xd1   :  { %307 = vadd.xlane.f32.xlu1 %v306_v56 }
  0xd2   :  { %331 = vadd.xlane.f32.xlu0 %v330_v18  ;;  %328 = vadd.xlane.f32.xlu2 %v327_v15 }
  0xf3   :  { %v359_v35 = vpop.xlane.xlu2 %358 }
  0xf4   :  { %v335_v13 = vpop.xlane.xlu0 %334  ;;  %v405_v36 = vmul.f32 %v359_v35, %v1883_v58 }
  0xf5   :  { %v397_v14 = vmul.f32 %v335_v13, %v1883_v58 }
  0xf6   :  { %v2145_v32 = vadd.f32 1e-05, %v405_v36 }
  0xf7   :  { %v2143_v27 = vadd.f32 1e-05, %v397_v14 }
  0xf8   :  { %vm691_vm7 = vweird.f32 %v2145_v32 }
  0xf9   :  { %1516 = vrsqrt.f32 %v2143_v27  ;;  %vm611_vm2 = vweird.f32 %v2143_v27 }
  0xfa   :  { %1518 = vrsqrt.f32 %v2145_v32 }
  0xfb   :  { %v287_v6 = vpop.xlane.xlu2 %286 }
  0xfc   :  { %v338_v47 = vpop.xlane.xlu1 %337  ;;  %v362_v45 = vpop.xlane.xlu0 %361  ;;  %v381_v9 = vmul.f32 %v287_v6, %v1883_v58 }
  0xfd   :  { %v398_v48 = vmul.f32 %v338_v47, %v1883_v58  ;;  %v406_v60 = vmul.f32 %v362_v45, %v1883_v58 }
  0xfe   :  { %v2168_v20 = vadd.f32 1e-05, %v381_v9 }
  0xff   :  { %v2158_v42 = vpop.eup %1516  ;;  %v2160_v44 = vadd.f32 1e-05, %v398_v48  ;;  %v2162_v16 = vadd.f32 1e-05, %v406_v60 }
 0x100   :  { %v2164_v25 = vpop.eup %1518  ;;  %v606_v61 = vmul.f32 %v2158_v42, %v2143_v27  ;;  %vm612_vm3 = vweird.f32 %v2158_v42  ;;  %vm451_vm13 = vweird.f32 %v2168_v20 }
 0x101   :  { %v686_v21 = vmul.f32 %v2164_v25, %v2145_v32  ;;  %1520 = vrsqrt.f32 %v2160_v44  ;;  %vm692_vm4 = vweird.f32 %v2164_v25  ;;  %vm2213_vm6 = vmor %vm611_vm2, %vm612_vm3  ;;  %vm621_vm9 = vweird.f32 %v2160_v44 }
 0x102   :  { %v607_v39 = vmul.f32 %v2158_v42, %v606_v61  ;;  %1522 = vrsqrt.f32 %v2162_v16  ;;  %vm2221_vm8 = vmor %vm691_vm7, %vm692_vm4  ;;  %vm701_vm12 = vweird.f32 %v2162_v16 }
 0x103   :  { %v687_v54 = vmul.f32 %v2164_v25, %v686_v21  ;;  %1524 = vrsqrt.f32 %v2168_v20  ;;  %v314_v15 = vpop.xlane.xlu2 %313 }
 0x104   :  { %v311_v46 = vpop.xlane.xlu1 %310  ;;  %v290_v55 = vpop.xlane.xlu0 %289  ;;  %v608_v40 = vmul.f32 0.5, %v607_v39  ;;  %v390_v18 = vmul.f32 %v314_v15, %v1883_v58 }
 0x105   :  { %v389_v59 = vmul.f32 %v311_v46, %v1883_v58  ;;  %v382_v17 = vmul.f32 %v290_v55, %v1883_v58  ;;  %v688_v56 = vmul.f32 0.5, %v687_v54 }
 0x106   :  { %v609_v45 = vsub.f32 1.5, %v608_v40  ;;  %v2192_v60 = vadd.f32 1e-05, %v390_v18 }
 0x107   :  { %v1521_v13 = vpop.eup %1520  ;;  %v2180_v35 = vadd.f32 1e-05, %v389_v59  ;;  %v2185_v62 = vadd.f32 1e-05, %v382_v17  ;;  %v689_v6 = vsub.f32 1.5, %v688_v56 }
 0x108   :  { %v2182_v14 = vpop.eup %1522  ;;  %v616_v36 = vmul.f32 %v1521_v13, %v2160_v44  ;;  %v610_v55 = vmul.f32 %v2158_v42, %v609_v45  ;;  %vm622_vm5 = vweird.f32 %v1521_v13 }
 0x109   :  { %v2187_v47 = vpop.eup %1524  ;;  %v696_v48 = vmul.f32 %v2182_v14, %v2162_v16  ;;  %1526 = vrsqrt.f32 %v2180_v35  ;;  %v690_v17 = vmul.f32 %v2164_v25, %v689_v6  ;;  %vm2232_vm10 = vmor %vm621_vm9, %vm622_vm5  ;;  %vm702_vm11 = vweird.f32 %v2182_v14  ;;  %v2267_v16 = vld [vmem:[%s3269_s3] ss:$0 sm:$0xff] }
 0x10a   :  { %v617_v9 = vmul.f32 %v1521_v13, %v616_v36  ;;  %v446_v1 = vmul.f32 %v2187_v47, %v2168_v20  ;;  %1528 = vrsqrt.f32 %v2185_v62  ;;  %v614_v32 = vsel %vm2213_vm6, %v2158_v42, %v610_v55  ;;  %vm2272_vm14 = vmor %vm701_vm12, %vm702_vm11 }
 0x10b   :  { %v697_v61 = vmul.f32 %v2182_v14, %v696_v48  ;;  %1530 = vrsqrt.f32 %v2192_v60  ;;  %v694_v44 = vsel %vm2221_vm8, %v2164_v25, %v690_v17  ;;  %v781_v17 = vmul.f32 %v614_v32, %v1893_v29 }
 0x10c   :  { %v618_v21 = vmul.f32 0.5, %v617_v9  ;;  %v447_v39 = vmul.f32 %v2187_v47, %v446_v1  ;;  %v365_v54 = vpop.xlane.xlu0 %364  ;;  %v341_v46 = vpop.xlane.xlu1 %340  ;;  %vm452_vm15 = vweird.f32 %v2187_v47  ;;  %vm531_vm1 = vweird.f32 %v2180_v35 }
 0x10d   :  { %v698_v40 = vmul.f32 0.5, %v697_v61  ;;  %v344_v59 = vpop.xlane.xlu2 %343  ;;  %v407_v56 = vmul.f32 %v365_v54, %v1883_v58  ;;  %v399_v18 = vmul.f32 %v341_v46, %v1883_v58  ;;  %vm2300_vm2 = vmor %vm451_vm13, %vm452_vm15  ;;  %vm461_vm3 = vweird.f32 %v2185_v62 }
 0x10e   :  { %v619_v15 = vsub.f32 1.5, %v618_v21  ;;  %v448_v9 = vmul.f32 0.5, %v447_v39  ;;  %v400_v6 = vmul.f32 %v344_v59, %v1883_v58  ;;  %vm541_vm5 = vweird.f32 %v2192_v60 }
 0x10f   :  { %v2207_v36 = vpop.eup %1526  ;;  %v699_v48 = vsub.f32 1.5, %v698_v40  ;;  %v2237_v39 = vadd.f32 1e-05, %v407_v56  ;;  %v2247_v55 = vadd.f32 1e-05, %v399_v18 }
 0x110   :  { %v620_v61 = vmul.f32 %v1521_v13, %v619_v15  ;;  %v526_v27 = vmul.f32 %v2207_v36, %v2180_v35  ;;  %v2239_v54 = vpop.eup %1528  ;;  %v449_v15 = vsub.f32 1.5, %v448_v9  ;;  %v2254_v45 = vadd.f32 1e-05, %v400_v6 }
 0x111   :  { %v2249_v40 = vpop.eup %1530  ;;  %v700_v59 = vmul.f32 %v2182_v14, %v699_v48  ;;  %v456_v56 = vmul.f32 %v2239_v54, %v2185_v62  ;;  %1532 = vrsqrt.f32 %v2237_v39  ;;  %v789_v6 = vmul.f32 %v694_v44, %v1889_v28 }
 0x112   :  { %v624_v46 = vsel %vm2232_vm10, %v1521_v13, %v620_v61  ;;  %v527_v42 = vmul.f32 %v2207_v36, %v526_v27  ;;  %v536_v13 = vmul.f32 %v2249_v40, %v2192_v60  ;;  %1534 = vrsqrt.f32 %v2247_v55 }
 0x113   :  { %v782_v18 = vmul.f32 %v624_v46, %v1914_v8  ;;  %v457_v48 = vmul.f32 %v2239_v54, %v456_v56  ;;  %v704_v27 = vsel %vm2272_vm14, %v2182_v14, %v700_v59  ;;  %v450_v32 = vmul.f32 %v2187_v47, %v449_v15  ;;  %v2293_v14 = vld [vmem:[%s3270_s4] ss:$0 sm:$0xff] }
 0x114   :  { %v528_v25 = vmul.f32 0.5, %v527_v42  ;;  %v296_v9 = vpop.xlane.xlu0 %295  ;;  %v368_v1 = vpop.xlane.xlu1 %367  ;;  %v537_v29 = vmul.f32 %v2249_v40, %v536_v13  ;;  %1536 = vrsqrt.f32 %v2254_v45  ;;  %v817_v13 = vmul.f32 %v2267_v16, %v781_v17 }
 0x115   :  { %v293_v8 = vpop.xlane.xlu2 %292  ;;  %v458_v21 = vmul.f32 0.5, %v457_v48  ;;  %v384_v44 = vmul.f32 %v296_v9, %v1883_v58  ;;  %v408_v46 = vmul.f32 %v368_v1, %v1883_v58  ;;  %v818_v61 = vmul.f32 %v2267_v16, %v782_v18 }
 0x116   :  { %v529_v28 = vsub.f32 1.5, %v528_v25  ;;  %v538_v42 = vmul.f32 0.5, %v537_v29  ;;  %v383_v56 = vmul.f32 %v293_v8, %v1883_v58  ;;  %v790_v59 = vmul.f32 %v704_v27, %v1910_v7 }
 0x117   :  { %v2305_v25 = vadd.f32 1e-05, %v384_v44  ;;  %v825_v17 = vmul.f32 %v2267_v16, %v789_v6  ;;  %v2308_v18 = vpop.eup %1532  ;;  %v454_v7 = vsel %vm2300_vm2, %v2187_v47, %v450_v32  ;;  %vm532_vm4 = vweird.f32 %v2207_v36 }
 0x118   :  { %v530_v48 = vmul.f32 %v2207_v36, %v529_v28  ;;  %v2316_v20 = vadd.f32 1e-05, %v408_v46  ;;  %v2318_v9 = vpop.eup %1534  ;;  %v459_v1 = vsub.f32 1.5, %v458_v21  ;;  %v706_v6 = vmul.f32 %v2308_v18, %v2237_v39  ;;  %vm2343_vm7 = vmor %vm531_vm1, %vm532_vm4 }
 0x119   :  { %1538 = vrsqrt.f32 %v2305_v25  ;;  %v2323_v29 = vadd.f32 1e-05, %v383_v56  ;;  %v539_v47 = vsub.f32 1.5, %v538_v42  ;;  %v626_v27 = vmul.f32 %v2318_v9, %v2247_v55 }
 0x11a   :  { %v2325_v8 = vpop.eup %1536  ;;  %v853_v32 = vadd.f32 %v2293_v14, %v817_v13  ;;  %v854_v28 = vadd.f32 %v2293_v14, %v818_v61  ;;  %vm462_vm6 = vweird.f32 %v2239_v54  ;;  %v707_v21 = vmul.f32 %v2308_v18, %v706_v6 }
 0x11b   :  { %v636_v44 = vmul.f32 %v2325_v8, %v2254_v45  ;;  %v826_v46 = vmul.f32 %v2267_v16, %v790_v59  ;;  %v2337_v56 = vmul.f32 %v454_v7, %v1904_v3  ;;  %vm542_vm8 = vweird.f32 %v2249_v40  ;;  %vm2366_vm9 = vmor %vm461_vm3, %vm462_vm6 }
 0x11c   :  { %v627_v13 = vmul.f32 %v2318_v9, %v626_v27  ;;  %1540 = vrsqrt.f32 %v2316_v20  ;;  %v347_v61 = vpop.xlane.xlu0 %346  ;;  %v534_v3 = vsel %vm2343_vm7, %v2207_v36, %v530_v48  ;;  %v460_v59 = vmul.f32 %v2239_v54, %v459_v1  ;;  %v317_v35 = vpop.xlane.xlu1 %316  ;;  %vm2384_vm12 = vmor %vm541_vm5, %vm542_vm8 }
 0x11d   :  { %v637_v15 = vmul.f32 %v2325_v8, %v636_v44  ;;  %1542 = vrsqrt.f32 %v2323_v29  ;;  %v540_v7 = vmul.f32 %v2249_v40, %v539_v47  ;;  %v708_v6 = vmul.f32 0.5, %v707_v21  ;;  %v320_v48 = vpop.xlane.xlu2 %319 }
 0x11e   :  { %v628_v52 = vmul.f32 0.5, %v627_v13  ;;  %v877_v57 = vpack.c.bf16 %v854_v28, %v853_v32  ;;  %v861_v43 = vadd.f32 %v2293_v14, %v825_v17  ;;  %v862_v42 = vadd.f32 %v2293_v14, %v826_v46 }
 0x11f   :  { %v2357_v27 = vpop.eup %1538  ;;  %v638_v22 = vmul.f32 0.5, %v637_v15  ;;  %v401_v36 = vmul.f32 %v347_v61, %v1883_v58  ;;  %vm711_vm10 = vweird.f32 %v2237_v39  ;;  %vm631_vm11 = vweird.f32 %v2247_v55 }
 0x120   :  { %v476_v17 = vmul.f32 %v2357_v27, %v2305_v25  ;;  %1415 = vmatmul.msk.bf16.vlgmr.msra.gmra.mxu2 %vm85_vm0, %v877_v57  ;;  %v391_v47 = vmul.f32 %v317_v35, %v1883_v58  ;;  %v773_v32 = vmul.f32 %v534_v3, %v1938_v11  ;;  %v464_v62 = vsel %vm2366_vm9, %v2239_v54, %v460_v59 }
 0x121   :  { %v629_v21 = vsub.f32 1.5, %v628_v52  ;;  %vm641_vm13 = vweird.f32 %v2254_v45  ;;  %v881_v57 = vpack.c.bf16 %v862_v42, %v861_v43  ;;  %v544_v11 = vsel %vm2384_vm12, %v2249_v40, %v540_v7 }
 0x122   :  { %v2389_v44 = vpop.eup %1540  ;;  %v709_v46 = vsub.f32 1.5, %v708_v6  ;;  %v477_v54 = vmul.f32 %v2357_v27, %v476_v17  ;;  %v2395_v13 = vadd.f32 1e-05, %v401_v36  ;;  %vm712_vm14 = vweird.f32 %v2308_v18 }
 0x123   :  { %v2397_v60 = vpop.eup %1542  ;;  %v639_v61 = vsub.f32 1.5, %v638_v22  ;;  %v716_v52 = vmul.f32 %v2389_v44, %v2316_v20  ;;  %1419 = vmatmul.msk.bf16.vlgmr.msra.gmra.mxu3 %vm85_vm0, %v881_v57  ;;  %v2403_v43 = vadd.f32 1e-05, %v391_v47  ;;  %v766_v3 = vmul.f32 %v464_v62, %v1925_v0  ;;  %vm2439_vm5 = vmor %vm711_vm10, %vm712_vm14 }
 0x124   :  { %vm632_vm15 = vweird.f32 %v2318_v9  ;;  %v466_v40 = vmul.f32 %v2397_v60, %v2323_v29  ;;  %v392_v59 = vmul.f32 %v320_v48, %v1883_v58  ;;  %v774_v15 = vmul.f32 %v544_v11, %v1934_v2  ;;  %v374_v47 = vpop.xlane.xlu0 %373  ;;  %v350_v57 = vpop.xlane.xlu1 %349 }
 0x125   :  { %v630_v22 = vmul.f32 %v2318_v9, %v629_v21  ;;  %vm642_vm1 = vweird.f32 %v2325_v8  ;;  %v717_v35 = vmul.f32 %v2389_v44, %v716_v52  ;;  %v2415_v7 = vmul.f32 %v2308_v18, %v709_v46  ;;  %vm2426_vm3 = vmor %vm631_vm11, %vm632_vm15  ;;  %v371_v11 = vpop.xlane.xlu2 %370 }
 0x126   :  { %v478_v6 = vmul.f32 0.5, %v477_v54  ;;  %v467_v0 = vmul.f32 %v2397_v60, %v466_v40  ;;  %1544 = vrsqrt.f32 %v2395_v13  ;;  %v640_v42 = vmul.f32 %v2325_v8, %v639_v61  ;;  %vm2458_vm7 = vmor %vm641_vm13, %vm642_vm1 }
 0x127   :  { %v718_v36 = vmul.f32 0.5, %v717_v35  ;;  %vm471_vm2 = vweird.f32 %v2323_v29  ;;  %1546 = vrsqrt.f32 %v2403_v43  ;;  %vm482_vm4 = vweird.f32 %v2357_v27 }
 0x128   :  { %v468_v48 = vmul.f32 0.5, %v467_v0  ;;  %v2431_v1 = vadd.f32 1e-05, %v392_v59  ;;  %v801_v17 = vmul.f32 %v2267_v16, %v2337_v56  ;;  %v634_v55 = vsel %vm2426_vm3, %v2318_v9, %v630_v22 }
 0x129   :  { %vm481_vm6 = vweird.f32 %v2305_v25  ;;  %v802_v28 = vmul.f32 %v2267_v16, %v766_v3  ;;  %v809_v21 = vmul.f32 %v2267_v16, %v773_v32  ;;  %v810_v56 = vmul.f32 %v2267_v16, %v774_v15 }
 0x12a   :  { %v714_v39 = vsel %vm2439_vm5, %v2308_v18, %v2415_v7  ;;  %v479_v46 = vsub.f32 1.5, %v478_v6  ;;  %vm721_vm8 = vweird.f32 %v2316_v20  ;;  %v469_v32 = vsub.f32 1.5, %v468_v48  ;;  %vm2517_vm12 = vmor %vm481_vm6, %vm482_vm4 }
 0x12b   :  { %1548 = vrsqrt.f32 %v2431_v1  ;;  %v644_v54 = vsel %vm2458_vm7, %v2325_v8, %v640_v42  ;;  %v719_v61 = vsub.f32 1.5, %v718_v36  ;;  %v837_v18 = vadd.f32 %v2293_v14, %v801_v17 }
 0x12c   :  { %v838_v52 = vadd.f32 %v2293_v14, %v802_v28  ;;  %v2469_v45 = vpop.eup %1544  ;;  %v783_v3 = vmul.f32 %v634_v55, %v1949_v5  ;;  %v845_v40 = vadd.f32 %v2293_v14, %v809_v21  ;;  %v846_v59 = vadd.f32 %v2293_v14, %v810_v56 }
 0x12d   :  { %v410_v15 = vmul.f32 %v374_v47, %v1883_v58  ;;  %v2475_v22 = vpop.eup %1546  ;;  %v470_v35 = vmul.f32 %v2397_v60, %v469_v32  ;;  %vm472_vm9 = vweird.f32 %v2397_v60  ;;  %v646_v8 = vmul.f32 %v2469_v45, %v2395_v13  ;;  %v323_v32 = vpop.xlane.xlu0 %322 }
 0x12e   :  { %v869_v7 = vpack.c.bf16 %v838_v52, %v837_v18  ;;  %v784_v6 = vmul.f32 %v644_v54, %v1962_v10  ;;  %v480_v5 = vmul.f32 %v2357_v27, %v479_v46  ;;  %vm722_vm10 = vweird.f32 %v2389_v44  ;;  %vm2495_vm11 = vmor %vm471_vm2, %vm472_vm9  ;;  %v302_v18 = vpop.xlane.xlu2 %301 }
 0x12f   :  { %v546_v0 = vmul.f32 %v2475_v22, %v2403_v43  ;;  %v720_v42 = vmul.f32 %v2389_v44, %v719_v61  ;;  %v647_v36 = vmul.f32 %v2469_v45, %v646_v8  ;;  %v873_v2 = vpack.c.bf16 %v846_v59, %v845_v40  ;;  %vm2529_vm13 = vmor %vm721_vm8, %vm722_vm10  ;;  %v299_v61 = vpop.xlane.xlu1 %298 }
 0x130   :  { %1407 = vmatmul.msk.bf16.vlgmr.msra.gmra.mxu0 %vm85_vm0, %v869_v7  ;;  %v2489_v48 = vadd.f32 1e-05, %v410_v15  ;;  %v402_v62 = vmul.f32 %v350_v57, %v1883_v58  ;;  %v409_v55 = vmul.f32 %v371_v11, %v1883_v58  ;;  %v819_v28 = vmul.f32 %v2267_v16, %v783_v3 }
 0x131   :  { %v2491_v17 = vpop.eup %1548  ;;  %v547_v47 = vmul.f32 %v2475_v22, %v546_v0  ;;  %v474_v21 = vsel %vm2495_vm11, %v2397_v60, %v470_v35  ;;  %v648_v56 = vmul.f32 0.5, %v647_v36  ;;  %1411 = vmatmul.msk.bf16.vlgmr.msra.gmra.mxu1 %vm85_vm0, %v873_v2  ;;  %v2511_v9 = vmul.f32 %v714_v39, %v1958_v19 }
 0x132   :  { %v556_v29 = vmul.f32 %v2491_v17, %v2431_v1  ;;  %1550 = vrsqrt.f32 %v2489_v48  ;;  %v2521_v11 = vadd.f32 1e-05, %v402_v62  ;;  %v2523_v46 = vadd.f32 1e-05, %v409_v55 }
 0x133   :  { %v548_v60 = vmul.f32 0.5, %v547_v47  ;;  %vm651_vm14 = vweird.f32 %v2395_v13  ;;  %v820_v39 = vmul.f32 %v2267_v16, %v784_v6  ;;  %v855_v54 = vadd.f32 %v2293_v14, %v819_v28 }
 0x134   :  { %v557_v25 = vmul.f32 %v2491_v17, %v556_v29  ;;  %v484_v52 = vsel %vm2517_vm12, %v2357_v27, %v480_v5  ;;  %v724_v20 = vsel %vm2529_vm13, %v2389_v44, %v720_v42  ;;  %v767_v3 = vmul.f32 %v474_v21, %v1986_v26 }
 0x135   :  { %1552 = vrsqrt.f32 %v2521_v11  ;;  %v649_v40 = vsub.f32 1.5, %v648_v56  ;;  %v856_v15 = vadd.f32 %v2293_v14, %v820_v39  ;;  %v549_v35 = vsub.f32 1.5, %v548_v60 }
 0x136   :  { %v558_v59 = vmul.f32 0.5, %v557_v25  ;;  %1554 = vrsqrt.f32 %v2523_v46  ;;  %v393_v8 = vmul.f32 %v323_v32, %v1883_v58  ;;  %v385_v7 = vmul.f32 %v299_v61, %v1883_v58 }
 0x137   :  { %v386_v27 = vmul.f32 %v302_v18, %v1883_v58  ;;  %v768_v44 = vmul.f32 %v484_v52, %v1982_v23  ;;  %vm551_vm15 = vweird.f32 %v2403_v43  ;;  %vm561_vm1 = vweird.f32 %v2431_v1  ;;  %v356_v43 = vpop.xlane.xlu0 %355 }
 0x138   :  { %v2550_v6 = vpop.eup %1550  ;;  %v878_v26 = vpack.c.bf16 %v856_v15, %v855_v54  ;;  %v792_v5 = vmul.f32 %v724_v20, %v1973_v51  ;;  %vm652_vm2 = vweird.f32 %v2469_v45  ;;  %v559_v0 = vsub.f32 1.5, %v558_v59  ;;  %v326_v54 = vpop.xlane.xlu1 %325 }
 0x139   :  { %v736_v42 = vmul.f32 %v2550_v6, %v2489_v48  ;;  %v650_v36 = vmul.f32 %v2469_v45, %v649_v40  ;;  %v2561_v2 = vadd.f32 1e-05, %v393_v8  ;;  %v2563_v23 = vadd.f32 1e-05, %v385_v7  ;;  %vm2584_vm5 = vmor %vm651_vm14, %vm652_vm2 }
 0x13a   :  { %1416 = vmatmul.msk.bf16.gmra.mxu2 %vm85_vm0, %v878_v26  ;;  %v803_v10 = vmul.f32 %v2267_v16, %v767_v3  ;;  %v550_v51 = vmul.f32 %v2475_v22, %v549_v35  ;;  %vm552_vm3 = vweird.f32 %v2475_v22  ;;  %v2571_v55 = vadd.f32 1e-05, %v386_v27 }
 0x13b   :  { %v2566_v47 = vpop.eup %1552  ;;  %v737_v62 = vmul.f32 %v2550_v6, %v736_v42  ;;  %vm562_vm4 = vweird.f32 %v2491_v17  ;;  %1556 = vrsqrt.f32 %v2561_v2  ;;  %v804_v56 = vmul.f32 %v2267_v16, %v768_v44  ;;  %vm2597_vm7 = vmor %vm551_vm15, %vm552_vm3 }
 0x13c   :  { %v2573_v28 = vpop.eup %1554  ;;  %v656_v21 = vmul.f32 %v2566_v47, %v2521_v11  ;;  %v560_v57 = vmul.f32 %v2491_v17, %v559_v0  ;;  %vm741_vm6 = vweird.f32 %v2489_v48  ;;  %v654_v19 = vsel %vm2584_vm5, %v2469_v45, %v650_v36  ;;  %vm2613_vm8 = vmor %vm561_vm1, %vm562_vm4 }
 0x13d   :  { %v738_v60 = vmul.f32 0.5, %v737_v62  ;;  %v726_v32 = vmul.f32 %v2573_v28, %v2523_v46  ;;  %1558 = vrsqrt.f32 %v2563_v23  ;;  %v839_v39 = vadd.f32 %v2293_v14, %v803_v10 }
 0x13e   :  { %v657_v25 = vmul.f32 %v2566_v47, %v656_v21  ;;  %v554_v61 = vsel %vm2597_vm7, %v2475_v22, %v550_v51  ;;  %1560 = vrsqrt.f32 %v2571_v55  ;;  %vm661_vm9 = vweird.f32 %v2521_v11 }
 0x13f   :  { %v739_v18 = vsub.f32 1.5, %v738_v60  ;;  %v727_v45 = vmul.f32 %v2573_v28, %v726_v32  ;;  %v840_v3 = vadd.f32 %v2293_v14, %v804_v56  ;;  %v827_v22 = vmul.f32 %v2267_v16, %v2511_v9 }
 0x140   :  { %v658_v20 = vmul.f32 0.5, %v657_v25  ;;  %v828_v40 = vmul.f32 %v2267_v16, %v792_v5  ;;  %v2623_v59 = vmul.f32 %v654_v19, %v2006_v34  ;;  %v564_v1 = vsel %vm2613_vm8, %v2491_v17, %v560_v57  ;;  %v353_v5 = vpop.xlane.xlu2 %352 }
 0x141   :  { %v728_v15 = vmul.f32 0.5, %v727_v45  ;;  %v394_v35 = vmul.f32 %v326_v54, %v1883_v58  ;;  %v2629_v8 = vpop.eup %1556  ;;  %v870_v27 = vpack.c.bf16 %v840_v3, %v839_v39  ;;  %v863_v44 = vadd.f32 %v2293_v14, %v827_v22  ;;  %v377_v45 = vpop.xlane.xlu1 %376 }
 0x142   :  { %v659_v7 = vsub.f32 1.5, %v658_v20  ;;  %v864_v9 = vadd.f32 %v2293_v14, %v828_v40  ;;  %v775_v26 = vmul.f32 %v554_v61, %v1997_v37  ;;  %v740_v34 = vmul.f32 %v2550_v6, %v739_v18 }
 0x143   :  { %vm742_vm10 = vweird.f32 %v2550_v6  ;;  %vm731_vm11 = vweird.f32 %v2523_v46  ;;  %v566_v17 = vmul.f32 %v2629_v8, %v2561_v2  ;;  %v2639_v0 = vpop.eup %1558  ;;  %v729_v42 = vsub.f32 1.5, %v728_v15  ;;  %1408 = vmatmul.msk.bf16.gmra.mxu0 %vm85_vm0, %v870_v27 }
 0x144   :  { %v882_v36 = vpack.c.bf16 %v864_v9, %v863_v44  ;;  %v2642_v10 = vadd.f32 1e-05, %v394_v35  ;;  %v404_v37 = vmul.f32 %v356_v43, %v1883_v58  ;;  %v2645_v51 = vpop.eup %1560  ;;  %v776_v62 = vmul.f32 %v564_v1, %v2010_v50  ;;  %vm2656_vm13 = vmor %vm741_vm6, %vm742_vm10  ;;  %v305_v43 = vpop.xlane.xlu0 %304 }
 0x145   :  { %vm662_vm12 = vweird.f32 %v2566_v47  ;;  %v567_v21 = vmul.f32 %v2629_v8, %v566_v17  ;;  %v486_v56 = vmul.f32 %v2639_v0, %v2563_v23  ;;  %v660_v57 = vmul.f32 %v2566_v47, %v659_v7 }
 0x146   :  { %vm732_vm14 = vweird.f32 %v2573_v28  ;;  %v496_v50 = vmul.f32 %v2645_v51, %v2571_v55  ;;  %1420 = vmatmul.msk.bf16.gmra.mxu3 %vm85_vm0, %v882_v36  ;;  %1562 = vrsqrt.f32 %v2642_v10  ;;  %v744_v60 = vsel %vm2656_vm13, %v2550_v6, %v740_v34  ;;  %vm2681_vm3 = vmor %vm661_vm9, %vm662_vm12 }
 0x147   :  { %v568_v48 = vmul.f32 0.5, %v567_v21  ;;  %vm571_vm15 = vweird.f32 %v2561_v2  ;;  %v487_v32 = vmul.f32 %v2639_v0, %v486_v56  ;;  %v730_v19 = vmul.f32 %v2573_v28, %v729_v42  ;;  %vm2703_vm5 = vmor %vm731_vm11, %vm732_vm14 }
 0x148   :  { %vm572_vm1 = vweird.f32 %v2629_v8  ;;  %vm491_vm2 = vweird.f32 %v2563_v23  ;;  %v497_v13 = vmul.f32 %v2645_v51, %v496_v50  ;;  %v2675_v25 = vadd.f32 1e-05, %v404_v37  ;;  %v380_v34 = vpop.xlane.xlu2 %379 }
 0x149   :  { %v569_v39 = vsub.f32 1.5, %v568_v48  ;;  %v488_v54 = vmul.f32 0.5, %v487_v32  ;;  %v403_v61 = vmul.f32 %v353_v5, %v1883_v58  ;;  %v811_v18 = vmul.f32 %v2267_v16, %v775_v26  ;;  %vm2722_vm7 = vmor %vm571_vm15, %vm572_vm1  ;;  %v308_v6 = vpop.xlane.xlu1 %307 }
 0x14a   :  { %v664_v52 = vsel %vm2681_vm3, %v2566_v47, %v660_v57  ;;  %v498_v20 = vmul.f32 0.5, %v497_v13  ;;  %vm501_vm4 = vweird.f32 %v2571_v55  ;;  %1564 = vrsqrt.f32 %v2675_v25 }
 0x14b   :  { %v812_v11 = vmul.f32 %v2267_v16, %v776_v62  ;;  %v570_v3 = vmul.f32 %v2629_v8, %v569_v39  ;;  %v489_v22 = vsub.f32 1.5, %v488_v54  ;;  %v2694_v40 = vadd.f32 1e-05, %v403_v61 }
 0x14c   :  { %v847_v1 = vadd.f32 %v2293_v14, %v811_v18  ;;  %v2697_v15 = vpop.eup %1562  ;;  %v499_v35 = vsub.f32 1.5, %v498_v20  ;;  %v411_v27 = vmul.f32 %v377_v45, %v1883_v58  ;;  %v387_v44 = vmul.f32 %v305_v43, %v1883_v58 }
 0x14d   :  { %v848_v7 = vadd.f32 %v2293_v14, %v812_v11  ;;  %v794_v9 = vmul.f32 %v744_v60, %v2030_v38  ;;  %v734_v26 = vsel %vm2703_vm5, %v2573_v28, %v730_v19  ;;  %vm492_vm6 = vweird.f32 %v2639_v0 }
 0x14e   :  { %v576_v46 = vmul.f32 %v2697_v15, %v2642_v10  ;;  %v786_v17 = vmul.f32 %v664_v52, %v2021_v4  ;;  %v490_v38 = vmul.f32 %v2639_v0, %v489_v22  ;;  %vm502_vm8 = vweird.f32 %v2645_v51  ;;  %vm2746_vm9 = vmor %vm491_vm2, %vm492_vm6  ;;  %v332_v22 = vpop.xlane.xlu0 %331 }
 0x14f   :  { %1566 = vrsqrt.f32 %v2694_v40  ;;  %v574_v28 = vsel %vm2722_vm7, %v2629_v8, %v570_v3  ;;  %v874_v42 = vpack.c.bf16 %v848_v7, %v847_v1  ;;  %v2733_v36 = vadd.f32 1e-05, %v411_v27  ;;  %vm2768_vm12 = vmor %vm501_vm4, %vm502_vm8 }
 0x150   :  { %v577_v4 = vmul.f32 %v2697_v15, %v576_v46  ;;  %v2735_v2 = vpop.eup %1564  ;;  %v793_v37 = vmul.f32 %v734_v26, %v2034_v41  ;;  %v500_v62 = vmul.f32 %v2645_v51, %v499_v35  ;;  %v2739_v21 = vadd.f32 1e-05, %v387_v44 }
 0x151   :  { %v412_v56 = vmul.f32 %v380_v34, %v1883_v58  ;;  %vm581_vm10 = vweird.f32 %v2642_v10  ;;  %vm582_vm11 = vweird.f32 %v2697_v15  ;;  %v676_v41 = vmul.f32 %v2735_v2, %v2675_v25  ;;  %1412 = vmatmul.msk.bf16.gmra.mxu1 %vm85_vm0, %v874_v42 }
 0x152   :  { %v578_v29 = vmul.f32 0.5, %v577_v4  ;;  %v2756_v57 = vmul.f32 %v574_v28, %v2054_v49  ;;  %v494_v23 = vsel %vm2746_vm9, %v2639_v0, %v490_v38  ;;  %1568 = vrsqrt.f32 %v2733_v36  ;;  %vm2799_vm15 = vmor %vm581_vm10, %vm582_vm11  ;;  %v329_v4 = vpop.xlane.xlu2 %328 }
 0x153   :  { %v2762_v50 = vadd.f32 1e-05, %v412_v56  ;;  %v677_v49 = vmul.f32 %v2735_v2, %v676_v41  ;;  %vm681_vm13 = vweird.f32 %v2675_v25  ;;  %1570 = vrsqrt.f32 %v2739_v21 }
 0x154   :  { %v579_v48 = vsub.f32 1.5, %v578_v29  ;;  %v821_v0 = vmul.f32 %v2267_v16, %v2623_v59  ;;  %v504_v55 = vsel %vm2768_vm12, %v2645_v51, %v500_v62  ;;  %v822_v19 = vmul.f32 %v2267_v16, %v786_v17 }
 0x155   :  { %v2777_v32 = vpop.eup %1566  ;;  %1572 = vrsqrt.f32 %v2762_v50  ;;  %v829_v13 = vmul.f32 %v2267_v16, %v793_v37  ;;  %v769_v39 = vmul.f32 %v494_v23, %v2045_v33  ;;  %v678_v61 = vmul.f32 0.5, %v677_v49 }
 0x156   :  { %v580_v54 = vmul.f32 %v2697_v15, %v579_v48  ;;  %v666_v59 = vmul.f32 %v2777_v32, %v2694_v40  ;;  %vm671_vm14 = vweird.f32 %v2694_v40  ;;  %v857_v18 = vadd.f32 %v2293_v14, %v821_v0 }
 0x157   :  { %v858_v51 = vadd.f32 %v2293_v14, %v822_v19  ;;  %v830_v45 = vmul.f32 %v2267_v16, %v794_v9  ;;  %v865_v43 = vadd.f32 %v2293_v14, %v829_v13  ;;  %v770_v52 = vmul.f32 %v504_v55, %v2058_v24 }
 0x158   :  { %v679_v20 = vsub.f32 1.5, %v678_v61  ;;  %v667_v11 = vmul.f32 %v2777_v32, %v666_v59  ;;  %v388_v3 = vmul.f32 %v308_v6, %v1883_v58  ;;  %v1569_v1 = vpop.eup %1568  ;;  %v584_v47 = vsel %vm2799_vm15, %v2697_v15, %v580_v54 }
 0x159   :  { %vm682_vm1 = vweird.f32 %v2735_v2  ;;  %v879_v24 = vpack.c.bf16 %v858_v51, %v857_v18  ;;  %v866_v10 = vadd.f32 %v2293_v14, %v830_v45  ;;  %v2810_v35 = vpop.eup %1570  ;;  %vm672_vm2 = vweird.f32 %v2777_v32 }
 0x15a   :  { %v680_v7 = vmul.f32 %v2735_v2, %v679_v20  ;;  %v668_v27 = vmul.f32 0.5, %v667_v11  ;;  %v746_v44 = vmul.f32 %v1569_v1, %v2733_v36  ;;  %vm751_vm3 = vweird.f32 %v2733_v36  ;;  %vm2829_vm5 = vmor %vm681_vm13, %vm682_vm1 }
 0x15b   :  { %v1573_v9 = vpop.eup %1572  ;;  %v506_v15 = vmul.f32 %v2810_v35, %v2739_v21  ;;  %1417 = vmatmul.msk.bf16.gmra.mxu2 %vm85_vm0, %v879_v24  ;;  %v883_v26 = vpack.c.bf16 %v866_v10, %v865_v43  ;;  %v2819_v46 = vadd.f32 1e-05, %v388_v3  ;;  %v396_v34 = vmul.f32 %v332_v22, %v1883_v58  ;;  %vm2845_vm8 = vmor %vm671_vm14, %vm672_vm2 }
 0x15c   :  { %v778_v17 = vmul.f32 %v584_v47, %v2069_v31  ;;  %v669_v5 = vsub.f32 1.5, %v668_v27  ;;  %v747_v38 = vmul.f32 %v1569_v1, %v746_v44  ;;  %v756_v28 = vmul.f32 %v1573_v9, %v2762_v50 }
 0x15d   :  { %vm761_vm4 = vweird.f32 %v2762_v50  ;;  %vm752_vm6 = vweird.f32 %v1569_v1  ;;  %v507_v37 = vmul.f32 %v2810_v35, %v506_v15  ;;  %vm512_vm7 = vweird.f32 %v2810_v35  ;;  %1421 = vmatmul.msk.bf16.gmra.mxu3 %vm85_vm0, %v883_v26 }
 0x15e   :  { %1574 = vrsqrt.f32 %v2819_v46  ;;  %v684_v31 = vsel %vm2829_vm5, %v2735_v2, %v680_v7  ;;  %v670_v62 = vmul.f32 %v2777_v32, %v669_v5  ;;  %v748_v25 = vmul.f32 0.5, %v747_v38  ;;  %vm753_vm10 = vmor %vm751_vm3, %vm752_vm6 }
 0x15f   :  { %v757_v56 = vmul.f32 %v1573_v9, %v756_v28  ;;  %v508_v29 = vmul.f32 0.5, %v507_v37  ;;  %v2849_v41 = vadd.f32 1e-05, %v396_v34  ;;  %v395_v23 = vmul.f32 %v329_v4, %v1883_v58 }
 0x160   :  { %v805_v60 = vmul.f32 %v2267_v16, %v769_v39  ;;  %v674_v2 = vsel %vm2845_vm8, %v2777_v32, %v670_v62  ;;  %v749_v48 = vsub.f32 1.5, %v748_v25  ;;  %v806_v0 = vmul.f32 %v2267_v16, %v770_v52  ;;  %v3337_v62 = vld [vmem:[#allocation4_spill] sm:$0xff] }
 0x161   :  { %v758_v49 = vmul.f32 0.5, %v757_v56  ;;  %v788_v40 = vmul.f32 %v684_v31, %v2085_v12  ;;  %v509_v55 = vsub.f32 1.5, %v508_v29  ;;  %vm762_vm9 = vweird.f32 %v1573_v9 }
 0x162   :  { %1576 = vrsqrt.f32 %v2849_v41  ;;  %v750_v19 = vmul.f32 %v1569_v1, %v749_v48  ;;  %v2859_v6 = vadd.f32 1e-05, %v395_v23  ;;  %v841_v58 = vadd.f32 %v2293_v14, %v805_v60  ;;  %vm763_vm11 = vmor %vm761_vm4, %vm762_vm9 }
 0x163   :  { %v759_v13 = vsub.f32 1.5, %v758_v49  ;;  %v787_v54 = vmul.f32 %v674_v2, %v2078_v53  ;;  %v842_v32 = vadd.f32 %v2293_v14, %v806_v0  ;;  %v813_v12 = vmul.f32 %v2267_v16, %v2756_v57  ;;  %v3338_v2 = vld [vmem:[#allocation5_spill] sm:$0xff] }
 0x164   :  { %v1575_v39 = vpop.eup %1574  ;;  %v814_v61 = vmul.f32 %v2267_v16, %v778_v17  ;;  %v754_v59 = vsel %vm753_vm10, %v1569_v1, %v750_v19  ;;  %v510_v18 = vmul.f32 %v2810_v35, %v509_v55  ;;  %1578 = vrsqrt.f32 %v2859_v6 }
 0x165   :  { %v760_v51 = vmul.f32 %v1573_v9, %v759_v13  ;;  %v516_v45 = vmul.f32 %v1575_v39, %v2819_v46  ;;  %v795_v43 = vmul.f32 %v754_v59, %v2093_v30  ;;  %vm511_vm12 = vweird.f32 %v2739_v21  ;;  %v3339_v13 = vld [vmem:[#allocation3_spill] sm:$0xff] }
 0x166   :  { %v871_v57 = vpack.c.bf16 %v842_v32, %v841_v58  ;;  %vm2880_vm13 = vmor %vm511_vm12, %vm512_vm7  ;;  %v849_v20 = vadd.f32 %v2293_v14, %v813_v12  ;;  %v850_v50 = vadd.f32 %v2293_v14, %v814_v61  ;;  %v823_v11 = vmul.f32 %v2267_v16, %v787_v54 }
 0x167   :  { %v764_v53 = vsel %vm763_vm11, %v1573_v9, %v760_v51  ;;  %v517_v36 = vmul.f32 %v1575_v39, %v516_v45  ;;  %v514_v21 = vsel %vm2880_vm13, %v2810_v35, %v510_v18  ;;  %v824_v1 = vmul.f32 %v2267_v16, %v788_v40  ;;  %v3336_v9 = vld [vmem:[#allocation2_spill] sm:$0xff] }
 0x168   :  { %v1577_v52 = vpop.eup %1576  ;;  %v796_v30 = vmul.f32 %v764_v53, %v2103_v63  ;;  %1409 = vmatmul.msk.bf16.gmra.mxu0 %vm85_vm0, %v871_v57  ;;  %v875_v47 = vpack.c.bf16 %v850_v50, %v849_v20  ;;  %v859_v63 = vadd.f32 %v2293_v14, %v823_v11  ;;  %v831_v24 = vmul.f32 %v2267_v16, %v795_v43 }
 0x169   :  { %v518_v3 = vmul.f32 0.5, %v517_v36  ;;  %v596_v22 = vmul.f32 %v1577_v52, %v2849_v41  ;;  %vm522_vm14 = vweird.f32 %v1575_v39  ;;  %v860_v44 = vadd.f32 %v2293_v14, %v824_v1 }
 0x16a   :  { %v832_v10 = vmul.f32 %v2267_v16, %v796_v30  ;;  %v1579_v35 = vpop.eup %1578  ;;  %v771_v15 = vmul.f32 %v514_v21, %v3336_v9  ;;  %1413 = vmatmul.msk.bf16.gmra.mxu1 %vm85_vm0, %v875_v47  ;;  %v867_v26 = vadd.f32 %v2293_v14, %v831_v24  ;;  %vm521_vm15 = vweird.f32 %v2819_v46 }
 0x16b   :  { %v519_v7 = vsub.f32 1.5, %v518_v3  ;;  %v597_v27 = vmul.f32 %v1577_v52, %v596_v22  ;;  %v586_v38 = vmul.f32 %v1579_v35, %v2859_v6  ;;  %vm523_vm1 = vmor %vm521_vm15, %vm522_vm14  ;;  %v880_v28 = vpack.c.bf16 %v860_v44, %v859_v63 }
 0x16c   :  { %v868_v34 = vadd.f32 %v2293_v14, %v832_v10  ;;  %vm602_vm2 = vweird.f32 %v1577_v52  ;;  %v807_v56 = vmul.f32 %v2267_v16, %v771_v15  ;;  %vm601_vm3 = vweird.f32 %v2849_v41 }
 0x16d   :  { %v520_v17 = vmul.f32 %v1575_v39, %v519_v7  ;;  %v598_v5 = vmul.f32 0.5, %v597_v27  ;;  %v587_v31 = vmul.f32 %v1579_v35, %v586_v38  ;;  %1418 = vmatmul.msk.bf16.gmra.mxu2 %vm85_vm0, %v880_v28  ;;  %vm603_vm4 = vmor %vm601_vm3, %vm602_vm2  ;;  %vm592_vm5 = vweird.f32 %v1579_v35 }
 0x16e   :  { %v884_v4 = vpack.c.bf16 %v868_v34, %v867_v26  ;;  %v843_v49 = vadd.f32 %v2293_v14, %v807_v56  ;;  %vm591_vm6 = vweird.f32 %v2859_v6  ;;  %v2924_v6 = vld [vmem:[%s3272_s2] ss:$0 sm:$0xff] }
 0x16f   :  { %v524_v42 = vsel %vm523_vm1, %v1575_v39, %v520_v17  ;;  %v599_v37 = vsub.f32 1.5, %v598_v5  ;;  %v588_v46 = vmul.f32 0.5, %v587_v31  ;;  %vm593_vm7 = vmor %vm591_vm6, %vm592_vm5 }
 0x170   :  { %v772_v25 = vmul.f32 %v524_v42, %v3337_v62  ;;  %1422 = vmatmul.msk.bf16.gmra.mxu3 %vm85_vm0, %v884_v4 }
 0x171   :  { %v600_v8 = vmul.f32 %v1577_v52, %v599_v37  ;;  %v589_v60 = vsub.f32 1.5, %v588_v46 }
 0x172   :  { %v808_v29 = vmul.f32 %v2267_v16, %v772_v25 }
 0x173   :  { %v604_v23 = vsel %vm603_vm4, %v1577_v52, %v600_v8  ;;  %v590_v40 = vmul.f32 %v1579_v35, %v589_v60 }
 0x174   :  { %v780_v48 = vmul.f32 %v604_v23, %v3338_v2  ;;  %v844_v0 = vadd.f32 %v2293_v14, %v808_v29 }
 0x175   :  { %v594_v19 = vsel %vm593_vm7, %v1579_v35, %v590_v40 }
 0x176   :  { %v872_v55 = vpack.c.bf16 %v844_v0, %v843_v49  ;;  %v816_v41 = vmul.f32 %v2267_v16, %v780_v48  ;;  %v779_v58 = vmul.f32 %v594_v19, %v3339_v13 }
 0x178   :  { %1410 = vmatmul.msk.bf16.gmra.mxu0 %vm85_vm0, %v872_v55  ;;  %v815_v39 = vmul.f32 %v2267_v16, %v779_v58  ;;  %v852_v54 = vadd.f32 %v2293_v14, %v816_v41 }
 0x17a   :  { %v851_v32 = vadd.f32 %v2293_v14, %v815_v39 }
 0x17c   :  { %v876_v12 = vpack.c.bf16 %v852_v54, %v851_v32 }
 0x17e   :  { %1414 = vmatmul.msk.bf16.gmra.mxu1 %vm85_vm0, %v876_v12  ;;  %vm1362_vm0 = vcmask 519168  }
 0x1a3   :  { %v1002_v61 = vpop.f32.mrf.mxu2 }
 0x1a4   :  { %v1003_v59 = vadd.f32 %v2924_v6, %v1002_v61 }
 0x1a6   :  { %v1090_v18 = vmul.f32 0.044715, %v1003_v59  ;;  %v1022_v51 = vpop.f32.mrf.mxu3  ;;  %v1058_v62 = vmul.f32 0.5, %v1003_v59 }
 0x1a7   :  { %v1023_v45 = vadd.f32 %v2924_v6, %v1022_v51 }
 0x1a8   :  { %v1122_v16 = vmul.f32 %v1090_v18, %v1003_v59 }
 0x1a9   :  { %v1098_v43 = vmul.f32 0.044715, %v1023_v45  ;;  %v1066_v49 = vmul.f32 0.5, %v1023_v45 }
 0x1aa   :  { %v1154_v53 = vmul.f32 %v1122_v16, %v1003_v59 }
 0x1ab   :  { %v1130_v36 = vmul.f32 %v1098_v43, %v1023_v45  ;;  %v1004_v14 = vpop.f32.mrf.mxu2 }
 0x1ac   :  { %v1186_v57 = vadd.f32 %v1154_v53, %v1003_v59  ;;  %v1005_v33 = vadd.f32 %v2924_v6, %v1004_v14 }
 0x1ad   :  { %v962_v52 = vpop.f32.mrf.mxu0  ;;  %v1162_v30 = vmul.f32 %v1130_v36, %v1023_v45 }
 0x1ae   :  { %v963_v20 = vadd.f32 %v2924_v6, %v962_v52  ;;  %v1218_v50 = vmul.f32 0.7978846, %v1186_v57  ;;  %v982_v11 = vpop.f32.mrf.mxu1  ;;  %v1091_v21 = vmul.f32 0.044715, %v1005_v33  ;;  %v1024_v3 = vpop.f32.mrf.mxu3  ;;  %v1059_v59 = vmul.f32 0.5, %v1005_v33 }
 0x1af   :  { %v1194_v22 = vadd.f32 %v1162_v30, %v1023_v45  ;;  %v983_v47 = vadd.f32 %v2924_v6, %v982_v11  ;;  %v2932_v24 = vadd.f32 %v2924_v6, %v1024_v3 }
 0x1b0   :  { %v1074_v1 = vmul.f32 0.044715, %v963_v20  ;;  %1580 = vtanh.f32 %v1218_v50  ;;  %v1123_v63 = vmul.f32 %v1091_v21, %v1005_v33  ;;  %v1042_v45 = vmul.f32 0.5, %v963_v20 }
 0x1b1   :  { %v1226_v10 = vmul.f32 0.7978846, %v1194_v22  ;;  %v1082_v27 = vmul.f32 0.044715, %v983_v47  ;;  %v1099_v35 = vmul.f32 0.044715, %v2932_v24 }
 0x1b2   :  { %v1106_v7 = vmul.f32 %v1074_v1, %v963_v20  ;;  %v1155_v44 = vmul.f32 %v1123_v63, %v1005_v33  ;;  %v1050_v14 = vmul.f32 0.5, %v983_v47  ;;  %v1067_v1 = vmul.f32 0.5, %v2932_v24 }
 0x1b3   :  { %1582 = vtanh.f32 %v1226_v10  ;;  %v1114_v15 = vmul.f32 %v1082_v27, %v983_v47  ;;  %v1131_v34 = vmul.f32 %v1099_v35, %v2932_v24 }
 0x1b4   :  { %v1138_v9 = vmul.f32 %v1106_v7, %v963_v20  ;;  %v1187_v26 = vadd.f32 %v1155_v44, %v1005_v33 }
 0x1b5   :  { %v964_v17 = vpop.f32.mrf.mxu0  ;;  %v1146_v38 = vmul.f32 %v1114_v15, %v983_v47  ;;  %v1163_v37 = vmul.f32 %v1131_v34, %v2932_v24 }
 0x1b6   :  { %v1170_v5 = vadd.f32 %v1138_v9, %v963_v20  ;;  %v2937_v28 = vadd.f32 %v2924_v6, %v964_v17  ;;  %v1581_v4 = vpop.eup %1580  ;;  %v1219_v42 = vmul.f32 0.7978846, %v1187_v26  ;;  %v984_v31 = vpop.f32.mrf.mxu1 }
 0x1b7   :  { %v1282_v25 = vadd.f32 1.0, %v1581_v4  ;;  %v1178_v8 = vadd.f32 %v1146_v38, %v983_v47  ;;  %v1195_v46 = vadd.f32 %v1163_v37, %v2932_v24  ;;  %v2943_v23 = vadd.f32 %v2924_v6, %v984_v31 }
 0x1b8   :  { %v1202_v56 = vmul.f32 0.7978846, %v1170_v5  ;;  %1584 = vtanh.f32 %v1219_v42  ;;  %v1075_v29 = vmul.f32 0.044715, %v2937_v28  ;;  %v1043_v37 = vmul.f32 0.5, %v2937_v28 }
 0x1b9   :  { %v1583_v60 = vpop.eup %1582  ;;  %v1314_v2 = vmul.f32 %v1282_v25, %v1058_v62  ;;  %v1210_v48 = vmul.f32 0.7978846, %v1178_v8  ;;  %v1227_v40 = vmul.f32 0.7978846, %v1195_v46  ;;  %v1083_v19 = vmul.f32 0.044715, %v2943_v23 }
 0x1ba   :  { %1586 = vtanh.f32 %v1202_v56  ;;  %v1290_v0 = vadd.f32 1.0, %v1583_v60  ;;  %v1107_v55 = vmul.f32 %v1075_v29, %v2937_v28 }
 0x1bb   :  { %v1346_v41 = vpack.c.bf16 %v1314_v2, %v1314_v2  ;;  %1588 = vtanh.f32 %v1210_v48  ;;  %v1115_v54 = vmul.f32 %v1083_v19, %v2943_v23 }
 0x1bc   :  { %v1322_v13 = vmul.f32 %v1290_v0, %v1066_v49  ;;  %1590 = vtanh.f32 %v1227_v40  ;;  %v1139_v58 = vmul.f32 %v1107_v55, %v2937_v28  ;;  %v1051_v0 = vmul.f32 0.5, %v2943_v23 }
 0x1bd   :  { %v1007_v39 = vpop.f32.mrf.mxu2  ;;  %1379 = vst.msk [vmem:[%s3273_s5 + $0x40] sm:$0xf] %vm1362_vm0, %v1346_v41  ;;  %v1147_v43 = vmul.f32 %v1115_v54, %v2943_v23 }
 0x1be   :  { %v2954_v32 = vadd.f32 %v2924_v6, %v1007_v39  ;;  %v1585_v12 = vpop.eup %1584  ;;  %v1354_v61 = vpack.c.bf16 %v1322_v13, %v1322_v13  ;;  %v1171_v18 = vadd.f32 %v1139_v58, %v2937_v28 }
 0x1bf   :  { %v1283_v16 = vadd.f32 1.0, %v1585_v12  ;;  %v1179_v50 = vadd.f32 %v1147_v43, %v2943_v23 }
 0x1c0   :  { %v1587_v51 = vpop.eup %1586  ;;  %v1092_v53 = vmul.f32 0.044715, %v2954_v32  ;;  %1387 = vst.msk [vmem:[%s3273_s5 + $0x60] sm:$0xf] %vm1362_vm0, %v1354_v61  ;;  %v1203_v57 = vmul.f32 0.7978846, %v1171_v18  ;;  %v967_v52 = vpop.f32.mrf.mxu0 }
 0x1c1   :  { %v1266_v36 = vadd.f32 1.0, %v1587_v51  ;;  %v1589_v30 = vpop.eup %1588  ;;  %v1315_v33 = vmul.f32 %v1283_v16, %v1059_v59  ;;  %v2966_v11 = vadd.f32 %v2924_v6, %v967_v52  ;;  %v1211_v47 = vmul.f32 0.7978846, %v1179_v50 }
 0x1c2   :  { %v1124_v20 = vmul.f32 %v1092_v53, %v2954_v32  ;;  %v1591_v21 = vpop.eup %1590  ;;  %v1274_v22 = vadd.f32 1.0, %v1589_v30  ;;  %1592 = vtanh.f32 %v1203_v57 }
 0x1c3   :  { %v1298_v3 = vmul.f32 %v1266_v36, %v1042_v45  ;;  %v1347_v63 = vpack.c.bf16 %v1315_v33, %v1315_v33  ;;  %v1291_v10 = vadd.f32 1.0, %v1591_v21  ;;  %v1076_v35 = vmul.f32 0.044715, %v2966_v11 }
 0x1c4   :  { %v1156_v7 = vmul.f32 %v1124_v20, %v2954_v32  ;;  %v1306_v44 = vmul.f32 %v1274_v22, %v1050_v14  ;;  %1594 = vtanh.f32 %v1211_v47  ;;  %v1060_v45 = vmul.f32 0.5, %v2954_v32 }
 0x1c5   :  { %v1330_v27 = vpack.c.bf16 %v1298_v3, %v1298_v3  ;;  %v1009_v9 = vpop.f32.mrf.mxu2  ;;  %1380 = vst.msk [vmem:[%s3273_s5 + $0x44] sm:$0xf] %vm1362_vm0, %v1347_v63  ;;  %v1323_v15 = vmul.f32 %v1291_v10, %v1067_v1  ;;  %v1108_v17 = vmul.f32 %v1076_v35, %v2966_v11  ;;  %v1044_v3 = vmul.f32 0.5, %v2966_v11 }
 0x1c6   :  { %v1188_v24 = vadd.f32 %v1156_v7, %v2954_v32  ;;  %v2977_v26 = vadd.f32 %v2924_v6, %v1009_v9  ;;  %v1338_v34 = vpack.c.bf16 %v1306_v44, %v1306_v44 }
 0x1c7   :  { %1363 = vst.msk [vmem:[%s3273_s5] sm:$0xf] %vm1362_vm0, %v1330_v27  ;;  %v1355_v5 = vpack.c.bf16 %v1323_v15, %v1323_v15  ;;  %v1140_v31 = vmul.f32 %v1108_v17, %v2966_v11 }
 0x1c8   :  { %v1220_v38 = vmul.f32 0.7978846, %v1188_v24  ;;  %v1093_v4 = vmul.f32 0.044715, %v2977_v26  ;;  %v1593_v42 = vpop.eup %1592  ;;  %1371 = vst.msk [vmem:[%s3273_s5 + $0x20] sm:$0xf] %vm1362_vm0, %v1338_v34  ;;  %v969_v25 = vpop.f32.mrf.mxu0 }
 0x1c9   :  { %v1027_v62 = vpop.f32.mrf.mxu3  ;;  %1388 = vst.msk [vmem:[%s3273_s5 + $0x64] sm:$0xf] %vm1362_vm0, %v1355_v5  ;;  %v1267_v56 = vadd.f32 1.0, %v1593_v42  ;;  %v1172_v29 = vadd.f32 %v1140_v31, %v2966_v11  ;;  %v3001_v28 = vadd.f32 %v2924_v6, %v969_v25  ;;  %v1061_v9 = vmul.f32 0.5, %v2977_v26 }
 0x1ca   :  { %1596 = vtanh.f32 %v1220_v38  ;;  %v1125_v8 = vmul.f32 %v1093_v4, %v2977_v26  ;;  %v2997_v46 = vadd.f32 %v2924_v6, %v1027_v62  ;;  %v1595_v60 = vpop.eup %1594 }
 0x1cb   :  { %v1299_v2 = vmul.f32 %v1267_v56, %v1043_v37  ;;  %v1275_v40 = vadd.f32 1.0, %v1595_v60  ;;  %v1204_v55 = vmul.f32 0.7978846, %v1172_v29  ;;  %v1077_v41 = vmul.f32 0.044715, %v3001_v28 }
 0x1cc   :  { %v1157_v48 = vmul.f32 %v1125_v8, %v2977_v26  ;;  %v1100_v49 = vmul.f32 0.044715, %v2997_v46  ;;  %v1045_v29 = vmul.f32 0.5, %v3001_v28 }
 0x1cd   :  { %v1331_v19 = vpack.c.bf16 %v1299_v2, %v1299_v2  ;;  %v1307_v54 = vmul.f32 %v1275_v40, %v1051_v0  ;;  %1598 = vtanh.f32 %v1204_v55  ;;  %v1109_v12 = vmul.f32 %v1077_v41, %v3001_v28 }
 0x1ce   :  { %v1189_v13 = vadd.f32 %v1157_v48, %v2977_v26  ;;  %v1132_v58 = vmul.f32 %v1100_v49, %v2997_v46  ;;  %v987_v39 = vpop.f32.mrf.mxu1  ;;  %v1068_v26 = vmul.f32 0.5, %v2997_v46 }
 0x1cf   :  { %v3011_v61 = vadd.f32 %v2924_v6, %v987_v39  ;;  %1364 = vst.msk [vmem:[%s3273_s5 + $0x4] sm:$0xf] %vm1362_vm0, %v1331_v19  ;;  %v1339_v51 = vpack.c.bf16 %v1307_v54, %v1307_v54  ;;  %v1141_v43 = vmul.f32 %v1109_v12, %v3001_v28 }
 0x1d0   :  { %v1597_v59 = vpop.eup %1596  ;;  %v1221_v23 = vmul.f32 0.7978846, %v1189_v13  ;;  %v1164_v18 = vmul.f32 %v1132_v58, %v2997_v46 }
 0x1d1   :  { %v1284_v16 = vadd.f32 1.0, %v1597_v59  ;;  %v1029_v53 = vpop.f32.mrf.mxu3  ;;  %v1084_v14 = vmul.f32 0.044715, %v3011_v61  ;;  %1372 = vst.msk [vmem:[%s3273_s5 + $0x24] sm:$0xf] %vm1362_vm0, %v1339_v51  ;;  %v1173_v32 = vadd.f32 %v1141_v43, %v3001_v28  ;;  %v1052_v54 = vmul.f32 0.5, %v3011_v61 }
 0x1d2   :  { %1600 = vtanh.f32 %v1221_v23  ;;  %v1196_v36 = vadd.f32 %v1164_v18, %v2997_v46  ;;  %v3023_v57 = vadd.f32 %v2924_v6, %v1029_v53 }
 0x1d3   :  { %v1316_v52 = vmul.f32 %v1284_v16, %v1060_v45  ;;  %v1116_v33 = vmul.f32 %v1084_v14, %v3011_v61  ;;  %v1599_v20 = vpop.eup %1598  ;;  %v1205_v22 = vmul.f32 0.7978846, %v1173_v32 }
 0x1d4   :  { %v1228_v30 = vmul.f32 0.7978846, %v1196_v36  ;;  %v1101_v50 = vmul.f32 0.044715, %v3023_v57  ;;  %v1268_v1 = vadd.f32 1.0, %v1599_v20  ;;  %v1069_v16 = vmul.f32 0.5, %v3023_v57 }
 0x1d5   :  { %v1348_v21 = vpack.c.bf16 %v1316_v52, %v1316_v52  ;;  %v1148_v63 = vmul.f32 %v1116_v33, %v3011_v61 }
 0x1d6   :  { %1602 = vtanh.f32 %v1228_v30  ;;  %v1133_v10 = vmul.f32 %v1101_v50, %v3023_v57  ;;  %v989_v47 = vpop.f32.mrf.mxu1  ;;  %v1300_v44 = vmul.f32 %v1268_v1, %v1044_v3 }
 0x1d7   :  { %1381 = vst.msk [vmem:[%s3273_s5 + $0x48] sm:$0xf] %vm1362_vm0, %v1348_v21  ;;  %1604 = vtanh.f32 %v1205_v22  ;;  %v990_v7 = vadd.f32 %v2924_v6, %v989_v47  ;;  %v1180_v11 = vadd.f32 %v1148_v63, %v3011_v61 }
 0x1d8   :  { %v1601_v27 = vpop.eup %1600  ;;  %v1165_v35 = vmul.f32 %v1133_v10, %v3023_v57  ;;  %v1332_v34 = vpack.c.bf16 %v1300_v44, %v1300_v44 }
 0x1d9   :  { %v1285_v15 = vadd.f32 1.0, %v1601_v27  ;;  %v1085_v24 = vmul.f32 0.044715, %v990_v7  ;;  %v1212_v17 = vmul.f32 0.7978846, %v1180_v11  ;;  %v1053_v21 = vmul.f32 0.5, %v990_v7 }
 0x1da   :  { %v1197_v5 = vadd.f32 %v1165_v35, %v3023_v57  ;;  %1365 = vst.msk [vmem:[%s3273_s5 + $0x8] sm:$0xf] %vm1362_vm0, %v1332_v34 }
 0x1db   :  { %v1317_v38 = vmul.f32 %v1285_v15, %v1061_v9  ;;  %v1117_v4 = vmul.f32 %v1085_v24, %v990_v7  ;;  %1606 = vtanh.f32 %v1212_v17 }
 0x1dc   :  { %v1603_v42 = vpop.eup %1602  ;;  %v1229_v37 = vmul.f32 0.7978846, %v1197_v5 }
 0x1dd   :  { %v1605_v31 = vpop.eup %1604  ;;  %v1349_v62 = vpack.c.bf16 %v1317_v38, %v1317_v38  ;;  %v1292_v25 = vadd.f32 1.0, %v1603_v42  ;;  %v1149_v56 = vmul.f32 %v1117_v4, %v990_v7 }
 0x1de   :  { %v1012_v8 = vpop.f32.mrf.mxu2  ;;  %v1269_v60 = vadd.f32 1.0, %v1605_v31  ;;  %1608 = vtanh.f32 %v1229_v37 }
 0x1df   :  { %v3051_v2 = vadd.f32 %v2924_v6, %v1012_v8  ;;  %1382 = vst.msk [vmem:[%s3273_s5 + $0x4c] sm:$0xf] %vm1362_vm0, %v1349_v62  ;;  %v1324_v48 = vmul.f32 %v1292_v25, %v1068_v26  ;;  %v1181_v49 = vadd.f32 %v1149_v56, %v990_v7 }
 0x1e0   :  { %v1032_v0 = vpop.f32.mrf.mxu3  ;;  %v1301_v40 = vmul.f32 %v1269_v60, %v1045_v29 }
 0x1e1   :  { %v1094_v46 = vmul.f32 0.044715, %v3051_v2  ;;  %v3059_v55 = vadd.f32 %v2924_v6, %v1032_v0  ;;  %v1356_v28 = vpack.c.bf16 %v1324_v48, %v1324_v48  ;;  %v1213_v41 = vmul.f32 0.7978846, %v1181_v49  ;;  %v1607_v19 = vpop.eup %1606 }
 0x1e2   :  { %v1333_v13 = vpack.c.bf16 %v1301_v40, %v1301_v40  ;;  %v1276_v12 = vadd.f32 1.0, %v1607_v19  ;;  %v1062_v29 = vmul.f32 0.5, %v3051_v2 }
 0x1e3   :  { %v1126_v58 = vmul.f32 %v1094_v46, %v3051_v2  ;;  %v1102_v39 = vmul.f32 0.044715, %v3059_v55  ;;  %1389 = vst.msk [vmem:[%s3273_s5 + $0x68] sm:$0xf] %vm1362_vm0, %v1356_v28  ;;  %1610 = vtanh.f32 %v1213_v41  ;;  %v1070_v60 = vmul.f32 0.5, %v3059_v55 }
 0x1e4   :  { %v1609_v59 = vpop.eup %1608  ;;  %1366 = vst.msk [vmem:[%s3273_s5 + $0xc] sm:$0xf] %vm1362_vm0, %v1333_v13  ;;  %v1308_v45 = vmul.f32 %v1276_v12, %v1052_v54 }
 0x1e5   :  { %v1158_v23 = vmul.f32 %v1126_v58, %v3051_v2  ;;  %v1134_v18 = vmul.f32 %v1102_v39, %v3059_v55  ;;  %v972_v51 = vpop.f32.mrf.mxu0  ;;  %v1293_v43 = vadd.f32 1.0, %v1609_v59 }
 0x1e6   :  { %v3076_v53 = vadd.f32 %v2924_v6, %v972_v51  ;;  %v1014_v61 = vpop.f32.mrf.mxu2  ;;  %v1340_v32 = vpack.c.bf16 %v1308_v45, %v1308_v45 }
 0x1e7   :  { %v1190_v36 = vadd.f32 %v1158_v23, %v3051_v2  ;;  %v1166_v14 = vmul.f32 %v1134_v18, %v3059_v55  ;;  %v3081_v52 = vadd.f32 %v2924_v6, %v1014_v61  ;;  %v1325_v30 = vmul.f32 %v1293_v43, %v1069_v16  ;;  %v992_v20 = vpop.f32.mrf.mxu1 }
 0x1e8   :  { %v1078_v33 = vmul.f32 0.044715, %v3076_v53  ;;  %v1034_v50 = vpop.f32.mrf.mxu3  ;;  %1373 = vst.msk [vmem:[%s3273_s5 + $0x28] sm:$0xf] %vm1362_vm0, %v1340_v32  ;;  %v3095_v27 = vadd.f32 %v2924_v6, %v992_v20  ;;  %v1046_v59 = vmul.f32 0.5, %v3076_v53 }
 0x1e9   :  { %v1222_v57 = vmul.f32 0.7978846, %v1190_v36  ;;  %v1198_v3 = vadd.f32 %v1166_v14, %v3059_v55  ;;  %v1095_v22 = vmul.f32 0.044715, %v3081_v52  ;;  %v1611_v1 = vpop.eup %1610  ;;  %v1357_v63 = vpack.c.bf16 %v1325_v30, %v1325_v30 }
 0x1ea   :  { %v1110_v10 = vmul.f32 %v1078_v33, %v3076_v53  ;;  %v3092_v47 = vadd.f32 %v2924_v6, %v1034_v50  ;;  %v1277_v7 = vadd.f32 1.0, %v1611_v1  ;;  %v1086_v17 = vmul.f32 0.044715, %v3095_v27 }
 0x1eb   :  { %1612 = vtanh.f32 %v1222_v57  ;;  %v1230_v44 = vmul.f32 0.7978846, %v1198_v3  ;;  %v1127_v11 = vmul.f32 %v1095_v22, %v3081_v52  ;;  %1390 = vst.msk [vmem:[%s3273_s5 + $0x6c] sm:$0xf] %vm1362_vm0, %v1357_v63  ;;  %v1063_v36 = vmul.f32 0.5, %v3081_v52 }
 0x1ec   :  { %v1142_v35 = vmul.f32 %v1110_v10, %v3076_v53  ;;  %v1103_v9 = vmul.f32 0.044715, %v3092_v47  ;;  %v1309_v15 = vmul.f32 %v1277_v7, %v1053_v21  ;;  %v1118_v31 = vmul.f32 %v1086_v17, %v3095_v27 }
 0x1ed   :  { %1614 = vtanh.f32 %v1230_v44  ;;  %v1159_v24 = vmul.f32 %v1127_v11, %v3081_v52  ;;  %v974_v34 = vpop.f32.mrf.mxu0  ;;  %v1071_v57 = vmul.f32 0.5, %v3092_v47  ;;  %v1054_v63 = vmul.f32 0.5, %v3095_v27 }
 0x1ee   :  { %v1174_v5 = vadd.f32 %v1142_v35, %v3076_v53  ;;  %v1135_v38 = vmul.f32 %v1103_v9, %v3092_v47  ;;  %v3109_v4 = vadd.f32 %v2924_v6, %v974_v34  ;;  %v1341_v42 = vpack.c.bf16 %v1309_v15, %v1309_v15 }
 0x1ef   :  { %v1191_v37 = vadd.f32 %v1159_v24, %v3081_v52  ;;  %v994_v56 = vpop.f32.mrf.mxu1  ;;  %v1150_v49 = vmul.f32 %v1118_v31, %v3095_v27 }
 0x1f0   :  { %v1206_v62 = vmul.f32 0.7978846, %v1174_v5  ;;  %v1167_v26 = vmul.f32 %v1135_v38, %v3092_v47  ;;  %v1079_v25 = vmul.f32 0.044715, %v3109_v4  ;;  %1374 = vst.msk [vmem:[%s3273_s5 + $0x2c] sm:$0xf] %vm1362_vm0, %v1341_v42  ;;  %v1017_v28 = vpop.f32.mrf.mxu2  ;;  %v3129_v2 = vadd.f32 %v2924_v6, %v994_v56 }
 0x1f1   :  { %v1613_v8 = vpop.eup %1612  ;;  %v1223_v48 = vmul.f32 0.7978846, %v1191_v37  ;;  %v1182_v13 = vadd.f32 %v1150_v49, %v3095_v27  ;;  %v3126_v58 = vadd.f32 %v2924_v6, %v1017_v28  ;;  %v1047_v34 = vmul.f32 0.5, %v3109_v4 }
 0x1f2   :  { %v1286_v0 = vadd.f32 1.0, %v1613_v8  ;;  %1616 = vtanh.f32 %v1206_v62  ;;  %v1199_v40 = vadd.f32 %v1167_v26, %v3092_v47  ;;  %v1111_v46 = vmul.f32 %v1079_v25, %v3109_v4 }
 0x1f3   :  { %v1037_v41 = vpop.f32.mrf.mxu3  ;;  %v1615_v19 = vpop.eup %1614  ;;  %1618 = vtanh.f32 %v1223_v48  ;;  %v1214_v23 = vmul.f32 0.7978846, %v1182_v13  ;;  %v1096_v18 = vmul.f32 0.044715, %v3126_v58  ;;  %v1087_v32 = vmul.f32 0.044715, %v3129_v2 }
 0x1f4   :  { %v1318_v55 = vmul.f32 %v1286_v0, %v1062_v29  ;;  %v1294_v39 = vadd.f32 1.0, %v1615_v19  ;;  %v1231_v54 = vmul.f32 0.7978846, %v1199_v40  ;;  %v1143_v12 = vmul.f32 %v1111_v46, %v3109_v4 }
 0x1f5   :  { %v3135_v51 = vadd.f32 %v2924_v6, %v1037_v41  ;;  %v977_v45 = vpop.f32.mrf.mxu0  ;;  %v1128_v14 = vmul.f32 %v1096_v18, %v3126_v58  ;;  %v1119_v22 = vmul.f32 %v1087_v32, %v3129_v2 }
 0x1f6   :  { %v1350_v16 = vpack.c.bf16 %v1318_v55, %v1318_v55  ;;  %v1326_v43 = vmul.f32 %v1294_v39, %v1070_v60  ;;  %1620 = vtanh.f32 %v1231_v54  ;;  %v1175_v61 = vadd.f32 %v1143_v12, %v3109_v4 }
 0x1f7   :  { %1622 = vtanh.f32 %v1214_v23  ;;  %v1104_v50 = vmul.f32 0.044715, %v3135_v51  ;;  %v3147_v20 = vadd.f32 %v2924_v6, %v977_v45  ;;  %v1160_v3 = vmul.f32 %v1128_v14, %v3126_v58 }
 0x1f8   :  { %v1617_v53 = vpop.eup %1616  ;;  %1383 = vst.msk [vmem:[%s3273_s5 + $0x50] sm:$0xf] %vm1362_vm0, %v1350_v16  ;;  %v1358_v30 = vpack.c.bf16 %v1326_v43, %v1326_v43  ;;  %v1207_v33 = vmul.f32 0.7978846, %v1175_v61  ;;  %v1019_v10 = vpop.f32.mrf.mxu2  ;;  %v1151_v47 = vmul.f32 %v1119_v22, %v3129_v2  ;;  %v1064_v14 = vmul.f32 0.5, %v3126_v58 }
 0x1f9   :  { %v1619_v21 = vpop.eup %1618  ;;  %v1270_v52 = vadd.f32 1.0, %v1617_v53  ;;  %v1136_v7 = vmul.f32 %v1104_v50, %v3135_v51  ;;  %v1192_v11 = vadd.f32 %v1160_v3, %v3126_v58  ;;  %v3161_v35 = vadd.f32 %v2924_v6, %v1019_v10 }
 0x1fa   :  { %1391 = vst.msk [vmem:[%s3273_s5 + $0x70] sm:$0xf] %vm1362_vm0, %v1358_v30  ;;  %v1287_v1 = vadd.f32 1.0, %v1619_v21  ;;  %1624 = vtanh.f32 %v1207_v33  ;;  %v1080_v27 = vmul.f32 0.044715, %v3147_v20  ;;  %v1183_v62 = vadd.f32 %v1151_v47, %v3129_v2 }
 0x1fb   :  { %v1302_v44 = vmul.f32 %v1270_v52, %v1046_v59  ;;  %v1039_v9 = vpop.f32.mrf.mxu3  ;;  %v1168_v17 = vmul.f32 %v1136_v7, %v3135_v51  ;;  %v997_v5 = vpop.f32.mrf.mxu1  ;;  %v1224_v31 = vmul.f32 0.7978846, %v1192_v11  ;;  %v1097_v56 = vmul.f32 0.044715, %v3161_v35 }
 0x1fc   :  { %v1621_v15 = vpop.eup %1620  ;;  %v1319_v24 = vmul.f32 %v1287_v1, %v1063_v36  ;;  %v3169_v8 = vadd.f32 %v2924_v6, %v1039_v9  ;;  %v1215_v29 = vmul.f32 0.7978846, %v1183_v62  ;;  %v1112_v40 = vmul.f32 %v1080_v27, %v3147_v20 }
 0x1fd   :  { %v1623_v38 = vpop.eup %1622  ;;  %v1334_v42 = vpack.c.bf16 %v1302_v44, %v1302_v44  ;;  %v1295_v37 = vadd.f32 1.0, %v1621_v15  ;;  %1626 = vtanh.f32 %v1224_v31  ;;  %v1200_v60 = vadd.f32 %v1168_v17, %v3135_v51  ;;  %v979_v13 = vpop.f32.mrf.mxu0 }
 0x1fe   :  { %v1351_v26 = vpack.c.bf16 %v1319_v24, %v1319_v24  ;;  %v1278_v25 = vadd.f32 1.0, %v1623_v38  ;;  %v1129_v0 = vmul.f32 %v1097_v56, %v3161_v35  ;;  %v3183_v46 = vadd.f32 %v2924_v6, %v997_v5 }
 0x1ff   :  { %1367 = vst.msk [vmem:[%s3273_s5 + $0x10] sm:$0xf] %vm1362_vm0, %v1334_v42  ;;  %v1327_v4 = vmul.f32 %v1295_v37, %v1071_v57  ;;  %1628 = vtanh.f32 %v1215_v29  ;;  %v1232_v19 = vmul.f32 0.7978846, %v1200_v60  ;;  %v1144_v54 = vmul.f32 %v1112_v40, %v3147_v20 }
 0x200   :  { %v1625_v48 = vpop.eup %1624  ;;  %1384 = vst.msk [vmem:[%s3273_s5 + $0x54] sm:$0xf] %vm1362_vm0, %v1351_v26  ;;  %v1310_v49 = vmul.f32 %v1278_v25, %v1054_v63  ;;  %v1161_v39 = vmul.f32 %v1129_v0, %v3161_v35  ;;  %v1088_v59 = vmul.f32 0.044715, %v3183_v46  ;;  %v1105_v45 = vmul.f32 0.044715, %v3169_v8 }
 0x201   :  { %v1359_v28 = vpack.c.bf16 %v1327_v4, %v1327_v4  ;;  %v1271_v41 = vadd.f32 1.0, %v1625_v48  ;;  %1630 = vtanh.f32 %v1232_v19  ;;  %v1176_v18 = vadd.f32 %v1144_v54, %v3147_v20 }
 0x202   :  { %v1342_v55 = vpack.c.bf16 %v1310_v49, %v1310_v49  ;;  %v1193_v23 = vadd.f32 %v1161_v39, %v3161_v35  ;;  %v3200_v16 = vadd.f32 %v2924_v6, %v979_v13  ;;  %v1120_v32 = vmul.f32 %v1088_v59, %v3183_v46 }
 0x203   :  { %1392 = vst.msk [vmem:[%s3273_s5 + $0x74] sm:$0xf] %vm1362_vm0, %v1359_v28  ;;  %v1303_v12 = vmul.f32 %v1271_v41, %v1047_v34  ;;  %v999_v43 = vpop.f32.mrf.mxu1  ;;  %v1627_v61 = vpop.eup %1626  ;;  %v1208_v50 = vmul.f32 0.7978846, %v1176_v18  ;;  %v1137_v21 = vmul.f32 %v1105_v45, %v3169_v8  ;;  %v1055_v57 = vmul.f32 0.5, %v3129_v2 }
 0x204   :  { %1375 = vst.msk [vmem:[%s3273_s5 + $0x30] sm:$0xf] %vm1362_vm0, %v1342_v55  ;;  %v3205_v53 = vadd.f32 %v2924_v6, %v999_v43  ;;  %v1288_v30 = vadd.f32 1.0, %v1627_v61  ;;  %v1225_v33 = vmul.f32 0.7978846, %v1193_v23  ;;  %v1072_v58 = vmul.f32 0.5, %v3135_v51 }
 0x205   :  { %v1335_v36 = vpack.c.bf16 %v1303_v12, %v1303_v12  ;;  %v1629_v52 = vpop.eup %1628  ;;  %v1152_v3 = vmul.f32 %v1120_v32, %v3183_v46  ;;  %v1081_v6 = vmul.f32 0.044715, %v3200_v16  ;;  %v1169_v63 = vmul.f32 %v1137_v21, %v3169_v8 }
 0x206   :  { %v1320_v22 = vmul.f32 %v1288_v30, %v1064_v14  ;;  %v1279_v1 = vadd.f32 1.0, %v1629_v52  ;;  %1632 = vtanh.f32 %v1225_v33  ;;  %v1089_v11 = vmul.f32 0.044715, %v3205_v53 }
 0x207   :  { %1368 = vst.msk [vmem:[%s3273_s5 + $0x14] sm:$0xf] %vm1362_vm0, %v1335_v36  ;;  %v1631_v10 = vpop.eup %1630  ;;  %1634 = vtanh.f32 %v1208_v50  ;;  %v1184_v7 = vadd.f32 %v1152_v3, %v3183_v46  ;;  %v1113_v44 = vmul.f32 %v1081_v6, %v3200_v16  ;;  %v1201_v9 = vadd.f32 %v1169_v63, %v3169_v8 }
 0x208   :  { %v1352_v2 = vpack.c.bf16 %v1320_v22, %v1320_v22  ;;  %v1311_v47 = vmul.f32 %v1279_v1, %v1055_v57  ;;  %v1296_v51 = vadd.f32 1.0, %v1631_v10  ;;  %v1121_v34 = vmul.f32 %v1089_v11, %v3205_v53 }
 0x209   :  { %v1216_v15 = vmul.f32 0.7978846, %v1184_v7  ;;  %v1145_v24 = vmul.f32 %v1113_v44, %v3200_v16  ;;  %v1233_v5 = vmul.f32 0.7978846, %v1201_v9  ;;  %v1065_v26 = vmul.f32 0.5, %v3161_v35 }
 0x20a   :  { %1385 = vst.msk [vmem:[%s3273_s5 + $0x58] sm:$0xf] %vm1362_vm0, %v1352_v2  ;;  %v1343_v17 = vpack.c.bf16 %v1311_v47, %v1311_v47  ;;  %v1328_v27 = vmul.f32 %v1296_v51, %v1072_v58  ;;  %v1153_v42 = vmul.f32 %v1121_v34, %v3205_v53  ;;  %v1048_v29 = vmul.f32 0.5, %v3147_v20 }
 0x20b   :  { %1636 = vtanh.f32 %v1216_v15  ;;  %v1177_v38 = vadd.f32 %v1145_v24, %v3200_v16  ;;  %v1056_v19 = vmul.f32 0.5, %v3183_v46  ;;  %v1073_v20 = vmul.f32 0.5, %v3169_v8 }
 0x20c   :  { %v1633_v37 = vpop.eup %1632  ;;  %1376 = vst.msk [vmem:[%s3273_s5 + $0x34] sm:$0xf] %vm1362_vm0, %v1343_v17  ;;  %v1360_v31 = vpack.c.bf16 %v1328_v27, %v1328_v27  ;;  %1638 = vtanh.f32 %v1233_v5  ;;  %v1185_v4 = vadd.f32 %v1153_v42, %v3205_v53  ;;  %v1049_v46 = vmul.f32 0.5, %v3200_v16 }
 0x20d   :  { %v1635_v62 = vpop.eup %1634  ;;  %v1289_v25 = vadd.f32 1.0, %v1633_v37  ;;  %v1209_v56 = vmul.f32 0.7978846, %v1177_v38  ;;  %v1057_v43 = vmul.f32 0.5, %v3205_v53 }
 0x20e   :  { %1393 = vst.msk [vmem:[%s3273_s5 + $0x78] sm:$0xf] %vm1362_vm0, %v1360_v31  ;;  %v1272_v60 = vadd.f32 1.0, %v1635_v62  ;;  %v1217_v49 = vmul.f32 0.7978846, %v1185_v4 }
 0x20f   :  { %v1321_v48 = vmul.f32 %v1289_v25, %v1065_v26  ;;  %1640 = vtanh.f32 %v1209_v56 }
 0x210   :  { %v1304_v0 = vmul.f32 %v1272_v60, %v1048_v29  ;;  %1642 = vtanh.f32 %v1217_v49 }
 0x211   :  { %v1637_v40 = vpop.eup %1636  ;;  %v1353_v28 = vpack.c.bf16 %v1321_v48, %v1321_v48 }
 0x212   :  { %v1639_v35 = vpop.eup %1638  ;;  %v1336_v41 = vpack.c.bf16 %v1304_v0, %v1304_v0  ;;  %v1280_v13 = vadd.f32 1.0, %v1637_v40 }
 0x213   :  { %1386 = vst.msk [vmem:[%s3273_s5 + $0x5c] sm:$0xf] %vm1362_vm0, %v1353_v28  ;;  %v1297_v55 = vadd.f32 1.0, %v1639_v35 }
 0x214   :  { %1369 = vst.msk [vmem:[%s3273_s5 + $0x18] sm:$0xf] %vm1362_vm0, %v1336_v41  ;;  %v1312_v39 = vmul.f32 %v1280_v13, %v1056_v19 }
 0x215   :  { %v1641_v54 = vpop.eup %1640  ;;  %v1329_v12 = vmul.f32 %v1297_v55, %v1073_v20 }
 0x216   :  { %v1344_v59 = vpack.c.bf16 %v1312_v39, %v1312_v39  ;;  %v1273_v23 = vadd.f32 1.0, %v1641_v54  ;;  %v1643_v18 = vpop.eup %1642 }
 0x217   :  { %v1361_v45 = vpack.c.bf16 %v1329_v12, %v1329_v12  ;;  %v1281_v61 = vadd.f32 1.0, %v1643_v18 }
 0x218   :  { %1377 = vst.msk [vmem:[%s3273_s5 + $0x38] sm:$0xf] %vm1362_vm0, %v1344_v59  ;;  %v1305_v8 = vmul.f32 %v1273_v23, %v1049_v46 }
 0x219   :  { %1394 = vst.msk [vmem:[%s3273_s5 + $0x7c] sm:$0xf] %vm1362_vm0, %v1361_v45  ;;  %v1313_v14 = vmul.f32 %v1281_v61, %v1057_v43 }
 0x21a   :  { %v1337_v36 = vpack.c.bf16 %v1305_v8, %v1305_v8 }
 0x21b   :  { %v1345_v16 = vpack.c.bf16 %v1313_v14, %v1313_v14 }
 0x21c   :  { %1370 = vst.msk [vmem:[%s3273_s5 + $0x1c] sm:$0xf] %vm1362_vm0, %v1337_v36 }
 0x21d   :  { %1378 = vst.msk [vmem:[%s3273_s5 + $0x3c] sm:$0xf] %vm1362_vm0, %v1345_v16 }

// kernel: vision_transformer_forward.15
= control target key start
LH: loop header
LB: loop body
LE: loop exit
PB: predicated region body
PF: predicated region fallthrough
CT: control target
= control target key end

     0   :  { %s3653_s9 = smov 0   ;;  %s3655_s10 = smov 0   ;;  %s4797_s0 = inlined_call_operand.vmem [shape: bf16[2,1,12,128,8], index: 0, kind: input, shape index: {}]   ;;  %s4798_s1 = inlined_call_operand.vmem [shape: f32[2,1,128], index: 1, kind: input, shape index: {}]   ;;  %s4799_s2 = inlined_call_operand.vmem [shape: bf16[2,1,128,32], index: 2, kind: output, shape index: {}]  }
   0x1   :  { %s3657_s11 = smov 0  }
   0x2 LB: > { %s24_s12 = sadd.s32 1, %s3629_s10  ;;  %p2614_p0 = scmp.ge.s32.totalorder %s3633_s11, 1  ;;  %s3633_s11 = sphi %s3657_s11, %s12_s11   ;;  %s3629_s10 = sphi %s3655_s10, %s4818_s10   ;;  %s3625_s9 = sphi %s3653_s9, %s4817_s9  }
   0x3   : > { %p26_p1 = scmp.ge.s32.totalorder %s24_s12, 2  ;;  %p140_p2 = scmp.lt.s32.totalorder %s3633_s11, 3 }
   0x5   : > { %s4820_s12 = smov (%p26_p1, %s24_s12), 0  ;;  %p141_p3 = pnand %p2614_p0, %p140_p2 }
   0x7   : > { %144 = sbr.rel (%p141_p3) target bundleno = 1592 (0x638), region = 28 }
   0xc   : > { %p173_p4 = scmp.lt.s32.totalorder %s3625_s9, 1  ;;  %vm328_vm0 = vcmask 64512   ;;  %s3635_s20 = smov 8   ;;  %vm2402_vm1 = vcmask 130048   ;;  %vm2419_vm2 = vcmask 195584   ;;  %vm2492_vm3 = vcmask 257024  }
   0xd   : > { %s3636_s21 = smov 24   ;;  %s3637_s22 = smov 16  }
   0xe   : > { %s4822_s9 = smov (!%p173_p4, %s3625_s9), 1 }
   0xf   : > { %s3325_s13 = smul.u32 768, %s4822_s9  ;;  %s3685_s19 = scalar_lea.vmem %s4798_s1, %s4822_s9 }
  0x10   : > { %v3716_v23 = vld [vmem:[%s3685_s19] ss:$0 sm:$0xff]  ;;  %s3212_s23 = sshll.u32 %s4822_s9, 6 }
  0x11   : > { %s3677_s16 = scalar_lea.vmem %s4797_s0, %s3325_s13  ;;  %s4710_s26 = scalar_lea.vmem %s4799_s2, %s3212_s23 }
  0x12   : > { %v3228_v0 = vld [vmem:[%s3677_s16 + $0x138] sm:$0xff]  ;;  %v3227_v2 = vld [vmem:[%s3677_s16 + $0x130] sm:$0xff]  ;;  %v3226_v4 = vld [vmem:[%s3677_s16 + $0x128] sm:$0xff] }
  0x13   : > { %v375_v1 = vsel %vm328_vm0, %v3228_v0, 0  ;;  %v372_v3 = vsel %vm328_vm0, %v3227_v2, 0  ;;  %v369_v5 = vsel %vm328_vm0, %v3226_v4, 0  ;;  %v3225_v6 = vld [vmem:[%s3677_s16 + $0x120] sm:$0xff]  ;;  %v3224_v8 = vld [vmem:[%s3677_s16 + $0x118] sm:$0xff]  ;;  %v3223_v10 = vld [vmem:[%s3677_s16 + $0x110] sm:$0xff] }
  0x14   : > { %377 = vmatpush.bf16.xpose.msra.mxu0 %v375_v1  ;;  %v366_v7 = vsel %vm328_vm0, %v3225_v6, 0  ;;  %v363_v9 = vsel %vm328_vm0, %v3224_v8, 0  ;;  %v360_v11 = vsel %vm328_vm0, %v3223_v10, 0  ;;  %v3222_v12 = vld [vmem:[%s3677_s16 + $0x108] sm:$0xff]  ;;  %v3221_v14 = vld [vmem:[%s3677_s16 + $0x100] sm:$0xff]  ;;  %v3215_v18 = vld [vmem:[%s3677_s16 + $0x10] sm:$0xff] }
  0x15   : > { %v357_v13 = vsel %vm328_vm0, %v3222_v12, 0  ;;  %v354_v15 = vsel %vm328_vm0, %v3221_v14, 0  ;;  %v3213_v16 = vld [vmem:[%s3677_s16] sm:$0xff]  ;;  %v3214_v17 = vld [vmem:[%s3677_s16 + $0x8] sm:$0xff]  ;;  %v3216_v19 = vld [vmem:[%s3677_s16 + $0x18] sm:$0xff] }
  0x16   : > { %v3217_v20 = vld [vmem:[%s3677_s16 + $0x20] sm:$0xff]  ;;  %v3218_v21 = vld [vmem:[%s3677_s16 + $0x28] sm:$0xff]  ;;  %v3219_v22 = vld [vmem:[%s3677_s16 + $0x30] sm:$0xff] }
  0x17   : > { %v3220_v29 = vld [vmem:[%s3677_s16 + $0x38] sm:$0xff]  ;;  %v3251_v37 = vld [vmem:[%s3677_s16 + $0x170] sm:$0xff]  ;;  %v3250_v41 = vld [vmem:[%s3677_s16 + $0x168] sm:$0xff] }
  0x18   : > { %v3252_v35 = vld [vmem:[%s3677_s16 + $0x178] sm:$0xff]  ;;  %v865_v40 = vsel %vm328_vm0, %v3251_v37, 0  ;;  %v862_v44 = vsel %vm328_vm0, %v3250_v41, 0  ;;  %v3249_v45 = vld [vmem:[%s3677_s16 + $0x160] sm:$0xff]  ;;  %v3247_v53 = vld [vmem:[%s3677_s16 + $0x150] sm:$0xff] }
  0x19   : > { %v868_v36 = vsel %vm328_vm0, %v3252_v35, 0  ;;  %v859_v48 = vsel %vm328_vm0, %v3249_v45, 0  ;;  %v3248_v49 = vld [vmem:[%s3677_s16 + $0x158] sm:$0xff]  ;;  %v853_v54 = vsel %vm328_vm0, %v3247_v53, 0  ;;  %v3246_v55 = vld [vmem:[%s3677_s16 + $0x148] sm:$0xff]  ;;  %v3245_v57 = vld [vmem:[%s3677_s16 + $0x140] sm:$0xff] }
  0x1a   : > { %870 = vmatpush.bf16.xpose.msra.mxu2 %v868_v36  ;;  %v856_v52 = vsel %vm328_vm0, %v3248_v49, 0  ;;  %v850_v56 = vsel %vm328_vm0, %v3246_v55, 0  ;;  %v847_v58 = vsel %vm328_vm0, %v3245_v57, 0  ;;  %v3237_v59 = vld [vmem:[%s3677_s16 + $0x40] sm:$0xff]  ;;  %v3238_v0 = vld [vmem:[%s3677_s16 + $0x48] sm:$0xff]  ;;  %v3231_v57 = vld [vmem:[%s3677_s16 + $0x210] sm:$0xff] }
  0x1b   : > { %v3241_v36 = vld [vmem:[%s3677_s16 + $0x60] sm:$0xff] }
  0x1c   : > { %378 = vmatpush.bf16.xpose.msra.mxu0 %v372_v3  ;;  %v3233_v55 = vld [vmem:[%s3677_s16 + $0x220] sm:$0xff] }
  0x22   : > { %871 = vmatpush.bf16.xpose.msra.mxu2 %v865_v40 }
  0x24   : > { %379 = vmatpush.bf16.xpose.msra.mxu0 %v369_v5 }
  0x2a   : > { %872 = vmatpush.bf16.xpose.msra.mxu2 %v862_v44 }
  0x2c   : > { %380 = vmatpush.bf16.xpose.msra.mxu0 %v366_v7 }
  0x32   : > { %873 = vmatpush.bf16.xpose.msra.mxu2 %v859_v48 }
  0x34   : > { %381 = vmatpush.bf16.xpose.msra.mxu0 %v363_v9 }
  0x3a   : > { %874 = vmatpush.bf16.xpose.msra.mxu2 %v856_v52 }
  0x3c   : > { %382 = vmatpush.bf16.xpose.msra.mxu0 %v360_v11  ;;  %v3239_v11 = vld [vmem:[%s3677_s16 + $0x50] sm:$0xff] }
  0x42   : > { %875 = vmatpush.bf16.xpose.msra.mxu2 %v853_v54 }
  0x44   : > { %383 = vmatpush.bf16.xpose.msra.mxu0 %v357_v13 }
  0x4a   : > { %876 = vmatpush.bf16.xpose.msra.mxu2 %v850_v56  ;;  %v3232_v56 = vld [vmem:[%s3677_s16 + $0x218] sm:$0xff] }
  0x4c   : > { %384 = vmatpush.bf16.xpose.msra.mxu0 %v354_v15 }
  0x52   : > { %877 = vmatpush.bf16.xpose.msra.mxu2 %v847_v58  ;;  %v3229_v58 = vld [vmem:[%s3677_s16 + $0x200] sm:$0xff] }
  0x53   : > { %2714 = vmatmul.msk.bf16.vlgmr.msra.gmra.mxu0 %vm328_vm0, %v3213_v16 }
  0x59   : > { %2866 = vmatmul.msk.bf16.vlgmr.msra.gmra.mxu2 %vm328_vm0, %v3237_v59 }
  0x63   : > { %2715 = vmatmul.msk.bf16.gmra.mxu0 %vm328_vm0, %v3214_v17 }
  0x69   : > { %2867 = vmatmul.msk.bf16.gmra.mxu2 %vm328_vm0, %v3238_v0 }
  0x73   : > { %2716 = vmatmul.msk.bf16.gmra.mxu0 %vm328_vm0, %v3215_v18 }
  0x79   : > { %2868 = vmatmul.msk.bf16.gmra.mxu2 %vm328_vm0, %v3239_v11 }
  0x83   : > { %2717 = vmatmul.msk.bf16.gmra.mxu0 %vm328_vm0, %v3216_v19 }
  0x93   : > { %2718 = vmatmul.msk.bf16.gmra.mxu0 %vm328_vm0, %v3217_v20 }
  0xa3   : > { %2719 = vmatmul.msk.bf16.gmra.mxu0 %vm328_vm0, %v3218_v21 }
  0xb3   : > { %2720 = vmatmul.msk.bf16.gmra.mxu0 %vm328_vm0, %v3219_v22 }
  0xc3   : > { %2721 = vmatmul.msk.bf16.gmra.mxu0 %vm328_vm0, %v3220_v29 }
  0xd0   : > { %v386_v24 = vpop.f32.mrf.mxu0 }
  0xd1   : > { %v387_v25 = vadd.f32 %v3716_v23, %v386_v24 }
  0xd3   : > { %426 = vmax.xlane.f32.xlu0 %v387_v25 }
  0xd8   : > { %v388_v26 = vpop.f32.mrf.mxu0 }
  0xd9   : > { %v389_v27 = vadd.f32 %v3716_v23, %v388_v26 }
  0xdb   : > { %428 = vmax.xlane.f32.xlu0 %v389_v27 }
  0xe0   : > { %v391_v28 = vpop.f32.mrf.mxu0 }
  0xe1   : > { %v3722_v30 = vadd.f32 %v3716_v23, %v391_v28 }
  0xe3   : > { %430 = vmax.xlane.f32.xlu1 %v3722_v30 }
  0xe8   : > { %v393_v31 = vpop.f32.mrf.mxu0 }
  0xe9   : > { %v3727_v32 = vadd.f32 %v3716_v23, %v393_v31 }
  0xeb   : > { %432 = vmax.xlane.f32.xlu1 %v3727_v32 }
  0xf0   : > { %v396_v33 = vpop.f32.mrf.mxu0 }
  0xf1   : > { %v3731_v34 = vadd.f32 %v3716_v23, %v396_v33  ;;  %v3235_v33 = vld [vmem:[%s3677_s16 + $0x230] sm:$0xff] }
  0xf3   : > { %434 = vmax.xlane.f32.xlu2 %v3731_v34 }
  0xf8   : > { %v398_v38 = vpop.f32.mrf.mxu0 }
  0xf9   : > { %v3738_v39 = vadd.f32 %v3716_v23, %v398_v38  ;;  %v3234_v38 = vld [vmem:[%s3677_s16 + $0x228] sm:$0xff] }
  0xfb   : > { %436 = vmax.xlane.f32.xlu2 %v3738_v39 }
 0x100   : > { %v401_v42 = vpop.f32.mrf.mxu0 }
 0x101   : > { %v3744_v43 = vadd.f32 %v3716_v23, %v401_v42 }
 0x103   : > { %438 = vmax.xlane.f32.xlu0 %v3744_v43 }
 0x108   : > { %v403_v46 = vpop.f32.mrf.mxu0 }
 0x109   : > { %v3750_v47 = vadd.f32 %v3716_v23, %v403_v46 }
 0x10b   : > { %440 = vmax.xlane.f32.xlu1 %v3750_v47 }
 0x110   : > { %v406_v50 = vpop.f32.mrf.mxu0 }
 0x111   : > { %v3756_v51 = vadd.f32 %v3716_v23, %v406_v50 }
 0x113   : > { %442 = vmax.xlane.f32.xlu1 %v3756_v51 }
 0x118   : > { %v408_v63 = vpop.f32.mrf.mxu0 }
 0x119   : > { %v3775_v8 = vadd.f32 %v3716_v23, %v408_v63 }
 0x120   : > { %v411_v5 = vpop.f32.mrf.mxu0 }
 0x121   : > { %v3784_v13 = vadd.f32 %v3716_v23, %v411_v5 }
 0x128   : > { %v413_v12 = vpop.f32.mrf.mxu0 }
 0x129   : > { %v3793_v21 = vadd.f32 %v3716_v23, %v413_v12 }
 0x130   : > { %v416_v20 = vpop.f32.mrf.mxu0 }
 0x131   : > { %v3802_v26 = vadd.f32 %v3716_v23, %v416_v20 }
 0x138   : > { %v418_v31 = vpop.f32.mrf.mxu0 }
 0x139   : > { %v3814_v37 = vadd.f32 %v3716_v23, %v418_v31 }
 0x140   : > { %v421_v41 = vpop.f32.mrf.mxu0 }
 0x146   : > { %v427_v60 = vpop.xlane.xlu0 %426 }
 0x147   : > { %v458_v61 = vsub.f32 %v387_v25, %v427_v60  ;;  %v3240_v25 = vld [vmem:[%s3677_s16 + $0x58] sm:$0xff]  ;;  %v3846_v60 = vpop.f32.mrf.mxu2 }
 0x148   : > { %2869 = vmatmul.msk.bf16.gmra.mxu2 %vm328_vm0, %v3240_v25  ;;  %v423_v48 = vpop.f32.mrf.mxu0 }
 0x149   : > { %v474_v62 = vmul.f32 1.442695, %v458_v61  ;;  %v3831_v50 = vadd.f32 %v3716_v23, %v423_v48 }
 0x14b   : > { %3354 = vpow2.f32 %v474_v62 }
 0x14e   : > { %v429_v1 = vpop.xlane.xlu0 %428 }
 0x14f   : > { %v459_v2 = vsub.f32 %v389_v27, %v429_v1 }
 0x151   : > { %v3770_v3 = vpop.eup %3354  ;;  %v476_v4 = vmul.f32 1.442695, %v459_v2 }
 0x152   : > { %506 = vadd.xlane.f32.xlu2 %v3770_v3 }
 0x153   : > { %3356 = vpow2.f32 %v476_v4  ;;  %v3849_v4 = vpop.f32.mrf.mxu2 }
 0x156   : > { %v431_v6 = vpop.xlane.xlu1 %430 }
 0x157   : > { %v460_v7 = vsub.f32 %v3722_v30, %v431_v6 }
 0x158   : > { %2870 = vmatmul.msk.bf16.gmra.mxu2 %vm328_vm0, %v3241_v36  ;;  %v3300_v36 = vld [vmem:[%s3677_s16 + $0x1f8] sm:$0xff] }
 0x159   : > { %v3777_v9 = vpop.eup %3356  ;;  %v478_v10 = vmul.f32 1.442695, %v460_v7 }
 0x15a   : > { %444 = vmax.xlane.f32.xlu2 %v3775_v8  ;;  %508 = vadd.xlane.f32.xlu0 %v3777_v9 }
 0x15b   : > { %3358 = vpow2.f32 %v478_v10 }
 0x15e   : > { %v433_v14 = vpop.xlane.xlu1 %432 }
 0x15f   : > { %v461_v15 = vsub.f32 %v3727_v32, %v433_v14  ;;  %v3236_v32 = vld [vmem:[%s3677_s16 + $0x238] sm:$0xff] }
 0x160   : > { %626 = vmatpush.bf16.msra.mxu1 %v3236_v32 }
 0x161   : > { %v3787_v16 = vpop.eup %3358  ;;  %v480_v17 = vmul.f32 1.442695, %v461_v15 }
 0x162   : > { %446 = vmax.xlane.f32.xlu2 %v3784_v13  ;;  %510 = vadd.xlane.f32.xlu0 %v3787_v16 }
 0x163   : > { %3360 = vpow2.f32 %v480_v17 }
 0x164   : > { %627 = vmatpush.bf16.msra.mxu1 %v3235_v33 }
 0x166   : > { %v435_v18 = vpop.xlane.xlu2 %434 }
 0x167   : > { %v462_v19 = vsub.f32 %v3731_v34, %v435_v18 }
 0x168   : > { %628 = vmatpush.bf16.msra.mxu1 %v3234_v38 }
 0x169   : > { %v3795_v22 = vpop.eup %3360  ;;  %v482_v24 = vmul.f32 1.442695, %v462_v19 }
 0x16a   : > { %512 = vadd.xlane.f32.xlu1 %v3795_v22  ;;  %448 = vmax.xlane.f32.xlu0 %v3793_v21 }
 0x16b   : > { %3362 = vpow2.f32 %v482_v24 }
 0x16c   : > { %629 = vmatpush.bf16.msra.mxu1 %v3233_v55 }
 0x16e   : > { %v437_v27 = vpop.xlane.xlu2 %436 }
 0x16f   : > { %v463_v28 = vsub.f32 %v3738_v39, %v437_v27 }
 0x170   : > { %630 = vmatpush.bf16.msra.mxu1 %v3232_v56 }
 0x171   : > { %v3805_v29 = vpop.eup %3362  ;;  %v484_v30 = vmul.f32 1.442695, %v463_v28 }
 0x172   : > { %514 = vadd.xlane.f32.xlu1 %v3805_v29  ;;  %450 = vmax.xlane.f32.xlu0 %v3802_v26 }
 0x173   : > { %3364 = vpow2.f32 %v484_v30 }
 0x174   : > { %631 = vmatpush.bf16.msra.mxu1 %v3231_v57 }
 0x176   : > { %v439_v34 = vpop.xlane.xlu0 %438 }
 0x177   : > { %v464_v35 = vsub.f32 %v3744_v43, %v439_v34  ;;  %v3823_v43 = vadd.f32 %v3716_v23, %v421_v41 }
 0x179   : > { %v3817_v39 = vpop.eup %3364  ;;  %v486_v40 = vmul.f32 1.442695, %v464_v35  ;;  %v3243_v35 = vld [vmem:[%s3677_s16 + $0x70] sm:$0xff] }
 0x17a   : > { %452 = vmax.xlane.f32.xlu1 %v3814_v37  ;;  %516 = vadd.xlane.f32.xlu2 %v3817_v39 }
 0x17b   : > { %3366 = vpow2.f32 %v486_v40 }
 0x17e   : > { %v441_v42 = vpop.xlane.xlu1 %440 }
 0x17f   : > { %v465_v44 = vsub.f32 %v3750_v47, %v441_v42 }
 0x181   : > { %v3826_v45 = vpop.eup %3366  ;;  %v488_v46 = vmul.f32 1.442695, %v465_v44 }
 0x182   : > { %454 = vmax.xlane.f32.xlu1 %v3823_v43  ;;  %518 = vadd.xlane.f32.xlu2 %v3826_v45 }
 0x183   : > { %3368 = vpow2.f32 %v488_v46 }
 0x186   : > { %v443_v49 = vpop.xlane.xlu1 %442 }
 0x187   : > { %v466_v52 = vsub.f32 %v3756_v51, %v443_v49  ;;  %v3230_v51 = vld [vmem:[%s3677_s16 + $0x208] sm:$0xff] }
 0x188   : > { %632 = vmatpush.bf16.msra.mxu1 %v3230_v51  ;;  %v3244_v51 = vld [vmem:[%s3677_s16 + $0x78] sm:$0xff] }
 0x189   : > { %v3834_v47 = vpop.eup %3368  ;;  %v490_v53 = vmul.f32 1.442695, %v466_v52 }
 0x18a   : > { %520 = vadd.xlane.f32.xlu0 %v3834_v47  ;;  %456 = vmax.xlane.f32.xlu2 %v3831_v50 }
 0x18b   : > { %3370 = vpow2.f32 %v490_v53 }
 0x18c   : > { %633 = vmatpush.bf16.msra.mxu1 %v3229_v58  ;;  %v3299_v58 = vld [vmem:[%s3677_s16 + $0x1f0] sm:$0xff] }
 0x191   : > { %v3838_v54 = vpop.eup %3370 }
 0x192   : > { %522 = vadd.xlane.f32.xlu0 %v3838_v54 }
 0x1c5   : > { %v507_v59 = vpop.xlane.xlu2 %506 }
 0x1c6   : > { %3372 = vrcp.f32 %v507_v59 }
 0x1cc   : > { %v3373_v1 = vpop.eup %3372 }
 0x1cd   : > { %v445_v61 = vpop.xlane.xlu2 %444  ;;  %v509_v62 = vpop.xlane.xlu0 %508  ;;  %v554_v7 = vmul.f32 %v3373_v1, %v3770_v3  ;;  %v3276_v1 = vld [vmem:[%s3677_s16 + $0x1b8] sm:$0xff] }
 0x1ce   : > { %v467_v63 = vsub.f32 %v3775_v8, %v445_v61  ;;  %3374 = vrcp.f32 %v509_v62  ;;  %v3242_v8 = vld [vmem:[%s3677_s16 + $0x68] sm:$0xff] }
 0x1cf   : > { %2871 = vmatmul.msk.bf16.gmra.mxu2 %vm328_vm0, %v3242_v8  ;;  %v3297_v8 = vld [vmem:[%s3677_s16 + $0x1e0] sm:$0xff] }
 0x1d0   : > { %v492_v0 = vmul.f32 1.442695, %v467_v63 }
 0x1d2   : > { %3376 = vpow2.f32 %v492_v0 }
 0x1d4   : > { %v3375_v2 = vpop.eup %3374 }
 0x1d5   : > { %v447_v5 = vpop.xlane.xlu2 %446  ;;  %v511_v6 = vpop.xlane.xlu0 %510  ;;  %v555_v10 = vmul.f32 %v3375_v2, %v3777_v9  ;;  %v3298_v2 = vld [vmem:[%s3677_s16 + $0x1e8] sm:$0xff] }
 0x1d6   : > { %v468_v11 = vsub.f32 %v3784_v13, %v447_v5  ;;  %v3860_v9 = vpop.f32.mrf.mxu2  ;;  %v1361_v5 = vsel %vm328_vm0, %v3276_v1, 0 }
 0x1d7   : > { %v570_v12 = vpack.c.bf16 %v555_v10, %v554_v7  ;;  %1363 = vmatpush.bf16.xpose.msrb.mxu1 %v1361_v5  ;;  %v3270_v5 = vld [vmem:[%s3677_s16 + $0x188] sm:$0xff] }
 0x1d8   : > { %v3854_v14 = vpop.eup %3376  ;;  %v494_v15 = vmul.f32 1.442695, %v468_v11 }
 0x1d9   : > { %524 = vadd.xlane.f32.xlu1 %v3854_v14  ;;  %634 = vmatmul.bf16.vlgmr.msra.gmra.mxu1 %v570_v12  ;;  %v3275_v12 = vld [vmem:[%s3677_s16 + $0x1b0] sm:$0xff] }
 0x1da   : > { %3378 = vpow2.f32 %v494_v15 }
 0x1db   : > { %3380 = vrcp.f32 %v511_v6  ;;  %v3908_v6 = vsel %vm328_vm0, %v3298_v2, 0  ;;  %v3285_v2 = vld [vmem:[%s3677_s16 + $0xc0] sm:$0xff] }
 0x1dd   : > { %v513_v17 = vpop.xlane.xlu1 %512  ;;  %v449_v18 = vpop.xlane.xlu0 %448 }
 0x1de   : > { %3382 = vrcp.f32 %v513_v17  ;;  %v469_v3 = vsub.f32 %v3793_v21, %v449_v18  ;;  %v886_v34 = vpop.f32.mrf.mxu2  ;;  %v3920_v17 = vadd.f32 %v3716_v23, %v3849_v4 }
 0x1df   : > { %2872 = vmatmul.msk.bf16.gmra.mxu2 %vm328_vm0, %v3243_v35  ;;  %v3911_v7 = vadd.f32 %v3716_v23, %v886_v34  ;;  %v3273_v34 = vld [vmem:[%s3677_s16 + $0x1a0] sm:$0xff] }
 0x1e0   : > { %v3862_v13 = vpop.eup %3378  ;;  %v496_v19 = vmul.f32 1.442695, %v469_v3  ;;  %v1352_v35 = vsel %vm328_vm0, %v3273_v34, 0 }
 0x1e1   : > { %526 = vadd.xlane.f32.xlu2 %v3862_v13  ;;  %v3381_v20 = vpop.eup %3380 }
 0x1e2   : > { %3384 = vpow2.f32 %v496_v19  ;;  %v556_v28 = vmul.f32 %v3381_v20, %v3787_v16  ;;  %v3875_v16 = vsel %vm328_vm0, %v3300_v36, 0  ;;  %v3274_v20 = vld [vmem:[%s3677_s16 + $0x1a8] sm:$0xff]  ;;  %v3295_v36 = vld [vmem:[%s3677_s16 + $0x1d0] sm:$0xff] }
 0x1e3   : > { %1856 = vmatpush.bf16.xpose.msrb.mxu0 %v3875_v16 }
 0x1e4   : > { %v3383_v24 = vpop.eup %3382 }
 0x1e5   : > { %v515_v25 = vpop.xlane.xlu1 %514  ;;  %v451_v27 = vpop.xlane.xlu0 %450  ;;  %v557_v30 = vmul.f32 %v3383_v24, %v3795_v22  ;;  %v3941_v24 = vadd.f32 %v3716_v23, %v3860_v9 }
 0x1e6   : > { %v470_v21 = vsub.f32 %v3802_v26, %v451_v27  ;;  %v889_v44 = vpop.f32.mrf.mxu2  ;;  %v1355_v27 = vsel %vm328_vm0, %v3274_v20, 0 }
 0x1e7   : > { %v571_v31 = vpack.c.bf16 %v557_v30, %v556_v28  ;;  %v3932_v19 = vadd.f32 %v3716_v23, %v889_v44 }
 0x1e8   : > { %v3868_v32 = vpop.eup %3384  ;;  %v498_v33 = vmul.f32 1.442695, %v470_v21 }
 0x1e9   : > { %639 = vmatmul.bf16.gmra.mxu1 %v571_v31  ;;  %528 = vadd.xlane.f32.xlu0 %v3868_v32  ;;  %v3296_v31 = vld [vmem:[%s3677_s16 + $0x1d8] sm:$0xff] }
 0x1ea   : > { %3386 = vpow2.f32 %v498_v33  ;;  %v3961_v33 = vsel %vm328_vm0, %v3296_v31, 0  ;;  %v3286_v31 = vld [vmem:[%s3677_s16 + $0xc8] sm:$0xff] }
 0x1eb   : > { %3388 = vrcp.f32 %v515_v25 }
 0x1ed   : > { %v453_v22 = vpop.xlane.xlu1 %452  ;;  %v517_v38 = vpop.xlane.xlu2 %516 }
 0x1ee   : > { %v471_v26 = vsub.f32 %v3814_v37, %v453_v22  ;;  %3390 = vrcp.f32 %v517_v38  ;;  %v3968_v22 = vsel %vm328_vm0, %v3295_v36, 0 }
 0x1ef   : > { %2873 = vmatmul.msk.bf16.gmra.mxu2 %vm328_vm0, %v3244_v51 }
 0x1f0   : > { %v3879_v40 = vpop.eup %3386  ;;  %v500_v41 = vmul.f32 1.442695, %v471_v26  ;;  %v3272_v26 = vld [vmem:[%s3677_s16 + $0x198] sm:$0xff] }
 0x1f1   : > { %530 = vadd.xlane.f32.xlu1 %v3879_v40  ;;  %v3389_v42 = vpop.eup %3388 }
 0x1f2   : > { %3392 = vpow2.f32 %v500_v41  ;;  %v558_v52 = vmul.f32 %v3389_v42, %v3805_v29  ;;  %v891_v29 = vpop.f32.mrf.mxu2  ;;  %v1349_v41 = vsel %vm328_vm0, %v3272_v26, 0 }
 0x1f3   : > { %v3951_v30 = vadd.f32 %v3716_v23, %v891_v29 }
 0x1f4   : > { %v3391_v46 = vpop.eup %3390 }
 0x1f5   : > { %v455_v48 = vpop.xlane.xlu1 %454  ;;  %v519_v49 = vpop.xlane.xlu2 %518  ;;  %v559_v53 = vmul.f32 %v3391_v46, %v3817_v39  ;;  %v3892_v39 = vsel %vm328_vm0, %v3299_v58, 0 }
 0x1f6   : > { %v472_v37 = vsub.f32 %v3823_v43, %v455_v48  ;;  %v3896_v43 = vadd.f32 %v3716_v23, %v3846_v60  ;;  %1857 = vmatpush.bf16.xpose.msrb.mxu0 %v3892_v39  ;;  %v3294_v48 = vld [vmem:[%s3677_s16 + $0x1c8] sm:$0xff] }
 0x1f7   : > { %v572_v55 = vpack.c.bf16 %v559_v53, %v558_v52  ;;  %v3977_v53 = vsel %vm328_vm0, %v3294_v48, 0 }
 0x1f8   : > { %v3885_v56 = vpop.eup %3392  ;;  %v502_v57 = vmul.f32 1.442695, %v472_v37 }
 0x1f9   : > { %532 = vadd.xlane.f32.xlu2 %v3885_v56  ;;  %644 = vmatmul.bf16.gmra.mxu1 %v572_v55 }
 0x1fa   : > { %3394 = vpow2.f32 %v502_v57  ;;  %v894_v15 = vpop.f32.mrf.mxu2  ;;  %v3271_v57 = vld [vmem:[%s3677_s16 + $0x190] sm:$0xff] }
 0x1fb   : > { %3396 = vrcp.f32 %v519_v49  ;;  %v3935_v4 = vadd.f32 %v3716_v23, %v894_v15  ;;  %v1346_v51 = vsel %vm328_vm0, %v3271_v57, 0 }
 0x1fd   : > { %v457_v59 = vpop.xlane.xlu2 %456  ;;  %v521_v61 = vpop.xlane.xlu0 %520 }
 0x1fe   : > { %v473_v62 = vsub.f32 %v3831_v50, %v457_v59  ;;  %3398 = vrcp.f32 %v521_v61  ;;  %1858 = vmatpush.bf16.xpose.msrb.mxu0 %v3908_v6 }
 0x200   : > { %v3900_v63 = vpop.eup %3394  ;;  %v504_v0 = vmul.f32 1.442695, %v473_v62 }
 0x201   : > { %919 = vmax.xlane.f32.xlu2 %v3896_v43  ;;  %534 = vadd.xlane.f32.xlu0 %v3900_v63  ;;  %v3397_v60 = vpop.eup %3396 }
 0x202   : > { %3400 = vpow2.f32 %v504_v0  ;;  %v560_v10 = vmul.f32 %v3397_v60, %v3826_v45  ;;  %v1358_v45 = vsel %vm328_vm0, %v3275_v12, 0  ;;  %v896_v25 = vpop.f32.mrf.mxu2  ;;  %v3269_v12 = vld [vmem:[%s3677_s16 + $0x180] sm:$0xff] }
 0x203   : > { %1364 = vmatpush.bf16.xpose.msrb.mxu1 %v1358_v45  ;;  %v3948_v28 = vadd.f32 %v3716_v23, %v896_v25 }
 0x204   : > { %v3399_v50 = vpop.eup %3398 }
 0x205   : > { %v561_v11 = vmul.f32 %v3399_v50, %v3834_v47  ;;  %v3929_v47 = vsel %vm328_vm0, %v3297_v8, 0  ;;  %v523_v38 = vpop.xlane.xlu0 %522  ;;  %v1343_v50 = vsel %vm328_vm0, %v3270_v5, 0 }
 0x206   : > { %1859 = vmatpush.bf16.xpose.msrb.mxu0 %v3929_v47  ;;  %3402 = vrcp.f32 %v523_v38 }
 0x207   : > { %v573_v18 = vpack.c.bf16 %v561_v11, %v560_v10 }
 0x208   : > { %v3922_v3 = vpop.eup %3400 }
 0x209   : > { %925 = vmax.xlane.f32.xlu2 %v3911_v7  ;;  %921 = vmax.xlane.f32.xlu0 %v3920_v17 }
 0x20a   : > { %536 = vadd.xlane.f32.xlu1 %v3922_v3  ;;  %649 = vmatmul.bf16.gmra.mxu1 %v573_v18  ;;  %v899_v9 = vpop.f32.mrf.mxu2 }
 0x20b   : > { %1365 = vmatpush.bf16.xpose.msrb.mxu1 %v1355_v27  ;;  %v3956_v21 = vadd.f32 %v3716_v23, %v899_v9 }
 0x20c   : > { %v3403_v44 = vpop.eup %3402 }
 0x20d   : > { %v562_v49 = vmul.f32 %v3403_v44, %v3838_v54  ;;  %v3293_v54 = vld [vmem:[%s3677_s16 + $0x1c0] sm:$0xff] }
 0x20e   : > { %1860 = vmatpush.bf16.xpose.msrb.mxu0 %v3961_v33 }
 0x211   : > { %931 = vmax.xlane.f32.xlu2 %v3935_v4  ;;  %927 = vmax.xlane.f32.xlu0 %v3932_v19 }
 0x212   : > { %923 = vmax.xlane.f32.xlu1 %v3941_v24  ;;  %v901_v1 = vpop.f32.mrf.mxu2 }
 0x213   : > { %1366 = vmatpush.bf16.xpose.msrb.mxu1 %v1352_v35 }
 0x216   : > { %1861 = vmatpush.bf16.xpose.msrb.mxu0 %v3968_v22 }
 0x219   : > { %933 = vmax.xlane.f32.xlu0 %v3948_v28 }
 0x21a   : > { %929 = vmax.xlane.f32.xlu1 %v3951_v30 }
 0x21b   : > { %1367 = vmatpush.bf16.xpose.msrb.mxu1 %v1349_v41 }
 0x21e   : > { %1862 = vmatpush.bf16.xpose.msrb.mxu0 %v3977_v53 }
 0x221   : > { %935 = vmax.xlane.f32.xlu0 %v3956_v21 }
 0x223   : > { %1368 = vmatpush.bf16.xpose.msrb.mxu1 %v1346_v51 }
 0x22b   : > { %1369 = vmatpush.bf16.xpose.msrb.mxu1 %v1343_v50 }
 0x24c   : > { %v525_v42 = vpop.xlane.xlu1 %524 }
 0x24d   : > { %3404 = vrcp.f32 %v525_v42 }
 0x252   : > { %v904_v11 = vpop.f32.mrf.mxu2 }
 0x253   : > { %v3405_v46 = vpop.eup %3404 }
 0x254   : > { %v563_v52 = vmul.f32 %v3405_v46, %v3854_v14  ;;  %v527_v55 = vpop.xlane.xlu2 %526  ;;  %v3984_v14 = vsel %vm328_vm0, %v3293_v54, 0 }
 0x255   : > { %3406 = vrcp.f32 %v527_v55  ;;  %1863 = vmatpush.bf16.xpose.msrb.mxu0 %v3984_v14 }
 0x256   : > { %v574_v37 = vpack.c.bf16 %v563_v52, %v562_v49  ;;  %v4012_v49 = vadd.f32 %v3716_v23, %v901_v1  ;;  %v4017_v55 = vpop.f32.mrf.mxu1 }
 0x258   : > { %654 = vmatmul.bf16.gmra.mxu1 %v574_v37 }
 0x25a   : > { %v906_v34 = vpop.f32.mrf.mxu2 }
 0x25b   : > { %v3407_v29 = vpop.eup %3406  ;;  %v4049_v50 = vadd.f32 %v3716_v23, %v906_v34  ;;  %v3264_v34 = vld [vmem:[%s3677_s16 + $0x98] sm:$0xff] }
 0x25c   : > { %v529_v58 = vpop.xlane.xlu0 %528  ;;  %v564_v61 = vmul.f32 %v3407_v29, %v3862_v13  ;;  %3170 = vmatmul.msk.bf16.vlgmr.msrb.gmra.mxu0 %vm328_vm0, %v3285_v2 }
 0x25d   : > { %3408 = vrcp.f32 %v529_v58 }
 0x262   : > { %v909_v46 = vpop.f32.mrf.mxu2 }
 0x263   : > { %v3409_v59 = vpop.eup %3408 }
 0x264   : > { %v565_v62 = vmul.f32 %v3409_v59, %v3868_v32  ;;  %v531_v60 = vpop.xlane.xlu1 %530  ;;  %v1340_v32 = vsel %vm328_vm0, %v3269_v12, 0  ;;  %v4062_v12 = vadd.f32 %v3716_v23, %v909_v46 }
 0x265   : > { %3410 = vrcp.f32 %v531_v60  ;;  %1370 = vmatpush.bf16.xpose.msrb.mxu1 %v1340_v32 }
 0x266   : > { %v575_v0 = vpack.c.bf16 %v565_v62, %v564_v61 }
 0x268   : > { %659 = vmatmul.bf16.gmra.mxu1 %v575_v0  ;;  %v4036_v0 = vpop.f32.mrf.mxu1 }
 0x26a   : > { %v911_v54 = vpop.f32.mrf.mxu2 }
 0x26b   : > { %v3411_v13 = vpop.eup %3410  ;;  %v4044_v60 = vadd.f32 %v3716_v23, %v911_v54 }
 0x26c   : > { %v533_v10 = vpop.xlane.xlu2 %532  ;;  %v566_v45 = vmul.f32 %v3411_v13, %v3879_v40  ;;  %3171 = vmatmul.msk.bf16.gmra.mxu0 %vm328_vm0, %v3286_v31 }
 0x26d   : > { %3412 = vrcp.f32 %v533_v10  ;;  %3309 = vmatpush.bf16.xpose.msra.mxu1 %v3875_v16 }
 0x272   : > { %v914_v10 = vpop.f32.mrf.mxu2 }
 0x273   : > { %v3413_v15 = vpop.eup %3412  ;;  %v4065_v13 = vadd.f32 %v3716_v23, %v914_v10 }
 0x274   : > { %v920_v8 = vpop.xlane.xlu2 %919  ;;  %v535_v18 = vpop.xlane.xlu0 %534  ;;  %v567_v20 = vmul.f32 %v3413_v15, %v3885_v56 }
 0x275   : > { %v951_v25 = vsub.f32 %v3896_v43, %v920_v8  ;;  %3310 = vmatpush.bf16.xpose.msra.mxu1 %v3892_v39 }
 0x276   : > { %v576_v27 = vpack.c.bf16 %v567_v20, %v566_v45  ;;  %v3262_v20 = vld [vmem:[%s3677_s16 + $0x88] sm:$0xff] }
 0x277   : > { %v967_v9 = vmul.f32 1.442695, %v951_v25 }
 0x278   : > { %664 = vmatmul.bf16.gmra.mxu1 %v576_v27 }
 0x279   : > { %3414 = vpow2.f32 %v967_v9 }
 0x27a   : > { %3416 = vrcp.f32 %v535_v18 }
 0x27c   : > { %v926_v35 = vpop.xlane.xlu2 %925  ;;  %v922_v36 = vpop.xlane.xlu0 %921 }
 0x27d   : > { %v954_v40 = vsub.f32 %v3911_v7, %v926_v35  ;;  %v537_v56 = vpop.xlane.xlu1 %536  ;;  %v952_v16 = vsub.f32 %v3920_v17, %v922_v36  ;;  %3311 = vmatpush.bf16.xpose.msra.mxu1 %v3908_v6  ;;  %v3260_v35 = vld [vmem:[%s3677_s16 + $0x278] sm:$0xff] }
 0x27e   : > { %3418 = vrcp.f32 %v537_v56  ;;  %1119 = vmatpush.bf16.msra.mxu3 %v3260_v35  ;;  %v3257_v56 = vld [vmem:[%s3677_s16 + $0x260] sm:$0xff] }
 0x27f   : > { %v4004_v43 = vpop.eup %3414  ;;  %v973_v38 = vmul.f32 1.442695, %v954_v40  ;;  %v969_v26 = vmul.f32 1.442695, %v952_v16  ;;  %v3258_v40 = vld [vmem:[%s3677_s16 + $0x268] sm:$0xff] }
 0x280   : > { %999 = vadd.xlane.f32.xlu1 %v4004_v43  ;;  %v3417_v41 = vpop.eup %3416 }
 0x281   : > { %3420 = vpow2.f32 %v973_v38  ;;  %v568_v17 = vmul.f32 %v3417_v41, %v3900_v63  ;;  %v3287_v63 = vld [vmem:[%s3677_s16 + $0xd0] sm:$0xff]  ;;  %v3256_v38 = vld [vmem:[%s3677_s16 + $0x258] sm:$0xff] }
 0x282   : > { %3422 = vpow2.f32 %v969_v26  ;;  %3172 = vmatmul.msk.bf16.gmra.mxu0 %vm328_vm0, %v3287_v63  ;;  %v3255_v26 = vld [vmem:[%s3677_s16 + $0x250] sm:$0xff] }
 0x284   : > { %v3419_v42 = vpop.eup %3418  ;;  %v928_v44 = vpop.xlane.xlu0 %927 }
 0x285   : > { %v924_v39 = vpop.xlane.xlu1 %923  ;;  %v955_v7 = vsub.f32 %v3932_v19, %v928_v44  ;;  %v569_v48 = vmul.f32 %v3419_v42, %v3922_v3  ;;  %v4026_v3 = vadd.f32 %v3716_v23, %v904_v11  ;;  %3312 = vmatpush.bf16.xpose.msra.mxu1 %v3929_v47  ;;  %v932_v29 = vpop.xlane.xlu2 %931  ;;  %v3261_v47 = vld [vmem:[%s3677_s16 + $0x80] sm:$0xff]  ;;  %v3254_v42 = vld [vmem:[%s3677_s16 + $0x248] sm:$0xff] }
 0x286   : > { %v953_v52 = vsub.f32 %v3941_v24, %v924_v39  ;;  %v957_v1 = vsub.f32 %v3935_v4, %v932_v29  ;;  %v3288_v4 = vld [vmem:[%s3677_s16 + $0xd8] sm:$0xff]  ;;  %v3253_v44 = vld [vmem:[%s3677_s16 + $0x240] sm:$0xff] }
 0x287   : > { %v4015_v37 = vpop.eup %3420  ;;  %v975_v57 = vmul.f32 1.442695, %v955_v7  ;;  %v577_v51 = vpack.c.bf16 %v569_v48, %v568_v17  ;;  %v3265_v39 = vld [vmem:[%s3677_s16 + $0xa0] sm:$0xff] }
 0x288   : > { %v4019_v6 = vpop.eup %3422  ;;  %v971_v58 = vmul.f32 1.442695, %v953_v52  ;;  %1005 = vadd.xlane.f32.xlu0 %v4015_v37  ;;  %937 = vmax.xlane.f32.xlu1 %v4012_v49 }
 0x289   : > { %669 = vmatmul.bf16.gmra.mxu1 %v577_v51  ;;  %1001 = vadd.xlane.f32.xlu2 %v4019_v6 }
 0x28a   : > { %3424 = vpow2.f32 %v971_v58 }
 0x28b   : > { %3426 = vpow2.f32 %v975_v57 }
 0x28c   : > { %v934_v2 = vpop.xlane.xlu0 %933 }
 0x28d   : > { %v930_v19 = vpop.xlane.xlu1 %929  ;;  %3313 = vmatpush.bf16.xpose.msra.mxu1 %v3961_v33  ;;  %v4056_v33 = vpop.f32.mrf.mxu1  ;;  %v958_v11 = vsub.f32 %v3948_v28, %v934_v2 }
 0x28e   : > { %v956_v24 = vsub.f32 %v3951_v30, %v930_v19  ;;  %v979_v30 = vmul.f32 1.442695, %v957_v1  ;;  %v916_v28 = vpop.f32.mrf.mxu2  ;;  %v3266_v19 = vld [vmem:[%s3677_s16 + $0xa8] sm:$0xff] }
 0x28f   : > { %v981_v32 = vmul.f32 1.442695, %v958_v11  ;;  %v4077_v45 = vadd.f32 %v3716_v23, %v916_v28 }
 0x290   : > { %v4031_v59 = vpop.eup %3424  ;;  %v977_v61 = vmul.f32 1.442695, %v956_v24  ;;  %939 = vmax.xlane.f32.xlu1 %v4026_v3 }
 0x291   : > { %v4034_v62 = vpop.eup %3426  ;;  %1003 = vadd.xlane.f32.xlu2 %v4031_v59 }
 0x292   : > { %3428 = vpow2.f32 %v977_v61  ;;  %1007 = vadd.xlane.f32.xlu0 %v4034_v62  ;;  %3173 = vmatmul.msk.bf16.gmra.mxu0 %vm328_vm0, %v3288_v4 }
 0x293   : > { %3430 = vpow2.f32 %v979_v30 }
 0x294   : > { %v936_v8 = vpop.xlane.xlu0 %935  ;;  %3432 = vpow2.f32 %v981_v32 }
 0x295   : > { %3314 = vmatpush.bf16.xpose.msra.mxu1 %v3968_v22  ;;  %v959_v22 = vsub.f32 %v3956_v21, %v936_v8  ;;  %v4074_v18 = vpop.f32.mrf.mxu1 }
 0x297   : > { %v983_v25 = vmul.f32 1.442695, %v959_v22 }
 0x298   : > { %v4046_v5 = vpop.eup %3428 }
 0x299   : > { %1009 = vadd.xlane.f32.xlu1 %v4046_v5  ;;  %3018 = vmatmul.msk.bf16.vlgmr.msrb.gmra.mxu1 %vm328_vm0, %v3261_v47  ;;  %v4067_v15 = vpop.eup %3430  ;;  %3434 = vpow2.f32 %v983_v25 }
 0x29a   : > { %941 = vmax.xlane.f32.xlu2 %v4049_v50  ;;  %945 = vmax.xlane.f32.xlu0 %v4044_v60  ;;  %v4080_v27 = vpop.eup %3432 }
 0x29d   : > { %3315 = vmatpush.bf16.xpose.msra.mxu1 %v3977_v53  ;;  %v4086_v21 = vpop.f32.mrf.mxu1  ;;  %v3263_v53 = vld [vmem:[%s3677_s16 + $0x90] sm:$0xff] }
 0x29e   : > { %4802 = vst [vmem:[#allocation2_spill] sm:$0xff] %v4086_v21 }
 0x29f   : > { %v4088_v23 = vpop.eup %3434 }
 0x2a1   : > { %1011 = vadd.xlane.f32.xlu1 %v4067_v15 }
 0x2a2   : > { %943 = vmax.xlane.f32.xlu2 %v4062_v12  ;;  %947 = vmax.xlane.f32.xlu0 %v4065_v13 }
 0x2a5   : > { %3316 = vmatpush.bf16.xpose.msra.mxu1 %v3984_v14  ;;  %v4092_v9 = vpop.f32.mrf.mxu1  ;;  %v3259_v14 = vld [vmem:[%s3677_s16 + $0x270] sm:$0xff] }
 0x2a6   : > { %4803 = vst [vmem:[#allocation3_spill] sm:$0xff] %v4092_v9  ;;  %1120 = vmatpush.bf16.msra.mxu3 %v3259_v14 }
 0x2a9   : > { %949 = vmax.xlane.f32.xlu1 %v4077_v45  ;;  %3019 = vmatmul.msk.bf16.gmra.mxu1 %vm328_vm0, %v3262_v20 }
 0x2aa   : > { %1013 = vadd.xlane.f32.xlu2 %v4080_v27  ;;  %1121 = vmatpush.bf16.msra.mxu3 %v3258_v40 }
 0x2ad   : > { %v4095_v31 = vpop.f32.mrf.mxu1 }
 0x2ae   : > { %4804 = vst [vmem:[#allocation4_spill] sm:$0xff] %v4095_v31  ;;  %1122 = vmatpush.bf16.msra.mxu3 %v3257_v56 }
 0x2b2   : > { %1015 = vadd.xlane.f32.xlu2 %v4088_v23  ;;  %1123 = vmatpush.bf16.msra.mxu3 %v3256_v38 }
 0x2b5   : > { %v4101_v36 = vpop.f32.mrf.mxu1 }
 0x2b6   : > { %4805 = vst [vmem:[#allocation5_spill] sm:$0xff] %v4101_v36  ;;  %1124 = vmatpush.bf16.msra.mxu3 %v3255_v26  ;;  %v3267_v26 = vld [vmem:[%s3677_s16 + $0xb0] sm:$0xff] }
 0x2b9   : > { %3020 = vmatmul.msk.bf16.gmra.mxu1 %vm328_vm0, %v3263_v53 }
 0x2ba   : > { %1125 = vmatpush.bf16.msra.mxu3 %v3254_v42 }
 0x2be   : > { %1126 = vmatpush.bf16.msra.mxu3 %v3253_v44 }
 0x2c9   : > { %3021 = vmatmul.msk.bf16.gmra.mxu1 %vm328_vm0, %v3264_v34 }
 0x2d5   : > { %v4105_v16 = vpop.f32.mrf.mxu1 }
 0x2d9   : > { %3022 = vmatmul.msk.bf16.gmra.mxu1 %vm328_vm0, %v3265_v39  ;;  %v4122_v24 = vpop.f32.mrf.mxu0 }
 0x2dd   : > { %v4109_v41 = vpop.f32.mrf.mxu1 }
 0x2e1   : > { %v1867_v34 = vpop.f32.mrf.mxu0 }
 0x2e5   : > { %v660_v46 = vpop.f32.mrf.mxu1 }
 0x2e6   : > { %v685_v7 = vpack.c.bf16 %v660_v46, %v660_v46 }
 0x2e8   : > { %v4115_v52 = vunpack.c.l.b16 %v685_v7 }
 0x2e9   : > { %3023 = vmatmul.msk.bf16.gmra.mxu1 %vm328_vm0, %v3266_v19  ;;  %v4144_v7 = vpop.f32.mrf.mxu0 }
 0x2ed   : > { %v662_v17 = vpop.f32.mrf.mxu1 }
 0x2ee   : > { %v686_v48 = vpack.c.bf16 %v662_v17, %v662_v17 }
 0x2f0   : > { %v4117_v57 = vunpack.c.l.b16 %v686_v48 }
 0x2f3   : > { %v1000_v58 = vpop.xlane.xlu1 %999 }
 0x2f4   : > { %3436 = vrcp.f32 %v1000_v58  ;;  %v3289_v58 = vld [vmem:[%s3677_s16 + $0xe0] sm:$0xff] }
 0x2f5   : > { %v665_v63 = vpop.f32.mrf.mxu1  ;;  %3174 = vmatmul.msk.bf16.gmra.mxu0 %vm328_vm0, %v3289_v58 }
 0x2f6   : > { %v687_v61 = vpack.c.bf16 %v665_v63, %v665_v63 }
 0x2f8   : > { %v4126_v4 = vunpack.c.l.b16 %v687_v61 }
 0x2f9   : > { %3024 = vmatmul.msk.bf16.gmra.mxu1 %vm328_vm0, %v3267_v26 }
 0x2fa   : > { %4806 = vst [vmem:[#allocation6_spill] sm:$0xff] %v4126_v4  ;;  %v3437_v32 = vpop.eup %3436  ;;  %v3277_v4 = vld [vmem:[%s3677_s16 + $0x280] sm:$0xff] }
 0x2fb   : > { %v938_v54 = vpop.xlane.xlu1 %937  ;;  %v1006_v29 = vpop.xlane.xlu0 %1005  ;;  %v1047_v25 = vmul.f32 %v3437_v32, %v4004_v43 }
 0x2fc   : > { %v960_v1 = vsub.f32 %v4012_v49, %v938_v54  ;;  %v1002_v47 = vpop.xlane.xlu2 %1001 }
 0x2fd   : > { %3438 = vrcp.f32 %v1002_v47  ;;  %v667_v30 = vpop.f32.mrf.mxu1 }
 0x2fe   : > { %v985_v2 = vmul.f32 1.442695, %v960_v1  ;;  %v688_v10 = vpack.c.bf16 %v667_v30, %v667_v30  ;;  %v4158_v30 = vld [vmem:[%s3685_s19] ss:$0 sm:$0xff] }
 0x300   : > { %3440 = vpow2.f32 %v985_v2  ;;  %v4128_v11 = vunpack.c.l.b16 %v688_v10  ;;  %v4161_v2 = vadd.f32 %v4158_v30, %v1867_v34 }
 0x302   : > { %4807 = vst [vmem:[#allocation7_spill] sm:$0xff] %v4128_v11 }
 0x303   : > { %v3439_v28 = vpop.eup %3438  ;;  %v940_v22 = vpop.xlane.xlu1 %939 }
 0x304   : > { %v961_v20 = vsub.f32 %v4026_v3, %v940_v22  ;;  %v1004_v49 = vpop.xlane.xlu2 %1003  ;;  %v1048_v53 = vmul.f32 %v3439_v28, %v4019_v6 }
 0x305   : > { %v1008_v35 = vpop.xlane.xlu0 %1007 }
 0x306   : > { %v4135_v14 = vpop.eup %3440  ;;  %v987_v40 = vmul.f32 1.442695, %v961_v20  ;;  %v670_v56 = vpop.f32.mrf.mxu1  ;;  %v1063_v38 = vpack.c.bf16 %v1048_v53, %v1047_v25 }
 0x307   : > { %1017 = vadd.xlane.f32.xlu0 %v4135_v14  ;;  %v689_v43 = vpack.c.bf16 %v670_v56, %v670_v56 }
 0x308   : > { %3442 = vpow2.f32 %v987_v40  ;;  %1127 = vmatmul.bf16.vlgmr.msra.gmra.mxu3 %v1063_v38 }
 0x309   : > { %3444 = vrcp.f32 %v1004_v49  ;;  %v1872_v49 = vpop.f32.mrf.mxu0 }
 0x30a   : > { %3446 = vrcp.f32 %v1006_v29  ;;  %v4148_v29 = vunpack.c.l.b16 %v689_v43 }
 0x30c   : > { %v1010_v1 = vpop.xlane.xlu1 %1009 }
 0x30d   : > { %v942_v3 = vpop.xlane.xlu2 %941  ;;  %v946_v6 = vpop.xlane.xlu0 %945 }
 0x30e   : > { %v4140_v42 = vpop.eup %3442  ;;  %v962_v44 = vsub.f32 %v4049_v50, %v942_v3  ;;  %v964_v46 = vsub.f32 %v4044_v60, %v946_v6  ;;  %v672_v39 = vpop.f32.mrf.mxu1  ;;  %v3268_v3 = vld [vmem:[%s3677_s16 + $0xb8] sm:$0xff]  ;;  %v3278_v50 = vld [vmem:[%s3677_s16 + $0x288] sm:$0xff] }
 0x30f   : > { %v3445_v17 = vpop.eup %3444  ;;  %v690_v48 = vpack.c.bf16 %v672_v39, %v672_v39  ;;  %1019 = vadd.xlane.f32.xlu0 %v4140_v42  ;;  %3025 = vmatmul.msk.bf16.gmra.mxu1 %vm328_vm0, %v3268_v3 }
 0x310   : > { %v989_v63 = vmul.f32 1.442695, %v962_v44  ;;  %v993_v19 = vmul.f32 1.442695, %v964_v46  ;;  %v3447_v54 = vpop.eup %3446  ;;  %v1049_v60 = vmul.f32 %v3445_v17, %v4031_v59 }
 0x311   : > { %v4150_v61 = vunpack.c.l.b16 %v690_v48  ;;  %v1050_v47 = vmul.f32 %v3447_v54, %v4015_v37  ;;  %v4172_v37 = vadd.f32 %v4158_v30, %v1872_v49  ;;  %v1875_v44 = vpop.f32.mrf.mxu0 }
 0x312   : > { %3448 = vpow2.f32 %v989_v63  ;;  %v4238_v3 = vadd.f32 %v4158_v30, %v1875_v44 }
 0x313   : > { %3450 = vpow2.f32 %v993_v19  ;;  %v1064_v22 = vpack.c.bf16 %v1050_v47, %v1049_v60 }
 0x314   : > { %3452 = vrcp.f32 %v1010_v1 }
 0x315   : > { %v944_v10 = vpop.xlane.xlu2 %943  ;;  %v948_v40 = vpop.xlane.xlu0 %947 }
 0x316   : > { %v963_v32 = vsub.f32 %v4062_v12, %v944_v10  ;;  %v1372_v28 = vpop.f32.mrf.mxu1  ;;  %v1012_v12 = vpop.xlane.xlu1 %1011  ;;  %v965_v43 = vsub.f32 %v4065_v13, %v948_v40  ;;  %v4192_v13 = vadd.f32 %v4158_v30, %v4122_v24 }
 0x317   : > { %1907 = vmax.xlane.f32.xlu0 %v4161_v2  ;;  %v4188_v46 = vadd.f32 %v4158_v30, %v1372_v28 }
 0x318   : > { %v4165_v59 = vpop.eup %3448  ;;  %v991_v20 = vmul.f32 1.442695, %v963_v32  ;;  %1132 = vmatmul.bf16.gmra.mxu3 %v1064_v22  ;;  %v995_v39 = vmul.f32 1.442695, %v965_v43 }
 0x319   : > { %v4167_v25 = vpop.eup %3450  ;;  %1021 = vadd.xlane.f32.xlu1 %v4165_v59  ;;  %v1877_v24 = vpop.f32.mrf.mxu0 }
 0x31a   : > { %3454 = vpow2.f32 %v991_v20  ;;  %1025 = vadd.xlane.f32.xlu2 %v4167_v25  ;;  %v3453_v34 = vpop.eup %3452  ;;  %v4213_v22 = vadd.f32 %v4158_v30, %v1877_v24 }
 0x31b   : > { %3456 = vrcp.f32 %v1008_v35  ;;  %v1052_v35 = vmul.f32 %v3453_v34, %v4046_v5 }
 0x31d   : > { %v1014_v17 = vpop.xlane.xlu2 %1013 }
 0x31e   : > { %v1374_v53 = vpop.f32.mrf.mxu1  ;;  %v950_v63 = vpop.xlane.xlu1 %949  ;;  %3458 = vrcp.f32 %v1014_v17 }
 0x31f   : > { %v4175_v56 = vadd.f32 %v4158_v30, %v1374_v53  ;;  %1911 = vmax.xlane.f32.xlu0 %v4172_v37  ;;  %3460 = vpow2.f32 %v995_v39  ;;  %v966_v5 = vsub.f32 %v4077_v45, %v950_v63  ;;  %v3291_v53 = vld [vmem:[%s3677_s16 + $0xf0] sm:$0xff] }
 0x320   : > { %v4178_v38 = vpop.eup %3454  ;;  %3462 = vrcp.f32 %v1012_v12 }
 0x321   : > { %v3457_v26 = vpop.eup %3456  ;;  %1023 = vadd.xlane.f32.xlu1 %v4178_v38  ;;  %v997_v1 = vmul.f32 1.442695, %v966_v5  ;;  %v1880_v12 = vpop.f32.mrf.mxu0 }
 0x322   : > { %1414 = vmax.xlane.f32.xlu2 %v4175_v56  ;;  %v1051_v6 = vmul.f32 %v3457_v26, %v4034_v62  ;;  %v3290_v62 = vld [vmem:[%s3677_s16 + $0xe8] sm:$0xff]  ;;  %v4246_v39 = vadd.f32 %v4158_v30, %v1880_v12 }
 0x323   : > { %3175 = vmatmul.msk.bf16.gmra.mxu0 %vm328_vm0, %v3290_v62  ;;  %3464 = vpow2.f32 %v997_v1 }
 0x324   : > { %v1065_v58 = vpack.c.bf16 %v1052_v35, %v1051_v6  ;;  %v3459_v60 = vpop.eup %3458 }
 0x325   : > { %v4205_v10 = vpop.eup %3460  ;;  %v1054_v45 = vmul.f32 %v3459_v60, %v4080_v27 }
 0x326   : > { %v1377_v48 = vpop.f32.mrf.mxu1  ;;  %v3463_v32 = vpop.eup %3462 }
 0x327   : > { %v4200_v19 = vadd.f32 %v4158_v30, %v1377_v48  ;;  %v1053_v28 = vmul.f32 %v3463_v32, %v4067_v15  ;;  %v4226_v15 = vadd.f32 %v4158_v30, %v4144_v7  ;;  %v1016_v48 = vpop.xlane.xlu2 %1015  ;;  %v3292_v32 = vld [vmem:[%s3677_s16 + $0xf8] sm:$0xff] }
 0x328   : > { %1137 = vmatmul.bf16.gmra.mxu3 %v1065_v58  ;;  %3466 = vrcp.f32 %v1016_v48  ;;  %3177 = vmatmul.msk.bf16.vlgmr.msra.gmra.mxu1 %vm328_vm0, %v3292_v32 }
 0x329   : > { %1412 = vmax.xlane.f32.xlu1 %v4188_v46  ;;  %v1066_v49 = vpack.c.bf16 %v1054_v45, %v1053_v28  ;;  %v4216_v34 = vpop.eup %3464  ;;  %v1882_v43 = vpop.f32.mrf.mxu0 }
 0x32a   : > { %1905 = vmax.xlane.f32.xlu2 %v4192_v13  ;;  %v4235_v35 = vadd.f32 %v4158_v30, %v1882_v43 }
 0x32e   : > { %v1379_v54 = vpop.f32.mrf.mxu1  ;;  %v3467_v63 = vpop.eup %3466 }
 0x32f   : > { %v4203_v47 = vadd.f32 %v4158_v30, %v1379_v54  ;;  %v1055_v54 = vmul.f32 %v3467_v63, %v4088_v23 }
 0x331   : > { %1027 = vadd.xlane.f32.xlu1 %v4205_v10  ;;  %1418 = vmax.xlane.f32.xlu0 %v4203_v47 }
 0x332   : > { %1416 = vmax.xlane.f32.xlu2 %v4200_v19 }
 0x333   : > { %3176 = vmatmul.msk.bf16.gmra.mxu0 %vm328_vm0, %v3291_v53 }
 0x336   : > { %v1382_v20 = vpop.f32.mrf.mxu1 }
 0x337   : > { %v4222_v27 = vadd.f32 %v4158_v30, %v1382_v20 }
 0x338   : > { %1142 = vmatmul.bf16.gmra.mxu3 %v1066_v49 }
 0x339   : > { %1915 = vmax.xlane.f32.xlu0 %v4213_v22 }
 0x33a   : > { %1029 = vadd.xlane.f32.xlu2 %v4216_v34 }
 0x33e   : > { %v1384_v40 = vpop.f32.mrf.mxu1 }
 0x33f   : > { %v4229_v26 = vadd.f32 %v4158_v30, %v1384_v40 }
 0x341   : > { %1420 = vmax.xlane.f32.xlu0 %v4222_v27  ;;  %1422 = vmax.xlane.f32.xlu1 %v4229_v26 }
 0x342   : > { %1909 = vmax.xlane.f32.xlu2 %v4226_v15 }
 0x346   : > { %v1387_v7 = vpop.f32.mrf.mxu1 }
 0x347   : > { %v4243_v6 = vadd.f32 %v4158_v30, %v1387_v7 }
 0x349   : > { %1919 = vmax.xlane.f32.xlu0 %v4235_v35 }
 0x34a   : > { %1913 = vmax.xlane.f32.xlu2 %v4238_v3 }
 0x34e   : > { %v1389_v17 = vpop.f32.mrf.mxu1 }
 0x351   : > { %1424 = vmax.xlane.f32.xlu0 %v4243_v6 }
 0x352   : > { %1917 = vmax.xlane.f32.xlu2 %v4246_v39 }
 0x356   : > { %v4250_v58 = vpop.f32.mrf.mxu1 }
 0x35e   : > { %v1394_v1 = vpop.f32.mrf.mxu1 }
 0x366   : > { %v4257_v53 = vpop.f32.mrf.mxu1 }
 0x37a   : > { %v1018_v44 = vpop.xlane.xlu0 %1017 }
 0x37b   : > { %3468 = vrcp.f32 %v1018_v44 }
 0x381   : > { %v3469_v62 = vpop.eup %3468 }
 0x382   : > { %v1020_v5 = vpop.xlane.xlu0 %1019  ;;  %v1056_v24 = vmul.f32 %v3469_v62, %v4135_v14 }
 0x383   : > { %3470 = vrcp.f32 %v1020_v5  ;;  %v1399_v5 = vpop.f32.mrf.mxu1 }
 0x384   : > { %v1067_v60 = vpack.c.bf16 %v1056_v24, %v1055_v54  ;;  %v4266_v54 = vadd.f32 %v4158_v30, %v1389_v17 }
 0x386   : > { %1147 = vmatmul.bf16.gmra.mxu3 %v1067_v60 }
 0x389   : > { %v3471_v23 = vpop.eup %3470 }
 0x38a   : > { %v1908_v45 = vpop.xlane.xlu0 %1907  ;;  %v1057_v14 = vmul.f32 %v3471_v23, %v4140_v42 }
 0x38b   : > { %v1938_v28 = vsub.f32 %v4161_v2, %v1908_v45  ;;  %v1402_v17 = vpop.f32.mrf.mxu1 }
 0x38c   : > { %v1022_v20 = vpop.xlane.xlu1 %1021 }
 0x38d   : > { %3472 = vrcp.f32 %v1022_v20  ;;  %v1026_v49 = vpop.xlane.xlu2 %1025  ;;  %v1955_v12 = vmul.f32 1.442695, %v1938_v28  ;;  %v4276_v20 = vadd.f32 %v4158_v30, %v1394_v1 }
 0x38f   : > { %3474 = vpow2.f32 %v1955_v12 }
 0x392   : > { %v4268_v42 = vpop.xlane.xlu0 %1911 }
 0x393   : > { %v3473_v40 = vpop.eup %3472 }
 0x394   : > { %v1058_v43 = vmul.f32 %v3473_v40, %v4165_v59  ;;  %v1024_v48 = vpop.xlane.xlu1 %1023 }
 0x395   : > { %v4261_v7 = vpop.eup %3474  ;;  %v1415_v44 = vpop.xlane.xlu2 %1414  ;;  %3476 = vrcp.f32 %v1024_v48 }
 0x396   : > { %v1445_v63 = vsub.f32 %v4175_v56, %v1415_v44  ;;  %v1068_v2 = vpack.c.bf16 %v1058_v43, %v1057_v14  ;;  %1987 = vadd.xlane.f32.xlu1 %v4261_v7  ;;  %v4282_v14 = vadd.f32 %v4158_v30, %v1402_v17 }
 0x398   : > { %v1462_v62 = vmul.f32 1.442695, %v1445_v63  ;;  %1152 = vmatmul.bf16.gmra.mxu3 %v1068_v2 }
 0x39a   : > { %3478 = vpow2.f32 %v1462_v62 }
 0x39b   : > { %3480 = vrcp.f32 %v1026_v49  ;;  %v3477_v56 = vpop.eup %3476 }
 0x39c   : > { %v1413_v60 = vpop.xlane.xlu1 %1412  ;;  %v1059_v49 = vmul.f32 %v3477_v56, %v4178_v38  ;;  %v4291_v38 = vadd.f32 %v4158_v30, %v1399_v5 }
 0x39d   : > { %v1906_v59 = vpop.xlane.xlu2 %1905  ;;  %v1444_v48 = vsub.f32 %v4188_v46, %v1413_v60  ;;  %v4297_v46 = vadd.f32 %v4158_v30, %v4250_v58  ;;  %v4308_v58 = vadd.f32 %v4158_v30, %v4257_v53 }
 0x39e   : > { %v1937_v24 = vsub.f32 %v4192_v13, %v1906_v59  ;;  %1426 = vmax.xlane.f32.xlu1 %v4266_v54 }
 0x3a0   : > { %v4272_v32 = vpop.eup %3478  ;;  %v1953_v45 = vmul.f32 1.442695, %v1937_v24 }
 0x3a1   : > { %v3481_v28 = vpop.eup %3480  ;;  %1494 = vadd.xlane.f32.xlu2 %v4272_v32 }
 0x3a2   : > { %3482 = vpow2.f32 %v1953_v45  ;;  %v1060_v13 = vmul.f32 %v3481_v28, %v4167_v25  ;;  %v1885_v25 = vpop.f32.mrf.mxu0 }
 0x3a4   : > { %v1419_v12 = vpop.xlane.xlu0 %1418  ;;  %v1069_v43 = vpack.c.bf16 %v1060_v13, %v1059_v49  ;;  %v1028_v63 = vpop.xlane.xlu1 %1027 }
 0x3a5   : > { %v1417_v23 = vpop.xlane.xlu2 %1416  ;;  %v1447_v40 = vsub.f32 %v4203_v47, %v1419_v12  ;;  %v1460_v47 = vmul.f32 1.442695, %v1444_v48 }
 0x3a6   : > { %1430 = vmax.xlane.f32.xlu1 %v4276_v20 }
 0x3a7   : > { %v1466_v1 = vmul.f32 1.442695, %v1447_v40  ;;  %v1446_v40 = vsub.f32 %v4200_v19, %v1417_v23 }
 0x3a8   : > { %v4286_v44 = vpop.eup %3482  ;;  %1157 = vmatmul.bf16.gmra.mxu3 %v1069_v43 }
 0x3a9   : > { %3484 = vpow2.f32 %v1466_v1  ;;  %1436 = vmax.xlane.f32.xlu2 %v4282_v14  ;;  %1985 = vadd.xlane.f32.xlu0 %v4286_v44  ;;  %v1404_v1 = vpop.f32.mrf.mxu1 }
 0x3aa   : > { %3486 = vrcp.f32 %v1028_v63  ;;  %v1887_v24 = vpop.f32.mrf.mxu0  ;;  %v4329_v23 = vadd.f32 %v4158_v30, %v1404_v1 }
 0x3ab   : > { %v4314_v13 = vadd.f32 %v4158_v30, %v1887_v24 }
 0x3ac   : > { %v4293_v2 = vpop.xlane.xlu0 %1915 }
 0x3ad   : > { %v1030_v62 = vpop.xlane.xlu2 %1029 }
 0x3ae   : > { %3488 = vrcp.f32 %v1030_v62  ;;  %1434 = vmax.xlane.f32.xlu1 %v4291_v38 }
 0x3af   : > { %v4300_v59 = vpop.eup %3484  ;;  %3490 = vpow2.f32 %v1460_v47 }
 0x3b0   : > { %v3487_v5 = vpop.eup %3486 }
 0x3b1   : > { %1428 = vmax.xlane.f32.xlu0 %v4297_v46  ;;  %1498 = vadd.xlane.f32.xlu2 %v4300_v59  ;;  %v1061_v49 = vmul.f32 %v3487_v5, %v4205_v10  ;;  %v1940_v10 = vsub.f32 %v4172_v37, %v4268_v42  ;;  %v4337_v5 = vld [vmem:[%s3677_s16 + $0x2f8] sm:$0xff] }
 0x3b2   : > { %2105 = vmatpush.bf16.msrb.mxu2 %v4337_v5 }
 0x3b3   : > { %v1959_v47 = vmul.f32 1.442695, %v1940_v10 }
 0x3b4   : > { %v3489_v56 = vpop.eup %3488  ;;  %v1423_v60 = vpop.xlane.xlu1 %1422 }
 0x3b5   : > { %v1421_v45 = vpop.xlane.xlu0 %1420  ;;  %v4304_v28 = vpop.eup %3490  ;;  %v1449_v17 = vsub.f32 %v4229_v26, %v1423_v60  ;;  %v1062_v12 = vmul.f32 %v3489_v56, %v4216_v34  ;;  %v4322_v34 = vadd.f32 %v4158_v30, %v1885_v25  ;;  %v1464_v26 = vmul.f32 1.442695, %v1446_v40 }
 0x3b6   : > { %1492 = vadd.xlane.f32.xlu1 %v4304_v28  ;;  %v1910_v63 = vpop.xlane.xlu2 %1909  ;;  %v1448_v42 = vsub.f32 %v4222_v27, %v1421_v45  ;;  %v1407_v25 = vpop.f32.mrf.mxu1 }
 0x3b7   : > { %v1470_v43 = vmul.f32 1.442695, %v1449_v17  ;;  %v1070_v48 = vpack.c.bf16 %v1062_v12, %v1061_v49  ;;  %v1939_v19 = vsub.f32 %v4226_v15, %v1910_v63  ;;  %v1890_v56 = vpop.f32.mrf.mxu0  ;;  %v1942_v49 = vsub.f32 %v4213_v22, %v4293_v2 }
 0x3b8   : > { %v1468_v15 = vmul.f32 1.442695, %v1448_v42  ;;  %v4364_v22 = vadd.f32 %v4158_v30, %v1407_v25  ;;  %v3306_v42 = vld [vmem:[%s3677_s16 + $0x2e8] sm:$0xff]  ;;  %v3305_v25 = vld [vmem:[%s3677_s16 + $0x2e0] sm:$0xff] }
 0x3b9   : > { %3492 = vpow2.f32 %v1470_v43  ;;  %1432 = vmax.xlane.f32.xlu0 %v4308_v58  ;;  %1162 = vmatmul.bf16.gmra.mxu3 %v1070_v48  ;;  %v1957_v37 = vmul.f32 1.442695, %v1939_v19  ;;  %v4356_v43 = vadd.f32 %v4158_v30, %v1890_v56  ;;  %v1963_v63 = vmul.f32 1.442695, %v1942_v49  ;;  %v4387_v56 = vld [vmem:[%s3677_s16 + $0x2d8] sm:$0xff]  ;;  %v3282_v49 = vld [vmem:[%s3677_s16 + $0x2a8] sm:$0xff] }
 0x3ba   : > { %1923 = vmax.xlane.f32.xlu2 %v4314_v13  ;;  %3494 = vpow2.f32 %v1464_v26 }
 0x3bb   : > { %3496 = vpow2.f32 %v1959_v47 }
 0x3bc   : > { %3498 = vpow2.f32 %v1957_v37  ;;  %v3307_v37 = vld [vmem:[%s3677_s16 + $0x2f0] sm:$0xff] }
 0x3bd   : > { %v4326_v53 = vpop.xlane.xlu0 %1919  ;;  %3500 = vpow2.f32 %v1468_v15  ;;  %2106 = vmatpush.bf16.msrb.mxu2 %v3307_v37  ;;  %v3284_v15 = vld [vmem:[%s3677_s16 + $0x2b8] sm:$0xff] }
 0x3be   : > { %1921 = vmax.xlane.f32.xlu1 %v4322_v34  ;;  %v1409_v12 = vpop.f32.mrf.mxu1  ;;  %1612 = vmatpush.bf16.msrb.mxu3 %v3284_v15 }
 0x3bf   : > { %v4332_v62 = vpop.eup %3492  ;;  %v4359_v1 = vadd.f32 %v4158_v30, %v1409_v12  ;;  %v1892_v10 = vpop.f32.mrf.mxu0  ;;  %v4397_v12 = vld [vmem:[%s3677_s16 + $0x2c8] sm:$0xff] }
 0x3c0   : > { %v4341_v24 = vpop.eup %3494  ;;  %v4374_v26 = vadd.f32 %v4158_v30, %v1892_v10  ;;  %v4402_v10 = vld [vmem:[%s3677_s16 + $0x2c0] sm:$0xff] }
 0x3c1   : > { %1438 = vmax.xlane.f32.xlu0 %v4329_v23  ;;  %v4344_v27 = vpop.eup %3496  ;;  %2107 = vmatpush.bf16.msrb.mxu2 %v3306_v42 }
 0x3c2   : > { %1502 = vadd.xlane.f32.xlu2 %v4332_v62  ;;  %v4346_v45 = vpop.eup %3498 }
 0x3c3   : > { %v4353_v40 = vpop.eup %3500 }
 0x3c5   : > { %v1425_v60 = vpop.xlane.xlu0 %1424  ;;  %2108 = vmatpush.bf16.msrb.mxu2 %v3305_v25 }
 0x3c6   : > { %1496 = vadd.xlane.f32.xlu1 %v4341_v24  ;;  %v1450_v17 = vsub.f32 %v4243_v6, %v1425_v60  ;;  %v3283_v60 = vld [vmem:[%s3677_s16 + $0x2b0] sm:$0xff] }
 0x3c7   : > { %v1895_v19 = vpop.f32.mrf.mxu0  ;;  %1613 = vmatpush.bf16.msrb.mxu3 %v3283_v60  ;;  %v3279_v60 = vld [vmem:[%s3677_s16 + $0x290] sm:$0xff] }
 0x3c8   : > { %v1472_v48 = vmul.f32 1.442695, %v1450_v17  ;;  %v4378_v47 = vadd.f32 %v4158_v30, %v1895_v19  ;;  %v4392_v17 = vld [vmem:[%s3677_s16 + $0x2d0] sm:$0xff]  ;;  %v3280_v19 = vld [vmem:[%s3677_s16 + $0x298] sm:$0xff] }
 0x3c9   : > { %1991 = vadd.xlane.f32.xlu0 %v4344_v27  ;;  %2109 = vmatpush.bf16.msrb.mxu2 %v4387_v56 }
 0x3ca   : > { %1989 = vadd.xlane.f32.xlu2 %v4346_v45  ;;  %3502 = vpow2.f32 %v1472_v48  ;;  %v1914_v48 = vpop.xlane.xlu2 %1913 }
 0x3cb   : > { %3504 = vpow2.f32 %v1963_v63  ;;  %1614 = vmatpush.bf16.msrb.mxu3 %v3282_v49  ;;  %v3281_v63 = vld [vmem:[%s3677_s16 + $0x2a0] sm:$0xff]  ;;  %v1941_v11 = vsub.f32 %v4238_v3, %v1914_v48 }
 0x3cd   : > { %2110 = vmatpush.bf16.msrb.mxu2 %v4392_v17 }
 0x3ce   : > { %1500 = vadd.xlane.f32.xlu1 %v4353_v40 }
 0x3cf   : > { %1615 = vmatpush.bf16.msrb.mxu3 %v3281_v63  ;;  %v1961_v63 = vmul.f32 1.442695, %v1941_v11  ;;  %v1897_v9 = vpop.f32.mrf.mxu0 }
 0x3d0   : > { %v4368_v6 = vpop.eup %3502 }
 0x3d1   : > { %1925 = vmax.xlane.f32.xlu0 %v4356_v43  ;;  %v4370_v2 = vpop.eup %3504  ;;  %2111 = vmatpush.bf16.msrb.mxu2 %v4397_v12 }
 0x3d2   : > { %1442 = vmax.xlane.f32.xlu2 %v4359_v1  ;;  %v1918_v8 = vpop.xlane.xlu2 %1917 }
 0x3d3   : > { %1616 = vmatpush.bf16.msrb.mxu3 %v3280_v19 }
 0x3d5   : > { %2112 = vmatpush.bf16.msrb.mxu2 %v4402_v10 }
 0x3d6   : > { %1440 = vmax.xlane.f32.xlu1 %v4364_v22 }
 0x3d7   : > { %1617 = vmatpush.bf16.msrb.mxu3 %v3279_v60  ;;  %v4413_v60 = vpop.f32.mrf.mxu3 }
 0x3d9   : > { %1504 = vadd.xlane.f32.xlu0 %v4368_v6 }
 0x3da   : > { %1995 = vadd.xlane.f32.xlu2 %v4370_v2 }
 0x3db   : > { %1618 = vmatpush.bf16.msrb.mxu3 %v3278_v50  ;;  %v4415_v50 = vpop.f32.mrf.mxu1 }
 0x3de   : > { %1927 = vmax.xlane.f32.xlu1 %v4374_v26 }
 0x3df   : > { %1619 = vmatpush.bf16.msrb.mxu3 %v3277_v4 }
 0x3e1   : > { %1929 = vmax.xlane.f32.xlu0 %v4378_v47 }
 0x3e3   : > { %3317 = vmatpush.bf16.msra.mxu3 %v4337_v5 }
 0x3e7   : > { %3318 = vmatpush.bf16.msra.mxu3 %v3307_v37 }
 0x3eb   : > { %3319 = vmatpush.bf16.msra.mxu3 %v3306_v42  ;;  %v4431_v42 = vpop.f32.mrf.mxu3 }
 0x3ef   : > { %3320 = vmatpush.bf16.msra.mxu3 %v3305_v25 }
 0x3f3   : > { %3321 = vmatpush.bf16.msra.mxu3 %v4387_v56 }
 0x3f7   : > { %3322 = vmatpush.bf16.msra.mxu3 %v4392_v17 }
 0x3fb   : > { %3323 = vmatpush.bf16.msra.mxu3 %v4397_v12 }
 0x3ff   : > { %3324 = vmatpush.bf16.msra.mxu3 %v4402_v10 }
 0x409   : > { %v1988_v15 = vpop.xlane.xlu1 %1987 }
 0x411   : > { %v1427_v51 = vpop.xlane.xlu1 %1426 }
 0x412   : > { %v1451_v49 = vsub.f32 %v4266_v54, %v1427_v51 }
 0x414   : > { %v1474_v31 = vmul.f32 1.442695, %v1451_v49  ;;  %v1495_v21 = vpop.xlane.xlu2 %1494 }
 0x416   : > { %3506 = vpow2.f32 %v1474_v31 }
 0x417   : > { %3508 = vrcp.f32 %v1988_v15 }
 0x418   : > { %3510 = vpow2.f32 %v1961_v63 }
 0x419   : > { %v1431_v36 = vpop.xlane.xlu1 %1430 }
 0x41a   : > { %v1453_v19 = vsub.f32 %v4276_v20, %v1431_v36 }
 0x41c   : > { %v4417_v51 = vpop.eup %3506  ;;  %v1478_v3 = vmul.f32 1.442695, %v1453_v19  ;;  %v4419_v54 = vpop.xlane.xlu2 %1436  ;;  %v1943_v19 = vsub.f32 %v4246_v39, %v1918_v8 }
 0x41d   : > { %v1986_v4 = vpop.xlane.xlu0 %1985  ;;  %1506 = vadd.xlane.f32.xlu1 %v4417_v51  ;;  %v3509_v31 = vpop.eup %3508  ;;  %v1456_v10 = vsub.f32 %v4282_v14, %v4419_v54 }
 0x41e   : > { %3512 = vrcp.f32 %v1986_v4  ;;  %v4422_v11 = vpop.eup %3510  ;;  %v2034_v49 = vmul.f32 %v3509_v31, %v4261_v7  ;;  %v4440_v31 = vadd.f32 %v4158_v30, %v1897_v9 }
 0x41f   : > { %3514 = vpow2.f32 %v1478_v3  ;;  %v1902_v3 = vpop.f32.mrf.mxu1 }
 0x420   : > { %3516 = vrcp.f32 %v1495_v21 }
 0x421   : > { %v1435_v36 = vpop.xlane.xlu1 %1434 }
 0x424   : > { %v3513_v20 = vpop.eup %3512  ;;  %v1499_v37 = vpop.xlane.xlu2 %1498 }
 0x425   : > { %v4424_v5 = vpop.eup %3514  ;;  %v1429_v48 = vpop.xlane.xlu0 %1428  ;;  %v2033_v15 = vmul.f32 %v3513_v20, %v4286_v44  ;;  %1993 = vadd.xlane.f32.xlu1 %v4422_v11  ;;  %v4436_v44 = vadd.f32 %v4158_v30, %v1902_v3  ;;  %v1944_v20 = vsub.f32 %v4235_v35, %v4326_v53  ;;  %v4463_v3 = vadd.f32 %v4158_v30, %v4415_v50 }
 0x426   : > { %v1452_v63 = vsub.f32 %v4297_v46, %v1429_v48  ;;  %1510 = vadd.xlane.f32.xlu0 %v4424_v5  ;;  %v1965_v46 = vmul.f32 1.442695, %v1943_v19  ;;  %v3517_v21 = vpop.eup %3516 }
 0x427   : > { %v2049_v25 = vpack.c.bf16 %v2034_v49, %v2033_v15  ;;  %v4452_v15 = vpop.f32.mrf.mxu3  ;;  %v1455_v49 = vsub.f32 %v4291_v38, %v1435_v36  ;;  %v1541_v19 = vmul.f32 %v3517_v21, %v4272_v32  ;;  %v1967_v35 = vmul.f32 1.442695, %v1944_v20 }
 0x428   : > { %v1476_v4 = vmul.f32 1.442695, %v1452_v63 }
 0x429   : > { %2113 = vmatmul.bf16.vlgmr.msrb.gmra.mxu2 %v2049_v25  ;;  %v1493_v7 = vpop.xlane.xlu1 %1492  ;;  %v1482_v25 = vmul.f32 1.442695, %v1455_v49 }
 0x42a   : > { %3518 = vpow2.f32 %v1476_v4 }
 0x42b   : > { %3520 = vrcp.f32 %v1493_v7 }
 0x42c   : > { %3522 = vpow2.f32 %v1965_v46  ;;  %v1484_v46 = vmul.f32 1.442695, %v1456_v10 }
 0x42d   : > { %v1433_v8 = vpop.xlane.xlu0 %1432  ;;  %v4442_v39 = vpop.xlane.xlu2 %1923  ;;  %1931 = vmax.xlane.f32.xlu1 %v4440_v31 }
 0x42e   : > { %v1454_v56 = vsub.f32 %v4308_v58, %v1433_v8  ;;  %1935 = vmax.xlane.f32.xlu0 %v4436_v44 }
 0x42f   : > { %v4474_v50 = vpop.f32.mrf.mxu3 }
 0x430   : > { %v4450_v17 = vpop.eup %3518  ;;  %v1480_v9 = vmul.f32 1.442695, %v1454_v56 }
 0x431   : > { %v3521_v48 = vpop.eup %3520  ;;  %1508 = vadd.xlane.f32.xlu2 %v4450_v17  ;;  %v1922_v58 = vpop.xlane.xlu1 %1921 }
 0x432   : > { %3524 = vpow2.f32 %v1480_v9  ;;  %v1540_v63 = vmul.f32 %v3521_v48, %v4304_v28  ;;  %v4459_v12 = vpop.eup %3522  ;;  %v1945_v30 = vsub.f32 %v4322_v34, %v1922_v58  ;;  %v1946_v34 = vsub.f32 %v4314_v13, %v4442_v39 }
 0x433   : > { %3526 = vpow2.f32 %v1967_v35 }
 0x434   : > { %v1556_v53 = vpack.c.bf16 %v1541_v19, %v1540_v63  ;;  %3528 = vrcp.f32 %v1499_v37  ;;  %v1969_v56 = vmul.f32 1.442695, %v1945_v30 }
 0x435   : > { %v1439_v38 = vpop.xlane.xlu0 %1438  ;;  %v1503_v36 = vpop.xlane.xlu2 %1502  ;;  %3530 = vpow2.f32 %v1482_v25 }
 0x436   : > { %v1457_v4 = vsub.f32 %v4329_v23, %v1439_v38  ;;  %1620 = vmatmul.bf16.vlgmr.msrb.gmra.mxu3 %v1556_v53  ;;  %1997 = vadd.xlane.f32.xlu0 %v4459_v12  ;;  %v1971_v38 = vmul.f32 1.442695, %v1946_v34 }
 0x437   : > { %v4489_v35 = vpop.f32.mrf.mxu3 }
 0x438   : > { %v4467_v32 = vpop.eup %3524  ;;  %v1486_v28 = vmul.f32 1.442695, %v1457_v4 }
 0x439   : > { %1933 = vmax.xlane.f32.xlu2 %v4463_v3  ;;  %1512 = vadd.xlane.f32.xlu1 %v4467_v32  ;;  %v1497_v23 = vpop.xlane.xlu1 %1496  ;;  %v4476_v7 = vpop.eup %3526 }
 0x43a   : > { %3532 = vpow2.f32 %v1486_v28  ;;  %v3529_v8 = vpop.eup %3528 }
 0x43b   : > { %3534 = vrcp.f32 %v1497_v23  ;;  %v4478_v14 = vpop.eup %3530  ;;  %v1543_v49 = vmul.f32 %v3529_v8, %v4300_v59 }
 0x43d   : > { %v1992_v37 = vpop.xlane.xlu0 %1991  ;;  %v1990_v21 = vpop.xlane.xlu2 %1989 }
 0x43e   : > { %3536 = vrcp.f32 %v1992_v37 }
 0x43f   : > { %3538 = vrcp.f32 %v1990_v21 }
 0x440   : > { %v4480_v54 = vpop.eup %3532  ;;  %3540 = vpow2.f32 %v1484_v46 }
 0x441   : > { %v3535_v20 = vpop.eup %3534  ;;  %1514 = vadd.xlane.f32.xlu2 %v4478_v14  ;;  %1999 = vadd.xlane.f32.xlu1 %v4476_v7  ;;  %3542 = vpow2.f32 %v1969_v56  ;;  %v1501_v9 = vpop.xlane.xlu1 %1500 }
 0x442   : > { %1518 = vadd.xlane.f32.xlu0 %v4480_v54  ;;  %v1542_v48 = vmul.f32 %v3535_v20, %v4341_v24  ;;  %3544 = vrcp.f32 %v1501_v9  ;;  %v4502_v56 = vpop.f32.mrf.mxu3 }
 0x443   : > { %3546 = vrcp.f32 %v1503_v36 }
 0x444   : > { %v3537_v58 = vpop.eup %3536  ;;  %v1557_v63 = vpack.c.bf16 %v1543_v49, %v1542_v48  ;;  %3548 = vpow2.f32 %v1971_v38 }
 0x445   : > { %v3539_v19 = vpop.eup %3538  ;;  %v1926_v53 = vpop.xlane.xlu0 %1925  ;;  %v2036_v25 = vmul.f32 %v3537_v58, %v4344_v27 }
 0x446   : > { %v1443_v4 = vpop.xlane.xlu2 %1442  ;;  %1625 = vmatmul.bf16.gmra.mxu3 %v1557_v63  ;;  %v2035_v13 = vmul.f32 %v3539_v19, %v4346_v45  ;;  %v4493_v39 = vpop.eup %3540  ;;  %v1947_v27 = vsub.f32 %v4356_v43, %v1926_v53 }
 0x447   : > { %v1459_v24 = vsub.f32 %v4359_v1, %v1443_v4  ;;  %v4496_v28 = vpop.eup %3542 }
 0x448   : > { %v2050_v59 = vpack.c.bf16 %v2036_v25, %v2035_v13  ;;  %v3545_v23 = vpop.eup %3544  ;;  %v1973_v37 = vmul.f32 1.442695, %v1947_v27 }
 0x449   : > { %v1490_v10 = vmul.f32 1.442695, %v1459_v24  ;;  %1516 = vadd.xlane.f32.xlu2 %v4493_v39  ;;  %2001 = vadd.xlane.f32.xlu1 %v4496_v28  ;;  %v1441_v30 = vpop.xlane.xlu1 %1440  ;;  %v3547_v8 = vpop.eup %3546  ;;  %v1544_v21 = vmul.f32 %v3545_v23, %v4353_v40 }
 0x44a   : > { %2118 = vmatmul.bf16.gmra.mxu2 %v2050_v59  ;;  %v1458_v45 = vsub.f32 %v4364_v22, %v1441_v30  ;;  %v4504_v36 = vpop.eup %3548  ;;  %v1545_v22 = vmul.f32 %v3547_v8, %v4332_v62  ;;  %v4519_v53 = vpop.f32.mrf.mxu3 }
 0x44b   : > { %3550 = vpow2.f32 %v1490_v10 }
 0x44c   : > { %v1488_v46 = vmul.f32 1.442695, %v1458_v45  ;;  %v1558_v9 = vpack.c.bf16 %v1545_v22, %v1544_v21 }
 0x44d   : > { %v1505_v1 = vpop.xlane.xlu0 %1504 }
 0x44e   : > { %3552 = vpow2.f32 %v1488_v46  ;;  %v1996_v10 = vpop.xlane.xlu2 %1995 }
 0x44f   : > { %3554 = vpow2.f32 %v1973_v37 }
 0x451   : > { %v4507_v20 = vpop.eup %3550  ;;  %2003 = vadd.xlane.f32.xlu2 %v4504_v36  ;;  %v1928_v43 = vpop.xlane.xlu1 %1927 }
 0x452   : > { %1522 = vadd.xlane.f32.xlu1 %v4507_v20  ;;  %v1948_v34 = vsub.f32 %v4374_v26, %v1928_v43 }
 0x454   : > { %v4513_v48 = vpop.eup %3552  ;;  %v1975_v49 = vmul.f32 1.442695, %v1948_v34 }
 0x455   : > { %v1930_v58 = vpop.xlane.xlu0 %1929  ;;  %1520 = vadd.xlane.f32.xlu0 %v4513_v48  ;;  %v4517_v40 = vpop.eup %3554 }
 0x456   : > { %v1949_v63 = vsub.f32 %v4378_v47, %v1930_v58  ;;  %1630 = vmatmul.bf16.gmra.mxu3 %v1558_v9  ;;  %3556 = vpow2.f32 %v1975_v49  ;;  %v4528_v47 = vpop.f32.mrf.mxu3 }
 0x458   : > { %v1977_v19 = vmul.f32 1.442695, %v1949_v63 }
 0x459   : > { %2005 = vadd.xlane.f32.xlu2 %v4517_v40 }
 0x45a   : > { %3558 = vpow2.f32 %v1977_v19 }
 0x45b   : > { %3560 = vrcp.f32 %v1505_v1 }
 0x45c   : > { %v4522_v62 = vpop.eup %3556 }
 0x45d   : > { %2007 = vadd.xlane.f32.xlu0 %v4522_v62 }
 0x45e   : > { %v4530_v25 = vpop.f32.mrf.mxu3 }
 0x460   : > { %v4525_v26 = vpop.eup %3558 }
 0x461   : > { %2009 = vadd.xlane.f32.xlu1 %v4525_v26  ;;  %v3561_v27 = vpop.eup %3560 }
 0x462   : > { %v1546_v46 = vmul.f32 %v3561_v27, %v4368_v6 }
 0x466   : > { %v4532_v38 = vpop.f32.mrf.mxu3 }
 0x46e   : > { %v4534_v4 = vpop.f32.mrf.mxu3 }
 0x476   : > { %v4536_v13 = vpop.f32.mrf.mxu3 }
 0x47e   : > { %v4538_v59 = vpop.f32.mrf.mxu3 }
 0x486   : > { %v4542_v21 = vpop.f32.mrf.mxu3 }
 0x490   : > { %v1507_v24 = vpop.xlane.xlu1 %1506 }
 0x491   : > { %3562 = vrcp.f32 %v1507_v24 }
 0x492   : > { %3564 = vrcp.f32 %v1996_v10  ;;  %v4548_v10 = vpop.f32.mrf.mxu3 }
 0x497   : > { %v3563_v30 = vpop.eup %3562 }
 0x498   : > { %v1994_v45 = vpop.xlane.xlu1 %1993  ;;  %v1547_v37 = vmul.f32 %v3563_v30, %v4417_v51  ;;  %v3565_v1 = vpop.eup %3564 }
 0x499   : > { %v1511_v23 = vpop.xlane.xlu0 %1510  ;;  %3566 = vrcp.f32 %v1994_v45  ;;  %v2038_v49 = vmul.f32 %v3565_v1, %v4370_v2 }
 0x49a   : > { %v1559_v8 = vpack.c.bf16 %v1547_v37, %v1546_v46  ;;  %3568 = vrcp.f32 %v1511_v23  ;;  %v4559_v1 = vpop.f32.mrf.mxu3 }
 0x49c   : > { %1635 = vmatmul.bf16.gmra.mxu3 %v1559_v8 }
 0x49f   : > { %v3567_v43 = vpop.eup %3566 }
 0x4a0   : > { %v1932_v22 = vpop.xlane.xlu1 %1931  ;;  %v2037_v9 = vmul.f32 %v3567_v43, %v4422_v11  ;;  %v3569_v27 = vpop.eup %3568 }
 0x4a1   : > { %v1936_v34 = vpop.xlane.xlu0 %1935  ;;  %v1950_v58 = vsub.f32 %v4440_v31, %v1932_v22 }
 0x4a2   : > { %v1952_v63 = vsub.f32 %v4436_v44, %v1936_v34  ;;  %v2051_v6 = vpack.c.bf16 %v2038_v49, %v2037_v9  ;;  %v1549_v44 = vmul.f32 %v3569_v27, %v4424_v5  ;;  %v1168_v27 = vpack.c.bf16 %v4413_v60, %v4413_v60 }
 0x4a3   : > { %v1979_v51 = vmul.f32 1.442695, %v1950_v58  ;;  %v1169_v58 = vpack.c.bf16 %v4431_v42, %v4431_v42 }
 0x4a4   : > { %v1983_v19 = vmul.f32 1.442695, %v1952_v63  ;;  %v1509_v24 = vpop.xlane.xlu2 %1508  ;;  %2123 = vmatmul.bf16.gmra.mxu2 %v2051_v6 }
 0x4a5   : > { %3570 = vrcp.f32 %v1509_v24  ;;  %v2227_v42 = vunpack.c.l.b16 %v1169_v58 }
 0x4a6   : > { %3572 = vpow2.f32 %v1979_v51 }
 0x4a7   : > { %3574 = vpow2.f32 %v1983_v19 }
 0x4a9   : > { %v1998_v43 = vpop.xlane.xlu0 %1997 }
 0x4ab   : > { %v3571_v30 = vpop.eup %3570 }
 0x4ac   : > { %v4550_v11 = vpop.eup %3572  ;;  %v1934_v2 = vpop.xlane.xlu2 %1933  ;;  %v1548_v31 = vmul.f32 %v3571_v30, %v4450_v17  ;;  %v1173_v30 = vpack.c.bf16 %v4502_v56, %v4502_v56 }
 0x4ad   : > { %v4554_v45 = vpop.eup %3574  ;;  %v1951_v23 = vsub.f32 %v4463_v3, %v1934_v2  ;;  %v1513_v46 = vpop.xlane.xlu1 %1512  ;;  %2011 = vadd.xlane.f32.xlu2 %v4550_v11 }
 0x4ae   : > { %2015 = vadd.xlane.f32.xlu1 %v4554_v45  ;;  %v1560_v37 = vpack.c.bf16 %v1549_v44, %v1548_v31  ;;  %v4566_v63 = vpop.f32.mrf.mxu2 }
 0x4af   : > { %v1981_v8 = vmul.f32 1.442695, %v1951_v23  ;;  %v1172_v23 = vpack.c.bf16 %v4489_v35, %v4489_v35 }
 0x4b0   : > { %1640 = vmatmul.bf16.gmra.mxu3 %v1560_v37 }
 0x4b1   : > { %3576 = vpow2.f32 %v1981_v8  ;;  %v2230_v56 = vunpack.c.l.b16 %v1172_v23 }
 0x4b2   : > { %3578 = vrcp.f32 %v1513_v46 }
 0x4b3   : > { %3580 = vrcp.f32 %v1998_v43  ;;  %v2231_v43 = vunpack.c.l.b16 %v1173_v30 }
 0x4b4   : > { %v1515_v17 = vpop.xlane.xlu2 %1514 }
 0x4b5   : > { %3582 = vrcp.f32 %v1515_v17  ;;  %v2000_v5 = vpop.xlane.xlu1 %1999  ;;  %v1519_v46 = vpop.xlane.xlu0 %1518  ;;  %v1175_v17 = vpack.c.bf16 %v4528_v47, %v4528_v47  ;;  %v2244_v47 = vpack.c.b16 %v2231_v43, %v2230_v56 }
 0x4b6   : > { %3584 = vrcp.f32 %v2000_v5  ;;  %v1170_v5 = vpack.c.bf16 %v4452_v15, %v4452_v15  ;;  %v4592_v58 = vpop.f32.mrf.mxu2 }
 0x4b7   : > { %v4561_v22 = vpop.eup %3576 }
 0x4b8   : > { %2013 = vadd.xlane.f32.xlu0 %v4561_v22  ;;  %v3579_v3 = vpop.eup %3578 }
 0x4b9   : > { %v1621_v34 = vpop.f32.mrf.mxu3  ;;  %v3581_v9 = vpop.eup %3580  ;;  %v1550_v19 = vmul.f32 %v3579_v3, %v4467_v32 }
 0x4ba   : > { %v2039_v2 = vmul.f32 %v3581_v9, %v4459_v12  ;;  %v1661_v32 = vpack.c.bf16 %v1621_v34, %v1621_v34  ;;  %v1171_v12 = vpack.c.bf16 %v4474_v50, %v4474_v50  ;;  %v1181_v50 = vpack.c.bf16 %v4542_v21, %v4542_v21 }
 0x4bb   : > { %v3583_v49 = vpop.eup %3582  ;;  %v2228_v21 = vunpack.c.l.b16 %v1170_v5 }
 0x4bc   : > { %v3585_v6 = vpop.eup %3584  ;;  %v1517_v51 = vpop.xlane.xlu2 %1516  ;;  %v1551_v24 = vmul.f32 %v3583_v49, %v4478_v14  ;;  %v2226_v14 = vunpack.c.l.b16 %v1168_v27  ;;  %v4584_v3 = vunpack.c.l.b16 %v1661_v32  ;;  %v1174_v49 = vpack.c.bf16 %v4519_v53, %v4519_v53 }
 0x4bd   : > { %v2040_v31 = vmul.f32 %v3585_v6, %v4476_v7  ;;  %v2002_v8 = vpop.xlane.xlu1 %2001  ;;  %3586 = vrcp.f32 %v1517_v51  ;;  %v2229_v6 = vunpack.c.l.b16 %v1171_v12 }
 0x4be   : > { %v1561_v44 = vpack.c.bf16 %v1551_v24, %v1550_v19  ;;  %3588 = vrcp.f32 %v1519_v46  ;;  %v2242_v35 = vpack.c.b16 %v2227_v42, %v2226_v14  ;;  %v2233_v19 = vunpack.c.l.b16 %v1175_v17 }
 0x4bf   : > { %v2052_v37 = vpack.c.bf16 %v2040_v31, %v2039_v2  ;;  %3590 = vrcp.f32 %v2002_v8  ;;  %v1180_v24 = vpack.c.bf16 %v4538_v59, %v4538_v59  ;;  %v2232_v30 = vunpack.c.l.b16 %v1174_v49 }
 0x4c0   : > { %1645 = vmatmul.bf16.gmra.mxu3 %v1561_v44  ;;  %v2239_v2 = vunpack.c.l.b16 %v1181_v50  ;;  %v1177_v44 = vpack.c.bf16 %v4532_v38, %v4532_v38  ;;  %v2243_v42 = vpack.c.b16 %v2229_v6, %v2228_v21  ;;  %v1176_v8 = vpack.c.bf16 %v4530_v25, %v4530_v25 }
 0x4c1   : > { %2128 = vmatmul.bf16.gmra.mxu2 %v2052_v37  ;;  %v1623_v60 = vpop.f32.mrf.mxu3  ;;  %v1179_v37 = vpack.c.bf16 %v4536_v13, %v4536_v13  ;;  %v2238_v32 = vunpack.c.l.b16 %v1180_v24  ;;  %v2245_v59 = vpack.c.b16 %v2233_v19, %v2232_v30  ;;  %v1182_v49 = vpack.c.bf16 %v4548_v10, %v4548_v10 }
 0x4c2   : > { %v1662_v7 = vpack.c.bf16 %v1623_v60, %v1623_v60  ;;  %v2235_v13 = vunpack.c.l.b16 %v1177_v44  ;;  %v2155_v10 = vpack.c.bf16 %v4592_v58, %v4592_v58 }
 0x4c3   : > { %v3587_v51 = vpop.eup %3586  ;;  %v2248_v60 = vpack.c.b16 %v2239_v2, %v2238_v32  ;;  %v2237_v25 = vunpack.c.l.b16 %v1179_v37  ;;  %v2240_v21 = vunpack.c.l.b16 %v1182_v49 }
 0x4c4   : > { %v4586_v34 = vunpack.c.l.b16 %v1662_v7  ;;  %v2004_v9 = vpop.xlane.xlu2 %2003  ;;  %v3589_v53 = vpop.eup %3588  ;;  %v1552_v23 = vmul.f32 %v3587_v51, %v4493_v39  ;;  %v1178_v39 = vpack.c.bf16 %v4534_v4, %v4534_v4  ;;  %v1183_v4 = vpack.c.bf16 %v4559_v1, %v4559_v1 }
 0x4c5   : > { %3592 = vrcp.f32 %v2004_v9  ;;  %2250 = vrot.lane.b32.xlu2 %v2242_v35, %s3635_s20  ;;  %v3591_v27 = vpop.eup %3590  ;;  %v1553_v14 = vmul.f32 %v3589_v53, %v4480_v54  ;;  %v2234_v35 = vunpack.c.l.b16 %v1176_v8  ;;  %v1523_v54 = vpop.xlane.xlu1 %1522  ;;  %v2339_v32 = vunpack.c.l.b16 %v2155_v10 }
 0x4c6   : > { %v2298_v15 = vpack.c.b16 %v4586_v34, %v4584_v3  ;;  %v2041_v43 = vmul.f32 %v3591_v27, %v4496_v28  ;;  %v2236_v28 = vunpack.c.l.b16 %v1178_v39  ;;  %v2241_v51 = vunpack.c.l.b16 %v1183_v4 }
 0x4c7   : > { %2254 = vrot.lane.b32.xlu1 %v2244_v47, %s3635_s20  ;;  %v1562_v56 = vpack.c.bf16 %v1553_v14, %v1552_v23  ;;  %v2246_v5 = vpack.c.b16 %v2235_v13, %v2234_v35 }
 0x4c8   : > { %v1521_v31 = vpop.xlane.xlu0 %1520  ;;  %v2247_v9 = vpack.c.b16 %v2237_v25, %v2236_v28 }
 0x4c9   : > { %3594 = vrcp.f32 %v1521_v31  ;;  %v2249_v31 = vpack.c.b16 %v2241_v51, %v2240_v21 }
 0x4cb   : > { %v3593_v46 = vpop.eup %3592 }
 0x4cc   : > { %2252 = vrot.lane.b32.xlu0 %v2243_v42, %s3635_s20  ;;  %v2042_v38 = vmul.f32 %v3593_v46, %v4504_v36  ;;  %v2006_v7 = vpop.xlane.xlu2 %2005  ;;  %v2154_v46 = vpack.c.bf16 %v4566_v63, %v4566_v63 }
 0x4cd   : > { %v2119_v12 = vpop.f32.mrf.mxu2  ;;  %2256 = vrot.lane.b32.xlu2 %v2245_v59, %s3635_s20  ;;  %3596 = vrcp.f32 %v2006_v7 }
 0x4ce   : > { %v2053_v17 = vpack.c.bf16 %v2042_v38, %v2041_v43  ;;  %v2156_v50 = vpack.c.bf16 %v2119_v12, %v2119_v12  ;;  %v2338_v8 = vunpack.c.l.b16 %v2154_v46 }
 0x4cf   : > { %2262 = vrot.lane.b32.xlu1 %v2248_v60, %s3635_s20  ;;  %v3595_v6 = vpop.eup %3594 }
 0x4d0   : > { %1650 = vmatmul.bf16.gmra.mxu3 %v1562_v56  ;;  %v2008_v36 = vpop.xlane.xlu0 %2007  ;;  %v2340_v30 = vunpack.c.l.b16 %v2156_v50  ;;  %v1554_v44 = vmul.f32 %v3595_v6, %v4513_v48  ;;  %v2354_v48 = vpack.c.b16 %v2339_v32, %v2338_v8 }
 0x4d1   : > { %2133 = vmatmul.bf16.gmra.mxu2 %v2053_v17  ;;  %3598 = vrcp.f32 %v2008_v36 }
 0x4d2   : > { %3600 = vrcp.f32 %v1523_v54 }
 0x4d3   : > { %v3597_v24 = vpop.eup %3596 }
 0x4d4   : > { %2258 = vrot.lane.b32.xlu0 %v2246_v5, %s3635_s20  ;;  %v2043_v23 = vmul.f32 %v3597_v24, %v4517_v40  ;;  %v1626_v40 = vpop.f32.mrf.mxu3  ;;  %v2010_v43 = vpop.xlane.xlu1 %2009 }
 0x4d5   : > { %v2121_v47 = vpop.f32.mrf.mxu2  ;;  %2260 = vrot.lane.b32.xlu2 %v2247_v9, %s3635_s20  ;;  %3602 = vrcp.f32 %v2010_v43 }
 0x4d6   : > { %v2157_v19 = vpack.c.bf16 %v2121_v47, %v2121_v47 }
 0x4d7   : > { %v3599_v53 = vpop.eup %3598 }
 0x4d8   : > { %v2341_v1 = vunpack.c.l.b16 %v2157_v19  ;;  %v3601_v27 = vpop.eup %3600  ;;  %v2044_v2 = vmul.f32 %v3599_v53, %v4522_v62 }
 0x4d9   : > { %v1555_v37 = vmul.f32 %v3601_v27, %v4507_v20 }
 0x4da   : > { %v2355_v42 = vpack.c.b16 %v2341_v1, %v2340_v30  ;;  %v2054_v62 = vpack.c.bf16 %v2044_v2, %v2043_v23  ;;  %v1663_v2 = vpack.c.bf16 %v1626_v40, %v1626_v40 }
 0x4db   : > { %v1563_v59 = vpack.c.bf16 %v1555_v37, %v1554_v44  ;;  %v3603_v39 = vpop.eup %3602  ;;  %v4808_v44 = vpack.c.b16 %v4117_v57, %v4115_v52 }
 0x4dc   : > { %2264 = vrot.lane.b32.xlu0 %v2249_v31, %s3635_s20  ;;  %v1628_v58 = vpop.f32.mrf.mxu3  ;;  %v2045_v17 = vmul.f32 %v3603_v39, %v4525_v26 }
 0x4dd   : > { %2364 = vrot.lane.b32.xlu2 %v2355_v42, %s3636_s21  ;;  %v1664_v1 = vpack.c.bf16 %v1628_v58, %v1628_v58 }
 0x4df   : > { %v2285_v10 = vunpack.c.l.b16 %v1664_v1 }
 0x4e0   : > { %1655 = vmatmul.bf16.gmra.mxu3 %v1563_v59 }
 0x4e1   : > { %2138 = vmatmul.bf16.gmra.mxu2 %v2054_v62 }
 0x4e4   : > { %2362 = vrot.lane.b32.xlu0 %v2354_v48, %s3636_s21  ;;  %v4632_v14 = vpop.f32.mrf.mxu3 }
 0x4ec   : > { %v4634_v63 = vpop.f32.mrf.mxu3 }
 0x51f   : > { %v1636_v38 = vpop.f32.mrf.mxu3 }
 0x520   : > { %v2012_v20 = vpop.xlane.xlu2 %2011  ;;  %v1667_v13 = vpack.c.bf16 %v1636_v38, %v1636_v38 }
 0x521   : > { %3604 = vrcp.f32 %v2012_v20  ;;  %v2016_v12 = vpop.xlane.xlu1 %2015 }
 0x522   : > { %3606 = vrcp.f32 %v2016_v12  ;;  %v4640_v4 = vunpack.c.l.b16 %v1667_v13  ;;  %v4809_v12 = vpack.c.b16 %v4150_v61, %v4148_v29 }
 0x527   : > { %v3605_v60 = vpop.eup %3604  ;;  %v2124_v7 = vpop.f32.mrf.mxu2 }
 0x528   : > { %v4636_v56 = vpop.permute.xlu2 %2250  ;;  %v2046_v25 = vmul.f32 %v3605_v60, %v4550_v11  ;;  %v1638_v35 = vpop.f32.mrf.mxu3  ;;  %v2158_v49 = vpack.c.bf16 %v2124_v7, %v2124_v7  ;;  %v1666_v7 = vpack.c.bf16 %v4634_v63, %v4634_v63 }
 0x529   : > { %v1668_v54 = vpack.c.bf16 %v1638_v35, %v1638_v35  ;;  %v3607_v50 = vpop.eup %3606 }
 0x52a   : > { %v2055_v28 = vpack.c.bf16 %v2046_v25, %v2045_v17  ;;  %v2048_v51 = vmul.f32 %v3607_v50, %v4554_v45  ;;  %v2342_v19 = vunpack.c.l.b16 %v2158_v49  ;;  %v2284_v45 = vunpack.c.l.b16 %v1663_v2 }
 0x52b   : > { %v2014_v36 = vpop.xlane.xlu0 %2013  ;;  %v4642_v5 = vunpack.c.l.b16 %v1668_v54  ;;  %v1665_v25 = vpack.c.bf16 %v4632_v14, %v4632_v14 }
 0x52c   : > { %3608 = vrcp.f32 %v2014_v36  ;;  %2143 = vmatmul.bf16.gmra.mxu2 %v2055_v28  ;;  %v2287_v28 = vunpack.c.l.b16 %v1666_v7 }
 0x52d   : > { %v2301_v9 = vpack.c.b16 %v4642_v5, %v4640_v4  ;;  %v2286_v36 = vunpack.c.l.b16 %v1665_v25  ;;  %v677_v4 = vpack.c.bf16 %v4056_v33, %v4056_v33 }
 0x52f   : > { %v2126_v47 = vpop.f32.mrf.mxu2  ;;  %v2300_v49 = vpack.c.b16 %v2287_v28, %v2286_v36 }
 0x530   : > { %v4646_v26 = vpop.permute.xlu2 %2256  ;;  %v2159_v11 = vpack.c.bf16 %v2126_v47, %v2126_v47 }
 0x532   : > { %v3609_v6 = vpop.eup %3608  ;;  %v2343_v53 = vunpack.c.l.b16 %v2159_v11 }
 0x533   : > { %v2047_v24 = vmul.f32 %v3609_v6, %v4561_v22  ;;  %v1641_v21 = vpop.f32.mrf.mxu3  ;;  %v2299_v22 = vpack.c.b16 %v2285_v10, %v2284_v45 }
 0x534   : > { %v2356_v30 = vpack.c.b16 %v2343_v53, %v2342_v19  ;;  %v1669_v62 = vpack.c.bf16 %v1641_v21, %v1641_v21 }
 0x535   : > { %v2056_v27 = vpack.c.bf16 %v2048_v51, %v2047_v24 }
 0x536   : > { %2366 = vrot.lane.b32.xlu1 %v2356_v30, %s3636_s21  ;;  %v2290_v59 = vunpack.c.l.b16 %v1669_v62 }
 0x537   : > { %2148 = vmatmul.bf16.vlgmr.msra.gmra.mxu3 %v2056_v27 }
 0x538   : > { %v2261_v31 = vpop.permute.xlu2 %2260 }
 0x539   : > { %v4655_v42 = vsel %vm328_vm0, %v4808_v44, %v2261_v31 }
 0x53b   : > { %v1643_v23 = vpop.f32.mrf.mxu3 }
 0x53c   : > { %v1670_v46 = vpack.c.bf16 %v1643_v23, %v1643_v23 }
 0x53e   : > { %v4657_v37 = vpop.permute.xlu0 %2252  ;;  %2308 = vrot.lane.b32.xlu1 %v2299_v22, %s3637_s22  ;;  %v2291_v32 = vunpack.c.l.b16 %v1670_v46 }
 0x540   : > { %v2302_v40 = vpack.c.b16 %v2291_v32, %v2290_v59 }
 0x543   : > { %v1646_v8 = vpop.f32.mrf.mxu3 }
 0x544   : > { %v2129_v48 = vpop.f32.mrf.mxu2  ;;  %v1671_v47 = vpack.c.bf16 %v1646_v8, %v1646_v8 }
 0x545   : > { %v2160_v52 = vpack.c.bf16 %v2129_v48, %v2129_v48  ;;  %v4688_v48 = vpop.permute.xlu1 %2254 }
 0x546   : > { %v4660_v58 = vpop.permute.xlu0 %2258  ;;  %2314 = vrot.lane.b32.xlu1 %v2302_v40, %s3637_s22  ;;  %v2292_v51 = vunpack.c.l.b16 %v1671_v47 }
 0x547   : > { %v2344_v39 = vunpack.c.l.b16 %v2160_v52  ;;  %v678_v52 = vpack.c.bf16 %v4074_v18, %v4074_v18  ;;  %v683_v18 = vpack.c.bf16 %v4105_v16, %v4105_v16 }
 0x54b   : > { %v1648_v57 = vpop.f32.mrf.mxu3 }
 0x54c   : > { %v2131_v43 = vpop.f32.mrf.mxu2  ;;  %v1672_v50 = vpack.c.bf16 %v1648_v57, %v1648_v57  ;;  %v2188_v57 = vunpack.c.l.b16 %v677_v4 }
 0x54d   : > { %v2161_v20 = vpack.c.bf16 %v2131_v43, %v2131_v43  ;;  %v4690_v40 = vpop.permute.xlu1 %2262 }
 0x54e   : > { %v2265_v38 = vpop.permute.xlu0 %2264  ;;  %v2293_v6 = vunpack.c.l.b16 %v1672_v50 }
 0x54f   : > { %v2345_v60 = vunpack.c.l.b16 %v2161_v20  ;;  %v4667_v13 = vsel %vm328_vm0, %v4809_v12, %v2265_v38  ;;  %v684_v38 = vpack.c.bf16 %v4109_v41, %v4109_v41  ;;  %v2365_v12 = vpop.permute.xlu2 %2364  ;;  %v2194_v41 = vunpack.c.l.b16 %v683_v18 }
 0x550   : > { %v2303_v14 = vpack.c.b16 %v2293_v6, %v2292_v51  ;;  %v676_v6 = vpack.c.bf16 %v4036_v0, %v4036_v0 }
 0x551   : > { %v2357_v17 = vpack.c.b16 %v2345_v60, %v2344_v39 }
 0x553   : > { %2368 = vrot.lane.b32.xlu0 %v2357_v17, %s3636_s21  ;;  %v1651_v35 = vpop.f32.mrf.mxu3  ;;  %v2195_v17 = vunpack.c.l.b16 %v684_v38 }
 0x554   : > { %v2134_v54 = vpop.f32.mrf.mxu2  ;;  %v1673_v62 = vpack.c.bf16 %v1651_v35, %v1651_v35 }
 0x555   : > { %v2162_v29 = vpack.c.bf16 %v2134_v54, %v2134_v54  ;;  %v2206_v36 = vpack.c.b16 %v2195_v17, %v2194_v41 }
 0x557   : > { %v2346_v19 = vunpack.c.l.b16 %v2162_v29  ;;  %v2392_v47 = vsel %vm328_vm0, %v2206_v36, %v4660_v58  ;;  %v2187_v58 = vunpack.c.l.b16 %v676_v6  ;;  %v4815_v6 = vld [vmem:[#allocation6_spill] sm:$0xff] }
 0x55b   : > { %2310 = vrot.lane.b32.xlu0 %v2300_v49, %s3637_s22  ;;  %v1653_v61 = vpop.f32.mrf.mxu3 }
 0x55c   : > { %v2136_v11 = vpop.f32.mrf.mxu2  ;;  %v1674_v22 = vpack.c.bf16 %v1653_v61, %v1653_v61 }
 0x55d   : > { %v2163_v63 = vpack.c.bf16 %v2136_v11, %v2136_v11 }
 0x55e   : > { %v2295_v3 = vunpack.c.l.b16 %v1674_v22 }
 0x55f   : > { %v2347_v24 = vunpack.c.l.b16 %v2163_v63 }
 0x561   : > { %v2358_v53 = vpack.c.b16 %v2347_v24, %v2346_v19  ;;  %v675_v19 = vpack.c.bf16 %v4017_v55, %v4017_v55  ;;  %v2363_v24 = vpop.permute.xlu0 %2362 }
 0x563   : > { %2316 = vrot.lane.b32.xlu0 %v2303_v14, %s3637_s22  ;;  %2370 = vrot.lane.b32.xlu2 %v2358_v53, %s3636_s21  ;;  %v1656_v21 = vpop.f32.mrf.mxu3 }
 0x564   : > { %v2139_v1 = vpop.f32.mrf.mxu2  ;;  %v1675_v27 = vpack.c.bf16 %v1656_v21, %v1656_v21 }
 0x565   : > { %v2164_v46 = vpack.c.bf16 %v2139_v1, %v2139_v1 }
 0x566   : > { %v2296_v10 = vunpack.c.l.b16 %v1675_v27  ;;  %v2186_v27 = vunpack.c.l.b16 %v675_v19 }
 0x567   : > { %v2348_v34 = vunpack.c.l.b16 %v2164_v46  ;;  %v4812_v46 = vld [vmem:[#allocation2_spill] sm:$0xff] }
 0x56b   : > { %2306 = vrot.lane.b32.xlu2 %v2298_v15, %s3637_s22  ;;  %v1658_v30 = vpop.f32.mrf.mxu3  ;;  %v2294_v15 = vunpack.c.l.b16 %v1673_v62  ;;  %v679_v62 = vpack.c.bf16 %v4812_v46, %v4812_v46 }
 0x56c   : > { %v1676_v2 = vpack.c.bf16 %v1658_v30, %v1658_v30  ;;  %v2141_v31 = vpop.f32.mrf.mxu2 }
 0x56d   : > { %v2165_v23 = vpack.c.bf16 %v2141_v31, %v2141_v31  ;;  %v2304_v8 = vpack.c.b16 %v2295_v3, %v2294_v15 }
 0x56e   : > { %v2297_v44 = vunpack.c.l.b16 %v1676_v2 }
 0x56f   : > { %v2349_v32 = vunpack.c.l.b16 %v2165_v23 }
 0x570   : > { %v2305_v45 = vpack.c.b16 %v2297_v44, %v2296_v10  ;;  %v2202_v10 = vpack.c.b16 %v2187_v58, %v2186_v27  ;;  %v4810_v44 = vld [vmem:[#allocation3_spill] sm:$0xff] }
 0x571   : > { %v2359_v59 = vpack.c.b16 %v2349_v32, %v2348_v34  ;;  %v680_v55 = vpack.c.bf16 %v4810_v44, %v4810_v44  ;;  %v4813_v32 = vld [vmem:[#allocation4_spill] sm:$0xff] }
 0x572   : > { %2320 = vrot.lane.b32.xlu1 %v2305_v45, %s3637_s22  ;;  %v4811_v45 = vld [vmem:[#allocation5_spill] sm:$0xff]  ;;  %v681_v3 = vpack.c.bf16 %v4813_v32, %v4813_v32  ;;  %v2380_v34 = vsel %vm328_vm0, %v2202_v10, %v4636_v56 }
 0x573   : > { %2312 = vrot.lane.b32.xlu2 %v2301_v9, %s3637_s22  ;;  %v2189_v9 = vunpack.c.l.b16 %v678_v52  ;;  %v682_v23 = vpack.c.bf16 %v4811_v45, %v4811_v45 }
 0x574   : > { %v2192_v18 = vunpack.c.l.b16 %v681_v3 }
 0x575   : > { %v2203_v43 = vpack.c.b16 %v2189_v9, %v2188_v57  ;;  %v2191_v9 = vunpack.c.l.b16 %v680_v55  ;;  %v2193_v57 = vunpack.c.l.b16 %v682_v23 }
 0x577   : > { %v2383_v39 = vsel %vm328_vm0, %v2203_v43, %v4657_v37 }
 0x57a   : > { %2372 = vrot.lane.b32.xlu1 %v2359_v59, %s3636_s21 }
 0x57b   : > { %2318 = vrot.lane.b32.xlu2 %v2304_v8, %s3637_s22 }
 0x5a8   : > { %v4696_v5 = vpop.permute.xlu1 %2366 }
 0x5af   : > { %v2144_v20 = vpop.f32.mrf.mxu2 }
 0x5b0   : > { %v2309_v60 = vpop.permute.xlu1 %2308  ;;  %v2166_v37 = vpack.c.bf16 %v2144_v20, %v2144_v20 }
 0x5b1   : > { %v2406_v33 = vsel %vm2402_vm1, %v2383_v39, %v2309_v60  ;;  %v2190_v60 = vunpack.c.l.b16 %v679_v62 }
 0x5b2   : > { %v2423_v7 = vsel %vm2419_vm2, %v2406_v33, %v2365_v12  ;;  %v2350_v29 = vunpack.c.l.b16 %v2166_v37 }
 0x5b3   : > { %v2446_v25 = vunpack.c.l.b16 %v2423_v7  ;;  %v2447_v35 = vunpack.c.h.b16 %v2423_v7  ;;  %v2204_v33 = vpack.c.b16 %v2191_v9, %v2190_v60  ;;  %v2205_v7 = vpack.c.b16 %v2193_v57, %v2192_v18 }
 0x5b5   : > { %v2462_v16 = vpack.c.b16 %v2446_v25, %v2446_v25  ;;  %v2463_v54 = vpack.c.b16 %v2447_v35, %v2447_v35  ;;  %v2389_v17 = vsel %vm328_vm0, %v2205_v7, %v4646_v26  ;;  %v2386_v25 = vsel %vm328_vm0, %v2204_v33, %v4688_v48 }
 0x5b7   : > { %v2146_v28 = vpop.f32.mrf.mxu2  ;;  %2495 = vst.msk [vmem:[%s4710_s26 + $0x8] sm:$0xf] %vm2492_vm3, %v2462_v16 }
 0x5b8   : > { %v2167_v49 = vpack.c.bf16 %v2146_v28, %v2146_v28  ;;  %2496 = vst.msk [vmem:[%s4710_s26 + $0xc] sm:$0xf] %vm2492_vm3, %v2463_v54  ;;  %v2315_v50 = vpop.permute.xlu1 %2314 }
 0x5b9   : > { %v2412_v63 = vsel %vm2402_vm1, %v2392_v47, %v2315_v50 }
 0x5ba   : > { %v2351_v61 = vunpack.c.l.b16 %v2167_v49  ;;  %v2149_v11 = vpop.f32.mrf.mxu3 }
 0x5bb   : > { %v2168_v30 = vpack.c.bf16 %v2149_v11, %v2149_v11  ;;  %v4814_v11 = vld [vmem:[#allocation7_spill] sm:$0xff] }
 0x5bc   : > { %v2360_v51 = vpack.c.b16 %v2351_v61, %v2350_v29 }
 0x5bd   : > { %v2371_v14 = vpop.permute.xlu2 %2370  ;;  %v2352_v15 = vunpack.c.l.b16 %v2168_v30 }
 0x5be   : > { %v2429_v53 = vsel %vm2419_vm2, %v2412_v63, %v2371_v14  ;;  %2374 = vrot.lane.b32.xlu0 %v2360_v51, %s3636_s21  ;;  %v4816_v63 = vpack.c.b16 %v4814_v11, %v4815_v6 }
 0x5bf   : > { %v2452_v21 = vunpack.c.l.b16 %v2429_v53  ;;  %v2453_v1 = vunpack.c.h.b16 %v2429_v53 }
 0x5c0   : > { %v2398_v51 = vsel %vm328_vm0, %v4816_v63, %v4690_v40 }
 0x5c1   : > { %v2468_v0 = vpack.c.b16 %v2452_v21, %v2452_v21  ;;  %v2469_v2 = vpack.c.b16 %v2453_v1, %v2453_v1 }
 0x5c2   : > { %v2151_v31 = vpop.f32.mrf.mxu3 }
 0x5c3   : > { %2501 = vst.msk [vmem:[%s4710_s26 + $0x20] sm:$0xf] %vm2492_vm3, %v2468_v0  ;;  %v2169_v22 = vpack.c.bf16 %v2151_v31, %v2151_v31 }
 0x5c4   : > { %2502 = vst.msk [vmem:[%s4710_s26 + $0x24] sm:$0xf] %vm2492_vm3, %v2469_v2 }
 0x5c5   : > { %v2353_v59 = vunpack.c.l.b16 %v2169_v22  ;;  %v2307_v8 = vpop.permute.xlu2 %2306  ;;  %v2369_v52 = vpop.permute.xlu0 %2368 }
 0x5c6   : > { %v2404_v4 = vsel %vm2402_vm1, %v2380_v34, %v2307_v8 }
 0x5c7   : > { %v2361_v43 = vpack.c.b16 %v2353_v59, %v2352_v15  ;;  %v2421_v20 = vsel %vm2419_vm2, %v2404_v4, %v2363_v24 }
 0x5c8   : > { %v2444_v38 = vunpack.c.l.b16 %v2421_v20  ;;  %v2445_v39 = vunpack.c.h.b16 %v2421_v20 }
 0x5c9   : > { %2376 = vrot.lane.b32.xlu2 %v2361_v43, %s3636_s21 }
 0x5ca   : > { %v2460_v56 = vpack.c.b16 %v2444_v38, %v2444_v38  ;;  %v2461_v12 = vpack.c.b16 %v2445_v39, %v2445_v39 }
 0x5cc   : > { %2493 = vst.msk [vmem:[%s4710_s26] sm:$0xf] %vm2492_vm3, %v2460_v56 }
 0x5cd   : > { %2494 = vst.msk [vmem:[%s4710_s26 + $0x4] sm:$0xf] %vm2492_vm3, %v2461_v12  ;;  %v2313_v35 = vpop.permute.xlu2 %2312  ;;  %v2311_v41 = vpop.permute.xlu0 %2310 }
 0x5ce   : > { %v2410_v37 = vsel %vm2402_vm1, %v2389_v17, %v2313_v35  ;;  %v2408_v16 = vsel %vm2402_vm1, %v2386_v25, %v2311_v41 }
 0x5cf   : > { %v2427_v54 = vsel %vm2419_vm2, %v2410_v37, %v2369_v52  ;;  %v2425_v26 = vsel %vm2419_vm2, %v2408_v16, %v4696_v5 }
 0x5d0   : > { %v2450_v28 = vunpack.c.l.b16 %v2427_v54  ;;  %v2451_v36 = vunpack.c.h.b16 %v2427_v54  ;;  %v2448_v48 = vunpack.c.l.b16 %v2425_v26  ;;  %v2449_v49 = vunpack.c.h.b16 %v2425_v26 }
 0x5d2   : > { %v2466_v50 = vpack.c.b16 %v2450_v28, %v2450_v28  ;;  %v2467_v47 = vpack.c.b16 %v2451_v36, %v2451_v36  ;;  %v2464_v29 = vpack.c.b16 %v2448_v48, %v2448_v48  ;;  %v2465_v61 = vpack.c.b16 %v2449_v49, %v2449_v49 }
 0x5d4   : > { %2499 = vst.msk [vmem:[%s4710_s26 + $0x18] sm:$0xf] %vm2492_vm3, %v2466_v50 }
 0x5d5   : > { %2500 = vst.msk [vmem:[%s4710_s26 + $0x1c] sm:$0xf] %vm2492_vm3, %v2467_v47  ;;  %v2319_v5 = vpop.permute.xlu2 %2318  ;;  %v2317_v53 = vpop.permute.xlu0 %2316 }
 0x5d6   : > { %2497 = vst.msk [vmem:[%s4710_s26 + $0x10] sm:$0xf] %vm2492_vm3, %v2464_v29  ;;  %v2416_v19 = vsel %vm2402_vm1, %v2398_v51, %v2319_v5  ;;  %v2414_v40 = vsel %vm2402_vm1, %v4655_v42, %v2317_v53 }
 0x5d7   : > { %2498 = vst.msk [vmem:[%s4710_s26 + $0x14] sm:$0xf] %vm2492_vm3, %v2465_v61 }
 0x5e4   : > { %v2321_v24 = vpop.permute.xlu1 %2320 }
 0x5e5   : > { %v2418_v14 = vsel %vm2402_vm1, %v4667_v13, %v2321_v24 }
 0x5ec   : > { %v2373_v58 = vpop.permute.xlu1 %2372 }
 0x5ed   : > { %v2431_v21 = vsel %vm2419_vm2, %v2414_v40, %v2373_v58 }
 0x5ee   : > { %v2454_v1 = vunpack.c.l.b16 %v2431_v21  ;;  %v2455_v27 = vunpack.c.h.b16 %v2431_v21 }
 0x5f0   : > { %v2470_v30 = vpack.c.b16 %v2454_v1, %v2454_v1  ;;  %v2471_v0 = vpack.c.b16 %v2455_v27, %v2455_v27 }
 0x5f2   : > { %2503 = vst.msk [vmem:[%s4710_s26 + $0x28] sm:$0xf] %vm2492_vm3, %v2470_v30 }
 0x5f3   : > { %2504 = vst.msk [vmem:[%s4710_s26 + $0x2c] sm:$0xf] %vm2492_vm3, %v2471_v0 }
 0x623   : > { %v2377_v13 = vpop.permute.xlu2 %2376 }
 0x624   : > { %v2435_v2 = vsel %vm2419_vm2, %v2418_v14, %v2377_v13 }
 0x625   : > { %v2458_v31 = vunpack.c.l.b16 %v2435_v2  ;;  %v2459_v10 = vunpack.c.h.b16 %v2435_v2 }
 0x627   : > { %v2474_v42 = vpack.c.b16 %v2458_v31, %v2458_v31  ;;  %v2475_v44 = vpack.c.b16 %v2459_v10, %v2459_v10 }
 0x629   : > { %2507 = vst.msk [vmem:[%s4710_s26 + $0x38] sm:$0xf] %vm2492_vm3, %v2474_v42 }
 0x62a   : > { %2508 = vst.msk [vmem:[%s4710_s26 + $0x3c] sm:$0xf] %vm2492_vm3, %v2475_v44 }
 0x630   : > { %v2375_v55 = vpop.permute.xlu0 %2374 }
 0x631   : > { %v2433_v45 = vsel %vm2419_vm2, %v2416_v19, %v2375_v55 }
 0x632   : > { %v2456_v23 = vunpack.c.l.b16 %v2433_v45  ;;  %v2457_v22 = vunpack.c.h.b16 %v2433_v45 }
 0x634   : > { %v2472_v46 = vpack.c.b16 %v2456_v23, %v2456_v23  ;;  %v2473_v62 = vpack.c.b16 %v2457_v22, %v2457_v22 }
 0x636   : > { %2505 = vst.msk [vmem:[%s4710_s26 + $0x30] sm:$0xf] %vm2492_vm3, %v2472_v46 }
 0x637   : > { %2506 = vst.msk [vmem:[%s4710_s26 + $0x34] sm:$0xf] %vm2492_vm3, %v2473_v62 }
 0x638 PF: > { %s12_s11 = sadd.s32 1, %s3633_s11   ;;  %s4817_s9 = smov %s3629_s10 }
 0x639   : > { %p9_p5 = scmp.ge.s32.totalorder %s12_s11, 4   ;;  %s4818_s10 = smov %s4820_s12 }
 0x63b   :  { %11 = sbr.rel (!%p9_p5) target bundleno = 2 (0x2), region = 72 }

// kernel: vision_transformer_forward.24
= control target key start
LH: loop header
LB: loop body
LE: loop exit
PB: predicated region body
PF: predicated region fallthrough
CT: control target
= control target key end

     0   :  { %vm78_vm0 = vcmask 261120   ;;  %s2264_s0 = inlined_call_operand.vmem [shape: bf16[256,32], index: 0, kind: input, shape index: {}]   ;;  %s2265_s1 = inlined_call_operand.vmem [shape: f32[1,32], index: 1, kind: input, shape index: {}]   ;;  %s2266_s2 = inlined_call_operand.vmem [shape: f32[1,32], index: 2, kind: input, shape index: {}]   ;;  %s2267_s3 = inlined_call_operand.vmem [shape: f32[256,32], index: 3, kind: output, shape index: {}]  }
   0x1   :  { %v1072_v0 = vld [vmem:[%s2264_s0 + $0x10] sm:$0xff]   ;;  %v1077_v1 = vld [vmem:[%s2264_s0 + $0x8] sm:$0xff]   ;;  %v1082_v2 = vld [vmem:[%s2264_s0] sm:$0xff]  }
   0x2   :  { %v908_v3 = vunpack.c.l.bf16 %v1072_v0  ;;  %v904_v4 = vunpack.c.l.bf16 %v1077_v1  ;;  %v900_v5 = vunpack.c.l.bf16 %v1082_v2  ;;  %v909_v9 = vunpack.c.h.bf16 %v1072_v0  ;;  %v1111_v15 = vld [vmem:[%s2264_s0 + $0x20] sm:$0xff]   ;;  %v1116_v16 = vld [vmem:[%s2264_s0 + $0x18] sm:$0xff]   ;;  %v1133_v23 = vld [vmem:[%s2264_s0 + $0x28] sm:$0xff]  }
   0x3   :  { %v905_v10 = vunpack.c.h.bf16 %v1077_v1  ;;  %v901_v11 = vunpack.c.h.bf16 %v1082_v2  ;;  %v916_v17 = vunpack.c.l.bf16 %v1111_v15  ;;  %v913_v18 = vunpack.c.h.bf16 %v1116_v16  ;;  %v1150_v30 = vld [vmem:[%s2264_s0 + $0x38] sm:$0xff]   ;;  %v1155_v31 = vld [vmem:[%s2264_s0 + $0x30] sm:$0xff]   ;;  %v1172_v38 = vld [vmem:[%s2264_s0 + $0x40] sm:$0xff]  }
   0x4   :  { %v91_v6 = vsel %vm78_vm0, %v908_v3, 0.0  ;;  %v85_v7 = vsel %vm78_vm0, %v904_v4, 0.0  ;;  %v79_v8 = vsel %vm78_vm0, %v900_v5, 0.0  ;;  %v94_v12 = vsel %vm78_vm0, %v909_v9, 0.0  ;;  %v1189_v45 = vld [vmem:[%s2264_s0 + $0x50] sm:$0xff]   ;;  %v1194_v46 = vld [vmem:[%s2264_s0 + $0x48] sm:$0xff]  }
   0x5   :  { %92 = vadd.xlane.f32.xlu2 %v91_v6  ;;  %86 = vadd.xlane.f32.xlu1 %v85_v7  ;;  %v88_v13 = vsel %vm78_vm0, %v905_v10, 0.0  ;;  %v82_v14 = vsel %vm78_vm0, %v901_v11, 0.0  ;;  %v912_v19 = vunpack.c.l.bf16 %v1116_v16  ;;  %v103_v20 = vsel %vm78_vm0, %v916_v17, 0.0  ;;  %v1211_v53 = vld [vmem:[%s2264_s0 + $0x58] sm:$0xff]   ;;  %v1228_v60 = vld [vmem:[%s2264_s0 + $0x68] sm:$0xff]   ;;  %v1233_v61 = vld [vmem:[%s2264_s0 + $0x60] sm:$0xff]  }
   0x6   :  { %80 = vadd.xlane.f32.xlu0 %v79_v8  ;;  %v100_v21 = vsel %vm78_vm0, %v913_v18, 0.0  ;;  %v921_v24 = vunpack.c.h.bf16 %v1133_v23  ;;  %v920_v25 = vunpack.c.l.bf16 %v1133_v23  ;;  %v917_v26 = vunpack.c.h.bf16 %v1111_v15 }
   0x7   :  { %v97_v22 = vsel %vm78_vm0, %v912_v19, 0.0  ;;  %v928_v32 = vunpack.c.l.bf16 %v1150_v30  ;;  %v925_v33 = vunpack.c.h.bf16 %v1155_v31  ;;  %v924_v34 = vunpack.c.l.bf16 %v1155_v31 }
   0x8   :  { %v112_v27 = vsel %vm78_vm0, %v921_v24, 0.0  ;;  %v109_v28 = vsel %vm78_vm0, %v920_v25, 0.0  ;;  %v106_v29 = vsel %vm78_vm0, %v917_v26, 0.0  ;;  %v933_v39 = vunpack.c.h.bf16 %v1172_v38 }
   0x9   :  { %v121_v35 = vsel %vm78_vm0, %v928_v32, 0.0  ;;  %v118_v36 = vsel %vm78_vm0, %v925_v33, 0.0  ;;  %v115_v37 = vsel %vm78_vm0, %v924_v34, 0.0  ;;  %v932_v40 = vunpack.c.l.bf16 %v1172_v38 }
   0xa   :  { %v929_v41 = vunpack.c.h.bf16 %v1150_v30  ;;  %v130_v42 = vsel %vm78_vm0, %v933_v39, 0.0  ;;  %v940_v47 = vunpack.c.l.bf16 %v1189_v45  ;;  %v937_v48 = vunpack.c.h.bf16 %v1194_v46 }
   0xb   :  { %v127_v43 = vsel %vm78_vm0, %v932_v40, 0.0  ;;  %v936_v49 = vunpack.c.l.bf16 %v1194_v46  ;;  %v945_v54 = vunpack.c.h.bf16 %v1211_v53  ;;  %v944_v55 = vunpack.c.l.bf16 %v1211_v53 }
   0xc   :  { %v124_v44 = vsel %vm78_vm0, %v929_v41, 0.0  ;;  %v139_v50 = vsel %vm78_vm0, %v940_v47, 0.0  ;;  %v136_v51 = vsel %vm78_vm0, %v937_v48, 0.0  ;;  %v941_v56 = vunpack.c.h.bf16 %v1189_v45 }
   0xd   :  { %95 = vadd.xlane.f32.xlu2 %v94_v12  ;;  %89 = vadd.xlane.f32.xlu1 %v88_v13  ;;  %v133_v52 = vsel %vm78_vm0, %v936_v49, 0.0  ;;  %v148_v57 = vsel %vm78_vm0, %v945_v54, 0.0  ;;  %v145_v58 = vsel %vm78_vm0, %v944_v55, 0.0  ;;  %v952_v62 = vunpack.c.l.bf16 %v1228_v60  ;;  %v1250_v13 = vld [vmem:[%s2264_s0 + $0x70] sm:$0xff]  }
   0xe   :  { %83 = vadd.xlane.f32.xlu0 %v82_v14  ;;  %v142_v59 = vsel %vm78_vm0, %v941_v56, 0.0  ;;  %v949_v63 = vunpack.c.h.bf16 %v1233_v61  ;;  %v948_v6 = vunpack.c.l.bf16 %v1233_v61  ;;  %v957_v14 = vunpack.c.h.bf16 %v1250_v13 }
   0xf   :  { %v157_v7 = vsel %vm78_vm0, %v952_v62, 0.0 }
  0x10   :  { %v154_v8 = vsel %vm78_vm0, %v949_v63, 0.0  ;;  %v151_v12 = vsel %vm78_vm0, %v948_v6, 0.0 }
  0x15   :  { %104 = vadd.xlane.f32.xlu2 %v103_v20  ;;  %101 = vadd.xlane.f32.xlu1 %v100_v21  ;;  %v956_v20 = vunpack.c.l.bf16 %v1250_v13  ;;  %v953_v21 = vunpack.c.h.bf16 %v1228_v60 }
  0x16   :  { %98 = vadd.xlane.f32.xlu0 %v97_v22  ;;  %v166_v22 = vsel %vm78_vm0, %v957_v14, 0.0 }
  0x1d   :  { %113 = vadd.xlane.f32.xlu2 %v112_v27  ;;  %110 = vadd.xlane.f32.xlu1 %v109_v28  ;;  %v163_v27 = vsel %vm78_vm0, %v956_v20, 0.0  ;;  %v160_v28 = vsel %vm78_vm0, %v953_v21, 0.0 }
  0x1e   :  { %107 = vadd.xlane.f32.xlu0 %v106_v29  ;;  %v1267_v29 = vld [vmem:[%s2264_s0 + $0x78] sm:$0xff]  }
  0x25   :  { %122 = vadd.xlane.f32.xlu2 %v121_v35  ;;  %119 = vadd.xlane.f32.xlu1 %v118_v36  ;;  %v961_v35 = vunpack.c.h.bf16 %v1267_v29  ;;  %v960_v36 = vunpack.c.l.bf16 %v1267_v29 }
  0x26   :  { %116 = vadd.xlane.f32.xlu0 %v115_v37 }
  0x27   :  { %v172_v37 = vsel %vm78_vm0, %v961_v35, 0.0 }
  0x2d   :  { %131 = vadd.xlane.f32.xlu2 %v130_v42  ;;  %128 = vadd.xlane.f32.xlu1 %v127_v43  ;;  %v169_v42 = vsel %vm78_vm0, %v960_v36, 0.0  ;;  %v1048_v43 = vmov 32.0  }
  0x2e   :  { %125 = vadd.xlane.f32.xlu0 %v124_v44  ;;  %980 = vrcp.f32 %v1048_v43 }
  0x34   :  { %v981_v44 = vpop.eup %980 }
  0x35   :  { %140 = vadd.xlane.f32.xlu2 %v139_v50  ;;  %137 = vadd.xlane.f32.xlu1 %v136_v51  ;;  %v176_v50 = vmul.f32 32.0, %v981_v44  ;;  %vm180_vm1 = vweird.f32 %v981_v44 }
  0x36   :  { %134 = vadd.xlane.f32.xlu0 %v133_v52 }
  0x37   :  { %v177_v51 = vsub.f32 1.0, %v176_v50 }
  0x39   :  { %v178_v52 = vmul.f32 %v981_v44, %v177_v51 }
  0x3d   :  { %149 = vadd.xlane.f32.xlu2 %v148_v57  ;;  %146 = vadd.xlane.f32.xlu1 %v145_v58  ;;  %v179_v57 = vadd.f32 %v981_v44, %v178_v52 }
  0x3e   :  { %143 = vadd.xlane.f32.xlu0 %v142_v59 }
  0x3f   :  { %v1277_v58 = vsel %vm180_vm1, %v981_v44, %v179_v57 }
  0x45   :  { %158 = vadd.xlane.f32.xlu2 %v157_v7  ;;  %155 = vadd.xlane.f32.xlu1 %v154_v8 }
  0x46   :  { %152 = vadd.xlane.f32.xlu0 %v151_v12 }
  0x4d   :  { %167 = vadd.xlane.f32.xlu2 %v166_v22  ;;  %164 = vadd.xlane.f32.xlu1 %v163_v27 }
  0x4e   :  { %161 = vadd.xlane.f32.xlu0 %v160_v28 }
  0x55   :  { %173 = vadd.xlane.f32.xlu1 %v172_v37 }
  0x56   :  { %170 = vadd.xlane.f32.xlu0 %v169_v42 }
  0x78   :  { %v93_v59 = vpop.xlane.xlu2 %92  ;;  %v87_v7 = vpop.xlane.xlu1 %86 }
  0x79   :  { %v184_v8 = vmul.f32 %v1277_v58, %v87_v7  ;;  %v81_v12 = vpop.xlane.xlu0 %80  ;;  %v186_v57 = vmul.f32 %v1277_v58, %v93_v59 }
  0x7a   :  { %v182_v22 = vmul.f32 %v1277_v58, %v81_v12 }
  0x7b   :  { %v1283_v27 = vsub.f32 %v904_v4, %v184_v8 }
  0x7c   :  { %v1287_v28 = vsub.f32 %v900_v5, %v182_v22 }
  0x7d   :  { %v248_v37 = vmul.f32 %v1283_v27, %v1283_v27 }
  0x7e   :  { %v246_v42 = vmul.f32 %v1287_v28, %v1287_v28 }
  0x7f   :  { %v284_v43 = vsel %vm78_vm0, %v248_v37, 0.0 }
  0x80   :  { %v96_v44 = vpop.xlane.xlu2 %95  ;;  %285 = vadd.xlane.f32.xlu1 %v284_v43  ;;  %v90_v50 = vpop.xlane.xlu1 %89  ;;  %v278_v51 = vsel %vm78_vm0, %v246_v42, 0.0  ;;  %v1317_v42 = vsub.f32 %v908_v3, %v186_v57 }
  0x81   :  { %v187_v4 = vmul.f32 %v1277_v58, %v96_v44  ;;  %v185_v52 = vmul.f32 %v1277_v58, %v90_v50  ;;  %279 = vadd.xlane.f32.xlu2 %v278_v51  ;;  %v84_v5 = vpop.xlane.xlu0 %83 }
  0x82   :  { %v183_v7 = vmul.f32 %v1277_v58, %v84_v5  ;;  %v250_v51 = vmul.f32 %v1317_v42, %v1317_v42 }
  0x83   :  { %v1301_v8 = vsub.f32 %v909_v9, %v187_v4  ;;  %v1305_v12 = vsub.f32 %v905_v10, %v185_v52 }
  0x84   :  { %v1309_v22 = vsub.f32 %v901_v11, %v183_v7  ;;  %v290_v7 = vsel %vm78_vm0, %v250_v51, 0.0 }
  0x85   :  { %v251_v37 = vmul.f32 %v1301_v8, %v1301_v8  ;;  %v249_v59 = vmul.f32 %v1305_v12, %v1305_v12 }
  0x86   :  { %v247_v9 = vmul.f32 %v1309_v22, %v1309_v22 }
  0x87   :  { %v293_v1 = vsel %vm78_vm0, %v251_v37, 0.0  ;;  %v287_v10 = vsel %vm78_vm0, %v249_v59, 0.0 }
  0x88   :  { %v105_v2 = vpop.xlane.xlu2 %104  ;;  %294 = vadd.xlane.f32.xlu1 %v293_v1  ;;  %v281_v11 = vsel %vm78_vm0, %v247_v9, 0.0  ;;  %v102_v43 = vpop.xlane.xlu1 %101 }
  0x89   :  { %v190_v44 = vmul.f32 %v1277_v58, %v105_v2  ;;  %288 = vadd.xlane.f32.xlu2 %v287_v10  ;;  %282 = vadd.xlane.f32.xlu0 %v281_v11  ;;  %v99_v50 = vpop.xlane.xlu0 %98  ;;  %v189_v3 = vmul.f32 %v1277_v58, %v102_v43 }
  0x8a   :  { %v188_v0 = vmul.f32 %v1277_v58, %v99_v50 }
  0x8b   :  { %v1331_v4 = vsub.f32 %v916_v17, %v190_v44  ;;  %v1341_v57 = vsub.f32 %v913_v18, %v189_v3 }
  0x8c   :  { %v1335_v52 = vsub.f32 %v912_v19, %v188_v0 }
  0x8d   :  { %v254_v5 = vmul.f32 %v1331_v4, %v1331_v4  ;;  %v253_v2 = vmul.f32 %v1341_v57, %v1341_v57 }
  0x8e   :  { %v252_v37 = vmul.f32 %v1335_v52, %v1335_v52 }
  0x8f   :  { %v302_v59 = vsel %vm78_vm0, %v254_v5, 0.0  ;;  %v299_v0 = vsel %vm78_vm0, %v253_v2, 0.0 }
  0x90   :  { %v114_v17 = vpop.xlane.xlu2 %113  ;;  %303 = vadd.xlane.f32.xlu1 %v302_v59  ;;  %v296_v9 = vsel %vm78_vm0, %v252_v37, 0.0  ;;  %v111_v19 = vpop.xlane.xlu1 %110 }
  0x91   :  { %v193_v1 = vmul.f32 %v1277_v58, %v114_v17  ;;  %291 = vadd.xlane.f32.xlu0 %v290_v7  ;;  %297 = vadd.xlane.f32.xlu2 %v296_v9  ;;  %v108_v10 = vpop.xlane.xlu0 %107  ;;  %v192_v18 = vmul.f32 %v1277_v58, %v111_v19 }
  0x92   :  { %v191_v16 = vmul.f32 %v1277_v58, %v108_v10 }
  0x93   :  { %v1355_v11 = vsub.f32 %v921_v24, %v193_v1  ;;  %v1365_v50 = vsub.f32 %v920_v25, %v192_v18 }
  0x94   :  { %v1359_v43 = vsub.f32 %v917_v26, %v191_v16 }
  0x95   :  { %v257_v44 = vmul.f32 %v1355_v11, %v1355_v11  ;;  %v256_v37 = vmul.f32 %v1365_v50, %v1365_v50 }
  0x96   :  { %v255_v3 = vmul.f32 %v1359_v43, %v1359_v43 }
  0x97   :  { %v311_v51 = vsel %vm78_vm0, %v257_v44, 0.0  ;;  %v308_v1 = vsel %vm78_vm0, %v256_v37, 0.0 }
  0x98   :  { %v123_v24 = vpop.xlane.xlu2 %122  ;;  %312 = vadd.xlane.f32.xlu1 %v311_v51  ;;  %v305_v15 = vsel %vm78_vm0, %v255_v3, 0.0  ;;  %v120_v26 = vpop.xlane.xlu1 %119 }
  0x99   :  { %v196_v5 = vmul.f32 %v1277_v58, %v123_v24  ;;  %300 = vadd.xlane.f32.xlu0 %v299_v0  ;;  %306 = vadd.xlane.f32.xlu2 %v305_v15  ;;  %v117_v7 = vpop.xlane.xlu0 %116  ;;  %v195_v25 = vmul.f32 %v1277_v58, %v120_v26 }
  0x9a   :  { %v194_v23 = vmul.f32 %v1277_v58, %v117_v7 }
  0x9b   :  { %v1379_v59 = vsub.f32 %v928_v32, %v196_v5  ;;  %v1389_v19 = vsub.f32 %v925_v33, %v195_v25 }
  0x9c   :  { %v1383_v17 = vsub.f32 %v924_v34, %v194_v23 }
  0x9d   :  { %v260_v9 = vmul.f32 %v1379_v59, %v1379_v59  ;;  %v259_v0 = vmul.f32 %v1389_v19, %v1389_v19 }
  0x9e   :  { %v258_v10 = vmul.f32 %v1383_v17, %v1383_v17 }
  0x9f   :  { %v320_v16 = vsel %vm78_vm0, %v260_v9, 0.0  ;;  %v317_v26 = vsel %vm78_vm0, %v259_v0, 0.0 }
  0xa0   :  { %v132_v32 = vpop.xlane.xlu2 %131  ;;  %321 = vadd.xlane.f32.xlu1 %v320_v16  ;;  %v314_v18 = vsel %vm78_vm0, %v258_v10, 0.0  ;;  %v129_v34 = vpop.xlane.xlu1 %128 }
  0xa1   :  { %v199_v2 = vmul.f32 %v1277_v58, %v132_v32  ;;  %309 = vadd.xlane.f32.xlu0 %v308_v1  ;;  %315 = vadd.xlane.f32.xlu2 %v314_v18  ;;  %v126_v44 = vpop.xlane.xlu0 %125  ;;  %v198_v33 = vmul.f32 %v1277_v58, %v129_v34 }
  0xa2   :  { %v197_v31 = vmul.f32 %v1277_v58, %v126_v44 }
  0xa3   :  { %v1403_v3 = vsub.f32 %v933_v39, %v199_v2  ;;  %v1413_v15 = vsub.f32 %v932_v40, %v198_v33 }
  0xa4   :  { %v1407_v51 = vsub.f32 %v929_v41, %v197_v31 }
  0xa5   :  { %v263_v24 = vmul.f32 %v1403_v3, %v1403_v3  ;;  %v262_v37 = vmul.f32 %v1413_v15, %v1413_v15 }
  0xa6   :  { %v261_v5 = vmul.f32 %v1407_v51, %v1407_v51 }
  0xa7   :  { %v329_v7 = vsel %vm78_vm0, %v263_v24, 0.0  ;;  %v326_v32 = vsel %vm78_vm0, %v262_v37, 0.0 }
  0xa8   :  { %v141_v39 = vpop.xlane.xlu2 %140  ;;  %330 = vadd.xlane.f32.xlu1 %v329_v7  ;;  %v323_v30 = vsel %vm78_vm0, %v261_v5, 0.0  ;;  %v138_v41 = vpop.xlane.xlu1 %137 }
  0xa9   :  { %v202_v23 = vmul.f32 %v1277_v58, %v141_v39  ;;  %318 = vadd.xlane.f32.xlu0 %v317_v26  ;;  %324 = vadd.xlane.f32.xlu2 %v323_v30  ;;  %v135_v25 = vpop.xlane.xlu0 %134  ;;  %v201_v40 = vmul.f32 %v1277_v58, %v138_v41 }
  0xaa   :  { %v200_v38 = vmul.f32 %v1277_v58, %v135_v25 }
  0xab   :  { %v1427_v9 = vsub.f32 %v940_v47, %v202_v23  ;;  %v1437_v16 = vsub.f32 %v937_v48, %v201_v40 }
  0xac   :  { %v1431_v1 = vsub.f32 %v936_v49, %v200_v38 }
  0xad   :  { %v266_v10 = vmul.f32 %v1427_v9, %v1427_v9  ;;  %v265_v33 = vmul.f32 %v1437_v16, %v1437_v16 }
  0xae   :  { %v264_v18 = vmul.f32 %v1431_v1, %v1431_v1 }
  0xaf   :  { %v338_v34 = vsel %vm78_vm0, %v266_v10, 0.0  ;;  %v335_v7 = vsel %vm78_vm0, %v265_v33, 0.0 }
  0xb0   :  { %v150_v47 = vpop.xlane.xlu2 %149  ;;  %339 = vadd.xlane.f32.xlu1 %v338_v34  ;;  %v332_v2 = vsel %vm78_vm0, %v264_v18, 0.0  ;;  %v147_v49 = vpop.xlane.xlu1 %146 }
  0xb1   :  { %v205_v44 = vmul.f32 %v1277_v58, %v150_v47  ;;  %327 = vadd.xlane.f32.xlu0 %v326_v32  ;;  %333 = vadd.xlane.f32.xlu2 %v332_v2  ;;  %v144_v31 = vpop.xlane.xlu0 %143  ;;  %v204_v48 = vmul.f32 %v1277_v58, %v147_v49 }
  0xb2   :  { %v203_v46 = vmul.f32 %v1277_v58, %v144_v31 }
  0xb3   :  { %v1451_v0 = vsub.f32 %v945_v54, %v205_v44  ;;  %v1461_v5 = vsub.f32 %v944_v55, %v204_v48 }
  0xb4   :  { %v1455_v24 = vsub.f32 %v941_v56, %v203_v46 }
  0xb5   :  { %v269_v26 = vmul.f32 %v1451_v0, %v1451_v0  ;;  %v268_v25 = vmul.f32 %v1461_v5, %v1461_v5 }
  0xb6   :  { %v267_v39 = vmul.f32 %v1455_v24, %v1455_v24 }
  0xb7   :  { %v347_v30 = vsel %vm78_vm0, %v269_v26, 0.0  ;;  %v344_v32 = vsel %vm78_vm0, %v268_v25, 0.0 }
  0xb8   :  { %v159_v54 = vpop.xlane.xlu2 %158  ;;  %348 = vadd.xlane.f32.xlu1 %v347_v30  ;;  %v341_v45 = vsel %vm78_vm0, %v267_v39, 0.0  ;;  %v156_v56 = vpop.xlane.xlu1 %155 }
  0xb9   :  { %v208_v41 = vmul.f32 %v1277_v58, %v159_v54  ;;  %336 = vadd.xlane.f32.xlu0 %v335_v7  ;;  %342 = vadd.xlane.f32.xlu2 %v341_v45  ;;  %v153_v23 = vpop.xlane.xlu0 %152  ;;  %v207_v55 = vmul.f32 %v1277_v58, %v156_v56 }
  0xba   :  { %v206_v53 = vmul.f32 %v1277_v58, %v153_v23 }
  0xbb   :  { %v1475_v38 = vsub.f32 %v952_v62, %v208_v41  ;;  %v1485_v10 = vsub.f32 %v949_v63, %v207_v55 }
  0xbc   :  { %v1479_v40 = vsub.f32 %v948_v6, %v206_v53 }
  0xbd   :  { %v272_v37 = vmul.f32 %v1475_v38, %v1475_v38  ;;  %v271_v44 = vmul.f32 %v1485_v10, %v1485_v10 }
  0xbe   :  { %v270_v18 = vmul.f32 %v1479_v40, %v1479_v40 }
  0xbf   :  { %v356_v34 = vsel %vm78_vm0, %v272_v37, 0.0  ;;  %v353_v26 = vsel %vm78_vm0, %v271_v44, 0.0 }
  0xc0   :  { %v168_v62 = vpop.xlane.xlu2 %167  ;;  %357 = vadd.xlane.f32.xlu1 %v356_v34  ;;  %v350_v47 = vsel %vm78_vm0, %v270_v18, 0.0  ;;  %v165_v6 = vpop.xlane.xlu1 %164 }
  0xc1   :  { %v211_v2 = vmul.f32 %v1277_v58, %v168_v62  ;;  %345 = vadd.xlane.f32.xlu0 %v344_v32  ;;  %351 = vadd.xlane.f32.xlu2 %v350_v47  ;;  %v162_v49 = vpop.xlane.xlu0 %161  ;;  %v210_v63 = vmul.f32 %v1277_v58, %v165_v6 }
  0xc2   :  { %v209_v61 = vmul.f32 %v1277_v58, %v162_v49 }
  0xc3   :  { %v1499_v31 = vsub.f32 %v957_v14, %v211_v2  ;;  %v1509_v33 = vsub.f32 %v956_v20, %v210_v63 }
  0xc4   :  { %v1503_v46 = vsub.f32 %v953_v21, %v209_v61 }
  0xc5   :  { %v275_v48 = vmul.f32 %v1499_v31, %v1499_v31  ;;  %v274_v20 = vmul.f32 %v1509_v33, %v1509_v33 }
  0xc6   :  { %v273_v7 = vmul.f32 %v1503_v46, %v1503_v46 }
  0xc7   :  { %v365_v39 = vsel %vm78_vm0, %v275_v48, 0.0  ;;  %v362_v56 = vsel %vm78_vm0, %v274_v20, 0.0 }
  0xc8   :  { %366 = vadd.xlane.f32.xlu1 %v365_v39  ;;  %v359_v14 = vsel %vm78_vm0, %v273_v7, 0.0  ;;  %v174_v60 = vpop.xlane.xlu1 %173 }
  0xc9   :  { %354 = vadd.xlane.f32.xlu0 %v353_v26  ;;  %360 = vadd.xlane.f32.xlu2 %v359_v14  ;;  %v171_v21 = vpop.xlane.xlu0 %170  ;;  %v213_v13 = vmul.f32 %v1277_v58, %v174_v60 }
  0xca   :  { %v212_v30 = vmul.f32 %v1277_v58, %v171_v21 }
  0xcb   :  { %v1526_v45 = vsub.f32 %v961_v35, %v213_v13 }
  0xcc   :  { %v1522_v54 = vsub.f32 %v960_v36, %v212_v30 }
  0xcd   :  { %v277_v53 = vmul.f32 %v1526_v45, %v1526_v45 }
  0xce   :  { %v276_v41 = vmul.f32 %v1522_v54, %v1522_v54 }
  0xcf   :  { %v371_v55 = vsel %vm78_vm0, %v277_v53, 0.0 }
  0xd0   :  { %v368_v23 = vsel %vm78_vm0, %v276_v41, 0.0 }
  0xd1   :  { %363 = vadd.xlane.f32.xlu0 %v362_v56  ;;  %369 = vadd.xlane.f32.xlu2 %v368_v23 }
  0xd9   :  { %372 = vadd.xlane.f32.xlu0 %v371_v55 }
  0xf3   :  { %v286_v36 = vpop.xlane.xlu1 %285 }
  0xf4   :  { %v376_v29 = vmul.f32 %v286_v36, %v1277_v58  ;;  %v280_v35 = vpop.xlane.xlu2 %279 }
  0xf5   :  { %v374_v25 = vmul.f32 %v280_v35, %v1277_v58 }
  0xf6   :  { %v408_v37 = vadd.f32 1e-05, %v376_v29 }
  0xf7   :  { %v406_v32 = vadd.f32 1e-05, %v374_v25 }
  0xf8   :  { %982 = vrsqrt.f32 %v408_v37  ;;  %vm464_vm2 = vweird.f32 %v408_v37 }
  0xf9   :  { %984 = vrsqrt.f32 %v406_v32  ;;  %vm444_vm4 = vweird.f32 %v406_v32 }
  0xfb   :  { %v295_v18 = vpop.xlane.xlu1 %294 }
  0xfc   :  { %v379_v34 = vmul.f32 %v295_v18, %v1277_v58  ;;  %v289_v62 = vpop.xlane.xlu2 %288  ;;  %v283_v47 = vpop.xlane.xlu0 %282 }
  0xfd   :  { %v377_v6 = vmul.f32 %v289_v62, %v1277_v58  ;;  %v375_v2 = vmul.f32 %v283_v47, %v1277_v58  ;;  %v1568_v62 = vld [vmem:[%s2265_s1] ss:$0 sm:$0xff] }
  0xfe   :  { %v983_v49 = vpop.eup %982  ;;  %v1540_v61 = vadd.f32 1e-05, %v379_v34 }
  0xff   :  { %v985_v63 = vpop.eup %984  ;;  %v459_v44 = vmul.f32 %v983_v49, %v408_v37  ;;  %v1542_v48 = vadd.f32 1e-05, %v377_v6  ;;  %v1544_v26 = vadd.f32 1e-05, %v375_v2  ;;  %vm465_vm3 = vweird.f32 %v983_v49  ;;  %v1585_v37 = vld [vmem:[%s2266_s2] ss:$0 sm:$0xff] }
 0x100   :  { %v439_v7 = vmul.f32 %v985_v63, %v406_v32  ;;  %986 = vrsqrt.f32 %v1540_v61  ;;  %vm445_vm5 = vweird.f32 %v985_v63  ;;  %vm494_vm6 = vweird.f32 %v1540_v61  ;;  %vm466_vm8 = vmor %vm464_vm2, %vm465_vm3 }
 0x101   :  { %v460_v39 = vmul.f32 %v983_v49, %v459_v44  ;;  %988 = vrsqrt.f32 %v1542_v48  ;;  %vm474_vm7 = vweird.f32 %v1542_v48  ;;  %vm446_vm9 = vmor %vm444_vm4, %vm445_vm5  ;;  %vm454_vm10 = vweird.f32 %v1544_v26 }
 0x102   :  { %v440_v14 = vmul.f32 %v985_v63, %v439_v7  ;;  %990 = vrsqrt.f32 %v1544_v26 }
 0x103   :  { %v461_v60 = vmul.f32 0.5, %v460_v39  ;;  %v304_v21 = vpop.xlane.xlu1 %303 }
 0x104   :  { %v441_v30 = vmul.f32 0.5, %v440_v14  ;;  %v382_v13 = vmul.f32 %v304_v21, %v1277_v58  ;;  %v298_v20 = vpop.xlane.xlu2 %297  ;;  %v292_v56 = vpop.xlane.xlu0 %291 }
 0x105   :  { %v462_v41 = vsub.f32 1.5, %v461_v60  ;;  %v380_v23 = vmul.f32 %v298_v20, %v1277_v58  ;;  %v378_v2 = vmul.f32 %v292_v56, %v1277_v58 }
 0x106   :  { %v1551_v53 = vpop.eup %986  ;;  %v442_v55 = vsub.f32 1.5, %v441_v30  ;;  %v1554_v36 = vadd.f32 1e-05, %v382_v13 }
 0x107   :  { %v1556_v29 = vpop.eup %988  ;;  %v463_v35 = vmul.f32 %v983_v49, %v462_v41  ;;  %v489_v25 = vmul.f32 %v1551_v53, %v1540_v61  ;;  %v1561_v18 = vadd.f32 1e-05, %v380_v23  ;;  %vm495_vm11 = vweird.f32 %v1551_v53 }
 0x108   :  { %v1563_v34 = vpop.eup %990  ;;  %v443_v47 = vmul.f32 %v985_v63, %v442_v55  ;;  %v469_v6 = vmul.f32 %v1556_v29, %v1542_v48  ;;  %992 = vrsqrt.f32 %v1554_v36  ;;  %vm475_vm12 = vweird.f32 %v1556_v29  ;;  %vm1606_vm13 = vmor %vm494_vm6, %vm495_vm11 }
 0x109   :  { %v467_v44 = vsel %vm466_vm8, %v983_v49, %v463_v35  ;;  %v490_v7 = vmul.f32 %v1551_v53, %v489_v25  ;;  %v449_v39 = vmul.f32 %v1563_v34, %v1544_v26  ;;  %994 = vrsqrt.f32 %v1561_v18  ;;  %vm476_vm2 = vmor %vm474_vm7, %vm475_vm12 }
 0x10a   :  { %v760_v14 = vmul.f32 %v467_v44, %v1283_v27  ;;  %v447_v60 = vsel %vm446_vm9, %v985_v63, %v443_v47  ;;  %v470_v32 = vmul.f32 %v1556_v29, %v469_v6  ;;  %v1595_v41 = vadd.f32 1e-05, %v378_v2 }
 0x10b   :  { %v758_v49 = vmul.f32 %v447_v60, %v1287_v28  ;;  %v491_v21 = vmul.f32 0.5, %v490_v7  ;;  %v450_v30 = vmul.f32 %v1563_v34, %v449_v39  ;;  %v313_v13 = vpop.xlane.xlu1 %312  ;;  %vm455_vm14 = vweird.f32 %v1563_v34 }
 0x10c   :  { %v796_v20 = vmul.f32 %v1568_v62, %v760_v14  ;;  %v471_v56 = vmul.f32 0.5, %v470_v32  ;;  %v307_v27 = vpop.xlane.xlu2 %306  ;;  %v301_v63 = vpop.xlane.xlu0 %300  ;;  %v385_v28 = vmul.f32 %v313_v13, %v1277_v58  ;;  %996 = vrsqrt.f32 %v1595_v41  ;;  %vm456_vm3 = vmor %vm454_vm10, %vm455_vm14 }
 0x10d   :  { %v794_v23 = vmul.f32 %v1568_v62, %v758_v49  ;;  %v492_v55 = vsub.f32 1.5, %v491_v21  ;;  %v451_v35 = vmul.f32 0.5, %v450_v30  ;;  %vm524_vm15 = vweird.f32 %v1554_v36 }
 0x10e   :  { %v1599_v25 = vpop.eup %992  ;;  %v832_v47 = vadd.f32 %v1585_v37, %v796_v20  ;;  %v472_v2 = vsub.f32 1.5, %v471_v56  ;;  %v1623_v60 = vadd.f32 1e-05, %v385_v28  ;;  %v383_v13 = vmul.f32 %v307_v27, %v1277_v58 }
 0x10f   :  { %v830_v44 = vadd.f32 %v1585_v37, %v794_v23  ;;  %v493_v7 = vmul.f32 %v1551_v53, %v492_v55  ;;  %v452_v39 = vsub.f32 1.5, %v451_v35  ;;  %v519_v14 = vmul.f32 %v1599_v25, %v1554_v36  ;;  %v1625_v32 = vpop.eup %994 }
 0x110   :  { %864 = vst.msk [vmem:[%s2267_s3 + $0x10] sm:$0xff] %vm78_vm0, %v832_v47  ;;  %v473_v61 = vmul.f32 %v1556_v29, %v472_v2  ;;  %vm525_vm1 = vweird.f32 %v1599_v25  ;;  %v381_v48 = vmul.f32 %v301_v63, %v1277_v58  ;;  %998 = vrsqrt.f32 %v1623_v60 }
 0x111   :  { %862 = vst.msk [vmem:[%s2267_s3] sm:$0xff] %vm78_vm0, %v830_v44  ;;  %v497_v49 = vsel %vm1606_vm13, %v1551_v53, %v493_v7  ;;  %v453_v21 = vmul.f32 %v1563_v34, %v452_v39  ;;  %v520_v30 = vmul.f32 %v1599_v25, %v519_v14  ;;  %v499_v53 = vmul.f32 %v1625_v32, %v1561_v18  ;;  %vm1668_vm5 = vmor %vm524_vm15, %vm525_vm1 }
 0x112   :  { %v763_v20 = vmul.f32 %v497_v49, %v1301_v8  ;;  %v477_v56 = vsel %vm476_vm2, %v1556_v29, %v473_v61  ;;  %v1653_v27 = vpop.eup %996  ;;  %vm504_vm4 = vweird.f32 %v1561_v18  ;;  %v1672_v39 = vadd.f32 1e-05, %v383_v13 }
 0x113   :  { %v761_v23 = vmul.f32 %v477_v56, %v1305_v12  ;;  %v457_v55 = vsel %vm456_vm3, %v1563_v34, %v453_v21  ;;  %v521_v35 = vmul.f32 0.5, %v520_v30  ;;  %v322_v8 = vpop.xlane.xlu1 %321  ;;  %v500_v28 = vmul.f32 %v1625_v32, %v499_v53 }
 0x114   :  { %v799_v29 = vmul.f32 %v1568_v62, %v763_v20  ;;  %v759_v26 = vmul.f32 %v457_v55, %v1309_v22  ;;  %v316_v47 = vpop.xlane.xlu2 %315  ;;  %v310_v6 = vpop.xlane.xlu0 %309  ;;  %v479_v12 = vmul.f32 %v1653_v27, %v1595_v41  ;;  %v1677_v21 = vadd.f32 1e-05, %v381_v48 }
 0x115   :  { %v797_v63 = vmul.f32 %v1568_v62, %v761_v23  ;;  %v522_v2 = vsub.f32 1.5, %v521_v35  ;;  %v501_v7 = vmul.f32 0.5, %v500_v28  ;;  %vm505_vm6 = vweird.f32 %v1625_v32 }
 0x116   :  { %v835_v34 = vadd.f32 %v1585_v37, %v799_v29  ;;  %v795_v44 = vmul.f32 %v1568_v62, %v759_v26  ;;  %v480_v49 = vmul.f32 %v1653_v27, %v479_v12  ;;  %1000 = vrsqrt.f32 %v1672_v39  ;;  %v1686_v13 = vpop.eup %998  ;;  %vm506_vm9 = vmor %vm504_vm4, %vm505_vm6 }
 0x117   :  { %v833_v14 = vadd.f32 %v1585_v37, %v797_v63  ;;  %v523_v61 = vmul.f32 %v1599_v25, %v522_v2  ;;  %v502_v30 = vsub.f32 1.5, %v501_v7  ;;  %vm484_vm7 = vweird.f32 %v1595_v41 }
 0x118   :  { %867 = vst.msk [vmem:[%s2267_s3 + $0x28] sm:$0xff] %vm78_vm0, %v835_v34  ;;  %v831_v36 = vadd.f32 %v1585_v37, %v795_v44  ;;  %v481_v56 = vmul.f32 0.5, %v480_v49  ;;  %1002 = vrsqrt.f32 %v1677_v21  ;;  %vm485_vm8 = vweird.f32 %v1653_v27 }
 0x119   :  { %865 = vst.msk [vmem:[%s2267_s3 + $0x18] sm:$0xff] %vm78_vm0, %v833_v14  ;;  %v527_v20 = vsel %vm1668_vm5, %v1599_v25, %v523_v61  ;;  %v503_v48 = vmul.f32 %v1625_v32, %v502_v30  ;;  %v549_v23 = vmul.f32 %v1686_v13, %v1623_v60  ;;  %v388_v55 = vmul.f32 %v322_v8, %v1277_v58  ;;  %vm486_vm11 = vmor %vm484_vm7, %vm485_vm8 }
 0x11a   :  { %863 = vst.msk [vmem:[%s2267_s3 + $0x8] sm:$0xff] %vm78_vm0, %v831_v36  ;;  %v766_v53 = vmul.f32 %v527_v20, %v1331_v4  ;;  %v482_v25 = vsub.f32 1.5, %v481_v56  ;;  %v386_v35 = vmul.f32 %v316_v47, %v1277_v58  ;;  %v384_v29 = vmul.f32 %v310_v6, %v1277_v58 }
 0x11b   :  { %v331_v26 = vpop.xlane.xlu1 %330  ;;  %v507_v28 = vsel %vm506_vm9, %v1625_v32, %v503_v48  ;;  %v550_v63 = vmul.f32 %v1686_v13, %v549_v23  ;;  %vm554_vm10 = vweird.f32 %v1623_v60  ;;  %v1718_v8 = vadd.f32 1e-05, %v388_v55 }
 0x11c   :  { %v802_v4 = vmul.f32 %v1568_v62, %v766_v53  ;;  %v391_v2 = vmul.f32 %v331_v26, %v1277_v58  ;;  %v325_v12 = vpop.xlane.xlu2 %324  ;;  %v319_v34 = vpop.xlane.xlu0 %318  ;;  %v764_v18 = vmul.f32 %v507_v28, %v1335_v52  ;;  %v483_v44 = vmul.f32 %v1653_v27, %v482_v25 }
 0x11d   :  { %v1720_v47 = vpop.eup %1000  ;;  %v551_v32 = vmul.f32 0.5, %v550_v63  ;;  %vm555_vm12 = vweird.f32 %v1686_v13  ;;  %v1728_v22 = vadd.f32 1e-05, %v386_v35  ;;  %v1736_v49 = vadd.f32 1e-05, %v384_v29 }
 0x11e   :  { %v838_v6 = vadd.f32 %v1585_v37, %v802_v4  ;;  %v1730_v52 = vpop.eup %1002  ;;  %v800_v7 = vmul.f32 %v1568_v62, %v764_v18  ;;  %v487_v14 = vsel %vm486_vm11, %v1653_v27, %v483_v44  ;;  %v529_v61 = vmul.f32 %v1720_v47, %v1672_v39  ;;  %vm1750_vm13 = vmor %vm554_vm10, %vm555_vm12 }
 0x11f   :  { %v762_v41 = vmul.f32 %v487_v14, %v1317_v42  ;;  %v552_v36 = vsub.f32 1.5, %v551_v32  ;;  %v509_v30 = vmul.f32 %v1730_v52, %v1677_v21  ;;  %v1745_v20 = vadd.f32 1e-05, %v391_v2 }
 0x120   :  { %870 = vst.msk [vmem:[%s2267_s3 + $0x40] sm:$0xff] %vm78_vm0, %v838_v6  ;;  %v836_v27 = vadd.f32 %v1585_v37, %v800_v7  ;;  %v530_v53 = vmul.f32 %v1720_v47, %v529_v61  ;;  %vm534_vm14 = vweird.f32 %v1672_v39  ;;  %1004 = vrsqrt.f32 %v1718_v8 }
 0x121   :  { %v798_v42 = vmul.f32 %v1568_v62, %v762_v41  ;;  %v553_v48 = vmul.f32 %v1686_v13, %v552_v36  ;;  %v510_v23 = vmul.f32 %v1730_v52, %v509_v30  ;;  %1006 = vrsqrt.f32 %v1728_v22 }
 0x122   :  { %868 = vst.msk [vmem:[%s2267_s3 + $0x30] sm:$0xff] %vm78_vm0, %v836_v27  ;;  %v531_v60 = vmul.f32 0.5, %v530_v53  ;;  %vm535_vm15 = vweird.f32 %v1720_v47  ;;  %vm514_vm1 = vweird.f32 %v1677_v21  ;;  %1008 = vrsqrt.f32 %v1736_v49 }
 0x123   :  { %v834_v25 = vadd.f32 %v1585_v37, %v798_v42  ;;  %v557_v55 = vsel %vm1750_vm13, %v1686_v13, %v553_v48  ;;  %v511_v35 = vmul.f32 0.5, %v510_v23  ;;  %1010 = vrsqrt.f32 %v1745_v20  ;;  %v340_v29 = vpop.xlane.xlu1 %339  ;;  %vm536_vm6 = vmor %vm534_vm14, %vm535_vm15 }
 0x124   :  { %v334_v26 = vpop.xlane.xlu2 %333  ;;  %v769_v4 = vmul.f32 %v557_v55, %v1355_v11  ;;  %v532_v28 = vsub.f32 1.5, %v531_v60  ;;  %vm515_vm2 = vweird.f32 %v1730_v52  ;;  %v389_v63 = vmul.f32 %v325_v12, %v1277_v58  ;;  %v328_v2 = vpop.xlane.xlu0 %327 }
 0x125   :  { %866 = vst.msk [vmem:[%s2267_s3 + $0x20] sm:$0xff] %vm78_vm0, %v834_v25  ;;  %v512_v18 = vsub.f32 1.5, %v511_v35  ;;  %vm584_vm3 = vweird.f32 %v1718_v8  ;;  %vm564_vm4 = vweird.f32 %v1728_v22  ;;  %v387_v13 = vmul.f32 %v319_v34, %v1277_v58  ;;  %vm516_vm7 = vmor %vm514_vm1, %vm515_vm2 }
 0x126   :  { %v1783_v44 = vpop.eup %1004  ;;  %v805_v11 = vmul.f32 %v1568_v62, %v769_v4  ;;  %v533_v6 = vmul.f32 %v1720_v47, %v532_v28  ;;  %vm614_vm5 = vweird.f32 %v1745_v20  ;;  %v394_v12 = vmul.f32 %v340_v29, %v1277_v58 }
 0x127   :  { %v392_v32 = vmul.f32 %v334_v26, %v1277_v58  ;;  %v1790_v7 = vpop.eup %1006  ;;  %v513_v34 = vmul.f32 %v1730_v52, %v512_v18  ;;  %v579_v14 = vmul.f32 %v1783_v44, %v1718_v8  ;;  %v1799_v61 = vadd.f32 1e-05, %v389_v63 }
 0x128   :  { %v390_v41 = vmul.f32 %v328_v2, %v1277_v58  ;;  %v1802_v36 = vpop.eup %1008  ;;  %v841_v30 = vadd.f32 %v1585_v37, %v805_v11  ;;  %v537_v27 = vsel %vm536_vm6, %v1720_v47, %v533_v6  ;;  %vm585_vm8 = vweird.f32 %v1783_v44 }
 0x129   :  { %v559_v39 = vmul.f32 %v1790_v7, %v1728_v22  ;;  %v1011_v56 = vpop.eup %1010  ;;  %v767_v53 = vmul.f32 %v537_v27, %v1359_v43  ;;  %v517_v42 = vsel %vm516_vm7, %v1730_v52, %v513_v34  ;;  %v580_v48 = vmul.f32 %v1783_v44, %v579_v14  ;;  %vm1838_vm11 = vmor %vm584_vm3, %vm585_vm8 }
 0x12a   :  { %v539_v47 = vmul.f32 %v1802_v36, %v1736_v49  ;;  %873 = vst.msk [vmem:[%s2267_s3 + $0x58] sm:$0xff] %vm78_vm0, %v841_v30  ;;  %v765_v21 = vmul.f32 %v517_v42, %v1341_v57  ;;  %v609_v60 = vmul.f32 %v1011_v56, %v1745_v20  ;;  %v1825_v25 = vadd.f32 1e-05, %v387_v13 }
 0x12b   :  { %v560_v23 = vmul.f32 %v1790_v7, %v559_v39  ;;  %v803_v43 = vmul.f32 %v1568_v62, %v767_v53  ;;  %v581_v52 = vmul.f32 0.5, %v580_v48  ;;  %vm565_vm9 = vweird.f32 %v1790_v7 }
 0x12c   :  { %v540_v55 = vmul.f32 %v1802_v36, %v539_v47  ;;  %v801_v35 = vmul.f32 %v1568_v62, %v765_v21  ;;  %v610_v26 = vmul.f32 %v1011_v56, %v609_v60  ;;  %1012 = vrsqrt.f32 %v1799_v61  ;;  %v1851_v8 = vpop.xlane.xlu0 %336  ;;  %vm1862_vm13 = vmor %vm564_vm4, %vm565_vm9  ;;  %v343_v39 = vpop.xlane.xlu2 %342 }
 0x12d   :  { %v561_v29 = vmul.f32 0.5, %v560_v23  ;;  %v839_v57 = vadd.f32 %v1585_v37, %v803_v43  ;;  %v582_v4 = vsub.f32 1.5, %v581_v52  ;;  %vm615_vm10 = vweird.f32 %v1011_v56 }
 0x12e   :  { %v541_v28 = vmul.f32 0.5, %v540_v55  ;;  %v837_v63 = vadd.f32 %v1585_v37, %v801_v35  ;;  %v611_v13 = vmul.f32 0.5, %v610_v26  ;;  %1014 = vrsqrt.f32 %v1825_v25  ;;  %vm1876_vm15 = vmor %vm614_vm5, %vm615_vm10 }
 0x12f   :  { %v562_v18 = vsub.f32 1.5, %v561_v29  ;;  %871 = vst.msk [vmem:[%s2267_s3 + $0x48] sm:$0xff] %vm78_vm0, %v839_v57  ;;  %v583_v11 = vmul.f32 %v1783_v44, %v582_v4  ;;  %vm545_vm12 = vweird.f32 %v1802_v36  ;;  %v1849_v34 = vadd.f32 1e-05, %v394_v12 }
 0x130   :  { %v542_v6 = vsub.f32 1.5, %v541_v28  ;;  %869 = vst.msk [vmem:[%s2267_s3 + $0x38] sm:$0xff] %vm78_vm0, %v837_v63  ;;  %vm544_vm14 = vweird.f32 %v1736_v49  ;;  %v612_v12 = vsub.f32 1.5, %v611_v13  ;;  %v1867_v27 = vadd.f32 1e-05, %v392_v32  ;;  %v349_v32 = vpop.xlane.xlu1 %348 }
 0x131   :  { %v563_v14 = vmul.f32 %v1790_v7, %v562_v18  ;;  %v587_v53 = vsel %vm1838_vm11, %v1783_v44, %v583_v11  ;;  %1016 = vrsqrt.f32 %v1849_v34  ;;  %v1881_v49 = vadd.f32 1e-05, %v390_v41  ;;  %vm546_vm1 = vmor %vm544_vm14, %vm545_vm12 }
 0x132   :  { %v543_v42 = vmul.f32 %v1802_v36, %v542_v6  ;;  %v1883_v48 = vpop.eup %1012  ;;  %v772_v47 = vmul.f32 %v587_v53, %v1379_v59  ;;  %v613_v20 = vmul.f32 %v1011_v56, %v612_v12  ;;  %1018 = vrsqrt.f32 %v1867_v27 }
 0x133   :  { %v567_v44 = vsel %vm1862_vm13, %v1790_v7, %v563_v14  ;;  %v589_v23 = vmul.f32 %v1883_v48, %v1799_v61  ;;  %vm594_vm2 = vweird.f32 %v1799_v61  ;;  %vm574_vm3 = vweird.f32 %v1825_v25 }
 0x134   :  { %v770_v21 = vmul.f32 %v567_v44, %v1383_v17  ;;  %v547_v41 = vsel %vm546_vm1, %v1802_v36, %v543_v42  ;;  %v1896_v60 = vpop.eup %1014  ;;  %v808_v59 = vmul.f32 %v1568_v62, %v772_v47  ;;  %v617_v7 = vsel %vm1876_vm15, %v1011_v56, %v613_v20  ;;  %v1936_v6 = vpop.xlane.xlu0 %345 }
 0x135   :  { %v768_v43 = vmul.f32 %v547_v41, %v1365_v50  ;;  %v775_v17 = vmul.f32 %v617_v7, %v1403_v3  ;;  %v590_v36 = vmul.f32 %v1883_v48, %v589_v23  ;;  %v569_v55 = vmul.f32 %v1896_v60, %v1825_v25  ;;  %v352_v53 = vpop.xlane.xlu2 %351 }
 0x136   :  { %v806_v52 = vmul.f32 %v1568_v62, %v770_v21  ;;  %v844_v35 = vadd.f32 %v1585_v37, %v808_v59  ;;  %vm644_vm4 = vweird.f32 %v1849_v34  ;;  %1020 = vrsqrt.f32 %v1881_v49 }
 0x137   :  { %v804_v50 = vmul.f32 %v1568_v62, %v768_v43  ;;  %v1913_v56 = vpop.eup %1016  ;;  %v811_v3 = vmul.f32 %v1568_v62, %v775_v17  ;;  %v591_v26 = vmul.f32 0.5, %v590_v36  ;;  %v570_v57 = vmul.f32 %v1896_v60, %v569_v55 }
 0x138   :  { %v842_v29 = vadd.f32 %v1585_v37, %v806_v52  ;;  %v1918_v4 = vpop.eup %1018  ;;  %876 = vst.msk [vmem:[%s2267_s3 + $0x70] sm:$0xff] %vm78_vm0, %v844_v35  ;;  %vm595_vm5 = vweird.f32 %v1883_v48  ;;  %v639_v63 = vmul.f32 %v1913_v56, %v1849_v34  ;;  %vm624_vm6 = vweird.f32 %v1867_v27  ;;  %v358_v44 = vpop.xlane.xlu1 %357 }
 0x139   :  { %v840_v28 = vadd.f32 %v1585_v37, %v804_v50  ;;  %v847_v2 = vadd.f32 %v1585_v37, %v811_v3  ;;  %v592_v18 = vsub.f32 1.5, %v591_v26  ;;  %v571_v13 = vmul.f32 0.5, %v570_v57  ;;  %vm596_vm9 = vmor %vm594_vm2, %vm595_vm5 }
 0x13a   :  { %874 = vst.msk [vmem:[%s2267_s3 + $0x60] sm:$0xff] %vm78_vm0, %v842_v29  ;;  %v619_v11 = vmul.f32 %v1918_v4, %v1867_v27  ;;  %vm575_vm7 = vweird.f32 %v1896_v60  ;;  %v640_v14 = vmul.f32 %v1913_v56, %v639_v63  ;;  %v397_v30 = vmul.f32 %v349_v32, %v1277_v58 }
 0x13b   :  { %872 = vst.msk [vmem:[%s2267_s3 + $0x50] sm:$0xff] %vm78_vm0, %v840_v28  ;;  %v395_v12 = vmul.f32 %v343_v39, %v1277_v58  ;;  %v593_v42 = vmul.f32 %v1883_v48, %v592_v18  ;;  %v572_v22 = vsub.f32 1.5, %v571_v13  ;;  %vm645_vm8 = vweird.f32 %v1913_v56  ;;  %vm576_vm10 = vmor %vm574_vm3, %vm575_vm7 }
 0x13c   :  { %879 = vst.msk [vmem:[%s2267_s3 + $0x88] sm:$0xff] %vm78_vm0, %v847_v2  ;;  %v620_v47 = vmul.f32 %v1918_v4, %v619_v11  ;;  %v1021_v20 = vpop.eup %1020  ;;  %v641_v39 = vmul.f32 0.5, %v640_v14  ;;  %v1957_v32 = vadd.f32 1e-05, %v397_v30  ;;  %v393_v41 = vmul.f32 %v1851_v8, %v1277_v58  ;;  %vm1978_vm11 = vmor %vm644_vm4, %vm645_vm8  ;;  %v2002_v2 = vpop.xlane.xlu0 %354 }
 0x13d   :  { %v1959_v21 = vadd.f32 1e-05, %v395_v12  ;;  %v597_v23 = vsel %vm596_vm9, %v1883_v48, %v593_v42  ;;  %v573_v59 = vmul.f32 %v1896_v60, %v572_v22  ;;  %v599_v7 = vmul.f32 %v1021_v20, %v1881_v49 }
 0x13e   :  { %v621_v43 = vmul.f32 0.5, %v620_v47  ;;  %v773_v52 = vmul.f32 %v597_v23, %v1407_v51  ;;  %v642_v61 = vsub.f32 1.5, %v641_v39  ;;  %1022 = vrsqrt.f32 %v1957_v32 }
 0x13f   :  { %v400_v17 = vmul.f32 %v358_v44, %v1277_v58  ;;  %v577_v8 = vsel %vm576_vm10, %v1896_v60, %v573_v59  ;;  %vm625_vm12 = vweird.f32 %v1918_v4  ;;  %v600_v25 = vmul.f32 %v1021_v20, %v599_v7 }
 0x140   :  { %v622_v51 = vsub.f32 1.5, %v621_v43  ;;  %v809_v36 = vmul.f32 %v1568_v62, %v773_v52  ;;  %v771_v55 = vmul.f32 %v577_v8, %v1389_v19  ;;  %v643_v35 = vmul.f32 %v1913_v56, %v642_v61  ;;  %vm626_vm14 = vmor %vm624_vm6, %vm625_vm12  ;;  %v367_v44 = vpop.xlane.xlu1 %366 }
 0x141   :  { %1024 = vrsqrt.f32 %v1959_v21  ;;  %v601_v50 = vmul.f32 0.5, %v600_v25  ;;  %vm605_vm13 = vweird.f32 %v1021_v20  ;;  %v1988_v34 = vadd.f32 1e-05, %v393_v41 }
 0x142   :  { %v623_v60 = vmul.f32 %v1918_v4, %v622_v51  ;;  %v845_v29 = vadd.f32 %v1585_v37, %v809_v36  ;;  %v807_v3 = vmul.f32 %v1568_v62, %v771_v55  ;;  %v647_v26 = vsel %vm1978_vm11, %v1913_v56, %v643_v35 }
 0x143   :  { %v1997_v19 = vadd.f32 1e-05, %v400_v17  ;;  %v778_v57 = vmul.f32 %v647_v26, %v1427_v9  ;;  %v602_v63 = vsub.f32 1.5, %v601_v50  ;;  %1026 = vrsqrt.f32 %v1988_v34  ;;  %v361_v9 = vpop.xlane.xlu2 %360 }
 0x144   :  { %v627_v28 = vsel %vm626_vm14, %v1918_v4, %v623_v60  ;;  %v2004_v18 = vpop.eup %1022  ;;  %877 = vst.msk [vmem:[%s2267_s3 + $0x78] sm:$0xff] %vm78_vm0, %v845_v29  ;;  %v843_v27 = vadd.f32 %v1585_v37, %v807_v3  ;;  %vm604_vm15 = vweird.f32 %v1881_v49  ;;  %vm674_vm2 = vweird.f32 %v1957_v32  ;;  %v2078_v60 = vpop.xlane.xlu0 %363 }
 0x145   :  { %v776_v56 = vmul.f32 %v627_v28, %v1431_v1  ;;  %1028 = vrsqrt.f32 %v1997_v19  ;;  %v814_v4 = vmul.f32 %v1568_v62, %v778_v57  ;;  %v603_v13 = vmul.f32 %v1021_v20, %v602_v63  ;;  %vm606_vm1 = vmor %vm604_vm15, %vm605_vm13 }
 0x146   :  { %v669_v11 = vmul.f32 %v2004_v18, %v1957_v32  ;;  %875 = vst.msk [vmem:[%s2267_s3 + $0x68] sm:$0xff] %vm78_vm0, %v843_v27  ;;  %v398_v30 = vmul.f32 %v352_v53, %v1277_v58  ;;  %v396_v49 = vmul.f32 %v1936_v6, %v1277_v58  ;;  %vm654_vm3 = vweird.f32 %v1959_v21 }
 0x147   :  { %v2017_v14 = vpop.eup %1024  ;;  %v812_v1 = vmul.f32 %v1568_v62, %v776_v56  ;;  %v850_v12 = vadd.f32 %v1585_v37, %v814_v4  ;;  %v607_v42 = vsel %vm606_vm1, %v1021_v20, %v603_v13  ;;  %vm675_vm4 = vweird.f32 %v2004_v18 }
 0x148   :  { %v670_v22 = vmul.f32 %v2004_v18, %v669_v11  ;;  %v649_v47 = vmul.f32 %v2017_v14, %v1959_v21  ;;  %v774_v41 = vmul.f32 %v607_v42, %v1413_v15  ;;  %v2036_v23 = vadd.f32 1e-05, %v398_v30  ;;  %vm2068_vm7 = vmor %vm674_vm2, %vm675_vm4 }
 0x149   :  { %v848_v39 = vadd.f32 %v1585_v37, %v812_v1  ;;  %v2038_v53 = vpop.eup %1026  ;;  %882 = vst.msk [vmem:[%s2267_s3 + $0xa0] sm:$0xff] %vm78_vm0, %v850_v12  ;;  %v2046_v59 = vadd.f32 1e-05, %v396_v49  ;;  %vm634_vm5 = vweird.f32 %v1988_v34  ;;  %v403_v52 = vmul.f32 %v367_v44, %v1277_v58 }
 0x14a   :  { %v671_v6 = vmul.f32 0.5, %v670_v22  ;;  %v650_v20 = vmul.f32 %v2017_v14, %v649_v47  ;;  %v810_v15 = vmul.f32 %v1568_v62, %v774_v41  ;;  %v629_v7 = vmul.f32 %v2038_v53, %v1988_v34 }
 0x14b   :  { %v2048_v43 = vpop.eup %1028  ;;  %880 = vst.msk [vmem:[%s2267_s3 + $0x90] sm:$0xff] %vm78_vm0, %v848_v39  ;;  %1030 = vrsqrt.f32 %v2036_v23  ;;  %vm704_vm6 = vweird.f32 %v1997_v19  ;;  %vm655_vm8 = vweird.f32 %v2017_v14  ;;  %vm635_vm9 = vweird.f32 %v2038_v53  ;;  %v370_v3 = vpop.xlane.xlu2 %369 }
 0x14c   :  { %v672_v61 = vsub.f32 1.5, %v671_v6  ;;  %v651_v17 = vmul.f32 0.5, %v650_v20  ;;  %v699_v8 = vmul.f32 %v2048_v43, %v1997_v19  ;;  %v846_v48 = vadd.f32 %v1585_v37, %v810_v15  ;;  %vm656_vm12 = vmor %vm654_vm3, %vm655_vm8 }
 0x14d   :  { %v630_v25 = vmul.f32 %v2038_v53, %v629_v7  ;;  %1032 = vrsqrt.f32 %v2046_v59  ;;  %vm705_vm10 = vweird.f32 %v2048_v43  ;;  %v2085_v50 = vadd.f32 1e-05, %v403_v52  ;;  %vm636_vm14 = vmor %vm634_vm5, %vm635_vm9  ;;  %v373_v52 = vpop.xlane.xlu0 %372 }
 0x14e   :  { %v673_v36 = vmul.f32 %v2004_v18, %v672_v61  ;;  %v652_v55 = vsub.f32 1.5, %v651_v17  ;;  %v700_v35 = vmul.f32 %v2048_v43, %v699_v8  ;;  %878 = vst.msk [vmem:[%s2267_s3 + $0x80] sm:$0xff] %vm78_vm0, %v846_v48  ;;  %v401_v29 = vmul.f32 %v361_v9, %v1277_v58  ;;  %vm2114_vm13 = vmor %vm704_vm6, %vm705_vm10 }
 0x14f   :  { %v631_v32 = vmul.f32 0.5, %v630_v25  ;;  %vm684_vm11 = vweird.f32 %v2036_v23  ;;  %1034 = vrsqrt.f32 %v2085_v50  ;;  %v404_v11 = vmul.f32 %v370_v3, %v1277_v58 }
 0x150   :  { %v677_v26 = vsel %vm2068_vm7, %v2004_v18, %v673_v36  ;;  %v653_v57 = vmul.f32 %v2017_v14, %v652_v55  ;;  %v701_v28 = vmul.f32 0.5, %v700_v35  ;;  %v399_v18 = vmul.f32 %v2002_v2, %v1277_v58 }
 0x151   :  { %v2093_v63 = vpop.eup %1030  ;;  %v781_v27 = vmul.f32 %v677_v26, %v1451_v0  ;;  %v632_v56 = vsub.f32 1.5, %v631_v32  ;;  %vm664_vm15 = vweird.f32 %v2046_v59  ;;  %vm734_vm1 = vweird.f32 %v2085_v50 }
 0x152   :  { %v657_v9 = vsel %vm656_vm12, %v2017_v14, %v653_v57  ;;  %v702_v4 = vsub.f32 1.5, %v701_v28  ;;  %v679_v13 = vmul.f32 %v2093_v63, %v2036_v23  ;;  %v2118_v14 = vadd.f32 1e-05, %v401_v29 }
 0x153   :  { %v1033_v0 = vpop.eup %1032  ;;  %v817_v1 = vmul.f32 %v1568_v62, %v781_v27  ;;  %v779_v21 = vmul.f32 %v657_v9, %v1455_v24  ;;  %v633_v30 = vmul.f32 %v2038_v53, %v632_v56  ;;  %vm685_vm2 = vweird.f32 %v2093_v63 }
 0x154   :  { %v703_v49 = vmul.f32 %v2048_v43, %v702_v4  ;;  %v680_v24 = vmul.f32 %v2093_v63, %v679_v13  ;;  %v659_v12 = vmul.f32 %v1033_v0, %v2046_v59  ;;  %1036 = vrsqrt.f32 %v2118_v14  ;;  %vm686_vm5 = vmor %vm684_vm11, %vm685_vm2 }
 0x155   :  { %v853_v19 = vadd.f32 %v1585_v37, %v817_v1  ;;  %v815_v42 = vmul.f32 %v1568_v62, %v779_v21  ;;  %v637_v22 = vsel %vm636_vm14, %v2038_v53, %v633_v30  ;;  %v1035_v41 = vpop.eup %1034  ;;  %v2144_v20 = vadd.f32 1e-05, %v399_v18 }
 0x156   :  { %v777_v34 = vmul.f32 %v637_v22, %v1437_v16  ;;  %v707_v47 = vsel %vm2114_vm13, %v2048_v43, %v703_v49  ;;  %v681_v44 = vmul.f32 0.5, %v680_v24  ;;  %v660_v39 = vmul.f32 %v1033_v0, %v659_v12 }
 0x157   :  { %885 = vst.msk [vmem:[%s2267_s3 + $0xb8] sm:$0xff] %vm78_vm0, %v853_v19  ;;  %v851_v6 = vadd.f32 %v1585_v37, %v815_v42  ;;  %v784_v53 = vmul.f32 %v707_v47, %v1475_v38  ;;  %v729_v7 = vmul.f32 %v1035_v41, %v2085_v50  ;;  %vm665_vm3 = vweird.f32 %v1033_v0 }
 0x158   :  { %v813_v16 = vmul.f32 %v1568_v62, %v777_v34  ;;  %v682_v15 = vsub.f32 1.5, %v681_v44  ;;  %v661_v43 = vmul.f32 0.5, %v660_v39  ;;  %vm735_vm4 = vweird.f32 %v1035_v41  ;;  %vm666_vm6 = vmor %vm664_vm15, %vm665_vm3 }
 0x159   :  { %883 = vst.msk [vmem:[%s2267_s3 + $0xa8] sm:$0xff] %vm78_vm0, %v851_v6  ;;  %v820_v61 = vmul.f32 %v1568_v62, %v784_v53  ;;  %1038 = vrsqrt.f32 %v2144_v20  ;;  %v730_v48 = vmul.f32 %v1035_v41, %v729_v7  ;;  %v2161_v36 = vadd.f32 1e-05, %v404_v11  ;;  %vm2188_vm7 = vmor %vm734_vm1, %vm735_vm4 }
 0x15a   :  { %v849_v38 = vadd.f32 %v1585_v37, %v813_v16  ;;  %v683_v17 = vmul.f32 %v2093_v63, %v682_v15  ;;  %v662_v8 = vsub.f32 1.5, %v661_v43  ;;  %v1037_v51 = vpop.eup %1036  ;;  %v402_v55 = vmul.f32 %v2078_v60, %v1277_v58 }
 0x15b   :  { %v856_v25 = vadd.f32 %v1585_v37, %v820_v61  ;;  %v405_v35 = vmul.f32 %v373_v52, %v1277_v58  ;;  %v731_v3 = vmul.f32 0.5, %v730_v48  ;;  %v709_v26 = vmul.f32 %v1037_v51, %v2118_v14 }
 0x15c   :  { %881 = vst.msk [vmem:[%s2267_s3 + $0x98] sm:$0xff] %vm78_vm0, %v849_v38  ;;  %v687_v32 = vsel %vm686_vm5, %v2093_v63, %v683_v17  ;;  %v663_v29 = vmul.f32 %v1033_v0, %v662_v8  ;;  %1040 = vrsqrt.f32 %v2161_v36  ;;  %v2181_v28 = vadd.f32 1e-05, %v402_v55 }
 0x15d   :  { %888 = vst.msk [vmem:[%s2267_s3 + $0xd0] sm:$0xff] %vm78_vm0, %v856_v25  ;;  %v782_v23 = vmul.f32 %v687_v32, %v1479_v40  ;;  %v732_v60 = vsub.f32 1.5, %v731_v3  ;;  %v710_v57 = vmul.f32 %v1037_v51, %v709_v26  ;;  %v2192_v59 = vadd.f32 1e-05, %v405_v35 }
 0x15e   :  { %v667_v58 = vsel %vm666_vm6, %v1033_v0, %v663_v29  ;;  %vm714_vm8 = vweird.f32 %v2118_v14  ;;  %vm715_vm9 = vweird.f32 %v1037_v51  ;;  %1042 = vrsqrt.f32 %v2181_v28 }
 0x15f   :  { %v1039_v63 = vpop.eup %1038  ;;  %v818_v27 = vmul.f32 %v1568_v62, %v782_v23  ;;  %v780_v56 = vmul.f32 %v667_v58, %v1461_v5  ;;  %v733_v18 = vmul.f32 %v1035_v41, %v732_v60  ;;  %v711_v9 = vmul.f32 0.5, %v710_v57  ;;  %vm716_vm10 = vmor %vm714_vm8, %vm715_vm9  ;;  %v1047_v60 = vld [vmem:[%s2266_s2] ss:$0 sm:$0xff] }
 0x160   :  { %v689_v4 = vmul.f32 %v1039_v63, %v2144_v20  ;;  %1044 = vrsqrt.f32 %v2192_v59  ;;  %vm695_vm11 = vweird.f32 %v1039_v63  ;;  %vm694_vm12 = vweird.f32 %v2144_v20 }
 0x161   :  { %v854_v13 = vadd.f32 %v1585_v37, %v818_v27  ;;  %v816_v11 = vmul.f32 %v1568_v62, %v780_v56  ;;  %v737_v5 = vsel %vm2188_vm7, %v1035_v41, %v733_v18  ;;  %v712_v50 = vsub.f32 1.5, %v711_v9  ;;  %vm696_vm13 = vmor %vm694_vm12, %vm695_vm11 }
 0x162   :  { %v690_v0 = vmul.f32 %v1039_v63, %v689_v4  ;;  %v1041_v1 = vpop.eup %1040  ;;  %v787_v30 = vmul.f32 %v737_v5, %v1499_v31  ;;  %vm744_vm14 = vweird.f32 %v2161_v36  ;;  %vm724_vm4 = vweird.f32 %v2181_v28 }
 0x163   :  { %886 = vst.msk [vmem:[%s2267_s3 + $0xc0] sm:$0xff] %vm78_vm0, %v854_v13  ;;  %v852_v21 = vadd.f32 %v1585_v37, %v816_v11  ;;  %v713_v2 = vmul.f32 %v1037_v51, %v712_v50  ;;  %v739_v24 = vmul.f32 %v1041_v1, %v2161_v36  ;;  %vm745_vm15 = vweird.f32 %v1041_v1 }
 0x164   :  { %v691_v49 = vmul.f32 0.5, %v690_v0  ;;  %v823_v12 = vmul.f32 %v1568_v62, %v787_v30  ;;  %v1043_v31 = vpop.eup %1042  ;;  %vm746_vm1 = vmor %vm744_vm14, %vm745_vm15  ;;  %vm754_vm6 = vweird.f32 %v2192_v59 }
 0x165   :  { %884 = vst.msk [vmem:[%s2267_s3 + $0xb0] sm:$0xff] %vm78_vm0, %v852_v21  ;;  %v717_v19 = vsel %vm716_vm10, %v1037_v51, %v713_v2  ;;  %v740_v22 = vmul.f32 %v1041_v1, %v739_v24  ;;  %v719_v6 = vmul.f32 %v1043_v31, %v2181_v28  ;;  %vm725_vm2 = vweird.f32 %v1043_v31 }
 0x166   :  { %v692_v42 = vsub.f32 1.5, %v691_v49  ;;  %v859_v34 = vadd.f32 %v1585_v37, %v823_v12  ;;  %v785_v47 = vmul.f32 %v717_v19, %v1503_v46  ;;  %v1045_v44 = vpop.eup %1044  ;;  %vm726_vm5 = vmor %vm724_vm4, %vm725_vm2 }
 0x167   :  { %v741_v41 = vmul.f32 0.5, %v740_v22  ;;  %v749_v53 = vmul.f32 %v1045_v44, %v2192_v59  ;;  %v720_v15 = vmul.f32 %v1043_v31, %v719_v6  ;;  %vm755_vm3 = vweird.f32 %v1045_v44 }
 0x168   :  { %v693_v39 = vmul.f32 %v1039_v63, %v692_v42  ;;  %891 = vst.msk [vmem:[%s2267_s3 + $0xe8] sm:$0xff] %vm78_vm0, %v859_v34  ;;  %v821_v14 = vmul.f32 %v1568_v62, %v785_v47  ;;  %vm756_vm7 = vmor %vm754_vm6, %vm755_vm3 }
 0x169   :  { %v742_v16 = vsub.f32 1.5, %v741_v41  ;;  %v750_v7 = vmul.f32 %v1045_v44, %v749_v53  ;;  %v721_v61 = vmul.f32 0.5, %v720_v15 }
 0x16a   :  { %v697_v46 = vsel %vm696_vm13, %v1039_v63, %v693_v39  ;;  %v857_v20 = vadd.f32 %v1585_v37, %v821_v14 }
 0x16b   :  { %v783_v43 = vmul.f32 %v697_v46, %v1485_v10  ;;  %v743_v52 = vmul.f32 %v1041_v1, %v742_v16  ;;  %v751_v17 = vmul.f32 0.5, %v750_v7  ;;  %v722_v48 = vsub.f32 1.5, %v721_v61 }
 0x16c   :  { %889 = vst.msk [vmem:[%s2267_s3 + $0xd8] sm:$0xff] %vm78_vm0, %v857_v20 }
 0x16d   :  { %v819_v38 = vmul.f32 %v1568_v62, %v783_v43  ;;  %v747_v8 = vsel %vm746_vm1, %v1041_v1, %v743_v52  ;;  %v752_v10 = vsub.f32 1.5, %v751_v17  ;;  %v723_v36 = vmul.f32 %v1043_v31, %v722_v48  ;;  %v1046_v62 = vld [vmem:[%s2265_s1] ss:$0 sm:$0xff] }
 0x16e   :  { %v788_v25 = vmul.f32 %v747_v8, %v1522_v54 }
 0x16f   :  { %v855_v51 = vadd.f32 %v1585_v37, %v819_v38  ;;  %v753_v35 = vmul.f32 %v1045_v44, %v752_v10  ;;  %v727_v54 = vsel %vm726_vm5, %v1043_v31, %v723_v36 }
 0x170   :  { %v824_v55 = vmul.f32 %v1046_v62, %v788_v25  ;;  %v786_v29 = vmul.f32 %v727_v54, %v1509_v33 }
 0x171   :  { %887 = vst.msk [vmem:[%s2267_s3 + $0xc8] sm:$0xff] %vm78_vm0, %v855_v51  ;;  %v757_v3 = vsel %vm756_vm7, %v1045_v44, %v753_v35 }
 0x172   :  { %v860_v32 = vadd.f32 %v1585_v37, %v824_v55  ;;  %v789_v26 = vmul.f32 %v757_v3, %v1526_v45  ;;  %v822_v23 = vmul.f32 %v1046_v62, %v786_v29 }
 0x174   :  { %892 = vst.msk [vmem:[%s2267_s3 + $0xf0] sm:$0xff] %vm78_vm0, %v860_v32  ;;  %v825_v58 = vmul.f32 %v1046_v62, %v789_v26  ;;  %v858_v57 = vadd.f32 %v1047_v60, %v822_v23 }
 0x176   :  { %v861_v28 = vadd.f32 %v1047_v60, %v825_v58  ;;  %890 = vst.msk [vmem:[%s2267_s3 + $0xe0] sm:$0xff] %vm78_vm0, %v858_v57 }
 0x178   :  { %893 = vst.msk [vmem:[%s2267_s3 + $0xf8] sm:$0xff] %vm78_vm0, %v861_v28 }

// kernel: vision_transformer_forward.25
= control target key start
LH: loop header
LB: loop body
LE: loop exit
PB: predicated region body
PF: predicated region fallthrough
CT: control target
= control target key end

     0   :  { %vm36_vm0 = vcmask 261120   ;;  %s108_s1 = inlined_call_operand.vmem [shape: bf16[32,32], index: 1, kind: input, shape index: {}]   ;;  %s109_s2 = inlined_call_operand.vmem [shape: f32[1,32], index: 2, kind: input, shape index: {}]   ;;  %s110_s0 = inlined_call_operand.vmem [shape: bf16[8,32], index: 0, kind: input, shape index: {}]   ;;  %s111_s3 = inlined_call_operand.vmem [shape: f32[8,32], index: 3, kind: output, shape index: {}]  }
   0x1   :  { %v69_v0 = vld [vmem:[%s108_s1 + $0x8] sm:$0xff]  ;;  %v68_v1 = vld [vmem:[%s108_s1] sm:$0xff] }
   0x2   :  { %46 = vmatpush.bf16.msra.mxu0 %v69_v0  ;;  %v15_v2 = vld [vmem:[%s110_s0] sm:$0xf] }
   0x3   :  { %v70_v3 = vld [vmem:[%s109_s2] ss:$0 sm:$0xff] }
   0x6   :  { %47 = vmatpush.bf16.msra.mxu0 %v68_v1 }
   0x9   :  { %67 = vmatmul.msk.bf16.vlgmr.msra.gmra.mxu0 %vm36_vm0, %v15_v2 }
  0x86   :  { %v49_v4 = vpop.f32.mrf.mxu0 }
  0x87   :  { %v50_v5 = vadd.f32 %v70_v3, %v49_v4 }
  0x89   :  { %71 = vtanh.f32 %v50_v5 }
  0x8e   :  { %v51_v6 = vpop.f32.mrf.mxu0 }
  0x8f   :  { %v72_v7 = vpop.eup %71 }
  0x90   :  { %54 = vst.msk [vmem:[%s111_s3] sm:$0xff] %vm36_vm0, %v72_v7 }

</bundles_post_ra>
